<compile_context>
chip_gen: v7x
topology: tpu7x:2x2x1
jax: 0.10.0
libtpu: 0.0.40
codegen_flags: <defaults>
</compile_context>

<pallas_src>
import math
import functools
import numpy as np
import jax
import jax.numpy as jnp
from jax import lax
from jax.experimental import pallas as pl
from jax.experimental.pallas import tpu as pltpu

_SQRT1_2 = 0.7071067811865476
_SQRT_2_OVER_PI = 0.7978845608028654


# ---------------------------------------------------------------------------
# Fully fused kernel (one grid step = one spatial row tile of one image).
# All channel-indexed data is in "permuted" order k = j*Cin + ic.
# ---------------------------------------------------------------------------
def _drfd_kernel(xpp_ref, w1_ref, wx_ref, pc_ref, wfuse_ref, bfuse_ref, o_ref,
                 xe_ref, yb_ref, *, n_row_tiles, mult):
    # xpp_ref : (1, 4, T2+2, W2+2, Cin)  parity planes of x padded by 2 (plane = 2*u+v)
    # w1_ref  : (9, 1, 1, Cout)          stage-A taps (grouped conv as depthwise on expanded lanes)
    # wx_ref  : (9, 1, 1, Cout)          stage-B depthwise stride-2 taps
    # pc_ref  : (6, 1, 1, Cout)          [b1, bx, sx, ox, sm, om]
    # wfuse   : (4*Cin+2*Cout, Cout)     stacked fusion weight (Cut conv+BN folded in), bf16
    # bfuse   : (1, Cout)                fused bias, f32
    # o_ref   : (1, T2*W2, Cout)
    # xe_ref  : (4, T2+2, W2+2, Cout)    VMEM scratch: lane-expanded input parity planes (f32)
    # yb_ref  : (4, T2+1, W2+1, Cout)    VMEM scratch: parity planes of padded stage-A output (bf16)
    f32 = jnp.float32
    T2 = xpp_ref.shape[2] - 2
    W2 = xpp_ref.shape[3] - 2
    Cout = o_ref.shape[2]

    b1, bx, sx, ox, sm, om = (pc_ref[i] for i in range(6))   # each (1, 1, Cout)

    # ---- expand the 4 input parity planes from Cin to Cout lanes (grouped -> depthwise) ----
    for p in range(4):
        plane = xpp_ref[0, p]
        if mult > 1:
            plane = jnp.concatenate([plane] * mult, axis=-1)
        xe_ref[p] = plane

    # ---- stage A: depthwise 3x3 / stride-1 conv, emitted directly as the 4 parity planes of
    #      the zero-padded conv output:  yb[r,s][a,b] = y_pad[2a+r-1, 2b+s-1] ----
    col_keep = lax.broadcasted_iota(jnp.int32, (1, W2 + 1, 1), 1) != 0
    for r in (0, 1):
        for s in (0, 1):
            acc = jnp.zeros((T2 + 1, W2 + 1, Cout), f32)
            for dy in range(3):
                for dx in range(3):
                    p = 2 * ((r + dy) % 2) + ((s + dx) % 2)
                    a0, b0 = (r + dy) // 2, (s + dx) // 2
                    acc = acc + (xe_ref[p, pl.ds(a0, T2 + 1), pl.ds(b0, W2 + 1), :]
                                 * w1_ref[3 * dy + dx])
            plane = acc + b1
            if s == 0:                                   # left padding column (gx = -1)
                plane = jnp.where(col_keep, plane, 0.0)
            yb_ref[2 * r + s] = plane.astype(yb_ref.dtype)

    # top padding row (gy = -1) only exists in the first row tile of each image
    def _zero_top_row():
        zr = jnp.zeros((1, W2 + 1, Cout), yb_ref.dtype)
        yb_ref[0, pl.ds(0, 1)] = zr
        yb_ref[1, pl.ds(0, 1)] = zr
    if n_row_tiles == 1:
        _zero_top_row()
    else:
        pl.when((pl.program_id(0) % n_row_tiles) == 0)(_zero_top_row)

    # ---- stage B: depthwise 3x3 / stride-2 conv + GELU + BN_x ----
    acc = jnp.zeros((T2, W2, Cout), f32)
    for dy in range(3):
        for dx in range(3):
            p = 2 * (dy % 2) + (dx % 2)
            patch = yb_ref[p, pl.ds(dy // 2, T2), pl.ds(dx // 2, W2), :].astype(f32)
            acc = acc + patch * wx_ref[3 * dy + dx]
    t = acc + bx
    # tanh-form GELU: one EUP tanh instead of the erf series (abs err ~3e-4, below bf16 noise)
    g = 0.5 * t * (1.0 + jnp.tanh(_SQRT_2_OVER_PI * (t + 0.044715 * (t * t * t))))
    xs = g * sx + ox

    # ---- 2x2 maxpool / stride 2 + BN_m (padding rows/cols are never read) ----
    m00 = yb_ref[3, pl.ds(0, T2), pl.ds(0, W2), :]
    m01 = yb_ref[2, pl.ds(0, T2), pl.ds(1, W2), :]
    m10 = yb_ref[1, pl.ds(1, T2), pl.ds(0, W2), :]
    m11 = yb_ref[0, pl.ds(1, T2), pl.ds(1, W2), :]
    m = jnp.maximum(jnp.maximum(m00, m01), jnp.maximum(m10, m11)).astype(f32)
    ms = m * sm + om

    # ---- Cut space-to-depth input (order x0,x1,x2,x3 = offsets (0,0),(1,0),(0,1),(1,1)) ----
    cc = jnp.concatenate(
        [xpp_ref[0, 2 * u + v, pl.ds(1, T2), pl.ds(1, W2), :]
         for (u, v) in ((0, 0), (1, 0), (0, 1), (1, 1))], axis=-1)

    # ---- stage C: single fused matmul  out = [cc | xs | ms] @ [W_cx; Wf_x; Wf_m] + b ----
    dt = wfuse_ref.dtype
    op = jnp.concatenate([cc.astype(dt), xs.astype(dt), ms.astype(dt)], axis=-1)
    op = op.reshape(T2 * W2, op.shape[-1])
    out = jnp.dot(op, wfuse_ref[...], preferred_element_type=f32) + bfuse_ref[...]
    o_ref[0] = out.astype(o_ref.dtype)


# ---------------------------------------------------------------------------
# Helpers
# ---------------------------------------------------------------------------
def _pick_row_tile(h2, w2, cin, cout, budget_bytes=24 * 1024 * 1024):
    # per-row VMEM residency of the fused kernel (double-buffered blocks + scratches + temps)
    per_row = (2 * 4 * (w2 + 2) * cin * 4         # input parity planes (x2 pipeline buffers)
               + 4 * (w2 + 2) * cout * 4          # lane-expanded planes (f32 scratch)
               + 4 * (w2 + 1) * cout * 2          # stage-A output parity planes (bf16 scratch)
               + 2 * w2 * cout * 4                # output block (x2 pipeline buffers)
               + w2 * (4 * cin + 2 * cout) * 2    # fused matmul operand
               + 4 * w2 * cout * 4)               # accumulators / headroom
    t = max(1, min(h2, budget_bytes // max(per_row, 1)))
    while h2 % t:
        t -= 1
    return int(t)


# ---------------------------------------------------------------------------
# Wrapper
# ---------------------------------------------------------------------------
def drfd_forward(x, params, interm_dtype=jnp.bfloat16):
    B, L, Cin = x.shape
    H = W = int(math.isqrt(L))
    assert H * W == L and H % 2 == 0
    Cout = params['conv_w'].shape[0]
    assert Cout % Cin == 0
    mult = Cout // Cin
    H2, W2 = H // 2, W // 2
    N2 = H2 * W2
    eps = 1e-5
    f32 = jnp.float32

    x_nhwc = x.astype(f32).reshape(B, H, W, Cin)

    # channel permutation: kernel channel k = j*Cin + ic  <->  original oc = ic*mult + j
    old_idx = np.array([(k % Cin) * mult + (k // Cin) for k in range(Cout)], np.int32)

    def bn_fold(prefix):
        g, b, m, v = (params[prefix + s] for s in ('_g', '_b', '_m', '_v'))
        s = g / jnp.sqrt(v + eps)
        return s, b - m * s

    # ---- stage A / B weights (permuted, depthwise over expanded lanes) ----
    w1p = params['conv_w'].reshape(Cout, 9)[old_idx].transpose(1, 0).reshape(9, 1, 1, Cout)
    wxp = params['convx_w'].reshape(Cout, 9)[old_idx].transpose(1, 0).reshape(9, 1, 1, Cout)
    sx, ox = bn_fold('bnx')
    sm, om = bn_fold('bnm')
    pc = jnp.stack([params['conv_b'][old_idx],
                    params['convx_b'][old_idx],
                    sx[old_idx], ox[old_idx],
                    sm[old_idx], om[old_idx]], axis=0).reshape(6, 1, 1, Cout)

    # ---- stage C: Cut (conv1x1 + BN) folded into the fusion matmul; weights stacked ----
    sc, occ = bn_fold('bnc')
    wc = params['cut_w'][:, :, 0, 0]                      # (Cout, 4*Cin)
    wc_fold = jnp.transpose(wc) * sc[None, :]             # (4*Cin, Cout)
    bc_fold = params['cut_b'] * sc + occ                  # (Cout,)

    wf = params['fusion_w'][:, :, 0, 0]                   # (Cout, 3*Cout)
    wf_c = jnp.transpose(wf[:, :Cout])                    # (Cout, Cout)
    wf_x = jnp.transpose(wf[:, Cout:2 * Cout])[old_idx]   # rows permuted to kernel order
    wf_m = jnp.transpose(wf[:, 2 * Cout:])[old_idx]
    w_fuse = jnp.concatenate([wc_fold @ wf_c, wf_x, wf_m], axis=0).astype(interm_dtype)
    b_fuse = (bc_fold @ wf_c + params['fusion_b']).reshape(1, Cout).astype(f32)

    # ---- parity planes of x (padded by 2), row-tiled with a 2-row halo ----
    T2 = _pick_row_tile(H2, W2, Cin, Cout)
    n_t = H2 // T2
    x_pad2 = jnp.pad(x_nhwc, ((0, 0), (2, 2), (2, 2), (0, 0)))
    xpp = x_pad2.reshape(B, H2 + 2, 2, W2 + 2, 2, Cin).transpose(0, 2, 4, 1, 3, 5)
    xpp = xpp.reshape(B, 4, H2 + 2, W2 + 2, Cin)
    if n_t > 1:
        ridx = np.arange(n_t)[:, None] * T2 + np.arange(T2 + 2)[None, :]
        xpp_t = xpp[:, :, ridx].transpose(0, 2, 1, 3, 4, 5)
        xpp_t = xpp_t.reshape(B * n_t, 4, T2 + 2, W2 + 2, Cin)
    else:
        xpp_t = xpp

    BN = B * n_t
    K = 4 * Cin + 2 * Cout

    def full(shape):
        n = len(shape)
        return pl.BlockSpec(tuple(shape), lambda i, _n=n: (0,) * _n)

    out_t = pl.pallas_call(
        functools.partial(_drfd_kernel, n_row_tiles=n_t, mult=mult),
        out_shape=jax.ShapeDtypeStruct((BN, T2 * W2, Cout), f32),
        grid=(BN,),
        in_specs=[pl.BlockSpec((1, 4, T2 + 2, W2 + 2, Cin), lambda i: (i, 0, 0, 0, 0)),
                  full((9, 1, 1, Cout)),
                  full((9, 1, 1, Cout)),
                  full((6, 1, 1, Cout)),
                  full((K, Cout)),
                  full((1, Cout))],
        out_specs=pl.BlockSpec((1, T2 * W2, Cout), lambda i: (i, 0, 0)),
        scratch_shapes=[pltpu.VMEM((4, T2 + 2, W2 + 2, Cout), jnp.float32),
                        pltpu.VMEM((4, T2 + 1, W2 + 1, Cout), interm_dtype)],
        compiler_params=pltpu.CompilerParams(
            dimension_semantics=("parallel",),
            vmem_limit_bytes=48 * 1024 * 1024),
    )(xpp_t, w1p, wxp, pc, w_fuse, b_fuse)

    return out_t.reshape(B, N2, Cout)


# ---------------------------------------------------------------------------
# Pure-JAX reference (correctness check)
# ---------------------------------------------------------------------------
def drfd_reference(x, params):
    eps = 1e-5
    B, L, Cin = x.shape
    H = W = int(math.isqrt(L))
    Cout = params['conv_w'].shape[0]
    xi = x.reshape(B, H, W, Cin).transpose(0, 3, 1, 2)  # NCHW
    dn = ('NCHW', 'OIHW', 'NCHW')

    def bn(v, prefix):
        g, b, m, va = (params[prefix + s] for s in ('_g', '_b', '_m', '_v'))
        sh = (1, -1, 1, 1)
        return (v - m.reshape(sh)) / jnp.sqrt(va.reshape(sh) + eps) * g.reshape(sh) + b.reshape(sh)

    conv = lax.conv_general_dilated(xi, params['conv_w'], (1, 1), ((1, 1), (1, 1)),
                                    feature_group_count=Cin, dimension_numbers=dn)
    conv = conv + params['conv_b'].reshape(1, -1, 1, 1)
    m = conv

    c = jnp.concatenate([xi[:, :, 0::2, 0::2], xi[:, :, 1::2, 0::2],
                         xi[:, :, 0::2, 1::2], xi[:, :, 1::2, 1::2]], axis=1)
    c = lax.conv_general_dilated(c, params['cut_w'], (1, 1), ((0, 0), (0, 0)), dimension_numbers=dn)
    c = bn(c + params['cut_b'].reshape(1, -1, 1, 1), 'bnc')

    xx = lax.conv_general_dilated(conv, params['convx_w'], (2, 2), ((1, 1), (1, 1)),
                                  feature_group_count=Cout, dimension_numbers=dn)
    xx = xx + params['convx_b'].reshape(1, -1, 1, 1)
    xx = 0.5 * xx * (1.0 + jax.scipy.special.erf(xx * _SQRT1_2))   # exact GELU
    xx = bn(xx, 'bnx')

    mp = m.reshape(B, Cout, H // 2, 2, W // 2, 2).max(axis=(3, 5))
    mp = bn(mp, 'bnm')

    cat = jnp.concatenate([c, xx, mp], axis=1)
    out = lax.conv_general_dilated(cat, params['fusion_w'], (1, 1), ((0, 0), (0, 0)),
                                   dimension_numbers=dn)
    out = out + params['fusion_b'].reshape(1, -1, 1, 1)
    return out.reshape(B, Cout, (H // 2) * (W // 2)).transpose(0, 2, 1)


def init_params(key, Cin, Cout):
    ks = jax.random.split(key, 12)

    def nrm(k, shape, s=0.2):
        return s * jax.random.normal(k, shape, jnp.float32)

    p = {
        'conv_w': nrm(ks[0], (Cout, 1, 3, 3)),
        'conv_b': nrm(ks[1], (Cout,), 0.1),
        'convx_w': nrm(ks[2], (Cout, 1, 3, 3)),
        'convx_b': nrm(ks[3], (Cout,), 0.1),
        'cut_w': nrm(ks[4], (Cout, 4 * Cin, 1, 1)),
        'cut_b': nrm(ks[5], (Cout,), 0.1),
        'fusion_w': nrm(ks[6], (Cout, 3 * Cout, 1, 1)),
        'fusion_b': nrm(ks[7], (Cout,), 0.1),
    }
    for i, pref in enumerate(('bnc', 'bnx', 'bnm')):
        kk = jax.random.split(ks[8 + i], 4)
        p[pref + '_g'] = 1.0 + 0.1 * jax.random.normal(kk[0], (Cout,), jnp.float32)
        p[pref + '_b'] = 0.1 * jax.random.normal(kk[1], (Cout,), jnp.float32)
        p[pref + '_m'] = 0.1 * jax.random.normal(kk[2], (Cout,), jnp.float32)
        p[pref + '_v'] = 1.0 + 0.1 * jnp.abs(jax.random.normal(kk[3], (Cout,), jnp.float32))
    return p


if __name__ == "__main__":
    B, Cin, Cout, H = 2, 4, 8, 16      # out_channels must be a multiple of in_channels (groups)
    L = H * H
    key = jax.random.PRNGKey(0)
    kx, kp = jax.random.split(key)
    x = jax.random.normal(kx, (B, L, Cin), jnp.float32)
    params = init_params(kp, Cin, Cout)

    out = jax.jit(drfd_forward)(x, params)
    out = jax.block_until_ready(out)

    ref = drfd_reference(x, params)
    assert out.shape == (B, L // 4, Cout)
    # bf16 intermediates + tanh GELU -> ~1e-2 level differences vs the pure-f32 reference
    np.testing.assert_allclose(np.asarray(out), np.asarray(ref), rtol=3e-2, atol=3e-2)
    print("KERNEL_OK")
</pallas_src>

<mosaic_0001>
module attributes {stable_mosaic.version = 11 : i64} {
  func.func @_drfd_kernel(%arg0: i32, %arg1: memref<1x4x10x10x4xf32, #tpu.memory_space<vmem>>, %arg2: memref<9x1x1x8xf32, #tpu.memory_space<vmem>>, %arg3: memref<9x1x1x8xf32, #tpu.memory_space<vmem>>, %arg4: memref<6x1x1x8xf32, #tpu.memory_space<vmem>>, %arg5: memref<32x8xbf16, #tpu.memory_space<vmem>>, %arg6: memref<1x8xf32, #tpu.memory_space<vmem>>, %arg7: memref<1x64x8xf32, #tpu.memory_space<vmem>>, %arg8: memref<4x10x10x8xf32, #tpu.memory_space<vmem>>, %arg9: memref<4x9x9x8xbf16, #tpu.memory_space<vmem>>) attributes {dimension_semantics = [#tpu.dimension_semantics<parallel>], iteration_bounds = array<i64: 2>, scalar_prefetch = 0 : i64, scratch_operands = 2 : i64, tpu.core_type = #tpu.core_type<tc>, window_params = [{transform_indices = @transform_0, window_bounds = array<i64: 1, 4, 10, 10, 4>}, {pipeline_mode = #tpu.pipeline_mode<synchronous>, transform_indices = @transform_1, window_bounds = array<i64: 9, 1, 1, 8>}, {pipeline_mode = #tpu.pipeline_mode<synchronous>, transform_indices = @transform_2, window_bounds = array<i64: 9, 1, 1, 8>}, {pipeline_mode = #tpu.pipeline_mode<synchronous>, transform_indices = @transform_3, window_bounds = array<i64: 6, 1, 1, 8>}, {pipeline_mode = #tpu.pipeline_mode<synchronous>, transform_indices = @transform_4, window_bounds = array<i64: 32, 8>}, {pipeline_mode = #tpu.pipeline_mode<synchronous>, transform_indices = @transform_5, window_bounds = array<i64: 1, 8>}, {transform_indices = @transform_6, window_bounds = array<i64: 1, 64, 8>}]} {
    %c0 = arith.constant 0 : index
    %c0_0 = arith.constant 0 : index
    %c0_1 = arith.constant 0 : index
    %c0_2 = arith.constant 0 : index
    %0 = vector.load %arg4[%c0, %c0_0, %c0_1, %c0_2] : memref<6x1x1x8xf32, #tpu.memory_space<vmem>>, vector<1x1x1x8xf32>
    %1 = vector.shape_cast %0 : vector<1x1x1x8xf32> to vector<1x1x8xf32>
    %c1 = arith.constant 1 : index
    %c0_3 = arith.constant 0 : index
    %c0_4 = arith.constant 0 : index
    %c0_5 = arith.constant 0 : index
    %2 = vector.load %arg4[%c1, %c0_3, %c0_4, %c0_5] : memref<6x1x1x8xf32, #tpu.memory_space<vmem>>, vector<1x1x1x8xf32>
    %3 = vector.shape_cast %2 : vector<1x1x1x8xf32> to vector<1x1x8xf32>
    %c2 = arith.constant 2 : index
    %c0_6 = arith.constant 0 : index
    %c0_7 = arith.constant 0 : index
    %c0_8 = arith.constant 0 : index
    %4 = vector.load %arg4[%c2, %c0_6, %c0_7, %c0_8] : memref<6x1x1x8xf32, #tpu.memory_space<vmem>>, vector<1x1x1x8xf32>
    %5 = vector.shape_cast %4 : vector<1x1x1x8xf32> to vector<1x1x8xf32>
    %c3 = arith.constant 3 : index
    %c0_9 = arith.constant 0 : index
    %c0_10 = arith.constant 0 : index
    %c0_11 = arith.constant 0 : index
    %6 = vector.load %arg4[%c3, %c0_9, %c0_10, %c0_11] : memref<6x1x1x8xf32, #tpu.memory_space<vmem>>, vector<1x1x1x8xf32>
    %7 = vector.shape_cast %6 : vector<1x1x1x8xf32> to vector<1x1x8xf32>
    %c4 = arith.constant 4 : index
    %c0_12 = arith.constant 0 : index
    %c0_13 = arith.constant 0 : index
    %c0_14 = arith.constant 0 : index
    %8 = vector.load %arg4[%c4, %c0_12, %c0_13, %c0_14] : memref<6x1x1x8xf32, #tpu.memory_space<vmem>>, vector<1x1x1x8xf32>
    %9 = vector.shape_cast %8 : vector<1x1x1x8xf32> to vector<1x1x8xf32>
    %c5 = arith.constant 5 : index
    %c0_15 = arith.constant 0 : index
    %c0_16 = arith.constant 0 : index
    %c0_17 = arith.constant 0 : index
    %10 = vector.load %arg4[%c5, %c0_15, %c0_16, %c0_17] : memref<6x1x1x8xf32, #tpu.memory_space<vmem>>, vector<1x1x1x8xf32>
    %11 = vector.shape_cast %10 : vector<1x1x1x8xf32> to vector<1x1x8xf32>
    %c0_18 = arith.constant 0 : index
    %c0_19 = arith.constant 0 : index
    %c0_20 = arith.constant 0 : index
    %c0_21 = arith.constant 0 : index
    %c0_22 = arith.constant 0 : index
    %12 = vector.load %arg1[%c0_18, %c0_19, %c0_20, %c0_21, %c0_22] : memref<1x4x10x10x4xf32, #tpu.memory_space<vmem>>, vector<1x1x10x10x4xf32>
    %13 = vector.shape_cast %12 : vector<1x1x10x10x4xf32> to vector<10x10x4xf32>
    %14 = tpu.concatenate %13, %13 in 2 : vector<10x10x4xf32>, vector<10x10x4xf32> -> vector<10x10x8xf32>
    %c0_23 = arith.constant 0 : index
    %c0_24 = arith.constant 0 : index
    %c0_25 = arith.constant 0 : index
    %c0_26 = arith.constant 0 : index
    %15 = vector.load %arg8[%c0_23, %c0_24, %c0_25, %c0_26] : memref<4x10x10x8xf32, #tpu.memory_space<vmem>>, vector<1x10x10x8xf32>
    %16 = vector.shape_cast %15 : vector<1x10x10x8xf32> to vector<10x10x8xf32>
    %17 = vector.shape_cast %14 : vector<10x10x8xf32> to vector<1x10x10x8xf32>
    tpu.vector_store %arg8[%c0_23, %c0_24, %c0_25, %c0_26], %17 {strides = array<i32>} : memref<4x10x10x8xf32, #tpu.memory_space<vmem>>, vector<1x10x10x8xf32>,
    %c0_27 = arith.constant 0 : index
    %c1_28 = arith.constant 1 : index
    %c0_29 = arith.constant 0 : index
    %c0_30 = arith.constant 0 : index
    %c0_31 = arith.constant 0 : index
    %18 = vector.load %arg1[%c0_27, %c1_28, %c0_29, %c0_30, %c0_31] : memref<1x4x10x10x4xf32, #tpu.memory_space<vmem>>, vector<1x1x10x10x4xf32>
    %19 = vector.shape_cast %18 : vector<1x1x10x10x4xf32> to vector<10x10x4xf32>
    %20 = tpu.concatenate %19, %19 in 2 : vector<10x10x4xf32>, vector<10x10x4xf32> -> vector<10x10x8xf32>
    %c1_32 = arith.constant 1 : index
    %c0_33 = arith.constant 0 : index
    %c0_34 = arith.constant 0 : index
    %c0_35 = arith.constant 0 : index
    %21 = vector.load %arg8[%c1_32, %c0_33, %c0_34, %c0_35] : memref<4x10x10x8xf32, #tpu.memory_space<vmem>>, vector<1x10x10x8xf32>
    %22 = vector.shape_cast %21 : vector<1x10x10x8xf32> to vector<10x10x8xf32>
    %23 = vector.shape_cast %20 : vector<10x10x8xf32> to vector<1x10x10x8xf32>
    tpu.vector_store %arg8[%c1_32, %c0_33, %c0_34, %c0_35], %23 {strides = array<i32>} : memref<4x10x10x8xf32, #tpu.memory_space<vmem>>, vector<1x10x10x8xf32>,
    %c0_36 = arith.constant 0 : index
    %c2_37 = arith.constant 2 : index
    %c0_38 = arith.constant 0 : index
    %c0_39 = arith.constant 0 : index
    %c0_40 = arith.constant 0 : index
    %24 = vector.load %arg1[%c0_36, %c2_37, %c0_38, %c0_39, %c0_40] : memref<1x4x10x10x4xf32, #tpu.memory_space<vmem>>, vector<1x1x10x10x4xf32>
    %25 = vector.shape_cast %24 : vector<1x1x10x10x4xf32> to vector<10x10x4xf32>
    %26 = tpu.concatenate %25, %25 in 2 : vector<10x10x4xf32>, vector<10x10x4xf32> -> vector<10x10x8xf32>
    %c2_41 = arith.constant 2 : index
    %c0_42 = arith.constant 0 : index
    %c0_43 = arith.constant 0 : index
    %c0_44 = arith.constant 0 : index
    %27 = vector.load %arg8[%c2_41, %c0_42, %c0_43, %c0_44] : memref<4x10x10x8xf32, #tpu.memory_space<vmem>>, vector<1x10x10x8xf32>
    %28 = vector.shape_cast %27 : vector<1x10x10x8xf32> to vector<10x10x8xf32>
    %29 = vector.shape_cast %26 : vector<10x10x8xf32> to vector<1x10x10x8xf32>
    tpu.vector_store %arg8[%c2_41, %c0_42, %c0_43, %c0_44], %29 {strides = array<i32>} : memref<4x10x10x8xf32, #tpu.memory_space<vmem>>, vector<1x10x10x8xf32>,
    %c0_45 = arith.constant 0 : index
    %c3_46 = arith.constant 3 : index
    %c0_47 = arith.constant 0 : index
    %c0_48 = arith.constant 0 : index
    %c0_49 = arith.constant 0 : index
    %30 = vector.load %arg1[%c0_45, %c3_46, %c0_47, %c0_48, %c0_49] : memref<1x4x10x10x4xf32, #tpu.memory_space<vmem>>, vector<1x1x10x10x4xf32>
    %31 = vector.shape_cast %30 : vector<1x1x10x10x4xf32> to vector<10x10x4xf32>
    %32 = tpu.concatenate %31, %31 in 2 : vector<10x10x4xf32>, vector<10x10x4xf32> -> vector<10x10x8xf32>
    %c3_50 = arith.constant 3 : index
    %c0_51 = arith.constant 0 : index
    %c0_52 = arith.constant 0 : index
    %c0_53 = arith.constant 0 : index
    %33 = vector.load %arg8[%c3_50, %c0_51, %c0_52, %c0_53] : memref<4x10x10x8xf32, #tpu.memory_space<vmem>>, vector<1x10x10x8xf32>
    %34 = vector.shape_cast %33 : vector<1x10x10x8xf32> to vector<10x10x8xf32>
    %35 = vector.shape_cast %32 : vector<10x10x8xf32> to vector<1x10x10x8xf32>
    tpu.vector_store %arg8[%c3_50, %c0_51, %c0_52, %c0_53], %35 {strides = array<i32>} : memref<4x10x10x8xf32, #tpu.memory_space<vmem>>, vector<1x10x10x8xf32>,
    %36 = tpu.iota {dimensions = array<i32: 1>} : vector<1x9x1xi32>
    %c0_i32 = arith.constant 0 : i32
    %37 = vector.broadcast %c0_i32 : i32 to vector<1x9x1xi32>
    %38 = arith.cmpi ne, %36, %37 : vector<1x9x1xi32>
    %cst = arith.constant 0.000000e+00 : f32
    %39 = vector.broadcast %cst : f32 to vector<9x9x8xf32>
    %c0_54 = arith.constant 0 : index
    %c0_55 = arith.constant 0 : index
    %c0_56 = arith.constant 0 : index
    %c0_57 = arith.constant 0 : index
    %40 = vector.load %arg8[%c0_54, %c0_55, %c0_56, %c0_57] : memref<4x10x10x8xf32, #tpu.memory_space<vmem>>, vector<1x9x9x8xf32>
    %41 = vector.shape_cast %40 : vector<1x9x9x8xf32> to vector<9x9x8xf32>
    %c0_58 = arith.constant 0 : index
    %c0_59 = arith.constant 0 : index
    %c0_60 = arith.constant 0 : index
    %c0_61 = arith.constant 0 : index
    %42 = vector.load %arg2[%c0_58, %c0_59, %c0_60, %c0_61] : memref<9x1x1x8xf32, #tpu.memory_space<vmem>>, vector<1x1x1x8xf32>
    %43 = vector.shape_cast %42 : vector<1x1x1x8xf32> to vector<1x1x8xf32>
    %44 = vector.broadcast %43 : vector<1x1x8xf32> to vector<9x9x8xf32>
    %45 = arith.mulf %41, %44 : vector<9x9x8xf32>
    %46 = arith.addf %39, %45 : vector<9x9x8xf32>
    %c1_62 = arith.constant 1 : index
    %c0_63 = arith.constant 0 : index
    %c0_64 = arith.constant 0 : index
    %c0_65 = arith.constant 0 : index
    %47 = vector.load %arg8[%c1_62, %c0_63, %c0_64, %c0_65] : memref<4x10x10x8xf32, #tpu.memory_space<vmem>>, vector<1x9x9x8xf32>
    %48 = vector.shape_cast %47 : vector<1x9x9x8xf32> to vector<9x9x8xf32>
    %c1_66 = arith.constant 1 : index
    %c0_67 = arith.constant 0 : index
    %c0_68 = arith.constant 0 : index
    %c0_69 = arith.constant 0 : index
    %49 = vector.load %arg2[%c1_66, %c0_67, %c0_68, %c0_69] : memref<9x1x1x8xf32, #tpu.memory_space<vmem>>, vector<1x1x1x8xf32>
    %50 = vector.shape_cast %49 : vector<1x1x1x8xf32> to vector<1x1x8xf32>
    %51 = vector.broadcast %50 : vector<1x1x8xf32> to vector<9x9x8xf32>
    %52 = arith.mulf %48, %51 : vector<9x9x8xf32>
    %53 = arith.addf %46, %52 : vector<9x9x8xf32>
    %c0_70 = arith.constant 0 : index
    %c0_71 = arith.constant 0 : index
    %c1_72 = arith.constant 1 : index
    %c0_73 = arith.constant 0 : index
    %54 = vector.load %arg8[%c0_70, %c0_71, %c1_72, %c0_73] : memref<4x10x10x8xf32, #tpu.memory_space<vmem>>, vector<1x9x9x8xf32>
    %55 = vector.shape_cast %54 : vector<1x9x9x8xf32> to vector<9x9x8xf32>
    %c2_74 = arith.constant 2 : index
    %c0_75 = arith.constant 0 : index
    %c0_76 = arith.constant 0 : index
    %c0_77 = arith.constant 0 : index
    %56 = vector.load %arg2[%c2_74, %c0_75, %c0_76, %c0_77] : memref<9x1x1x8xf32, #tpu.memory_space<vmem>>, vector<1x1x1x8xf32>
    %57 = vector.shape_cast %56 : vector<1x1x1x8xf32> to vector<1x1x8xf32>
    %58 = vector.broadcast %57 : vector<1x1x8xf32> to vector<9x9x8xf32>
    %59 = arith.mulf %55, %58 : vector<9x9x8xf32>
    %60 = arith.addf %53, %59 : vector<9x9x8xf32>
    %c2_78 = arith.constant 2 : index
    %c0_79 = arith.constant 0 : index
    %c0_80 = arith.constant 0 : index
    %c0_81 = arith.constant 0 : index
    %61 = vector.load %arg8[%c2_78, %c0_79, %c0_80, %c0_81] : memref<4x10x10x8xf32, #tpu.memory_space<vmem>>, vector<1x9x9x8xf32>
    %62 = vector.shape_cast %61 : vector<1x9x9x8xf32> to vector<9x9x8xf32>
    %c3_82 = arith.constant 3 : index
    %c0_83 = arith.constant 0 : index
    %c0_84 = arith.constant 0 : index
    %c0_85 = arith.constant 0 : index
    %63 = vector.load %arg2[%c3_82, %c0_83, %c0_84, %c0_85] : memref<9x1x1x8xf32, #tpu.memory_space<vmem>>, vector<1x1x1x8xf32>
    %64 = vector.shape_cast %63 : vector<1x1x1x8xf32> to vector<1x1x8xf32>
    %65 = vector.broadcast %64 : vector<1x1x8xf32> to vector<9x9x8xf32>
    %66 = arith.mulf %62, %65 : vector<9x9x8xf32>
    %67 = arith.addf %60, %66 : vector<9x9x8xf32>
    %c3_86 = arith.constant 3 : index
    %c0_87 = arith.constant 0 : index
    %c0_88 = arith.constant 0 : index
    %c0_89 = arith.constant 0 : index
    %68 = vector.load %arg8[%c3_86, %c0_87, %c0_88, %c0_89] : memref<4x10x10x8xf32, #tpu.memory_space<vmem>>, vector<1x9x9x8xf32>
    %69 = vector.shape_cast %68 : vector<1x9x9x8xf32> to vector<9x9x8xf32>
    %c4_90 = arith.constant 4 : index
    %c0_91 = arith.constant 0 : index
    %c0_92 = arith.constant 0 : index
    %c0_93 = arith.constant 0 : index
    %70 = vector.load %arg2[%c4_90, %c0_91, %c0_92, %c0_93] : memref<9x1x1x8xf32, #tpu.memory_space<vmem>>, vector<1x1x1x8xf32>
    %71 = vector.shape_cast %70 : vector<1x1x1x8xf32> to vector<1x1x8xf32>
    %72 = vector.broadcast %71 : vector<1x1x8xf32> to vector<9x9x8xf32>
    %73 = arith.mulf %69, %72 : vector<9x9x8xf32>
    %74 = arith.addf %67, %73 : vector<9x9x8xf32>
    %c2_94 = arith.constant 2 : index
    %c0_95 = arith.constant 0 : index
    %c1_96 = arith.constant 1 : index
    %c0_97 = arith.constant 0 : index
    %75 = vector.load %arg8[%c2_94, %c0_95, %c1_96, %c0_97] : memref<4x10x10x8xf32, #tpu.memory_space<vmem>>, vector<1x9x9x8xf32>
    %76 = vector.shape_cast %75 : vector<1x9x9x8xf32> to vector<9x9x8xf32>
    %c5_98 = arith.constant 5 : index
    %c0_99 = arith.constant 0 : index
    %c0_100 = arith.constant 0 : index
    %c0_101 = arith.constant 0 : index
    %77 = vector.load %arg2[%c5_98, %c0_99, %c0_100, %c0_101] : memref<9x1x1x8xf32, #tpu.memory_space<vmem>>, vector<1x1x1x8xf32>
    %78 = vector.shape_cast %77 : vector<1x1x1x8xf32> to vector<1x1x8xf32>
    %79 = vector.broadcast %78 : vector<1x1x8xf32> to vector<9x9x8xf32>
    %80 = arith.mulf %76, %79 : vector<9x9x8xf32>
    %81 = arith.addf %74, %80 : vector<9x9x8xf32>
    %c0_102 = arith.constant 0 : index
    %c1_103 = arith.constant 1 : index
    %c0_104 = arith.constant 0 : index
    %c0_105 = arith.constant 0 : index
    %82 = vector.load %arg8[%c0_102, %c1_103, %c0_104, %c0_105] : memref<4x10x10x8xf32, #tpu.memory_space<vmem>>, vector<1x9x9x8xf32>
    %83 = vector.shape_cast %82 : vector<1x9x9x8xf32> to vector<9x9x8xf32>
    %c6 = arith.constant 6 : index
    %c0_106 = arith.constant 0 : index
    %c0_107 = arith.constant 0 : index
    %c0_108 = arith.constant 0 : index
    %84 = vector.load %arg2[%c6, %c0_106, %c0_107, %c0_108] : memref<9x1x1x8xf32, #tpu.memory_space<vmem>>, vector<1x1x1x8xf32>
    %85 = vector.shape_cast %84 : vector<1x1x1x8xf32> to vector<1x1x8xf32>
    %86 = vector.broadcast %85 : vector<1x1x8xf32> to vector<9x9x8xf32>
    %87 = arith.mulf %83, %86 : vector<9x9x8xf32>
    %88 = arith.addf %81, %87 : vector<9x9x8xf32>
    %c1_109 = arith.constant 1 : index
    %c1_110 = arith.constant 1 : index
    %c0_111 = arith.constant 0 : index
    %c0_112 = arith.constant 0 : index
    %89 = vector.load %arg8[%c1_109, %c1_110, %c0_111, %c0_112] : memref<4x10x10x8xf32, #tpu.memory_space<vmem>>, vector<1x9x9x8xf32>
    %90 = vector.shape_cast %89 : vector<1x9x9x8xf32> to vector<9x9x8xf32>
    %c7 = arith.constant 7 : index
    %c0_113 = arith.constant 0 : index
    %c0_114 = arith.constant 0 : index
    %c0_115 = arith.constant 0 : index
    %91 = vector.load %arg2[%c7, %c0_113, %c0_114, %c0_115] : memref<9x1x1x8xf32, #tpu.memory_space<vmem>>, vector<1x1x1x8xf32>
    %92 = vector.shape_cast %91 : vector<1x1x1x8xf32> to vector<1x1x8xf32>
    %93 = vector.broadcast %92 : vector<1x1x8xf32> to vector<9x9x8xf32>
    %94 = arith.mulf %90, %93 : vector<9x9x8xf32>
    %95 = arith.addf %88, %94 : vector<9x9x8xf32>
    %c0_116 = arith.constant 0 : index
    %c1_117 = arith.constant 1 : index
    %c1_118 = arith.constant 1 : index
    %c0_119 = arith.constant 0 : index
    %96 = vector.load %arg8[%c0_116, %c1_117, %c1_118, %c0_119] : memref<4x10x10x8xf32, #tpu.memory_space<vmem>>, vector<1x9x9x8xf32>
    %97 = vector.shape_cast %96 : vector<1x9x9x8xf32> to vector<9x9x8xf32>
    %c8 = arith.constant 8 : index
    %c0_120 = arith.constant 0 : index
    %c0_121 = arith.constant 0 : index
    %c0_122 = arith.constant 0 : index
    %98 = vector.load %arg2[%c8, %c0_120, %c0_121, %c0_122] : memref<9x1x1x8xf32, #tpu.memory_space<vmem>>, vector<1x1x1x8xf32>
    %99 = vector.shape_cast %98 : vector<1x1x1x8xf32> to vector<1x1x8xf32>
    %100 = vector.broadcast %99 : vector<1x1x8xf32> to vector<9x9x8xf32>
    %101 = arith.mulf %97, %100 : vector<9x9x8xf32>
    %102 = arith.addf %95, %101 : vector<9x9x8xf32>
    %103 = vector.broadcast %1 : vector<1x1x8xf32> to vector<9x9x8xf32>
    %104 = arith.addf %102, %103 : vector<9x9x8xf32>
    %cst_123 = arith.constant 0.000000e+00 : f32
    %105 = vector.shape_cast %38 : vector<1x9x1xi1> to vector<1x9x1xi1>
    %106 = vector.broadcast %105 : vector<1x9x1xi1> to vector<9x9x8xi1>
    %107 = vector.broadcast %cst_123 : f32 to vector<9x9x8xf32>
    %108 = arith.select %106, %104, %107 : vector<9x9x8xi1>, vector<9x9x8xf32>
    %109 = arith.truncf %108 : vector<9x9x8xf32> to vector<9x9x8xbf16>
    %c0_124 = arith.constant 0 : index
    %c0_125 = arith.constant 0 : index
    %c0_126 = arith.constant 0 : index
    %c0_127 = arith.constant 0 : index
    %110 = vector.load %arg9[%c0_124, %c0_125, %c0_126, %c0_127] : memref<4x9x9x8xbf16, #tpu.memory_space<vmem>>, vector<1x9x9x8xbf16>
    %111 = vector.shape_cast %110 : vector<1x9x9x8xbf16> to vector<9x9x8xbf16>
    %112 = vector.shape_cast %109 : vector<9x9x8xbf16> to vector<1x9x9x8xbf16>
    tpu.vector_store %arg9[%c0_124, %c0_125, %c0_126, %c0_127], %112 {strides = array<i32>} : memref<4x9x9x8xbf16, #tpu.memory_space<vmem>>, vector<1x9x9x8xbf16>,
    %cst_128 = arith.constant 0.000000e+00 : f32
    %113 = vector.broadcast %cst_128 : f32 to vector<9x9x8xf32>
    %c1_129 = arith.constant 1 : index
    %c0_130 = arith.constant 0 : index
    %c0_131 = arith.constant 0 : index
    %c0_132 = arith.constant 0 : index
    %114 = vector.load %arg8[%c1_129, %c0_130, %c0_131, %c0_132] : memref<4x10x10x8xf32, #tpu.memory_space<vmem>>, vector<1x9x9x8xf32>
    %115 = vector.shape_cast %114 : vector<1x9x9x8xf32> to vector<9x9x8xf32>
    %c0_133 = arith.constant 0 : index
    %c0_134 = arith.constant 0 : index
    %c0_135 = arith.constant 0 : index
    %c0_136 = arith.constant 0 : index
    %116 = vector.load %arg2[%c0_133, %c0_134, %c0_135, %c0_136] : memref<9x1x1x8xf32, #tpu.memory_space<vmem>>, vector<1x1x1x8xf32>
    %117 = vector.shape_cast %116 : vector<1x1x1x8xf32> to vector<1x1x8xf32>
    %118 = vector.broadcast %117 : vector<1x1x8xf32> to vector<9x9x8xf32>
    %119 = arith.mulf %115, %118 : vector<9x9x8xf32>
    %120 = arith.addf %113, %119 : vector<9x9x8xf32>
    %c0_137 = arith.constant 0 : index
    %c0_138 = arith.constant 0 : index
    %c1_139 = arith.constant 1 : index
    %c0_140 = arith.constant 0 : index
    %121 = vector.load %arg8[%c0_137, %c0_138, %c1_139, %c0_140] : memref<4x10x10x8xf32, #tpu.memory_space<vmem>>, vector<1x9x9x8xf32>
    %122 = vector.shape_cast %121 : vector<1x9x9x8xf32> to vector<9x9x8xf32>
    %c1_141 = arith.constant 1 : index
    %c0_142 = arith.constant 0 : index
    %c0_143 = arith.constant 0 : index
    %c0_144 = arith.constant 0 : index
    %123 = vector.load %arg2[%c1_141, %c0_142, %c0_143, %c0_144] : memref<9x1x1x8xf32, #tpu.memory_space<vmem>>, vector<1x1x1x8xf32>
    %124 = vector.shape_cast %123 : vector<1x1x1x8xf32> to vector<1x1x8xf32>
    %125 = vector.broadcast %124 : vector<1x1x8xf32> to vector<9x9x8xf32>
    %126 = arith.mulf %122, %125 : vector<9x9x8xf32>
    %127 = arith.addf %120, %126 : vector<9x9x8xf32>
    %c1_145 = arith.constant 1 : index
    %c0_146 = arith.constant 0 : index
    %c1_147 = arith.constant 1 : index
    %c0_148 = arith.constant 0 : index
    %128 = vector.load %arg8[%c1_145, %c0_146, %c1_147, %c0_148] : memref<4x10x10x8xf32, #tpu.memory_space<vmem>>, vector<1x9x9x8xf32>
    %129 = vector.shape_cast %128 : vector<1x9x9x8xf32> to vector<9x9x8xf32>
    %c2_149 = arith.constant 2 : index
    %c0_150 = arith.constant 0 : index
    %c0_151 = arith.constant 0 : index
    %c0_152 = arith.constant 0 : index
    %130 = vector.load %arg2[%c2_149, %c0_150, %c0_151, %c0_152] : memref<9x1x1x8xf32, #tpu.memory_space<vmem>>, vector<1x1x1x8xf32>
    %131 = vector.shape_cast %130 : vector<1x1x1x8xf32> to vector<1x1x8xf32>
    %132 = vector.broadcast %131 : vector<1x1x8xf32> to vector<9x9x8xf32>
    %133 = arith.mulf %129, %132 : vector<9x9x8xf32>
    %134 = arith.addf %127, %133 : vector<9x9x8xf32>
    %c3_153 = arith.constant 3 : index
    %c0_154 = arith.constant 0 : index
    %c0_155 = arith.constant 0 : index
    %c0_156 = arith.constant 0 : index
    %135 = vector.load %arg8[%c3_153, %c0_154, %c0_155, %c0_156] : memref<4x10x10x8xf32, #tpu.memory_space<vmem>>, vector<1x9x9x8xf32>
    %136 = vector.shape_cast %135 : vector<1x9x9x8xf32> to vector<9x9x8xf32>
    %c3_157 = arith.constant 3 : index
    %c0_158 = arith.constant 0 : index
    %c0_159 = arith.constant 0 : index
    %c0_160 = arith.constant 0 : index
    %137 = vector.load %arg2[%c3_157, %c0_158, %c0_159, %c0_160] : memref<9x1x1x8xf32, #tpu.memory_space<vmem>>, vector<1x1x1x8xf32>
    %138 = vector.shape_cast %137 : vector<1x1x1x8xf32> to vector<1x1x8xf32>
    %139 = vector.broadcast %138 : vector<1x1x8xf32> to vector<9x9x8xf32>
    %140 = arith.mulf %136, %139 : vector<9x9x8xf32>
    %141 = arith.addf %134, %140 : vector<9x9x8xf32>
    %c2_161 = arith.constant 2 : index
    %c0_162 = arith.constant 0 : index
    %c1_163 = arith.constant 1 : index
    %c0_164 = arith.constant 0 : index
    %142 = vector.load %arg8[%c2_161, %c0_162, %c1_163, %c0_164] : memref<4x10x10x8xf32, #tpu.memory_space<vmem>>, vector<1x9x9x8xf32>
    %143 = vector.shape_cast %142 : vector<1x9x9x8xf32> to vector<9x9x8xf32>
    %c4_165 = arith.constant 4 : index
    %c0_166 = arith.constant 0 : index
    %c0_167 = arith.constant 0 : index
    %c0_168 = arith.constant 0 : index
    %144 = vector.load %arg2[%c4_165, %c0_166, %c0_167, %c0_168] : memref<9x1x1x8xf32, #tpu.memory_space<vmem>>, vector<1x1x1x8xf32>
    %145 = vector.shape_cast %144 : vector<1x1x1x8xf32> to vector<1x1x8xf32>
    %146 = vector.broadcast %145 : vector<1x1x8xf32> to vector<9x9x8xf32>
    %147 = arith.mulf %143, %146 : vector<9x9x8xf32>
    %148 = arith.addf %141, %147 : vector<9x9x8xf32>
    %c3_169 = arith.constant 3 : index
    %c0_170 = arith.constant 0 : index
    %c1_171 = arith.constant 1 : index
    %c0_172 = arith.constant 0 : index
    %149 = vector.load %arg8[%c3_169, %c0_170, %c1_171, %c0_172] : memref<4x10x10x8xf32, #tpu.memory_space<vmem>>, vector<1x9x9x8xf32>
    %150 = vector.shape_cast %149 : vector<1x9x9x8xf32> to vector<9x9x8xf32>
    %c5_173 = arith.constant 5 : index
    %c0_174 = arith.constant 0 : index
    %c0_175 = arith.constant 0 : index
    %c0_176 = arith.constant 0 : index
    %151 = vector.load %arg2[%c5_173, %c0_174, %c0_175, %c0_176] : memref<9x1x1x8xf32, #tpu.memory_space<vmem>>, vector<1x1x1x8xf32>
    %152 = vector.shape_cast %151 : vector<1x1x1x8xf32> to vector<1x1x8xf32>
    %153 = vector.broadcast %152 : vector<1x1x8xf32> to vector<9x9x8xf32>
    %154 = arith.mulf %150, %153 : vector<9x9x8xf32>
    %155 = arith.addf %148, %154 : vector<9x9x8xf32>
    %c1_177 = arith.constant 1 : index
    %c1_178 = arith.constant 1 : index
    %c0_179 = arith.constant 0 : index
    %c0_180 = arith.constant 0 : index
    %156 = vector.load %arg8[%c1_177, %c1_178, %c0_179, %c0_180] : memref<4x10x10x8xf32, #tpu.memory_space<vmem>>, vector<1x9x9x8xf32>
    %157 = vector.shape_cast %156 : vector<1x9x9x8xf32> to vector<9x9x8xf32>
    %c6_181 = arith.constant 6 : index
    %c0_182 = arith.constant 0 : index
    %c0_183 = arith.constant 0 : index
    %c0_184 = arith.constant 0 : index
    %158 = vector.load %arg2[%c6_181, %c0_182, %c0_183, %c0_184] : memref<9x1x1x8xf32, #tpu.memory_space<vmem>>, vector<1x1x1x8xf32>
    %159 = vector.shape_cast %158 : vector<1x1x1x8xf32> to vector<1x1x8xf32>
    %160 = vector.broadcast %159 : vector<1x1x8xf32> to vector<9x9x8xf32>
    %161 = arith.mulf %157, %160 : vector<9x9x8xf32>
    %162 = arith.addf %155, %161 : vector<9x9x8xf32>
    %c0_185 = arith.constant 0 : index
    %c1_186 = arith.constant 1 : index
    %c1_187 = arith.constant 1 : index
    %c0_188 = arith.constant 0 : index
    %163 = vector.load %arg8[%c0_185, %c1_186, %c1_187, %c0_188] : memref<4x10x10x8xf32, #tpu.memory_space<vmem>>, vector<1x9x9x8xf32>
    %164 = vector.shape_cast %163 : vector<1x9x9x8xf32> to vector<9x9x8xf32>
    %c7_189 = arith.constant 7 : index
    %c0_190 = arith.constant 0 : index
    %c0_191 = arith.constant 0 : index
    %c0_192 = arith.constant 0 : index
    %165 = vector.load %arg2[%c7_189, %c0_190, %c0_191, %c0_192] : memref<9x1x1x8xf32, #tpu.memory_space<vmem>>, vector<1x1x1x8xf32>
    %166 = vector.shape_cast %165 : vector<1x1x1x8xf32> to vector<1x1x8xf32>
    %167 = vector.broadcast %166 : vector<1x1x8xf32> to vector<9x9x8xf32>
    %168 = arith.mulf %164, %167 : vector<9x9x8xf32>
    %169 = arith.addf %162, %168 : vector<9x9x8xf32>
    %c1_193 = arith.constant 1 : index
    %c1_194 = arith.constant 1 : index
    %c1_195 = arith.constant 1 : index
    %c0_196 = arith.constant 0 : index
    %170 = vector.load %arg8[%c1_193, %c1_194, %c1_195, %c0_196] : memref<4x10x10x8xf32, #tpu.memory_space<vmem>>, vector<1x9x9x8xf32>
    %171 = vector.shape_cast %170 : vector<1x9x9x8xf32> to vector<9x9x8xf32>
    %c8_197 = arith.constant 8 : index
    %c0_198 = arith.constant 0 : index
    %c0_199 = arith.constant 0 : index
    %c0_200 = arith.constant 0 : index
    %172 = vector.load %arg2[%c8_197, %c0_198, %c0_199, %c0_200] : memref<9x1x1x8xf32, #tpu.memory_space<vmem>>, vector<1x1x1x8xf32>
    %173 = vector.shape_cast %172 : vector<1x1x1x8xf32> to vector<1x1x8xf32>
    %174 = vector.broadcast %173 : vector<1x1x8xf32> to vector<9x9x8xf32>
    %175 = arith.mulf %171, %174 : vector<9x9x8xf32>
    %176 = arith.addf %169, %175 : vector<9x9x8xf32>
    %177 = vector.broadcast %1 : vector<1x1x8xf32> to vector<9x9x8xf32>
    %178 = arith.addf %176, %177 : vector<9x9x8xf32>
    %179 = arith.truncf %178 : vector<9x9x8xf32> to vector<9x9x8xbf16>
    %c1_201 = arith.constant 1 : index
    %c0_202 = arith.constant 0 : index
    %c0_203 = arith.constant 0 : index
    %c0_204 = arith.constant 0 : index
    %180 = vector.load %arg9[%c1_201, %c0_202, %c0_203, %c0_204] : memref<4x9x9x8xbf16, #tpu.memory_space<vmem>>, vector<1x9x9x8xbf16>
    %181 = vector.shape_cast %180 : vector<1x9x9x8xbf16> to vector<9x9x8xbf16>
    %182 = vector.shape_cast %179 : vector<9x9x8xbf16> to vector<1x9x9x8xbf16>
    tpu.vector_store %arg9[%c1_201, %c0_202, %c0_203, %c0_204], %182 {strides = array<i32>} : memref<4x9x9x8xbf16, #tpu.memory_space<vmem>>, vector<1x9x9x8xbf16>,
    %cst_205 = arith.constant 0.000000e+00 : f32
    %183 = vector.broadcast %cst_205 : f32 to vector<9x9x8xf32>
    %c2_206 = arith.constant 2 : index
    %c0_207 = arith.constant 0 : index
    %c0_208 = arith.constant 0 : index
    %c0_209 = arith.constant 0 : index
    %184 = vector.load %arg8[%c2_206, %c0_207, %c0_208, %c0_209] : memref<4x10x10x8xf32, #tpu.memory_space<vmem>>, vector<1x9x9x8xf32>
    %185 = vector.shape_cast %184 : vector<1x9x9x8xf32> to vector<9x9x8xf32>
    %c0_210 = arith.constant 0 : index
    %c0_211 = arith.constant 0 : index
    %c0_212 = arith.constant 0 : index
    %c0_213 = arith.constant 0 : index
    %186 = vector.load %arg2[%c0_210, %c0_211, %c0_212, %c0_213] : memref<9x1x1x8xf32, #tpu.memory_space<vmem>>, vector<1x1x1x8xf32>
    %187 = vector.shape_cast %186 : vector<1x1x1x8xf32> to vector<1x1x8xf32>
    %188 = vector.broadcast %187 : vector<1x1x8xf32> to vector<9x9x8xf32>
    %189 = arith.mulf %185, %188 : vector<9x9x8xf32>
    %190 = arith.addf %183, %189 : vector<9x9x8xf32>
    %c3_214 = arith.constant 3 : index
    %c0_215 = arith.constant 0 : index
    %c0_216 = arith.constant 0 : index
    %c0_217 = arith.constant 0 : index
    %191 = vector.load %arg8[%c3_214, %c0_215, %c0_216, %c0_217] : memref<4x10x10x8xf32, #tpu.memory_space<vmem>>, vector<1x9x9x8xf32>
    %192 = vector.shape_cast %191 : vector<1x9x9x8xf32> to vector<9x9x8xf32>
    %c1_218 = arith.constant 1 : index
    %c0_219 = arith.constant 0 : index
    %c0_220 = arith.constant 0 : index
    %c0_221 = arith.constant 0 : index
    %193 = vector.load %arg2[%c1_218, %c0_219, %c0_220, %c0_221] : memref<9x1x1x8xf32, #tpu.memory_space<vmem>>, vector<1x1x1x8xf32>
    %194 = vector.shape_cast %193 : vector<1x1x1x8xf32> to vector<1x1x8xf32>
    %195 = vector.broadcast %194 : vector<1x1x8xf32> to vector<9x9x8xf32>
    %196 = arith.mulf %192, %195 : vector<9x9x8xf32>
    %197 = arith.addf %190, %196 : vector<9x9x8xf32>
    %c2_222 = arith.constant 2 : index
    %c0_223 = arith.constant 0 : index
    %c1_224 = arith.constant 1 : index
    %c0_225 = arith.constant 0 : index
    %198 = vector.load %arg8[%c2_222, %c0_223, %c1_224, %c0_225] : memref<4x10x10x8xf32, #tpu.memory_space<vmem>>, vector<1x9x9x8xf32>
    %199 = vector.shape_cast %198 : vector<1x9x9x8xf32> to vector<9x9x8xf32>
    %c2_226 = arith.constant 2 : index
    %c0_227 = arith.constant 0 : index
    %c0_228 = arith.constant 0 : index
    %c0_229 = arith.constant 0 : index
    %200 = vector.load %arg2[%c2_226, %c0_227, %c0_228, %c0_229] : memref<9x1x1x8xf32, #tpu.memory_space<vmem>>, vector<1x1x1x8xf32>
    %201 = vector.shape_cast %200 : vector<1x1x1x8xf32> to vector<1x1x8xf32>
    %202 = vector.broadcast %201 : vector<1x1x8xf32> to vector<9x9x8xf32>
    %203 = arith.mulf %199, %202 : vector<9x9x8xf32>
    %204 = arith.addf %197, %203 : vector<9x9x8xf32>
    %c0_230 = arith.constant 0 : index
    %c1_231 = arith.constant 1 : index
    %c0_232 = arith.constant 0 : index
    %c0_233 = arith.constant 0 : index
    %205 = vector.load %arg8[%c0_230, %c1_231, %c0_232, %c0_233] : memref<4x10x10x8xf32, #tpu.memory_space<vmem>>, vector<1x9x9x8xf32>
    %206 = vector.shape_cast %205 : vector<1x9x9x8xf32> to vector<9x9x8xf32>
    %c3_234 = arith.constant 3 : index
    %c0_235 = arith.constant 0 : index
    %c0_236 = arith.constant 0 : index
    %c0_237 = arith.constant 0 : index
    %207 = vector.load %arg2[%c3_234, %c0_235, %c0_236, %c0_237] : memref<9x1x1x8xf32, #tpu.memory_space<vmem>>, vector<1x1x1x8xf32>
    %208 = vector.shape_cast %207 : vector<1x1x1x8xf32> to vector<1x1x8xf32>
    %209 = vector.broadcast %208 : vector<1x1x8xf32> to vector<9x9x8xf32>
    %210 = arith.mulf %206, %209 : vector<9x9x8xf32>
    %211 = arith.addf %204, %210 : vector<9x9x8xf32>
    %c1_238 = arith.constant 1 : index
    %c1_239 = arith.constant 1 : index
    %c0_240 = arith.constant 0 : index
    %c0_241 = arith.constant 0 : index
    %212 = vector.load %arg8[%c1_238, %c1_239, %c0_240, %c0_241] : memref<4x10x10x8xf32, #tpu.memory_space<vmem>>, vector<1x9x9x8xf32>
    %213 = vector.shape_cast %212 : vector<1x9x9x8xf32> to vector<9x9x8xf32>
    %c4_242 = arith.constant 4 : index
    %c0_243 = arith.constant 0 : index
    %c0_244 = arith.constant 0 : index
    %c0_245 = arith.constant 0 : index
    %214 = vector.load %arg2[%c4_242, %c0_243, %c0_244, %c0_245] : memref<9x1x1x8xf32, #tpu.memory_space<vmem>>, vector<1x1x1x8xf32>
    %215 = vector.shape_cast %214 : vector<1x1x1x8xf32> to vector<1x1x8xf32>
    %216 = vector.broadcast %215 : vector<1x1x8xf32> to vector<9x9x8xf32>
    %217 = arith.mulf %213, %216 : vector<9x9x8xf32>
    %218 = arith.addf %211, %217 : vector<9x9x8xf32>
    %c0_246 = arith.constant 0 : index
    %c1_247 = arith.constant 1 : index
    %c1_248 = arith.constant 1 : index
    %c0_249 = arith.constant 0 : index
    %219 = vector.load %arg8[%c0_246, %c1_247, %c1_248, %c0_249] : memref<4x10x10x8xf32, #tpu.memory_space<vmem>>, vector<1x9x9x8xf32>
    %220 = vector.shape_cast %219 : vector<1x9x9x8xf32> to vector<9x9x8xf32>
    %c5_250 = arith.constant 5 : index
    %c0_251 = arith.constant 0 : index
    %c0_252 = arith.constant 0 : index
    %c0_253 = arith.constant 0 : index
    %221 = vector.load %arg2[%c5_250, %c0_251, %c0_252, %c0_253] : memref<9x1x1x8xf32, #tpu.memory_space<vmem>>, vector<1x1x1x8xf32>
    %222 = vector.shape_cast %221 : vector<1x1x1x8xf32> to vector<1x1x8xf32>
    %223 = vector.broadcast %222 : vector<1x1x8xf32> to vector<9x9x8xf32>
    %224 = arith.mulf %220, %223 : vector<9x9x8xf32>
    %225 = arith.addf %218, %224 : vector<9x9x8xf32>
    %c2_254 = arith.constant 2 : index
    %c1_255 = arith.constant 1 : index
    %c0_256 = arith.constant 0 : index
    %c0_257 = arith.constant 0 : index
    %226 = vector.load %arg8[%c2_254, %c1_255, %c0_256, %c0_257] : memref<4x10x10x8xf32, #tpu.memory_space<vmem>>, vector<1x9x9x8xf32>
    %227 = vector.shape_cast %226 : vector<1x9x9x8xf32> to vector<9x9x8xf32>
    %c6_258 = arith.constant 6 : index
    %c0_259 = arith.constant 0 : index
    %c0_260 = arith.constant 0 : index
    %c0_261 = arith.constant 0 : index
    %228 = vector.load %arg2[%c6_258, %c0_259, %c0_260, %c0_261] : memref<9x1x1x8xf32, #tpu.memory_space<vmem>>, vector<1x1x1x8xf32>
    %229 = vector.shape_cast %228 : vector<1x1x1x8xf32> to vector<1x1x8xf32>
    %230 = vector.broadcast %229 : vector<1x1x8xf32> to vector<9x9x8xf32>
    %231 = arith.mulf %227, %230 : vector<9x9x8xf32>
    %232 = arith.addf %225, %231 : vector<9x9x8xf32>
    %c3_262 = arith.constant 3 : index
    %c1_263 = arith.constant 1 : index
    %c0_264 = arith.constant 0 : index
    %c0_265 = arith.constant 0 : index
    %233 = vector.load %arg8[%c3_262, %c1_263, %c0_264, %c0_265] : memref<4x10x10x8xf32, #tpu.memory_space<vmem>>, vector<1x9x9x8xf32>
    %234 = vector.shape_cast %233 : vector<1x9x9x8xf32> to vector<9x9x8xf32>
    %c7_266 = arith.constant 7 : index
    %c0_267 = arith.constant 0 : index
    %c0_268 = arith.constant 0 : index
    %c0_269 = arith.constant 0 : index
    %235 = vector.load %arg2[%c7_266, %c0_267, %c0_268, %c0_269] : memref<9x1x1x8xf32, #tpu.memory_space<vmem>>, vector<1x1x1x8xf32>
    %236 = vector.shape_cast %235 : vector<1x1x1x8xf32> to vector<1x1x8xf32>
    %237 = vector.broadcast %236 : vector<1x1x8xf32> to vector<9x9x8xf32>
    %238 = arith.mulf %234, %237 : vector<9x9x8xf32>
    %239 = arith.addf %232, %238 : vector<9x9x8xf32>
    %c2_270 = arith.constant 2 : index
    %c1_271 = arith.constant 1 : index
    %c1_272 = arith.constant 1 : index
    %c0_273 = arith.constant 0 : index
    %240 = vector.load %arg8[%c2_270, %c1_271, %c1_272, %c0_273] : memref<4x10x10x8xf32, #tpu.memory_space<vmem>>, vector<1x9x9x8xf32>
    %241 = vector.shape_cast %240 : vector<1x9x9x8xf32> to vector<9x9x8xf32>
    %c8_274 = arith.constant 8 : index
    %c0_275 = arith.constant 0 : index
    %c0_276 = arith.constant 0 : index
    %c0_277 = arith.constant 0 : index
    %242 = vector.load %arg2[%c8_274, %c0_275, %c0_276, %c0_277] : memref<9x1x1x8xf32, #tpu.memory_space<vmem>>, vector<1x1x1x8xf32>
    %243 = vector.shape_cast %242 : vector<1x1x1x8xf32> to vector<1x1x8xf32>
    %244 = vector.broadcast %243 : vector<1x1x8xf32> to vector<9x9x8xf32>
    %245 = arith.mulf %241, %244 : vector<9x9x8xf32>
    %246 = arith.addf %239, %245 : vector<9x9x8xf32>
    %247 = vector.broadcast %1 : vector<1x1x8xf32> to vector<9x9x8xf32>
    %248 = arith.addf %246, %247 : vector<9x9x8xf32>
    %cst_278 = arith.constant 0.000000e+00 : f32
    %249 = vector.shape_cast %38 : vector<1x9x1xi1> to vector<1x9x1xi1>
    %250 = vector.broadcast %249 : vector<1x9x1xi1> to vector<9x9x8xi1>
    %251 = vector.broadcast %cst_278 : f32 to vector<9x9x8xf32>
    %252 = arith.select %250, %248, %251 : vector<9x9x8xi1>, vector<9x9x8xf32>
    %253 = arith.truncf %252 : vector<9x9x8xf32> to vector<9x9x8xbf16>
    %c2_279 = arith.constant 2 : index
    %c0_280 = arith.constant 0 : index
    %c0_281 = arith.constant 0 : index
    %c0_282 = arith.constant 0 : index
    %254 = vector.load %arg9[%c2_279, %c0_280, %c0_281, %c0_282] : memref<4x9x9x8xbf16, #tpu.memory_space<vmem>>, vector<1x9x9x8xbf16>
    %255 = vector.shape_cast %254 : vector<1x9x9x8xbf16> to vector<9x9x8xbf16>
    %256 = vector.shape_cast %253 : vector<9x9x8xbf16> to vector<1x9x9x8xbf16>
    tpu.vector_store %arg9[%c2_279, %c0_280, %c0_281, %c0_282], %256 {strides = array<i32>} : memref<4x9x9x8xbf16, #tpu.memory_space<vmem>>, vector<1x9x9x8xbf16>,
    %cst_283 = arith.constant 0.000000e+00 : f32
    %257 = vector.broadcast %cst_283 : f32 to vector<9x9x8xf32>
    %c3_284 = arith.constant 3 : index
    %c0_285 = arith.constant 0 : index
    %c0_286 = arith.constant 0 : index
    %c0_287 = arith.constant 0 : index
    %258 = vector.load %arg8[%c3_284, %c0_285, %c0_286, %c0_287] : memref<4x10x10x8xf32, #tpu.memory_space<vmem>>, vector<1x9x9x8xf32>
    %259 = vector.shape_cast %258 : vector<1x9x9x8xf32> to vector<9x9x8xf32>
    %c0_288 = arith.constant 0 : index
    %c0_289 = arith.constant 0 : index
    %c0_290 = arith.constant 0 : index
    %c0_291 = arith.constant 0 : index
    %260 = vector.load %arg2[%c0_288, %c0_289, %c0_290, %c0_291] : memref<9x1x1x8xf32, #tpu.memory_space<vmem>>, vector<1x1x1x8xf32>
    %261 = vector.shape_cast %260 : vector<1x1x1x8xf32> to vector<1x1x8xf32>
    %262 = vector.broadcast %261 : vector<1x1x8xf32> to vector<9x9x8xf32>
    %263 = arith.mulf %259, %262 : vector<9x9x8xf32>
    %264 = arith.addf %257, %263 : vector<9x9x8xf32>
    %c2_292 = arith.constant 2 : index
    %c0_293 = arith.constant 0 : index
    %c1_294 = arith.constant 1 : index
    %c0_295 = arith.constant 0 : index
    %265 = vector.load %arg8[%c2_292, %c0_293, %c1_294, %c0_295] : memref<4x10x10x8xf32, #tpu.memory_space<vmem>>, vector<1x9x9x8xf32>
    %266 = vector.shape_cast %265 : vector<1x9x9x8xf32> to vector<9x9x8xf32>
    %c1_296 = arith.constant 1 : index
    %c0_297 = arith.constant 0 : index
    %c0_298 = arith.constant 0 : index
    %c0_299 = arith.constant 0 : index
    %267 = vector.load %arg2[%c1_296, %c0_297, %c0_298, %c0_299] : memref<9x1x1x8xf32, #tpu.memory_space<vmem>>, vector<1x1x1x8xf32>
    %268 = vector.shape_cast %267 : vector<1x1x1x8xf32> to vector<1x1x8xf32>
    %269 = vector.broadcast %268 : vector<1x1x8xf32> to vector<9x9x8xf32>
    %270 = arith.mulf %266, %269 : vector<9x9x8xf32>
    %271 = arith.addf %264, %270 : vector<9x9x8xf32>
    %c3_300 = arith.constant 3 : index
    %c0_301 = arith.constant 0 : index
    %c1_302 = arith.constant 1 : index
    %c0_303 = arith.constant 0 : index
    %272 = vector.load %arg8[%c3_300, %c0_301, %c1_302, %c0_303] : memref<4x10x10x8xf32, #tpu.memory_space<vmem>>, vector<1x9x9x8xf32>
    %273 = vector.shape_cast %272 : vector<1x9x9x8xf32> to vector<9x9x8xf32>
    %c2_304 = arith.constant 2 : index
    %c0_305 = arith.constant 0 : index
    %c0_306 = arith.constant 0 : index
    %c0_307 = arith.constant 0 : index
    %274 = vector.load %arg2[%c2_304, %c0_305, %c0_306, %c0_307] : memref<9x1x1x8xf32, #tpu.memory_space<vmem>>, vector<1x1x1x8xf32>
    %275 = vector.shape_cast %274 : vector<1x1x1x8xf32> to vector<1x1x8xf32>
    %276 = vector.broadcast %275 : vector<1x1x8xf32> to vector<9x9x8xf32>
    %277 = arith.mulf %273, %276 : vector<9x9x8xf32>
    %278 = arith.addf %271, %277 : vector<9x9x8xf32>
    %c1_308 = arith.constant 1 : index
    %c1_309 = arith.constant 1 : index
    %c0_310 = arith.constant 0 : index
    %c0_311 = arith.constant 0 : index
    %279 = vector.load %arg8[%c1_308, %c1_309, %c0_310, %c0_311] : memref<4x10x10x8xf32, #tpu.memory_space<vmem>>, vector<1x9x9x8xf32>
    %280 = vector.shape_cast %279 : vector<1x9x9x8xf32> to vector<9x9x8xf32>
    %c3_312 = arith.constant 3 : index
    %c0_313 = arith.constant 0 : index
    %c0_314 = arith.constant 0 : index
    %c0_315 = arith.constant 0 : index
    %281 = vector.load %arg2[%c3_312, %c0_313, %c0_314, %c0_315] : memref<9x1x1x8xf32, #tpu.memory_space<vmem>>, vector<1x1x1x8xf32>
    %282 = vector.shape_cast %281 : vector<1x1x1x8xf32> to vector<1x1x8xf32>
    %283 = vector.broadcast %282 : vector<1x1x8xf32> to vector<9x9x8xf32>
    %284 = arith.mulf %280, %283 : vector<9x9x8xf32>
    %285 = arith.addf %278, %284 : vector<9x9x8xf32>
    %c0_316 = arith.constant 0 : index
    %c1_317 = arith.constant 1 : index
    %c1_318 = arith.constant 1 : index
    %c0_319 = arith.constant 0 : index
    %286 = vector.load %arg8[%c0_316, %c1_317, %c1_318, %c0_319] : memref<4x10x10x8xf32, #tpu.memory_space<vmem>>, vector<1x9x9x8xf32>
    %287 = vector.shape_cast %286 : vector<1x9x9x8xf32> to vector<9x9x8xf32>
    %c4_320 = arith.constant 4 : index
    %c0_321 = arith.constant 0 : index
    %c0_322 = arith.constant 0 : index
    %c0_323 = arith.constant 0 : index
    %288 = vector.load %arg2[%c4_320, %c0_321, %c0_322, %c0_323] : memref<9x1x1x8xf32, #tpu.memory_space<vmem>>, vector<1x1x1x8xf32>
    %289 = vector.shape_cast %288 : vector<1x1x1x8xf32> to vector<1x1x8xf32>
    %290 = vector.broadcast %289 : vector<1x1x8xf32> to vector<9x9x8xf32>
    %291 = arith.mulf %287, %290 : vector<9x9x8xf32>
    %292 = arith.addf %285, %291 : vector<9x9x8xf32>
    %c1_324 = arith.constant 1 : index
    %c1_325 = arith.constant 1 : index
    %c1_326 = arith.constant 1 : index
    %c0_327 = arith.constant 0 : index
    %293 = vector.load %arg8[%c1_324, %c1_325, %c1_326, %c0_327] : memref<4x10x10x8xf32, #tpu.memory_space<vmem>>, vector<1x9x9x8xf32>
    %294 = vector.shape_cast %293 : vector<1x9x9x8xf32> to vector<9x9x8xf32>
    %c5_328 = arith.constant 5 : index
    %c0_329 = arith.constant 0 : index
    %c0_330 = arith.constant 0 : index
    %c0_331 = arith.constant 0 : index
    %295 = vector.load %arg2[%c5_328, %c0_329, %c0_330, %c0_331] : memref<9x1x1x8xf32, #tpu.memory_space<vmem>>, vector<1x1x1x8xf32>
    %296 = vector.shape_cast %295 : vector<1x1x1x8xf32> to vector<1x1x8xf32>
    %297 = vector.broadcast %296 : vector<1x1x8xf32> to vector<9x9x8xf32>
    %298 = arith.mulf %294, %297 : vector<9x9x8xf32>
    %299 = arith.addf %292, %298 : vector<9x9x8xf32>
    %c3_332 = arith.constant 3 : index
    %c1_333 = arith.constant 1 : index
    %c0_334 = arith.constant 0 : index
    %c0_335 = arith.constant 0 : index
    %300 = vector.load %arg8[%c3_332, %c1_333, %c0_334, %c0_335] : memref<4x10x10x8xf32, #tpu.memory_space<vmem>>, vector<1x9x9x8xf32>
    %301 = vector.shape_cast %300 : vector<1x9x9x8xf32> to vector<9x9x8xf32>
    %c6_336 = arith.constant 6 : index
    %c0_337 = arith.constant 0 : index
    %c0_338 = arith.constant 0 : index
    %c0_339 = arith.constant 0 : index
    %302 = vector.load %arg2[%c6_336, %c0_337, %c0_338, %c0_339] : memref<9x1x1x8xf32, #tpu.memory_space<vmem>>, vector<1x1x1x8xf32>
    %303 = vector.shape_cast %302 : vector<1x1x1x8xf32> to vector<1x1x8xf32>
    %304 = vector.broadcast %303 : vector<1x1x8xf32> to vector<9x9x8xf32>
    %305 = arith.mulf %301, %304 : vector<9x9x8xf32>
    %306 = arith.addf %299, %305 : vector<9x9x8xf32>
    %c2_340 = arith.constant 2 : index
    %c1_341 = arith.constant 1 : index
    %c1_342 = arith.constant 1 : index
    %c0_343 = arith.constant 0 : index
    %307 = vector.load %arg8[%c2_340, %c1_341, %c1_342, %c0_343] : memref<4x10x10x8xf32, #tpu.memory_space<vmem>>, vector<1x9x9x8xf32>
    %308 = vector.shape_cast %307 : vector<1x9x9x8xf32> to vector<9x9x8xf32>
    %c7_344 = arith.constant 7 : index
    %c0_345 = arith.constant 0 : index
    %c0_346 = arith.constant 0 : index
    %c0_347 = arith.constant 0 : index
    %309 = vector.load %arg2[%c7_344, %c0_345, %c0_346, %c0_347] : memref<9x1x1x8xf32, #tpu.memory_space<vmem>>, vector<1x1x1x8xf32>
    %310 = vector.shape_cast %309 : vector<1x1x1x8xf32> to vector<1x1x8xf32>
    %311 = vector.broadcast %310 : vector<1x1x8xf32> to vector<9x9x8xf32>
    %312 = arith.mulf %308, %311 : vector<9x9x8xf32>
    %313 = arith.addf %306, %312 : vector<9x9x8xf32>
    %c3_348 = arith.constant 3 : index
    %c1_349 = arith.constant 1 : index
    %c1_350 = arith.constant 1 : index
    %c0_351 = arith.constant 0 : index
    %314 = vector.load %arg8[%c3_348, %c1_349, %c1_350, %c0_351] : memref<4x10x10x8xf32, #tpu.memory_space<vmem>>, vector<1x9x9x8xf32>
    %315 = vector.shape_cast %314 : vector<1x9x9x8xf32> to vector<9x9x8xf32>
    %c8_352 = arith.constant 8 : index
    %c0_353 = arith.constant 0 : index
    %c0_354 = arith.constant 0 : index
    %c0_355 = arith.constant 0 : index
    %316 = vector.load %arg2[%c8_352, %c0_353, %c0_354, %c0_355] : memref<9x1x1x8xf32, #tpu.memory_space<vmem>>, vector<1x1x1x8xf32>
    %317 = vector.shape_cast %316 : vector<1x1x1x8xf32> to vector<1x1x8xf32>
    %318 = vector.broadcast %317 : vector<1x1x8xf32> to vector<9x9x8xf32>
    %319 = arith.mulf %315, %318 : vector<9x9x8xf32>
    %320 = arith.addf %313, %319 : vector<9x9x8xf32>
    %321 = vector.broadcast %1 : vector<1x1x8xf32> to vector<9x9x8xf32>
    %322 = arith.addf %320, %321 : vector<9x9x8xf32>
    %323 = arith.truncf %322 : vector<9x9x8xf32> to vector<9x9x8xbf16>
    %c3_356 = arith.constant 3 : index
    %c0_357 = arith.constant 0 : index
    %c0_358 = arith.constant 0 : index
    %c0_359 = arith.constant 0 : index
    %324 = vector.load %arg9[%c3_356, %c0_357, %c0_358, %c0_359] : memref<4x9x9x8xbf16, #tpu.memory_space<vmem>>, vector<1x9x9x8xbf16>
    %325 = vector.shape_cast %324 : vector<1x9x9x8xbf16> to vector<9x9x8xbf16>
    %326 = vector.shape_cast %323 : vector<9x9x8xbf16> to vector<1x9x9x8xbf16>
    tpu.vector_store %arg9[%c3_356, %c0_357, %c0_358, %c0_359], %326 {strides = array<i32>} : memref<4x9x9x8xbf16, #tpu.memory_space<vmem>>, vector<1x9x9x8xbf16>,
    %cst_360 = arith.constant 0.000000e+00 : bf16
    %327 = vector.broadcast %cst_360 : bf16 to vector<1x9x8xbf16>
    %c0_361 = arith.constant 0 : index
    %c0_362 = arith.constant 0 : index
    %c0_363 = arith.constant 0 : index
    %c0_364 = arith.constant 0 : index
    %328 = vector.load %arg9[%c0_361, %c0_362, %c0_363, %c0_364] : memref<4x9x9x8xbf16, #tpu.memory_space<vmem>>, vector<1x1x9x8xbf16>
    %329 = vector.shape_cast %328 : vector<1x1x9x8xbf16> to vector<1x9x8xbf16>
    %330 = vector.shape_cast %327 : vector<1x9x8xbf16> to vector<1x1x9x8xbf16>
    tpu.vector_store %arg9[%c0_361, %c0_362, %c0_363, %c0_364], %330 {strides = array<i32>} : memref<4x9x9x8xbf16, #tpu.memory_space<vmem>>, vector<1x1x9x8xbf16>,
    %c1_365 = arith.constant 1 : index
    %c0_366 = arith.constant 0 : index
    %c0_367 = arith.constant 0 : index
    %c0_368 = arith.constant 0 : index
    %331 = vector.load %arg9[%c1_365, %c0_366, %c0_367, %c0_368] : memref<4x9x9x8xbf16, #tpu.memory_space<vmem>>, vector<1x1x9x8xbf16>
    %332 = vector.shape_cast %331 : vector<1x1x9x8xbf16> to vector<1x9x8xbf16>
    %333 = vector.shape_cast %327 : vector<1x9x8xbf16> to vector<1x1x9x8xbf16>
    tpu.vector_store %arg9[%c1_365, %c0_366, %c0_367, %c0_368], %333 {strides = array<i32>} : memref<4x9x9x8xbf16, #tpu.memory_space<vmem>>, vector<1x1x9x8xbf16>,
    %cst_369 = arith.constant 0.000000e+00 : f32
    %334 = vector.broadcast %cst_369 : f32 to vector<8x8x8xf32>
    %c0_370 = arith.constant 0 : index
    %c0_371 = arith.constant 0 : index
    %c0_372 = arith.constant 0 : index
    %c0_373 = arith.constant 0 : index
    %335 = vector.load %arg9[%c0_370, %c0_371, %c0_372, %c0_373] : memref<4x9x9x8xbf16, #tpu.memory_space<vmem>>, vector<1x8x8x8xbf16>
    %336 = vector.shape_cast %335 : vector<1x8x8x8xbf16> to vector<8x8x8xbf16>
    %337 = arith.extf %336 : vector<8x8x8xbf16> to vector<8x8x8xf32>
    %c0_374 = arith.constant 0 : index
    %c0_375 = arith.constant 0 : index
    %c0_376 = arith.constant 0 : index
    %c0_377 = arith.constant 0 : index
    %338 = vector.load %arg3[%c0_374, %c0_375, %c0_376, %c0_377] : memref<9x1x1x8xf32, #tpu.memory_space<vmem>>, vector<1x1x1x8xf32>
    %339 = vector.shape_cast %338 : vector<1x1x1x8xf32> to vector<1x1x8xf32>
    %340 = vector.broadcast %339 : vector<1x1x8xf32> to vector<8x8x8xf32>
    %341 = arith.mulf %337, %340 : vector<8x8x8xf32>
    %342 = arith.addf %334, %341 : vector<8x8x8xf32>
    %c1_378 = arith.constant 1 : index
    %c0_379 = arith.constant 0 : index
    %c0_380 = arith.constant 0 : index
    %c0_381 = arith.constant 0 : index
    %343 = vector.load %arg9[%c1_378, %c0_379, %c0_380, %c0_381] : memref<4x9x9x8xbf16, #tpu.memory_space<vmem>>, vector<1x8x8x8xbf16>
    %344 = vector.shape_cast %343 : vector<1x8x8x8xbf16> to vector<8x8x8xbf16>
    %345 = arith.extf %344 : vector<8x8x8xbf16> to vector<8x8x8xf32>
    %c1_382 = arith.constant 1 : index
    %c0_383 = arith.constant 0 : index
    %c0_384 = arith.constant 0 : index
    %c0_385 = arith.constant 0 : index
    %346 = vector.load %arg3[%c1_382, %c0_383, %c0_384, %c0_385] : memref<9x1x1x8xf32, #tpu.memory_space<vmem>>, vector<1x1x1x8xf32>
    %347 = vector.shape_cast %346 : vector<1x1x1x8xf32> to vector<1x1x8xf32>
    %348 = vector.broadcast %347 : vector<1x1x8xf32> to vector<8x8x8xf32>
    %349 = arith.mulf %345, %348 : vector<8x8x8xf32>
    %350 = arith.addf %342, %349 : vector<8x8x8xf32>
    %c0_386 = arith.constant 0 : index
    %c0_387 = arith.constant 0 : index
    %c1_388 = arith.constant 1 : index
    %c0_389 = arith.constant 0 : index
    %351 = vector.load %arg9[%c0_386, %c0_387, %c1_388, %c0_389] : memref<4x9x9x8xbf16, #tpu.memory_space<vmem>>, vector<1x8x8x8xbf16>
    %352 = vector.shape_cast %351 : vector<1x8x8x8xbf16> to vector<8x8x8xbf16>
    %353 = arith.extf %352 : vector<8x8x8xbf16> to vector<8x8x8xf32>
    %c2_390 = arith.constant 2 : index
    %c0_391 = arith.constant 0 : index
    %c0_392 = arith.constant 0 : index
    %c0_393 = arith.constant 0 : index
    %354 = vector.load %arg3[%c2_390, %c0_391, %c0_392, %c0_393] : memref<9x1x1x8xf32, #tpu.memory_space<vmem>>, vector<1x1x1x8xf32>
    %355 = vector.shape_cast %354 : vector<1x1x1x8xf32> to vector<1x1x8xf32>
    %356 = vector.broadcast %355 : vector<1x1x8xf32> to vector<8x8x8xf32>
    %357 = arith.mulf %353, %356 : vector<8x8x8xf32>
    %358 = arith.addf %350, %357 : vector<8x8x8xf32>
    %c2_394 = arith.constant 2 : index
    %c0_395 = arith.constant 0 : index
    %c0_396 = arith.constant 0 : index
    %c0_397 = arith.constant 0 : index
    %359 = vector.load %arg9[%c2_394, %c0_395, %c0_396, %c0_397] : memref<4x9x9x8xbf16, #tpu.memory_space<vmem>>, vector<1x8x8x8xbf16>
    %360 = vector.shape_cast %359 : vector<1x8x8x8xbf16> to vector<8x8x8xbf16>
    %361 = arith.extf %360 : vector<8x8x8xbf16> to vector<8x8x8xf32>
    %c3_398 = arith.constant 3 : index
    %c0_399 = arith.constant 0 : index
    %c0_400 = arith.constant 0 : index
    %c0_401 = arith.constant 0 : index
    %362 = vector.load %arg3[%c3_398, %c0_399, %c0_400, %c0_401] : memref<9x1x1x8xf32, #tpu.memory_space<vmem>>, vector<1x1x1x8xf32>
    %363 = vector.shape_cast %362 : vector<1x1x1x8xf32> to vector<1x1x8xf32>
    %364 = vector.broadcast %363 : vector<1x1x8xf32> to vector<8x8x8xf32>
    %365 = arith.mulf %361, %364 : vector<8x8x8xf32>
    %366 = arith.addf %358, %365 : vector<8x8x8xf32>
    %c3_402 = arith.constant 3 : index
    %c0_403 = arith.constant 0 : index
    %c0_404 = arith.constant 0 : index
    %c0_405 = arith.constant 0 : index
    %367 = vector.load %arg9[%c3_402, %c0_403, %c0_404, %c0_405] : memref<4x9x9x8xbf16, #tpu.memory_space<vmem>>, vector<1x8x8x8xbf16>
    %368 = vector.shape_cast %367 : vector<1x8x8x8xbf16> to vector<8x8x8xbf16>
    %369 = arith.extf %368 : vector<8x8x8xbf16> to vector<8x8x8xf32>
    %c4_406 = arith.constant 4 : index
    %c0_407 = arith.constant 0 : index
    %c0_408 = arith.constant 0 : index
    %c0_409 = arith.constant 0 : index
    %370 = vector.load %arg3[%c4_406, %c0_407, %c0_408, %c0_409] : memref<9x1x1x8xf32, #tpu.memory_space<vmem>>, vector<1x1x1x8xf32>
    %371 = vector.shape_cast %370 : vector<1x1x1x8xf32> to vector<1x1x8xf32>
    %372 = vector.broadcast %371 : vector<1x1x8xf32> to vector<8x8x8xf32>
    %373 = arith.mulf %369, %372 : vector<8x8x8xf32>
    %374 = arith.addf %366, %373 : vector<8x8x8xf32>
    %c2_410 = arith.constant 2 : index
    %c0_411 = arith.constant 0 : index
    %c1_412 = arith.constant 1 : index
    %c0_413 = arith.constant 0 : index
    %375 = vector.load %arg9[%c2_410, %c0_411, %c1_412, %c0_413] : memref<4x9x9x8xbf16, #tpu.memory_space<vmem>>, vector<1x8x8x8xbf16>
    %376 = vector.shape_cast %375 : vector<1x8x8x8xbf16> to vector<8x8x8xbf16>
    %377 = arith.extf %376 : vector<8x8x8xbf16> to vector<8x8x8xf32>
    %c5_414 = arith.constant 5 : index
    %c0_415 = arith.constant 0 : index
    %c0_416 = arith.constant 0 : index
    %c0_417 = arith.constant 0 : index
    %378 = vector.load %arg3[%c5_414, %c0_415, %c0_416, %c0_417] : memref<9x1x1x8xf32, #tpu.memory_space<vmem>>, vector<1x1x1x8xf32>
    %379 = vector.shape_cast %378 : vector<1x1x1x8xf32> to vector<1x1x8xf32>
    %380 = vector.broadcast %379 : vector<1x1x8xf32> to vector<8x8x8xf32>
    %381 = arith.mulf %377, %380 : vector<8x8x8xf32>
    %382 = arith.addf %374, %381 : vector<8x8x8xf32>
    %c0_418 = arith.constant 0 : index
    %c1_419 = arith.constant 1 : index
    %c0_420 = arith.constant 0 : index
    %c0_421 = arith.constant 0 : index
    %383 = vector.load %arg9[%c0_418, %c1_419, %c0_420, %c0_421] : memref<4x9x9x8xbf16, #tpu.memory_space<vmem>>, vector<1x8x8x8xbf16>
    %384 = vector.shape_cast %383 : vector<1x8x8x8xbf16> to vector<8x8x8xbf16>
    %385 = arith.extf %384 : vector<8x8x8xbf16> to vector<8x8x8xf32>
    %c6_422 = arith.constant 6 : index
    %c0_423 = arith.constant 0 : index
    %c0_424 = arith.constant 0 : index
    %c0_425 = arith.constant 0 : index
    %386 = vector.load %arg3[%c6_422, %c0_423, %c0_424, %c0_425] : memref<9x1x1x8xf32, #tpu.memory_space<vmem>>, vector<1x1x1x8xf32>
    %387 = vector.shape_cast %386 : vector<1x1x1x8xf32> to vector<1x1x8xf32>
    %388 = vector.broadcast %387 : vector<1x1x8xf32> to vector<8x8x8xf32>
    %389 = arith.mulf %385, %388 : vector<8x8x8xf32>
    %390 = arith.addf %382, %389 : vector<8x8x8xf32>
    %c1_426 = arith.constant 1 : index
    %c1_427 = arith.constant 1 : index
    %c0_428 = arith.constant 0 : index
    %c0_429 = arith.constant 0 : index
    %391 = vector.load %arg9[%c1_426, %c1_427, %c0_428, %c0_429] : memref<4x9x9x8xbf16, #tpu.memory_space<vmem>>, vector<1x8x8x8xbf16>
    %392 = vector.shape_cast %391 : vector<1x8x8x8xbf16> to vector<8x8x8xbf16>
    %393 = arith.extf %392 : vector<8x8x8xbf16> to vector<8x8x8xf32>
    %c7_430 = arith.constant 7 : index
    %c0_431 = arith.constant 0 : index
    %c0_432 = arith.constant 0 : index
    %c0_433 = arith.constant 0 : index
    %394 = vector.load %arg3[%c7_430, %c0_431, %c0_432, %c0_433] : memref<9x1x1x8xf32, #tpu.memory_space<vmem>>, vector<1x1x1x8xf32>
    %395 = vector.shape_cast %394 : vector<1x1x1x8xf32> to vector<1x1x8xf32>
    %396 = vector.broadcast %395 : vector<1x1x8xf32> to vector<8x8x8xf32>
    %397 = arith.mulf %393, %396 : vector<8x8x8xf32>
    %398 = arith.addf %390, %397 : vector<8x8x8xf32>
    %c0_434 = arith.constant 0 : index
    %c1_435 = arith.constant 1 : index
    %c1_436 = arith.constant 1 : index
    %c0_437 = arith.constant 0 : index
    %399 = vector.load %arg9[%c0_434, %c1_435, %c1_436, %c0_437] : memref<4x9x9x8xbf16, #tpu.memory_space<vmem>>, vector<1x8x8x8xbf16>
    %400 = vector.shape_cast %399 : vector<1x8x8x8xbf16> to vector<8x8x8xbf16>
    %401 = arith.extf %400 : vector<8x8x8xbf16> to vector<8x8x8xf32>
    %c8_438 = arith.constant 8 : index
    %c0_439 = arith.constant 0 : index
    %c0_440 = arith.constant 0 : index
    %c0_441 = arith.constant 0 : index
    %402 = vector.load %arg3[%c8_438, %c0_439, %c0_440, %c0_441] : memref<9x1x1x8xf32, #tpu.memory_space<vmem>>, vector<1x1x1x8xf32>
    %403 = vector.shape_cast %402 : vector<1x1x1x8xf32> to vector<1x1x8xf32>
    %404 = vector.broadcast %403 : vector<1x1x8xf32> to vector<8x8x8xf32>
    %405 = arith.mulf %401, %404 : vector<8x8x8xf32>
    %406 = arith.addf %398, %405 : vector<8x8x8xf32>
    %407 = vector.broadcast %3 : vector<1x1x8xf32> to vector<8x8x8xf32>
    %408 = arith.addf %406, %407 : vector<8x8x8xf32>
    %cst_442 = arith.constant 5.000000e-01 : f32
    %409 = vector.broadcast %cst_442 : f32 to vector<8x8x8xf32>
    %410 = arith.mulf %409, %408 : vector<8x8x8xf32>
    %411 = arith.mulf %408, %408 : vector<8x8x8xf32>
    %412 = arith.mulf %411, %408 : vector<8x8x8xf32>
    %cst_443 = arith.constant 4.471500e-02 : f32
    %413 = vector.broadcast %cst_443 : f32 to vector<8x8x8xf32>
    %414 = arith.mulf %413, %412 : vector<8x8x8xf32>
    %415 = arith.addf %408, %414 : vector<8x8x8xf32>
    %cst_444 = arith.constant 0.797884583 : f32
    %416 = vector.broadcast %cst_444 : f32 to vector<8x8x8xf32>
    %417 = arith.mulf %416, %415 : vector<8x8x8xf32>
    %418 = math.tanh %417 : vector<8x8x8xf32>
    %cst_445 = arith.constant 1.000000e+00 : f32
    %419 = vector.broadcast %cst_445 : f32 to vector<8x8x8xf32>
    %420 = arith.addf %419, %418 : vector<8x8x8xf32>
    %421 = arith.mulf %410, %420 : vector<8x8x8xf32>
    %422 = vector.broadcast %5 : vector<1x1x8xf32> to vector<8x8x8xf32>
    %423 = arith.mulf %421, %422 : vector<8x8x8xf32>
    %424 = vector.broadcast %7 : vector<1x1x8xf32> to vector<8x8x8xf32>
    %425 = arith.addf %423, %424 : vector<8x8x8xf32>
    %c3_446 = arith.constant 3 : index
    %c0_447 = arith.constant 0 : index
    %c0_448 = arith.constant 0 : index
    %c0_449 = arith.constant 0 : index
    %426 = vector.load %arg9[%c3_446, %c0_447, %c0_448, %c0_449] : memref<4x9x9x8xbf16, #tpu.memory_space<vmem>>, vector<1x8x8x8xbf16>
    %427 = vector.shape_cast %426 : vector<1x8x8x8xbf16> to vector<8x8x8xbf16>
    %c2_450 = arith.constant 2 : index
    %c0_451 = arith.constant 0 : index
    %c1_452 = arith.constant 1 : index
    %c0_453 = arith.constant 0 : index
    %428 = vector.load %arg9[%c2_450, %c0_451, %c1_452, %c0_453] : memref<4x9x9x8xbf16, #tpu.memory_space<vmem>>, vector<1x8x8x8xbf16>
    %429 = vector.shape_cast %428 : vector<1x8x8x8xbf16> to vector<8x8x8xbf16>
    %c1_454 = arith.constant 1 : index
    %c1_455 = arith.constant 1 : index
    %c0_456 = arith.constant 0 : index
    %c0_457 = arith.constant 0 : index
    %430 = vector.load %arg9[%c1_454, %c1_455, %c0_456, %c0_457] : memref<4x9x9x8xbf16, #tpu.memory_space<vmem>>, vector<1x8x8x8xbf16>
    %431 = vector.shape_cast %430 : vector<1x8x8x8xbf16> to vector<8x8x8xbf16>
    %c0_458 = arith.constant 0 : index
    %c1_459 = arith.constant 1 : index
    %c1_460 = arith.constant 1 : index
    %c0_461 = arith.constant 0 : index
    %432 = vector.load %arg9[%c0_458, %c1_459, %c1_460, %c0_461] : memref<4x9x9x8xbf16, #tpu.memory_space<vmem>>, vector<1x8x8x8xbf16>
    %433 = vector.shape_cast %432 : vector<1x8x8x8xbf16> to vector<8x8x8xbf16>
    %434 = arith.maximumf %427, %429 : vector<8x8x8xbf16>
    %435 = arith.maximumf %431, %433 : vector<8x8x8xbf16>
    %436 = arith.maximumf %434, %435 : vector<8x8x8xbf16>
    %437 = arith.extf %436 : vector<8x8x8xbf16> to vector<8x8x8xf32>
    %438 = vector.broadcast %9 : vector<1x1x8xf32> to vector<8x8x8xf32>
    %439 = arith.mulf %437, %438 : vector<8x8x8xf32>
    %440 = vector.broadcast %11 : vector<1x1x8xf32> to vector<8x8x8xf32>
    %441 = arith.addf %439, %440 : vector<8x8x8xf32>
    %c0_462 = arith.constant 0 : index
    %c0_463 = arith.constant 0 : index
    %c1_464 = arith.constant 1 : index
    %c1_465 = arith.constant 1 : index
    %c0_466 = arith.constant 0 : index
    %442 = vector.load %arg1[%c0_462, %c0_463, %c1_464, %c1_465, %c0_466] : memref<1x4x10x10x4xf32, #tpu.memory_space<vmem>>, vector<1x1x8x8x4xf32>
    %443 = vector.shape_cast %442 : vector<1x1x8x8x4xf32> to vector<8x8x4xf32>
    %c0_467 = arith.constant 0 : index
    %c2_468 = arith.constant 2 : index
    %c1_469 = arith.constant 1 : index
    %c1_470 = arith.constant 1 : index
    %c0_471 = arith.constant 0 : index
    %444 = vector.load %arg1[%c0_467, %c2_468, %c1_469, %c1_470, %c0_471] : memref<1x4x10x10x4xf32, #tpu.memory_space<vmem>>, vector<1x1x8x8x4xf32>
    %445 = vector.shape_cast %444 : vector<1x1x8x8x4xf32> to vector<8x8x4xf32>
    %c0_472 = arith.constant 0 : index
    %c1_473 = arith.constant 1 : index
    %c1_474 = arith.constant 1 : index
    %c1_475 = arith.constant 1 : index
    %c0_476 = arith.constant 0 : index
    %446 = vector.load %arg1[%c0_472, %c1_473, %c1_474, %c1_475, %c0_476] : memref<1x4x10x10x4xf32, #tpu.memory_space<vmem>>, vector<1x1x8x8x4xf32>
    %447 = vector.shape_cast %446 : vector<1x1x8x8x4xf32> to vector<8x8x4xf32>
    %c0_477 = arith.constant 0 : index
    %c3_478 = arith.constant 3 : index
    %c1_479 = arith.constant 1 : index
    %c1_480 = arith.constant 1 : index
    %c0_481 = arith.constant 0 : index
    %448 = vector.load %arg1[%c0_477, %c3_478, %c1_479, %c1_480, %c0_481] : memref<1x4x10x10x4xf32, #tpu.memory_space<vmem>>, vector<1x1x8x8x4xf32>
    %449 = vector.shape_cast %448 : vector<1x1x8x8x4xf32> to vector<8x8x4xf32>
    %450 = tpu.concatenate %443, %445, %447, %449 in 2 : vector<8x8x4xf32>, vector<8x8x4xf32>, vector<8x8x4xf32>, vector<8x8x4xf32> -> vector<8x8x16xf32>
    %451 = arith.truncf %450 : vector<8x8x16xf32> to vector<8x8x16xbf16>
    %452 = arith.truncf %425 : vector<8x8x8xf32> to vector<8x8x8xbf16>
    %453 = arith.truncf %441 : vector<8x8x8xf32> to vector<8x8x8xbf16>
    %454 = tpu.concatenate %451, %452, %453 in 2 : vector<8x8x16xbf16>, vector<8x8x8xbf16>, vector<8x8x8xbf16> -> vector<8x8x32xbf16>
    %455 = vector.shape_cast %454 : vector<8x8x32xbf16> to vector<64x32xbf16>
    %c0_482 = arith.constant 0 : index
    %c0_483 = arith.constant 0 : index
    %456 = vector.load %arg5[%c0_482, %c0_483] : memref<32x8xbf16, #tpu.memory_space<vmem>>, vector<32x8xbf16>
    %cst_484 = arith.constant dense<0.000000e+00> : vector<64x8xf32>
    %457 = tpu.matmul %455, %456, %cst_484 {dimension_numbers = #tpu.dot_dimension_numbers<[1], [0], [0], [1], [0, 0, 1, 1], [], []>} : vector<64x32xbf16>, vector<32x8xbf16>, vector<64x8xf32> -> vector<64x8xf32>
    %c0_485 = arith.constant 0 : index
    %c0_486 = arith.constant 0 : index
    %458 = vector.load %arg6[%c0_485, %c0_486] : memref<1x8xf32, #tpu.memory_space<vmem>>, vector<1x8xf32>
    %459 = vector.broadcast %458 : vector<1x8xf32> to vector<64x8xf32>
    %460 = arith.addf %457, %459 : vector<64x8xf32>
    %c0_487 = arith.constant 0 : index
    %c0_488 = arith.constant 0 : index
    %c0_489 = arith.constant 0 : index
    %461 = vector.load %arg7[%c0_487, %c0_488, %c0_489] : memref<1x64x8xf32, #tpu.memory_space<vmem>>, vector<1x64x8xf32>
    %462 = vector.shape_cast %461 : vector<1x64x8xf32> to vector<64x8xf32>
    %463 = vector.shape_cast %460 : vector<64x8xf32> to vector<1x64x8xf32>
    tpu.vector_store %arg7[%c0_487, %c0_488, %c0_489], %463 {strides = array<i32>} : memref<1x64x8xf32, #tpu.memory_space<vmem>>, vector<1x64x8xf32>,
    return
  }
  func.func @transform_0(%arg0: i32) -> (i32, i32, i32, i32, i32) {
    %c0_i32 = arith.constant 0 : i32
    %c0_i32_0 = arith.constant 0 : i32
    %c0_i32_1 = arith.constant 0 : i32
    %c0_i32_2 = arith.constant 0 : i32
    %c0_i32_3 = arith.constant 0 : i32
    return %arg0, %c0_i32, %c0_i32_0, %c0_i32_1, %c0_i32_2 : i32, i32, i32, i32, i32
  }
  func.func @transform_1(%arg0: i32) -> (i32, i32, i32, i32) {
    %c0_i32 = arith.constant 0 : i32
    %c0_i32_0 = arith.constant 0 : i32
    %c0_i32_1 = arith.constant 0 : i32
    %c0_i32_2 = arith.constant 0 : i32
    %c0_i32_3 = arith.constant 0 : i32
    return %c0_i32, %c0_i32_0, %c0_i32_1, %c0_i32_2 : i32, i32, i32, i32
  }
  func.func @transform_2(%arg0: i32) -> (i32, i32, i32, i32) {
    %c0_i32 = arith.constant 0 : i32
    %c0_i32_0 = arith.constant 0 : i32
    %c0_i32_1 = arith.constant 0 : i32
    %c0_i32_2 = arith.constant 0 : i32
    %c0_i32_3 = arith.constant 0 : i32
    return %c0_i32, %c0_i32_0, %c0_i32_1, %c0_i32_2 : i32, i32, i32, i32
  }
  func.func @transform_3(%arg0: i32) -> (i32, i32, i32, i32) {
    %c0_i32 = arith.constant 0 : i32
    %c0_i32_0 = arith.constant 0 : i32
    %c0_i32_1 = arith.constant 0 : i32
    %c0_i32_2 = arith.constant 0 : i32
    %c0_i32_3 = arith.constant 0 : i32
    return %c0_i32, %c0_i32_0, %c0_i32_1, %c0_i32_2 : i32, i32, i32, i32
  }
  func.func @transform_4(%arg0: i32) -> (i32, i32) {
    %c0_i32 = arith.constant 0 : i32
    %c0_i32_0 = arith.constant 0 : i32
    %c0_i32_1 = arith.constant 0 : i32
    return %c0_i32, %c0_i32_0 : i32, i32
  }
  func.func @transform_5(%arg0: i32) -> (i32, i32) {
    %c0_i32 = arith.constant 0 : i32
    %c0_i32_0 = arith.constant 0 : i32
    %c0_i32_1 = arith.constant 0 : i32
    return %c0_i32, %c0_i32_0 : i32, i32
  }
  func.func @transform_6(%arg0: i32) -> (i32, i32, i32) {
    %c0_i32 = arith.constant 0 : i32
    %c0_i32_0 = arith.constant 0 : i32
    %c0_i32_1 = arith.constant 0 : i32
    return %arg0, %c0_i32, %c0_i32_0 : i32, i32, i32
  }
}

</mosaic_0001>

<bundles_post_ra>
// kernel: drfd_forward.1
= control target key start
LH: loop header
LB: loop body
LE: loop exit
PB: predicated region body
PF: predicated region fallthrough
CT: control target
= control target key end

     0   :  { %s5632_s21 = smov 0   ;;  %s9656_s0 = inlined_call_operand.vmem [shape: f32[2,4,10,10,4], index: 0, kind: input, shape index: {}]   ;;  %s9657_s1 = inlined_call_operand.vmem [shape: f32[9,1,1,8], index: 1, kind: input, shape index: {}]   ;;  %s9658_s2 = inlined_call_operand.vmem [shape: f32[9,1,1,8], index: 2, kind: input, shape index: {}]   ;;  %s9659_s3 = inlined_call_operand.vmem [shape: f32[6,1,1,8], index: 3, kind: input, shape index: {}]   ;;  %s9660_s4 = inlined_call_operand.vmem [shape: bf16[32,8], index: 4, kind: input, shape index: {}]   ;;  %s9661_s5 = inlined_call_operand.vmem [shape: f32[1,8], index: 5, kind: input, shape index: {}]   ;;  %s9662_s6 = inlined_call_operand.vmem [shape: f32[2,64,8], index: 6, kind: output, shape index: {}]  }
   0x1 LB: > { %s5013_s22 = sadd.s32 4294967295, %s5589_s21   ;;  %p5017_p0 = scmp.ge.s32.totalorder %s5589_s21, 1  ;;  %s5589_s21 = sphi %s5632_s21, %s16_s21  }
   0x2   : > { %p212_p1 = scmp.lt.s32.totalorder %s5589_s21, 3 }
   0x4   : > { %p213_p2 = pnand %p5017_p0, %p212_p1 }
   0x6   : > { %216 = sbr.rel (%p213_p2) target bundleno = 1080 (0x438), region = 44 }
   0xd   : > { %p242_p3 = scmp.lt.s32.totalorder %s5013_s22, 1  ;;  %s5591_s27 = smov 4   ;;  %vm364_vm0 = vcmask 31744   ;;  %vm387_vm1 = vcmask 58368   ;;  %vm385_vm2 = vcmask 64512   ;;  %vm1517_vm3 = vcmask 57344  }
   0xe   : > { %vm1518_vm4 = vsmask.f32 256  ;;  %vm1515_vm7 = vcmask 60416   ;;  %s5593_s18 = smov 8   ;;  %vm3746_vm8 = vcmask 1046528   ;;  %s5596_s8 = smov 16  }
   0xf   : > { %s10274_s22 = smov (!%p242_p3, %s5013_s22), 1  ;;  %vm6149_vm5 = vmand %vm1517_vm3, %vm1518_vm4  ;;  %vm4255_vm9 = vsmask.f32 3328  ;;  %vm4256_vm10 = vsmask.f32 7440  ;;  %vm4706_vm12 = vcmask 97280  }
  0x10   : > { %s5389_s23 = smul.u32 640, %s10274_s22  ;;  %vm8968_vm11 = vmor %vm4255_vm9, %vm4256_vm10  ;;  %vm4787_vm13 = vcmask 130048   ;;  %vm4812_vm14 = vcmask 195584   ;;  %vm4872_vm15 = vcmask 261120   ;;  %s5294_s17 = sshll.u32 %s10274_s22, 6 }
  0x12   : > { %s5646_s26 = scalar_lea.vmem %s9656_s0, %s5389_s23  ;;  %s5594_s23 = smov 12  }
  0x13   : > { %v5649_v0 = vld [vmem:[%s5646_s26 + $0x148] sm:$0x3]  ;;  %v5669_v4 = vld [vmem:[%s5646_s26 + $0xa0] sm:$0xff]  ;;  %v5679_v6 = vld [vmem:[%s5646_s26 + $0x18] sm:$0x3] }
  0x14   : > { %v5652_v1 = vld [vmem:[%s5646_s26 + $0x8] sm:$0x3]  ;;  %592 = vrot.lane.b32.xlu1 %v5649_v0, %s5591_s27  ;;  %v5672_v5 = vld [vmem:[%s5646_s26] sm:$0xff]  ;;  %v5682_v7 = vld [vmem:[%s5646_s26 + $0x10] sm:$0xff] }
  0x15   : > { %306 = vrot.lane.b32.xlu0 %v5652_v1, %s5591_s27  ;;  %v5659_v2 = vld [vmem:[%s5646_s26 + $0x1e8] sm:$0x3]  ;;  %v5692_v9 = vld [vmem:[%s5646_s26 + $0x40] sm:$0xff]  ;;  %v5699_v10 = vld [vmem:[%s5646_s26 + $0x58] sm:$0x3] }
  0x16   : > { %v5662_v3 = vld [vmem:[%s5646_s26 + $0xa8] sm:$0x3]  ;;  %v5702_v11 = vld [vmem:[%s5646_s26 + $0x50] sm:$0xff]  ;;  %v5709_v12 = vld [vmem:[%s5646_s26 + $0xb8] sm:$0x3] }
  0x17   : > { %v5689_v8 = vld [vmem:[%s5646_s26 + $0x48] sm:$0x3]  ;;  %v5712_v13 = vld [vmem:[%s5646_s26 + $0xb0] sm:$0xff]  ;;  %v5722_v15 = vld [vmem:[%s5646_s26 + $0xe0] sm:$0xff] }
  0x18   : > { %734 = vrot.lane.b32.xlu1 %v5659_v2, %s5591_s27  ;;  %v5719_v14 = vld [vmem:[%s5646_s26 + $0xe8] sm:$0x3]  ;;  %v5729_v16 = vld [vmem:[%s5646_s26 + $0xf8] sm:$0x3]  ;;  %v5732_v17 = vld [vmem:[%s5646_s26 + $0xf0] sm:$0xff] }
  0x19   : > { %450 = vrot.lane.b32.xlu0 %v5662_v3, %s5591_s27  ;;  %v5739_v18 = vld [vmem:[%s5646_s26 + $0x28] sm:$0x3]  ;;  %v5742_v19 = vld [vmem:[%s5646_s26 + $0x20] sm:$0xff]  ;;  %v5749_v20 = vld [vmem:[%s5646_s26 + $0x38] sm:$0x3] }
  0x1a   : > { %v5752_v21 = vld [vmem:[%s5646_s26 + $0x30] sm:$0xff]  ;;  %v5759_v22 = vld [vmem:[%s5646_s26 + $0x68] sm:$0x3]  ;;  %v5762_v23 = vld [vmem:[%s5646_s26 + $0x60] sm:$0xff] }
  0x1b   : > { %v5769_v24 = vld [vmem:[%s5646_s26 + $0x78] sm:$0x3]  ;;  %v5772_v25 = vld [vmem:[%s5646_s26 + $0x70] sm:$0xff]  ;;  %v5779_v26 = vld [vmem:[%s5646_s26 + $0xc8] sm:$0x3] }
  0x1c   : > { %448 = vrot.lane.b32.xlu1 %v5669_v4, %s5591_s27  ;;  %v5030_v27 = vld [vmem:[%s5646_s26 + $0xc0] sm:$0xff]  ;;  %v5786_v28 = vld [vmem:[%s5646_s26 + $0xd8] sm:$0x3]  ;;  %v5789_v29 = vld [vmem:[%s5646_s26 + $0xd0] sm:$0xff] }
  0x1d   : > { %304 = vrot.lane.b32.xlu0 %v5672_v5, %s5591_s27  ;;  %v5796_v30 = vld [vmem:[%s5646_s26 + $0x108] sm:$0x3]  ;;  %v5038_v31 = vld [vmem:[%s5646_s26 + $0x100] sm:$0xff]  ;;  %v5041_v32 = vld [vmem:[%s5646_s26 + $0x118] sm:$0x3] }
  0x1e   : > { %v5040_v33 = vld [vmem:[%s5646_s26 + $0x110] sm:$0xff]  ;;  %v5046_v35 = vld [vmem:[%s5646_s26 + $0x140] sm:$0xff]  ;;  %v5049_v37 = vld [vmem:[%s5646_s26 + $0x158] sm:$0x3] }
  0x1f   : > { %v5807_v34 = vld [vmem:[%s5646_s26 + $0x150] sm:$0xff]  ;;  %v5054_v36 = vld [vmem:[%s5646_s26 + $0x180] sm:$0xff]  ;;  %v5055_v39 = vld [vmem:[%s5646_s26 + $0x188] sm:$0x3] }
  0x20   : > { %310 = vrot.lane.b32.xlu1 %v5679_v6, %s5591_s27  ;;  %v5056_v38 = vld [vmem:[%s5646_s26 + $0x190] sm:$0xff]  ;;  %v5050_v40 = vld [vmem:[%s5646_s26 + $0x160] sm:$0xff]  ;;  %v5057_v41 = vld [vmem:[%s5646_s26 + $0x198] sm:$0x3] }
  0x21   : > { %308 = vrot.lane.b32.xlu0 %v5682_v7, %s5591_s27  ;;  %v5052_v42 = vld [vmem:[%s5646_s26 + $0x170] sm:$0xff]  ;;  %v5051_v43 = vld [vmem:[%s5646_s26 + $0x168] sm:$0x3]  ;;  %v5058_v44 = vld [vmem:[%s5646_s26 + $0x1a0] sm:$0xff] }
  0x22   : > { %v5053_v45 = vld [vmem:[%s5646_s26 + $0x178] sm:$0x3]  ;;  %v5060_v46 = vld [vmem:[%s5646_s26 + $0x1b0] sm:$0xff]  ;;  %v5059_v47 = vld [vmem:[%s5646_s26 + $0x1a8] sm:$0x3] }
  0x23   : > { %v5066_v48 = vld [vmem:[%s5646_s26 + $0x1e0] sm:$0xff]  ;;  %v5061_v49 = vld [vmem:[%s5646_s26 + $0x1b8] sm:$0x3]  ;;  %v5068_v51 = vld [vmem:[%s5646_s26 + $0x1f0] sm:$0xff] }
  0x24   : > { %322 = vrot.lane.b32.xlu1 %v5689_v8, %s5591_s27  ;;  %v5074_v50 = vld [vmem:[%s5646_s26 + $0x220] sm:$0xff]  ;;  %v5069_v52 = vld [vmem:[%s5646_s26 + $0x1f8] sm:$0x3]  ;;  %v5076_v53 = vld [vmem:[%s5646_s26 + $0x230] sm:$0xff] }
  0x25   : > { %320 = vrot.lane.b32.xlu0 %v5692_v9, %s5591_s27  ;;  %v5072_v54 = vld [vmem:[%s5646_s26 + $0x210] sm:$0xff]  ;;  %v5070_v55 = vld [vmem:[%s5646_s26 + $0x200] sm:$0xff]  ;;  %v5077_v56 = vld [vmem:[%s5646_s26 + $0x238] sm:$0x3] }
  0x26   : > { %v5075_v57 = vld [vmem:[%s5646_s26 + $0x228] sm:$0x3]  ;;  %v5080_v58 = vld [vmem:[%s5646_s26 + $0x250] sm:$0xff]  ;;  %v5078_v59 = vld [vmem:[%s5646_s26 + $0x240] sm:$0xff] }
  0x28   : > { %326 = vrot.lane.b32.xlu1 %v5699_v10, %s5591_s27 }
  0x29   : > { %324 = vrot.lane.b32.xlu0 %v5702_v11, %s5591_s27 }
  0x2c   : > { %454 = vrot.lane.b32.xlu1 %v5709_v12, %s5591_s27 }
  0x2d   : > { %452 = vrot.lane.b32.xlu0 %v5712_v13, %s5591_s27 }
  0x30   : > { %466 = vrot.lane.b32.xlu1 %v5719_v14, %s5591_s27 }
  0x31   : > { %464 = vrot.lane.b32.xlu0 %v5722_v15, %s5591_s27 }
  0x34   : > { %470 = vrot.lane.b32.xlu1 %v5729_v16, %s5591_s27 }
  0x35   : > { %468 = vrot.lane.b32.xlu0 %v5732_v17, %s5591_s27 }
  0x38   : > { %314 = vrot.lane.b32.xlu1 %v5739_v18, %s5591_s27 }
  0x39   : > { %312 = vrot.lane.b32.xlu0 %v5742_v19, %s5591_s27 }
  0x3c   : > { %318 = vrot.lane.b32.xlu1 %v5749_v20, %s5591_s27 }
  0x3d   : > { %316 = vrot.lane.b32.xlu0 %v5752_v21, %s5591_s27 }
  0x40   : > { %330 = vrot.lane.b32.xlu1 %v5759_v22, %s5591_s27 }
  0x41   : > { %328 = vrot.lane.b32.xlu0 %v5762_v23, %s5591_s27 }
  0x44   : > { %334 = vrot.lane.b32.xlu1 %v5769_v24, %s5591_s27 }
  0x45   : > { %332 = vrot.lane.b32.xlu0 %v5772_v25, %s5591_s27 }
  0x48   : > { %458 = vrot.lane.b32.xlu1 %v5779_v26, %s5591_s27 }
  0x49   : > { %456 = vrot.lane.b32.xlu0 %v5030_v27, %s5591_s27  ;;  %v5073_v27 = vld [vmem:[%s5646_s26 + $0x218] sm:$0x3] }
  0x4c   : > { %462 = vrot.lane.b32.xlu1 %v5786_v28, %s5591_s27 }
  0x4d   : > { %460 = vrot.lane.b32.xlu0 %v5789_v29, %s5591_s27 }
  0x50   : > { %474 = vrot.lane.b32.xlu1 %v5796_v30, %s5591_s27 }
  0x51   : > { %472 = vrot.lane.b32.xlu0 %v5038_v31, %s5591_s27  ;;  %v5071_v31 = vld [vmem:[%s5646_s26 + $0x208] sm:$0x3] }
  0x54   : > { %478 = vrot.lane.b32.xlu1 %v5041_v32, %s5591_s27 }
  0x55   : > { %476 = vrot.lane.b32.xlu0 %v5040_v33, %s5591_s27 }
  0x58   : > { %594 = vrot.lane.b32.xlu1 %v5807_v34, %s5591_s27 }
  0x59   : > { %590 = vrot.lane.b32.xlu0 %v5046_v35, %s5591_s27  ;;  %v5081_v35 = vld [vmem:[%s5646_s26 + $0x258] sm:$0x3] }
  0x5c   : > { %606 = vrot.lane.b32.xlu1 %v5054_v36, %s5591_s27  ;;  %v5079_v36 = vld [vmem:[%s5646_s26 + $0x248] sm:$0x3] }
  0x5d   : > { %596 = vrot.lane.b32.xlu0 %v5049_v37, %s5591_s27 }
  0x60   : > { %610 = vrot.lane.b32.xlu1 %v5056_v38, %s5591_s27 }
  0x61   : > { %608 = vrot.lane.b32.xlu0 %v5055_v39, %s5591_s27  ;;  %v281_v39 = vld [vmem:[%s5646_s26 + $0x88] sm:$0x3] }
  0x64   : > { %598 = vrot.lane.b32.xlu1 %v5050_v40, %s5591_s27  ;;  %v280_v40 = vld [vmem:[%s5646_s26 + $0x80] sm:$0xff] }
  0x65   : > { %612 = vrot.lane.b32.xlu0 %v5057_v41, %s5591_s27 }
  0x68   : > { %602 = vrot.lane.b32.xlu1 %v5052_v42, %s5591_s27 }
  0x69   : > { %600 = vrot.lane.b32.xlu0 %v5051_v43, %s5591_s27 }
  0x6c   : > { %614 = vrot.lane.b32.xlu1 %v5058_v44, %s5591_s27 }
  0x6d   : > { %604 = vrot.lane.b32.xlu0 %v5053_v45, %s5591_s27 }
  0x70   : > { %618 = vrot.lane.b32.xlu1 %v5060_v46, %s5591_s27  ;;  %v5042_v46 = vld [vmem:[%s5646_s26 + $0x120] sm:$0xff] }
  0x71   : > { %616 = vrot.lane.b32.xlu0 %v5059_v47, %s5591_s27 }
  0x74   : > { %732 = vrot.lane.b32.xlu1 %v5066_v48, %s5591_s27  ;;  %v5909_v48 = vld [vmem:[%s9657_s1] ss:$0 sm:$0xff] }
  0x75   : > { %620 = vrot.lane.b32.xlu0 %v5061_v49, %s5591_s27  ;;  %v5063_v49 = vld [vmem:[%s5646_s26 + $0x1c8] sm:$0x3] }
  0x78   : > { %748 = vrot.lane.b32.xlu1 %v5074_v50, %s5591_s27 }
  0x79   : > { %736 = vrot.lane.b32.xlu0 %v5068_v51, %s5591_s27 }
  0x7c   : > { %738 = vrot.lane.b32.xlu1 %v5069_v52, %s5591_s27  ;;  %v5062_v52 = vld [vmem:[%s5646_s26 + $0x1c0] sm:$0xff] }
  0x7d   : > { %752 = vrot.lane.b32.xlu0 %v5076_v53, %s5591_s27 }
  0x80   : > { %744 = vrot.lane.b32.xlu1 %v5072_v54, %s5591_s27 }
  0x81   : > { %740 = vrot.lane.b32.xlu0 %v5070_v55, %s5591_s27 }
  0x84   : > { %754 = vrot.lane.b32.xlu1 %v5077_v56, %s5591_s27  ;;  %v5930_v56 = vld [vmem:[%s9657_s1 + $0x2] ss:$0 sm:$0xff] }
  0x85   : > { %750 = vrot.lane.b32.xlu0 %v5075_v57, %s5591_s27 }
  0x86   : > { %v593_v60 = vpop.permute.xlu1 %592 }
  0x87   : > { %v307_v61 = vpop.permute.xlu0 %306  ;;  %v651_v62 = vsel %vm364_vm0, %v5649_v0, %v593_v60 }
  0x88   : > { %v366_v63 = vsel %vm364_vm0, %v5652_v1, %v307_v61  ;;  %672 = vst.msk [vmem:[#allocation2 + $0x148] sm:$0x3] %vm387_vm1, %v651_v62  ;;  %760 = vrot.lane.b32.xlu1 %v5080_v58, %s5591_s27  ;;  %v5082_v61 = vld [vmem:[%s5646_s26 + $0x260] sm:$0xff] }
  0x89   : > { %388 = vst.msk [vmem:[#allocation2 + $0x8] sm:$0x3] %vm387_vm1, %v366_v63  ;;  %756 = vrot.lane.b32.xlu0 %v5078_v59, %s5591_s27 }
  0x8a   : > { %v735_v32 = vpop.permute.xlu1 %734 }
  0x8b   : > { %v451_v33 = vpop.permute.xlu0 %450  ;;  %v793_v0 = vsel %vm364_vm0, %v5659_v2, %v735_v32  ;;  %v283_v32 = vld [vmem:[%s5646_s26 + $0x98] sm:$0x3] }
  0x8c   : > { %v509_v1 = vsel %vm364_vm0, %v5662_v3, %v451_v33  ;;  %814 = vst.msk [vmem:[#allocation2 + $0x1e8] sm:$0x3] %vm387_vm1, %v793_v0  ;;  %746 = vrot.lane.b32.xlu1 %v5073_v27, %s5591_s27  ;;  %v5948_v33 = vld [vmem:[%s9657_s1 + $0x3] ss:$0 sm:$0xff] }
  0x8d   : > { %530 = vst.msk [vmem:[#allocation2 + $0xa8] sm:$0x3] %vm387_vm1, %v509_v1  ;;  %742 = vrot.lane.b32.xlu0 %v5071_v31, %s5591_s27 }
  0x8e   : > { %v449_v37 = vpop.permute.xlu1 %448 }
  0x8f   : > { %v305_v38 = vpop.permute.xlu0 %304  ;;  %v508_v2 = vsel %vm364_vm0, %v5669_v4, %v449_v37  ;;  %v1024_v0 = vld [vmem:[#allocation2 + $0x148] sm:$0x1]  ;;  %v5954_v37 = vld [vmem:[%s9657_s1 + $0x5] ss:$0 sm:$0xff] }
  0x90   : > { %v365_v3 = vsel %vm364_vm0, %v5672_v5, %v305_v38  ;;  %529 = vst.msk [vmem:[#allocation2 + $0xa0] sm:$0xff] %vm385_vm2, %v508_v2  ;;  %762 = vrot.lane.b32.xlu1 %v5081_v35, %s5591_s27  ;;  %v5043_v5 = vld [vmem:[%s5646_s26 + $0x128] sm:$0x3]  ;;  %v5959_v38 = vld [vmem:[%s9657_s1 + $0x4] ss:$0 sm:$0xff] }
  0x91   : > { %386 = vst.msk [vmem:[#allocation2] sm:$0xff] %vm385_vm2, %v365_v3  ;;  %758 = vrot.lane.b32.xlu0 %v5079_v36, %s5591_s27  ;;  %v962_v58 = vld [vmem:[#allocation2 + $0x9] sm:$0x1]  ;;  %v282_v36 = vld [vmem:[%s5646_s26 + $0x90] sm:$0xff] }
  0x92   : > { %v311_v41 = vpop.permute.xlu1 %310  ;;  %v1617_v63 = vld [vmem:[#allocation2 + $0x9] sm:$0x1]  ;;  %v988_v27 = vmul.f32 %v5930_v56, %v962_v58 }
  0x93   : > { %v309_v42 = vpop.permute.xlu0 %308  ;;  %v368_v4 = vsel %vm364_vm0, %v5679_v6, %v311_v41  ;;  %v1148_v2 = vld [vmem:[#allocation2 + $0x149] sm:$0x1] }
  0x94   : > { %v367_v43 = vsel %vm364_vm0, %v5682_v7, %v309_v42  ;;  %390 = vst.msk [vmem:[#allocation2 + $0x18] sm:$0x3] %vm387_vm1, %v368_v4  ;;  %338 = vrot.lane.b32.xlu1 %v281_v39, %s5591_s27  ;;  %v900_v47 = vld [vmem:[#allocation2 + $0xa8] sm:$0x1]  ;;  %v5045_v42 = vld [vmem:[%s5646_s26 + $0x138] sm:$0x3] }
  0x95   : > { %389 = vst.msk [vmem:[#allocation2 + $0x10] sm:$0xff] %vm385_vm2, %v367_v43  ;;  %336 = vrot.lane.b32.xlu0 %v280_v40, %s5591_s27  ;;  %v2293_v39 = vld [vmem:[#allocation2 + $0x1e8] sm:$0x1]  ;;  %v1678_v4 = vld [vmem:[#allocation2 + $0xa9] sm:$0x1] }
  0x96   : > { %v323_v44 = vpop.permute.xlu1 %322  ;;  %v2928_v40 = vld [vmem:[#allocation2 + $0x1e8] sm:$0x1] }
  0x97   : > { %v321_v45 = vpop.permute.xlu0 %320  ;;  %v374_v6 = vsel %vm364_vm0, %v5689_v8, %v323_v44  ;;  %v5916_v8 = vld [vmem:[%s9657_s1 + $0x1] ss:$0 sm:$0xff]  ;;  %v5044_v44 = vld [vmem:[%s5646_s26 + $0x130] sm:$0xff] }
  0x98   : > { %v373_v7 = vsel %vm364_vm0, %v5692_v9, %v321_v45  ;;  %396 = vst.msk [vmem:[#allocation2 + $0x48] sm:$0x3] %vm387_vm1, %v374_v6  ;;  %482 = vrot.lane.b32.xlu1 %v5043_v5, %s5591_s27  ;;  %v839_v9 = vld [vmem:[#allocation2 + $0x8] sm:$0x1]  ;;  %v926_v53 = vmul.f32 %v5916_v8, %v900_v47  ;;  %v1642_v3 = vmul.f32 %v5916_v8, %v1617_v63  ;;  %v899_v43 = vld [vmem:[#allocation2 + $0xa0] sm:$0xff] }
  0x99   : > { %395 = vst.msk [vmem:[#allocation2 + $0x40] sm:$0xff] %vm385_vm2, %v373_v7  ;;  %480 = vrot.lane.b32.xlu0 %v5042_v46, %s5591_s27  ;;  %v864_v57 = vmul.f32 %v5909_v48, %v839_v9  ;;  %v838_v5 = vld [vmem:[#allocation2] sm:$0xff]  ;;  %v1050_v45 = vmul.f32 %v5948_v33, %v1024_v0  ;;  %v1800_v46 = vld [vmem:[#allocation2 + $0x149] sm:$0x1]  ;;  %v2232_v6 = vld [vmem:[#allocation2 + $0x148] sm:$0x1]  ;;  %v925_v58 = vmul.f32 %v5916_v8, %v899_v43 }
  0x9a   : > { %v327_v50 = vpop.permute.xlu1 %326  ;;  %v2989_v7 = vld [vmem:[#allocation2 + $0x149] sm:$0x1]  ;;  %v1086_v9 = vld [vmem:[#allocation2 + $0x1e8] sm:$0x1]  ;;  %v2257_v63 = vmul.f32 %v5909_v48, %v2232_v6 }
  0x9b   : > { %v325_v51 = vpop.permute.xlu0 %324  ;;  %v376_v54 = vsel %vm364_vm0, %v5699_v10, %v327_v50  ;;  %v5083_v10 = vld [vmem:[%s5646_s26 + $0x268] sm:$0x3]  ;;  %v944_v62 = vadd.f32 %v926_v53, %v864_v57  ;;  %v1112_v0 = vmul.f32 %v5959_v38, %v1086_v9 }
  0x9c   : > { %v375_v55 = vsel %vm364_vm0, %v5702_v11, %v325_v51  ;;  %398 = vst.msk [vmem:[#allocation2 + $0x58] sm:$0x3] %vm387_vm1, %v376_v54  ;;  %624 = vrot.lane.b32.xlu1 %v5063_v49, %s5591_s27  ;;  %v1556_v11 = vld [vmem:[#allocation2 + $0xa8] sm:$0x1]  ;;  %v2354_v49 = vld [vmem:[#allocation2 + $0x149] sm:$0x1]  ;;  %v2318_v51 = vmul.f32 %v5916_v8, %v2293_v39 }
  0x9d   : > { %397 = vst.msk [vmem:[#allocation2 + $0x50] sm:$0xff] %vm385_vm2, %v375_v55  ;;  %622 = vrot.lane.b32.xlu0 %v5062_v52, %s5591_s27  ;;  %v1581_v31 = vmul.f32 %v5909_v48, %v1556_v11  ;;  %v1006_v41 = vadd.f32 %v988_v27, %v944_v62  ;;  %v1739_v50 = vld [vmem:[#allocation2 + $0x1e8] sm:$0x1]  ;;  %v2953_v52 = vmul.f32 %v5909_v48, %v2928_v40  ;;  %v3050_v55 = vld [vmem:[#allocation2 + $0x1e9] sm:$0x1] }
  0x9e   : > { %v5935_v59 = vpop.permute.xlu1 %454  ;;  %v863_v11 = vmul.f32 %v5909_v48, %v838_v5  ;;  %v5974_v62 = vmul.f32 %v5959_v38, %v1800_v46  ;;  %v3014_v27 = vmul.f32 %v5916_v8, %v2989_v7  ;;  %v3075_v40 = vmul.f32 %v5930_v56, %v3050_v55  ;;  %v1677_v46 = vld [vmem:[#allocation2 + $0xa1] sm:$0xff]  ;;  %v1211_v55 = vld [vmem:[#allocation2 + $0x18] sm:$0x1] }
  0x9f   : > { %v5937_v60 = vpop.permute.xlu0 %452  ;;  %v1660_v47 = vadd.f32 %v1642_v3, %v1581_v31  ;;  %v1068_v57 = vadd.f32 %v1050_v45, %v1006_v41  ;;  %v961_v31 = vld [vmem:[#allocation2 + $0x1] sm:$0xff]  ;;  %v1580_v41 = vmul.f32 %v5909_v48, %v899_v43  ;;  %v1861_v45 = vld [vmem:[#allocation2 + $0x1e9] sm:$0x1] }
  0xa0   : > { %766 = vrot.lane.b32.xlu1 %v5083_v10, %s5591_s27  ;;  %v1703_v10 = vmul.f32 %v5930_v56, %v1678_v4  ;;  %v3032_v39 = vadd.f32 %v3014_v27, %v2953_v52  ;;  %v1641_v6 = vmul.f32 %v5916_v8, %v961_v31  ;;  %v5997_v43 = vld [vmem:[%s9657_s1 + $0x8] ss:$0 sm:$0xff]  ;;  %v841_v52 = vld [vmem:[#allocation2 + $0x18] sm:$0x1]  ;;  %v3172_v27 = vld [vmem:[#allocation2 + $0x19] sm:$0x1] }
  0xa1   : > { %764 = vrot.lane.b32.xlu0 %v5082_v61, %s5591_s27  ;;  %v1174_v61 = vmul.f32 %v5954_v37, %v1148_v2  ;;  %v2336_v2 = vadd.f32 %v2318_v51, %v2257_v63  ;;  %v1130_v7 = vadd.f32 %v1112_v0, %v1068_v57  ;;  %v6012_v51 = vld [vmem:[%s9657_s1 + $0x7] ss:$0 sm:$0xff]  ;;  %v2415_v57 = vld [vmem:[#allocation2 + $0x18] sm:$0x1]  ;;  %v2537_v63 = vld [vmem:[#allocation2 + $0x19] sm:$0x1] }
  0xa2   : > { %v467_v1 = vpop.permute.xlu1 %466  ;;  %v1721_v3 = vadd.f32 %v1703_v10, %v1660_v47  ;;  %v511_v47 = vsel %vm364_vm0, %v5709_v12, %v5935_v59  ;;  %v1336_v10 = vld [vmem:[#allocation2 + $0x19] sm:$0x1] }
  0xa3   : > { %v465_v35 = vpop.permute.xlu0 %464  ;;  %532 = vst.msk [vmem:[#allocation2 + $0xb8] sm:$0x3] %vm387_vm1, %v511_v47  ;;  %v517_v9 = vsel %vm364_vm0, %v5719_v14, %v467_v1  ;;  %v6028_v1 = vmul.f32 %v5930_v56, %v1677_v46  ;;  %v6062_v46 = vmul.f32 %v5959_v38, %v3172_v27 }
  0xa4   : > { %342 = vrot.lane.b32.xlu1 %v283_v32, %s5591_s27  ;;  %v2379_v32 = vmul.f32 %v5930_v56, %v2354_v49  ;;  %v510_v49 = vsel %vm364_vm0, %v5712_v13, %v5937_v60  ;;  %v516_v12 = vsel %vm364_vm0, %v5722_v15, %v465_v35  ;;  %538 = vst.msk [vmem:[#allocation2 + $0xe8] sm:$0x3] %vm387_vm1, %v517_v9 }
  0xa5   : > { %340 = vrot.lane.b32.xlu0 %v282_v36, %s5591_s27  ;;  %v1764_v36 = vmul.f32 %v5948_v33, %v1739_v50  ;;  %531 = vst.msk [vmem:[#allocation2 + $0xb0] sm:$0xff] %vm385_vm2, %v510_v49  ;;  %537 = vst.msk [vmem:[#allocation2 + $0xe0] sm:$0xff] %vm385_vm2, %v516_v12  ;;  %v6025_v60 = vadd.f32 %v3075_v40, %v3032_v39  ;;  %v987_v35 = vmul.f32 %v5930_v56, %v961_v31 }
  0xa6   : > { %v471_v53 = vpop.permute.xlu1 %470  ;;  %v2440_v40 = vmul.f32 %v5948_v33, %v2415_v57 }
  0xa7   : > { %v469_v54 = vpop.permute.xlu0 %468  ;;  %v519_v59 = vsel %vm364_vm0, %v5729_v16, %v471_v53  ;;  %v1782_v50 = vadd.f32 %v1764_v36, %v1721_v3  ;;  %v1886_v16 = vmul.f32 %v5954_v37, %v1861_v45  ;;  %v964_v53 = vld [vmem:[#allocation2 + $0x19] sm:$0x1]  ;;  %v6041_v36 = vmul.f32 %v5909_v48, %v841_v52  ;;  %v847_v52 = vld [vmem:[#allocation2 + $0x48] sm:$0x1] }
  0xa8   : > { %486 = vrot.lane.b32.xlu1 %v5045_v42, %s5591_s27  ;;  %v943_v42 = vadd.f32 %v925_v58, %v863_v11  ;;  %540 = vst.msk [vmem:[#allocation2 + $0xf8] sm:$0x3] %vm387_vm1, %v519_v59  ;;  %v518_v13 = vsel %vm364_vm0, %v5732_v17, %v469_v54  ;;  %v1619_v58 = vld [vmem:[#allocation2 + $0x19] sm:$0x1]  ;;  %v2397_v54 = vadd.f32 %v2379_v32, %v2336_v2 }
  0xa9   : > { %484 = vrot.lane.b32.xlu0 %v5044_v44, %s5591_s27  ;;  %v5992_v44 = vld [vmem:[%s9657_s1 + $0x6] ss:$0 sm:$0xff]  ;;  %539 = vst.msk [vmem:[#allocation2 + $0xf0] sm:$0xff] %vm385_vm2, %v518_v13  ;;  %v1983_v11 = vld [vmem:[#allocation2 + $0x19] sm:$0x1]  ;;  %v1192_v3 = vadd.f32 %v1174_v61, %v1130_v7  ;;  %v1362_v32 = vmul.f32 %v5997_v43, %v1336_v10  ;;  %v1843_v61 = vadd.f32 %v5974_v62, %v1782_v50 }
  0xaa   : > { %v315_v4 = vpop.permute.xlu1 %314  ;;  %v1237_v39 = vmul.f32 %v5992_v44, %v1211_v55  ;;  %v6055_v2 = vmul.f32 %v5916_v8, %v1619_v58  ;;  %v6059_v45 = vmul.f32 %v5954_v37, %v2537_v63  ;;  %v1274_v62 = vld [vmem:[#allocation2 + $0xb8] sm:$0x1]  ;;  %v6074_v59 = vadd.f32 %v2440_v40, %v2397_v54  ;;  %v970_v55 = vld [vmem:[#allocation2 + $0x49] sm:$0x1]  ;;  %v2044_v27 = vld [vmem:[#allocation2 + $0xb9] sm:$0x1] }
  0xab   : > { %v313_v5 = vpop.permute.xlu0 %312  ;;  %v370_v14 = vsel %vm364_vm0, %v5739_v18, %v315_v4  ;;  %v963_v4 = vld [vmem:[#allocation2 + $0x11] sm:$0xff]  ;;  %v1300_v57 = vmul.f32 %v6012_v51, %v1274_v62  ;;  %v1904_v10 = vadd.f32 %v1886_v16, %v1843_v61  ;;  %v6112_v40 = vmul.f32 %v5930_v56, %v970_v55  ;;  %v2543_v61 = vld [vmem:[#allocation2 + $0x49] sm:$0x1] }
  0xac   : > { %v369_v15 = vsel %vm364_vm0, %v5742_v19, %v313_v5  ;;  %392 = vst.msk [vmem:[#allocation2 + $0x28] sm:$0x3] %vm387_vm1, %v370_v14  ;;  %v6034_v19 = vadd.f32 %v1641_v6, %v1580_v41  ;;  %v840_v41 = vld [vmem:[#allocation2 + $0x10] sm:$0xff]  ;;  %v2008_v5 = vmul.f32 %v6012_v51, %v1983_v11  ;;  %9673 = vst [vmem:[#allocation6_spill] sm:$0xff] %v6059_v45  ;;  %v1922_v13 = vld [vmem:[#allocation2 + $0xb8] sm:$0x1] }
  0xad   : > { %391 = vst.msk [vmem:[#allocation2 + $0x20] sm:$0xff] %vm385_vm2, %v369_v15  ;;  %v6065_v7 = vmul.f32 %v5909_v48, %v840_v41  ;;  %v6068_v47 = vmul.f32 %v5930_v56, %v963_v4  ;;  %v1255_v12 = vadd.f32 %v1237_v39, %v1192_v3  ;;  %v6077_v50 = vmul.f32 %v5992_v44, %v840_v41  ;;  %v1217_v14 = vld [vmem:[#allocation2 + $0x48] sm:$0x1]  ;;  %v1342_v15 = vld [vmem:[#allocation2 + $0x49] sm:$0x1] }
  0xae   : > { %v319_v17 = vpop.permute.xlu1 %318  ;;  %v1947_v58 = vmul.f32 %v5992_v44, %v1922_v13  ;;  %v6097_v54 = vmul.f32 %v5954_v37, %v963_v4  ;;  %v1989_v11 = vld [vmem:[#allocation2 + $0x49] sm:$0x1]  ;;  %v6106_v16 = vmul.f32 %v5959_v38, %v963_v4  ;;  %v6109_v39 = vmul.f32 %v5909_v48, %v847_v52  ;;  %9680 = vst [vmem:[#allocation13_spill] sm:$0xff] %v6112_v40  ;;  %v6123_v52 = vld [vmem:[#allocation2 + $0xb1] sm:$0xff] }
  0xaf   : > { %v317_v18 = vpop.permute.xlu0 %316  ;;  %v372_v31 = vsel %vm364_vm0, %v5749_v20, %v319_v17  ;;  %v6047_v20 = vadd.f32 %v987_v35, %v943_v42  ;;  %9674 = vst [vmem:[#allocation7_spill] sm:$0xff] %v6077_v50  ;;  %v1625_v35 = vld [vmem:[#allocation2 + $0x49] sm:$0x1]  ;;  %v6091_v17 = vmul.f32 %v6012_v51, %v963_v4  ;;  %v1318_v63 = vadd.f32 %v1300_v57, %v1255_v12  ;;  %v969_v57 = vld [vmem:[#allocation2 + $0x41] sm:$0xff]  ;;  %v2423_v50 = vld [vmem:[#allocation2 + $0x58] sm:$0x1] }
  0xb0   : > { %v371_v0 = vsel %vm364_vm0, %v5752_v21, %v317_v18  ;;  %394 = vst.msk [vmem:[#allocation2 + $0x38] sm:$0x3] %vm387_vm1, %v372_v31  ;;  %v6050_v21 = vmul.f32 %v5930_v56, %v964_v53  ;;  %v5103_v53 = vld [vmem:[%s9659_s3] ss:$0 sm:$0xff]  ;;  %v6094_v18 = vmul.f32 %v5948_v33, %v840_v41  ;;  %9678 = vst [vmem:[#allocation11_spill] sm:$0xff] %v6097_v54  ;;  %v6099_v31 = vld [vmem:[#allocation2 + $0xb0] sm:$0xff] }
  0xb1   : > { %393 = vst.msk [vmem:[#allocation2 + $0x30] sm:$0xff] %vm385_vm2, %v371_v0  ;;  %9671 = vst [vmem:[#allocation4_spill] sm:$0xff] %v6047_v20  ;;  %v2421_v41 = vld [vmem:[#allocation2 + $0x48] sm:$0x1]  ;;  %v6115_v62 = vmul.f32 %v5992_v44, %v1217_v14  ;;  %v1380_v12 = vadd.f32 %v1362_v32, %v1318_v63  ;;  %v6126_v55 = vmul.f32 %v6012_v51, %v1989_v11  ;;  %v2545_v20 = vld [vmem:[#allocation2 + $0x59] sm:$0x1] }
  0xb2   : > { %9672 = vst [vmem:[#allocation5_spill] sm:$0xff] %v6050_v21  ;;  %v331_v42 = vpop.permute.xlu1 %330  ;;  %9676 = vst [vmem:[#allocation9_spill] sm:$0xff] %v6091_v17  ;;  %v1582_v14 = vmul.f32 %v5909_v48, %v6099_v31  ;;  %v1558_v17 = vld [vmem:[#allocation2 + $0xb8] sm:$0x1] }
  0xb3   : > { %v329_v6 = vpop.permute.xlu0 %328  ;;  %v378_v49 = vsel %vm364_vm0, %v5759_v22, %v331_v42  ;;  %v6083_v22 = vmul.f32 %v5997_v43, %v963_v4  ;;  %9677 = vst [vmem:[#allocation10_spill] sm:$0xff] %v6094_v18  ;;  %9679 = vst [vmem:[#allocation12_spill] sm:$0xff] %v6106_v16  ;;  %v3178_v42 = vld [vmem:[#allocation2 + $0x49] sm:$0x1]  ;;  %v2196_v16 = vld [vmem:[#allocation3 + $0x4c] sm:$0x1] }
  0xb4   : > { %v377_v9 = vsel %vm364_vm0, %v5762_v23, %v329_v6  ;;  %400 = vst.msk [vmem:[#allocation2 + $0x68] sm:$0x3] %vm387_vm1, %v378_v49  ;;  %v1643_v23 = vmul.f32 %v5916_v8, %v963_v4  ;;  %v1965_v6 = vadd.f32 %v1947_v58, %v1904_v10  ;;  %9681 = vst [vmem:[#allocation14_spill] sm:$0xff] %v6115_v62  ;;  %v846_v4 = vld [vmem:[#allocation2 + $0x40] sm:$0xff]  ;;  %v3111_v40 = vld [vmem:[#allocation2 + $0xb8] sm:$0x1] }
  0xb5   : > { %399 = vst.msk [vmem:[#allocation2 + $0x60] sm:$0xff] %vm385_vm2, %v377_v9  ;;  %9675 = vst [vmem:[#allocation8_spill] sm:$0xff] %v6083_v22  ;;  %v6118_v49 = vmul.f32 %v5997_v43, %v1342_v15  ;;  %v6121_v9 = vmul.f32 %v5916_v8, %v1625_v35  ;;  %v2069_v10 = vmul.f32 %v5997_v43, %v2044_v27  ;;  %v849_v27 = vld [vmem:[#allocation2 + $0x58] sm:$0x1] }
  0xb6   : > { %v6101_v0 = vpop.permute.xlu1 %334  ;;  %9683 = vst [vmem:[#allocation16_spill] sm:$0xff] %v6126_v55  ;;  %v2026_v13 = vadd.f32 %v2008_v5, %v1965_v6  ;;  %v6132_v15 = vmul.f32 %v5948_v33, %v2421_v41  ;;  %v6135_v35 = vmul.f32 %v5954_v37, %v2543_v61  ;;  %v6138_v32 = vmul.f32 %v5959_v38, %v3178_v42  ;;  %v1520_v61 = vld [vmem:[#allocation3 + $0x4] sm:$0x1]  ;;  %v1344_v55 = vld [vmem:[#allocation2 + $0x59] sm:$0x1] }
  0xb7   : > { %v6103_v3 = vpop.permute.xlu0 %332  ;;  %9682 = vst [vmem:[#allocation15_spill] sm:$0xff] %v6118_v49  ;;  %v1404_v58 = vadd.f32 %v5103_v53, %v1380_v12  ;;  %v6145_v5 = vmul.f32 %v5909_v48, %v846_v4  ;;  %v9687_v41 = vmov 0  ;;  %v1661_v49 = vadd.f32 %v1643_v23, %v1582_v14  ;;  %v1991_v14 = vld [vmem:[#allocation2 + $0x59] sm:$0x1] }
  0xb8   : > { %9684 = vst [vmem:[#allocation17_spill] sm:$0xff] %v6132_v15  ;;  %9685 = vst [vmem:[#allocation18_spill] sm:$0xff] %v6135_v35  ;;  %v9688_v41 = vsel %vm6149_vm5, 4294967295, %v9687_v41  ;;  %v2087_v6 = vadd.f32 %v2069_v10, %v2026_v13  ;;  %v1704_v42 = vmul.f32 %v5930_v56, %v6123_v52  ;;  %v6156_v12 = vmul.f32 %v5930_v56, %v969_v57  ;;  %v972_v15 = vld [vmem:[#allocation2 + $0x59] sm:$0x1] }
  0xb9   : > { %9686 = vst [vmem:[#allocation19_spill] sm:$0xff] %v6138_v32  ;;  %9689 = vst [vmem:[#allocation20_spill] sm:$0xff] %v9688_v41  ;;  %v6159_v35 = vmul.f32 %v5992_v44, %v846_v4  ;;  %v6162_v62 = vmul.f32 %v5997_v43, %v969_v57  ;;  %v1219_v32 = vld [vmem:[#allocation2 + $0x58] sm:$0x1]  ;;  %v5296_v54 = vpack.c.bf16 %v1404_v58, %v1404_v58  ;;  %v1627_v10 = vld [vmem:[#allocation2 + $0x59] sm:$0x1] }
  0xba   : > { %v6140_v63 = vpop.permute.xlu1 %458  ;;  %9690 = vst [vmem:[#allocation21_spill] sm:$0xff] %v6156_v12  ;;  %v6165_v13 = vmul.f32 %v5916_v8, %v969_v57  ;;  %v6168_v23 = vmul.f32 %v6012_v51, %v969_v57  ;;  %v2105_v22 = vadd.f32 %v5103_v53, %v2087_v6  ;;  %v6170_v18 = vadd.f32 %v1704_v42, %v1661_v49  ;;  %v848_v42 = vld [vmem:[#allocation2 + $0x50] sm:$0xff]  ;;  %v3117_v41 = vld [vmem:[#allocation2 + $0xe8] sm:$0x1] }
  0xbb   : > { %v6142_v11 = vpop.permute.xlu0 %456  ;;  %9691 = vst [vmem:[#allocation22_spill] sm:$0xff] %v6159_v35  ;;  %9692 = vst [vmem:[#allocation23_spill] sm:$0xff] %v6162_v62  ;;  %v6173_v35 = vmul.f32 %v5948_v33, %v846_v4  ;;  %v6176_v62 = vmul.f32 %v5954_v37, %v969_v57  ;;  %v6179_v58 = vmul.f32 %v5959_v38, %v969_v57  ;;  %v3180_v57 = vld [vmem:[#allocation2 + $0x59] sm:$0x1] }
  0xbc   : > { %9693 = vst [vmem:[#allocation24_spill] sm:$0xff] %v6168_v23  ;;  %9694 = vst [vmem:[#allocation25_spill] sm:$0xff] %v6170_v18  ;;  %v1521_v23 = vsel %vm6149_vm5, %v5296_v54, %v1520_v61  ;;  %v6188_v49 = vmul.f32 %v5909_v48, %v849_v27  ;;  %v6191_v4 = vmul.f32 %v5930_v56, %v972_v15  ;;  %v3233_v18 = vld [vmem:[#allocation2 + $0xb9] sm:$0x1] }
  0xbd   : > { %9695 = vst [vmem:[#allocation26_spill] sm:$0xff] %v6173_v35  ;;  %9696 = vst [vmem:[#allocation27_spill] sm:$0xff] %v6176_v62  ;;  %v6194_v6 = vmul.f32 %v5992_v44, %v1219_v32  ;;  %v5314_v62 = vpack.c.bf16 %v2105_v22, %v2105_v22  ;;  %v6197_v54 = vmul.f32 %v5997_v43, %v1344_v55  ;;  %v902_v35 = vld [vmem:[#allocation2 + $0xb8] sm:$0x1] }
  0xbe   : > { %9697 = vst [vmem:[#allocation28_spill] sm:$0xff] %v6179_v58  ;;  %v6183_v45 = vpop.permute.xlu1 %462  ;;  %9698 = vst [vmem:[#allocation29_spill] sm:$0xff] %v6191_v4  ;;  %v971_v58 = vld [vmem:[#allocation2 + $0x51] sm:$0xff]  ;;  %v6200_v61 = vmul.f32 %v5916_v8, %v1627_v10  ;;  %v6203_v27 = vmul.f32 %v6012_v51, %v1991_v14  ;;  %v1583_v15 = vmul.f32 %v5909_v48, %v1558_v17 }
  0xbf   : > { %v6185_v53 = vpop.permute.xlu0 %460  ;;  %9699 = vst [vmem:[#allocation30_spill] sm:$0xff] %v6194_v6  ;;  %1522 = vst [vmem:[#allocation3 + $0x4] sm:$0x1] %v1521_v23  ;;  %v6207_v32 = vmul.f32 %v5948_v33, %v2423_v50  ;;  %v6210_v6 = vmul.f32 %v5954_v37, %v2545_v20  ;;  %v1680_v23 = vld [vmem:[#allocation2 + $0xb9] sm:$0x1]  ;;  %v2197_v22 = vsel %vm6149_vm5, %v5314_v62, %v2196_v16  ;;  %v6242_v4 = vld [vmem:[#allocation2 + $0xf0] sm:$0xff] }
  0xc0   : > { %9700 = vst [vmem:[#allocation31_spill] sm:$0xff] %v6197_v54  ;;  %9701 = vst [vmem:[#allocation32_spill] sm:$0xff] %v6203_v27  ;;  %v2476_v55 = vld [vmem:[#allocation2 + $0xb8] sm:$0x1]  ;;  %v3136_v10 = vmul.f32 %v5948_v33, %v3111_v40  ;;  %v6216_v54 = vmul.f32 %v5959_v38, %v3180_v57  ;;  %v6219_v14 = vmul.f32 %v5909_v48, %v848_v42 }
  0xc1   : > { %9702 = vst [vmem:[#allocation33_spill] sm:$0xff] %v6207_v32  ;;  %9703 = vst [vmem:[#allocation34_spill] sm:$0xff] %v6210_v6  ;;  %v6222_v17 = vmul.f32 %v5930_v56, %v971_v58  ;;  %v833_v6 = vlaneseq  ;;  %v6229_v16 = vmul.f32 %v5992_v44, %v848_v42  ;;  %v6232_v40 = vmul.f32 %v5997_v43, %v971_v58 }
  0xc2   : > { %9704 = vst [vmem:[#allocation35_spill] sm:$0xff] %v6216_v54  ;;  %2198 = vst [vmem:[#allocation3 + $0x4c] sm:$0x1] %v2197_v22  ;;  %v6224_v50 = vpop.permute.xlu1 %474  ;;  %v1651_v62 = vmul.f32 %v5916_v8, %v971_v58  ;;  %v928_v57 = vmul.f32 %v5916_v8, %v902_v35  ;;  %v6237_v32 = vmul.f32 %v6012_v51, %v971_v58 }
  0xc3   : > { %9705 = vst [vmem:[#allocation36_spill] sm:$0xff] %v6222_v17  ;;  %v6226_v20 = vpop.permute.xlu0 %472  ;;  %9706 = vst [vmem:[#allocation37_spill] sm:$0xff] %v6229_v16  ;;  %v1662_v22 = vadd.f32 %v6055_v2, %v1583_v15  ;;  %v1705_v54 = vmul.f32 %v5930_v56, %v1680_v23  ;;  %v2501_v27 = vmul.f32 %v5959_v38, %v2476_v55  ;;  %v1564_v17 = vld [vmem:[#allocation2 + $0xe8] sm:$0x1]  ;;  %v6256_v55 = vld [vmem:[#allocation2 + $0xf1] sm:$0xff] }
  0xc4   : > { %9707 = vst [vmem:[#allocation38_spill] sm:$0xff] %v6232_v40  ;;  %9708 = vst [vmem:[#allocation39_spill] sm:$0xff] %v6237_v32  ;;  %v6245_v16 = vmul.f32 %v5948_v33, %v848_v42  ;;  %v6248_v40 = vmul.f32 %v5954_v37, %v971_v58  ;;  %v3154_v35 = vadd.f32 %v3136_v10, %v6025_v60  ;;  %v908_v23 = vld [vmem:[#allocation2 + $0xe8] sm:$0x1] }
  0xc5   : > { %v6252_v32 = vmul.f32 %v5959_v38, %v971_v58  ;;  %v927_v15 = vmul.f32 %v5916_v8, %v6099_v31  ;;  %v6266_v60 = vadd.f32 %v6028_v1, %v6034_v19  ;;  %v6269_v58 = vadd.f32 %v928_v57, %v6041_v36  ;;  %v907_v36 = vld [vmem:[#allocation2 + $0xe0] sm:$0xff] }
  0xc6   : > { %9709 = vst [vmem:[#allocation40_spill] sm:$0xff] %v6245_v16  ;;  %9710 = vst [vmem:[#allocation41_spill] sm:$0xff] %v6248_v40  ;;  %v3604_v2 = vld [vmem:[#allocation3 + $0x4] sm:$0x1]  ;;  %v6258_v21 = vpop.permute.xlu1 %478  ;;  %v6262_v16 = vshrl.u32 %v833_v6, 7  ;;  %v3258_v10 = vmul.f32 %v5954_v37, %v3233_v18  ;;  %v1590_v40 = vmul.f32 %v5909_v48, %v6242_v4  ;;  %v6276_v12 = vadd.f32 %v1705_v54, %v1662_v22 }
  0xc7   : > { %9711 = vst [vmem:[#allocation42_spill] sm:$0xff] %v6252_v32  ;;  %v6260_v42 = vpop.permute.xlu0 %476  ;;  %9713 = vst [vmem:[#allocation44_spill] sm:$0xff] %v6266_v60  ;;  %v3605_v32 = vsel %vm6149_vm5, 0, %v3604_v2  ;;  %v6279_v6 = vadd.f32 %v2501_v27, %v6074_v59  ;;  %v6283_v1 = vmul.f32 %v6012_v51, %v6099_v31  ;;  %v1589_v19 = vmul.f32 %v5909_v48, %v1564_v17  ;;  %v1686_v60 = vld [vmem:[#allocation2 + $0xe9] sm:$0x1] }
  0xc8   : > { %9712 = vst [vmem:[#allocation43_spill] sm:$0xff] %v6262_v16  ;;  %9714 = vst [vmem:[#allocation45_spill] sm:$0xff] %v6269_v58  ;;  %v3215_v18 = vadd.f32 %v6062_v46, %v3154_v35  ;;  %v934_v2 = vmul.f32 %v5916_v8, %v908_v23  ;;  %v1280_v16 = vld [vmem:[#allocation2 + $0xe8] sm:$0x1]  ;;  %v1669_v54 = vadd.f32 %v1651_v62, %v1590_v40  ;;  %v1566_v35 = vld [vmem:[#allocation2 + $0xf8] sm:$0x1] }
  0xc9   : > { %9715 = vst [vmem:[#allocation46_spill] sm:$0xff] %v6276_v12  ;;  %9716 = vst [vmem:[#allocation47_spill] sm:$0xff] %v6279_v6  ;;  %v3608_v57 = vld [vmem:[#allocation3 + $0x4c] sm:$0x1]  ;;  %v1712_v59 = vmul.f32 %v5930_v56, %v6256_v55  ;;  %v6297_v17 = vmul.f32 %v5992_v44, %v6099_v31  ;;  %v6301_v46 = vmul.f32 %v5997_v43, %v6123_v52  ;;  %v1928_v22 = vld [vmem:[#allocation2 + $0xe8] sm:$0x1] }
  0xca   : > { %3606 = vst [vmem:[#allocation3 + $0x4] sm:$0x1] %v3605_v32  ;;  %9717 = vst [vmem:[#allocation48_spill] sm:$0xff] %v6283_v1  ;;  %v3609_v27 = vsel %vm6149_vm5, 0, %v3608_v57  ;;  %v6293_v32 = vadd.f32 %v927_v15, %v6065_v7  ;;  %v6303_v40 = vpop.permute.xlu1 %594  ;;  %v6309_v23 = vmul.f32 %v5959_v38, %v6099_v31  ;;  %v6313_v7 = vmul.f32 %v5948_v33, %v6099_v31  ;;  %v2050_v15 = vld [vmem:[#allocation2 + $0xe9] sm:$0x1] }
  0xcb   : > { %9718 = vst [vmem:[#allocation49_spill] sm:$0xff] %v6297_v17  ;;  %9719 = vst [vmem:[#allocation50_spill] sm:$0xff] %v6301_v46  ;;  %v6305_v62 = vpop.permute.xlu0 %590  ;;  %v2482_v57 = vld [vmem:[#allocation2 + $0xe8] sm:$0x1]  ;;  %v1588_v12 = vmul.f32 %v5909_v48, %v907_v36  ;;  %v6316_v46 = vadd.f32 %v1712_v59, %v1669_v54  ;;  %v6320_v17 = vmul.f32 %v5954_v37, %v6123_v52  ;;  %v910_v59 = vld [vmem:[#allocation2 + $0xf8] sm:$0x1] }
  0xcc   : > { %3610 = vst [vmem:[#allocation3 + $0x4c] sm:$0x1] %v3609_v27  ;;  %9720 = vst [vmem:[#allocation51_spill] sm:$0xff] %v6309_v23  ;;  %v1668_v27 = vadd.f32 %v6121_v9, %v1589_v19  ;;  %v1711_v1 = vmul.f32 %v5930_v56, %v1686_v60  ;;  %v3239_v23 = vld [vmem:[#allocation2 + $0xe9] sm:$0x1]  ;;  %v933_v6 = vmul.f32 %v5916_v8, %v907_v36  ;;  %v1685_v31 = vld [vmem:[#allocation2 + $0xe1] sm:$0xff] }
  0xcd   : > { %9721 = vst [vmem:[#allocation52_spill] sm:$0xff] %v6313_v7  ;;  %9722 = vst [vmem:[#allocation53_spill] sm:$0xff] %v6316_v46  ;;  %v6325_v7 = vadd.f32 %v3258_v10, %v3215_v18  ;;  %v6328_v58 = vadd.f32 %v934_v2, %v6109_v39  ;;  %v6331_v54 = vmul.f32 %v6012_v51, %v1280_v16  ;;  %v1688_v39 = vld [vmem:[#allocation2 + $0xf9] sm:$0x1] }
  0xce   : > { %9723 = vst [vmem:[#allocation54_spill] sm:$0xff] %v6320_v17  ;;  %v1591_v52 = vmul.f32 %v5909_v48, %v1566_v35  ;;  %v6335_v46 = vmul.f32 %v5992_v44, %v1928_v22  ;;  %v6338_v9 = vmul.f32 %v5997_v43, %v2050_v15  ;;  %v6341_v60 = vmul.f32 %v5959_v38, %v2482_v57  ;;  %v6346_v19 = vpop.permute.xlu1 %606  ;;  %v1282_v15 = vld [vmem:[#allocation2 + $0xf8] sm:$0x1] }
  0xcf   : > { %9724 = vst [vmem:[#allocation55_spill] sm:$0xff] %v6325_v7  ;;  %9725 = vst [vmem:[#allocation56_spill] sm:$0xff] %v6331_v54  ;;  %v6344_v10 = vmul.f32 %v5948_v33, %v3117_v41  ;;  %v6348_v16 = vpop.permute.xlu0 %596  ;;  %v6351_v18 = vmul.f32 %v5954_v37, %v3239_v23  ;;  %v6354_v2 = vmul.f32 %v6012_v51, %v907_v36  ;;  %v1930_v23 = vld [vmem:[#allocation2 + $0xf8] sm:$0x1] }
  0xd0   : > { %9726 = vst [vmem:[#allocation57_spill] sm:$0xff] %v6335_v46  ;;  %9727 = vst [vmem:[#allocation58_spill] sm:$0xff] %v6338_v9  ;;  %v1667_v22 = vadd.f32 %v6165_v13, %v1588_v12  ;;  %v1710_v35 = vmul.f32 %v5930_v56, %v1685_v31  ;;  %v6358_v57 = vadd.f32 %v1711_v1, %v1668_v27  ;;  %v3119_v1 = vld [vmem:[#allocation2 + $0xf8] sm:$0x1]  ;;  %v3241_v27 = vld [vmem:[#allocation2 + $0xf9] sm:$0x1] }
  0xd1   : > { %9728 = vst [vmem:[#allocation59_spill] sm:$0xff] %v6341_v60  ;;  %9729 = vst [vmem:[#allocation60_spill] sm:$0xff] %v6344_v10  ;;  %v6361_v41 = vadd.f32 %v933_v6, %v6145_v5  ;;  %v6364_v54 = vmul.f32 %v5992_v44, %v907_v36  ;;  %v936_v60 = vmul.f32 %v5916_v8, %v910_v59  ;;  %v2484_v10 = vld [vmem:[#allocation2 + $0xf8] sm:$0x1] }
  0xd2   : > { %9730 = vst [vmem:[#allocation61_spill] sm:$0xff] %v6351_v18  ;;  %9731 = vst [vmem:[#allocation62_spill] sm:$0xff] %v6354_v2  ;;  %v2052_v18 = vld [vmem:[#allocation2 + $0xf9] sm:$0x1]  ;;  %v6368_v9 = vmul.f32 %v5997_v43, %v1685_v31  ;;  %v1670_v12 = vadd.f32 %v6200_v61, %v1591_v52  ;;  %v1713_v13 = vmul.f32 %v5930_v56, %v1688_v39  ;;  %v6386_v61 = vpop.permute.xlu1 %610 }
  0xd3   : > { %9732 = vst [vmem:[#allocation63_spill] sm:$0xff] %v6358_v57  ;;  %9733 = vst [vmem:[#allocation64_spill] sm:$0xff] %v6364_v54  ;;  %v935_v5 = vmul.f32 %v5916_v8, %v6242_v4  ;;  %v6375_v6 = vmul.f32 %v5959_v38, %v907_v36  ;;  %v6378_v59 = vmul.f32 %v5948_v33, %v907_v36  ;;  %v6388_v52 = vpop.permute.xlu0 %608 }
  0xd4   : > { %9734 = vst [vmem:[#allocation65_spill] sm:$0xff] %v6368_v9  ;;  %v6381_v46 = vmul.f32 %v5954_v37, %v1685_v31  ;;  %v6384_v9 = vmul.f32 %v6012_v51, %v1282_v15  ;;  %v6390_v39 = vadd.f32 %v1710_v35, %v1667_v22  ;;  %v6393_v54 = vmul.f32 %v5992_v44, %v1930_v23  ;;  %v843_v31 = vld [vmem:[#allocation2 + $0x28] sm:$0x1]  ;;  %v1338_v23 = vld [vmem:[#allocation2 + $0x29] sm:$0x1] }
  0xd5   : > { %9735 = vst [vmem:[#allocation66_spill] sm:$0xff] %v6375_v6  ;;  %9736 = vst [vmem:[#allocation67_spill] sm:$0xff] %v6378_v59  ;;  %v6396_v57 = vmul.f32 %v5997_v43, %v2052_v18  ;;  %v6399_v36 = vmul.f32 %v5959_v38, %v2484_v10  ;;  %v6402_v15 = vadd.f32 %v936_v60, %v6188_v49  ;;  %v1213_v18 = vld [vmem:[#allocation2 + $0x28] sm:$0x1] }
  0xd6   : > { %9737 = vst [vmem:[#allocation68_spill] sm:$0xff] %v6381_v46  ;;  %9738 = vst [vmem:[#allocation69_spill] sm:$0xff] %v6384_v9  ;;  %v966_v46 = vld [vmem:[#allocation2 + $0x29] sm:$0x1]  ;;  %v6405_v59 = vmul.f32 %v5948_v33, %v3119_v1  ;;  %v6408_v22 = vmul.f32 %v5954_v37, %v3241_v27  ;;  %v6412_v35 = vmul.f32 %v6012_v51, %v6242_v4 }
  0xd7   : > { %9739 = vst [vmem:[#allocation70_spill] sm:$0xff] %v6390_v39  ;;  %9740 = vst [vmem:[#allocation71_spill] sm:$0xff] %v6393_v54  ;;  %v6414_v10 = vadd.f32 %v1713_v13, %v1670_v12  ;;  %v6421_v49 = vmul.f32 %v5992_v44, %v6242_v4  ;;  %v6425_v60 = vmul.f32 %v5997_v43, %v6256_v55  ;;  %v1985_v1 = vld [vmem:[#allocation2 + $0x29] sm:$0x1] }
  0xd8   : > { %9741 = vst [vmem:[#allocation72_spill] sm:$0xff] %v6396_v57  ;;  %9742 = vst [vmem:[#allocation73_spill] sm:$0xff] %v6399_v36  ;;  %v1621_v57 = vld [vmem:[#allocation2 + $0x29] sm:$0x1]  ;;  %v6417_v36 = vadd.f32 %v935_v5, %v6219_v14  ;;  %v6429_v27 = vmul.f32 %v5959_v38, %v6242_v4  ;;  %v6433_v12 = vmul.f32 %v5948_v33, %v6242_v4  ;;  %v6442_v5 = vpop.permute.xlu1 %598 }
  0xd9   : > { %9743 = vst [vmem:[#allocation74_spill] sm:$0xff] %v6405_v59  ;;  %9744 = vst [vmem:[#allocation75_spill] sm:$0xff] %v6408_v22  ;;  %v6437_v14 = vmul.f32 %v5954_v37, %v6256_v55  ;;  %v6440_v13 = vmul.f32 %v5909_v48, %v843_v31  ;;  %v6444_v22 = vpop.permute.xlu0 %612  ;;  %v6447_v59 = vmul.f32 %v5930_v56, %v966_v46  ;;  %v2539_v54 = vld [vmem:[#allocation2 + $0x29] sm:$0x1] }
  0xda   : > { %9745 = vst [vmem:[#allocation76_spill] sm:$0xff] %v6412_v35  ;;  %9746 = vst [vmem:[#allocation77_spill] sm:$0xff] %v6414_v10  ;;  %v6453_v4 = vmul.f32 %v5997_v43, %v1338_v23  ;;  %v6456_v55 = vmul.f32 %v5916_v8, %v1621_v57  ;;  %v6459_v31 = vmul.f32 %v6012_v51, %v1985_v1  ;;  %v3174_v57 = vld [vmem:[#allocation2 + $0x29] sm:$0x1]  ;;  %v6470_v23 = vld [vmem:[#allocation2 + $0x20] sm:$0xff] }
  0xdb   : > { %9747 = vst [vmem:[#allocation78_spill] sm:$0xff] %v6421_v49  ;;  %9748 = vst [vmem:[#allocation79_spill] sm:$0xff] %v6425_v60  ;;  %v6450_v60 = vmul.f32 %v5992_v44, %v1213_v18  ;;  %v379_v46 = vsel %vm364_vm0, %v5772_v25, %v6103_v3  ;;  %v513_v18 = vsel %vm364_vm0, %v5779_v26, %v6140_v63  ;;  %v6487_v63 = vld [vmem:[#allocation2 + $0x21] sm:$0xff]  ;;  %v2547_v9 = vld [vmem:[#allocation2 + $0x69] sm:$0x1] }
  0xdc   : > { %9749 = vst [vmem:[#allocation80_spill] sm:$0xff] %v6429_v27  ;;  %9750 = vst [vmem:[#allocation81_spill] sm:$0xff] %v6433_v12  ;;  %v380_v12 = vsel %vm364_vm0, %v5769_v24, %v6101_v0  ;;  %v5482_v24 = vld [vmem:[%s5646_s26 + $0xc0] sm:$0xff]  ;;  %v515_v26 = vsel %vm364_vm0, %v5786_v28, %v6183_v45  ;;  %v514_v0 = vsel %vm364_vm0, %v5789_v29, %v6185_v53  ;;  %v5484_v29 = vld [vmem:[%s5646_s26 + $0x118] sm:$0x3]  ;;  %v603_v1 = vpop.permute.xlu1 %602 }
  0xdd   : > { %9751 = vst [vmem:[#allocation82_spill] sm:$0xff] %v6437_v14  ;;  %9752 = vst [vmem:[#allocation83_spill] sm:$0xff] %v6450_v60  ;;  %v2417_v14 = vld [vmem:[#allocation2 + $0x28] sm:$0x1]  ;;  %v512_v25 = vsel %vm364_vm0, %v5482_v24, %v6142_v11  ;;  %v521_v3 = vsel %vm364_vm0, %v5796_v30, %v6224_v50  ;;  %v5483_v28 = vld [vmem:[%s5646_s26 + $0x100] sm:$0xff]  ;;  %v523_v30 = vsel %vm364_vm0, %v5484_v29, %v6258_v21 }
  0xde   : > { %9753 = vst [vmem:[#allocation84_spill] sm:$0xff] %v6453_v4  ;;  %9754 = vst [vmem:[#allocation85_spill] sm:$0xff] %v6459_v31  ;;  %v520_v45 = vsel %vm364_vm0, %v5483_v28, %v6226_v20  ;;  %v5485_v11 = vld [vmem:[%s5646_s26 + $0x110] sm:$0xff]  ;;  %v652_v50 = vsel %vm364_vm0, %v5807_v34, %v6303_v40  ;;  %v6509_v20 = vmul.f32 %v5954_v37, %v2539_v54  ;;  %v5486_v21 = vld [vmem:[%s5646_s26 + $0x140] sm:$0xff] }
  0xdf   : > { %402 = vst.msk [vmem:[#allocation2 + $0x78] sm:$0x3] %vm387_vm1, %v380_v12  ;;  %534 = vst.msk [vmem:[#allocation2 + $0xc8] sm:$0x3] %vm387_vm1, %v513_v18  ;;  %v522_v53 = vsel %vm364_vm0, %v5485_v11, %v6260_v42  ;;  %v601_v12 = vpop.permute.xlu0 %600  ;;  %v650_v34 = vsel %vm364_vm0, %v5486_v21, %v6305_v62  ;;  %v5487_v42 = vld [vmem:[%s5646_s26 + $0x180] sm:$0xff]  ;;  %v6522_v54 = vmul.f32 %v5959_v38, %v3174_v57  ;;  %v5489_v24 = vld [vmem:[%s5646_s26 + $0x190] sm:$0xff] }
  0xe0   : > { %401 = vst.msk [vmem:[#allocation2 + $0x70] sm:$0xff] %vm385_vm2, %v379_v46  ;;  %533 = vst.msk [vmem:[#allocation2 + $0xc0] sm:$0xff] %vm385_vm2, %v512_v25  ;;  %v6506_v46 = vmul.f32 %v5948_v33, %v2417_v14  ;;  %v658_v40 = vsel %vm364_vm0, %v5487_v42, %v6346_v19  ;;  %v6526_v14 = vmul.f32 %v5909_v48, %v6470_v23  ;;  %v5488_v18 = vld [vmem:[%s5646_s26 + $0x158] sm:$0x3]  ;;  %v5491_v28 = vld [vmem:[%s5646_s26 + $0x160] sm:$0xff] }
  0xe1   : > { %536 = vst.msk [vmem:[#allocation2 + $0xd8] sm:$0x3] %vm387_vm1, %v515_v26  ;;  %542 = vst.msk [vmem:[#allocation2 + $0x108] sm:$0x3] %vm387_vm1, %v521_v3  ;;  %v653_v62 = vsel %vm364_vm0, %v5488_v18, %v6348_v16  ;;  %v660_v19 = vsel %vm364_vm0, %v5489_v24, %v6386_v61  ;;  %v6538_v57 = vmul.f32 %v5930_v56, %v6487_v63  ;;  %v845_v26 = vld [vmem:[#allocation2 + $0x38] sm:$0x1] }
  0xe2   : > { %535 = vst.msk [vmem:[#allocation2 + $0xd0] sm:$0xff] %vm385_vm2, %v514_v0  ;;  %9755 = vst [vmem:[#allocation86_spill] sm:$0xff] %v6506_v46  ;;  %v6542_v25 = vmul.f32 %v5992_v44, %v6470_v23  ;;  %v968_v0 = vld [vmem:[#allocation2 + $0x39] sm:$0x1]  ;;  %v1215_v3 = vld [vmem:[#allocation2 + $0x38] sm:$0x1]  ;;  %v6554_v29 = vmul.f32 %v5997_v43, %v6487_v63  ;;  %v6571_v24 = vmul.f32 %v6012_v51, %v6487_v63 }
  0xe3   : > { %9756 = vst [vmem:[#allocation87_spill] sm:$0xff] %v6509_v20  ;;  %541 = vst.msk [vmem:[#allocation2 + $0x100] sm:$0xff] %vm385_vm2, %v520_v45  ;;  %v5490_v16 = vld [vmem:[%s5646_s26 + $0x188] sm:$0x3]  ;;  %v654_v45 = vsel %vm364_vm0, %v5491_v28, %v6442_v5  ;;  %v1623_v11 = vld [vmem:[#allocation2 + $0x39] sm:$0x1]  ;;  %v605_v18 = vpop.permute.xlu0 %604 }
  0xe4   : > { %544 = vst.msk [vmem:[#allocation2 + $0x118] sm:$0x3] %vm387_vm1, %v523_v30  ;;  %9757 = vst [vmem:[#allocation88_spill] sm:$0xff] %v6522_v54  ;;  %v659_v61 = vsel %vm364_vm0, %v5490_v16, %v6388_v52  ;;  %v1340_v30 = vld [vmem:[#allocation2 + $0x39] sm:$0x1]  ;;  %v5493_v21 = vld [vmem:[%s5646_s26 + $0x170] sm:$0xff] }
  0xe5   : > { %543 = vst.msk [vmem:[#allocation2 + $0x110] sm:$0xff] %vm385_vm2, %v522_v53  ;;  %673 = vst.msk [vmem:[#allocation2 + $0x150] sm:$0xff] %vm385_vm2, %v652_v50  ;;  %v1987_v53 = vld [vmem:[#allocation2 + $0x39] sm:$0x1]  ;;  %v656_v5 = vsel %vm364_vm0, %v5493_v21, %v603_v1  ;;  %v5495_v1 = vld [vmem:[%s5646_s26 + $0x1a0] sm:$0xff]  ;;  %v6593_v21 = vmul.f32 %v5909_v48, %v845_v26 }
  0xe6   : > { %671 = vst.msk [vmem:[#allocation2 + $0x140] sm:$0xff] %vm385_vm2, %v650_v34  ;;  %679 = vst.msk [vmem:[#allocation2 + $0x180] sm:$0xff] %vm385_vm2, %v658_v40  ;;  %v5492_v50 = vld [vmem:[%s5646_s26 + $0x198] sm:$0x3]  ;;  %v5494_v34 = vld [vmem:[%s5646_s26 + $0x168] sm:$0x3]  ;;  %v615_v40 = vpop.permute.xlu1 %614 }
  0xe7   : > { %9758 = vst [vmem:[#allocation89_spill] sm:$0xff] %v6542_v25  ;;  %674 = vst.msk [vmem:[#allocation2 + $0x158] sm:$0x3] %vm387_vm1, %v653_v62  ;;  %v661_v52 = vsel %vm364_vm0, %v5492_v50, %v6444_v22  ;;  %v655_v42 = vsel %vm364_vm0, %v5494_v34, %v601_v12  ;;  %v6567_v62 = vmul.f32 %v5916_v8, %v6487_v63  ;;  %v2541_v16 = vld [vmem:[#allocation2 + $0x39] sm:$0x1]  ;;  %v967_v34 = vld [vmem:[#allocation2 + $0x31] sm:$0xff] }
  0xe8   : > { %681 = vst.msk [vmem:[#allocation2 + $0x190] sm:$0xff] %vm385_vm2, %v660_v19  ;;  %9759 = vst [vmem:[#allocation90_spill] sm:$0xff] %v6554_v29  ;;  %v2419_v19 = vld [vmem:[#allocation2 + $0x38] sm:$0x1]  ;;  %v3176_v22 = vld [vmem:[#allocation2 + $0x39] sm:$0x1]  ;;  %v662_v12 = vsel %vm364_vm0, %v5495_v1, %v615_v40  ;;  %v6586_v50 = vmul.f32 %v5954_v37, %v6487_v63  ;;  %v6604_v40 = vmul.f32 %v5997_v43, %v1340_v30 }
  0xe9   : > { %680 = vst.msk [vmem:[#allocation2 + $0x188] sm:$0x3] %vm387_vm1, %v659_v61  ;;  %9760 = vst [vmem:[#allocation91_spill] sm:$0xff] %v6571_v24  ;;  %v5496_v61 = vld [vmem:[%s5646_s26 + $0x178] sm:$0x3]  ;;  %v6613_v1 = vmul.f32 %v5948_v33, %v2419_v19  ;;  %v6646_v46 = vmul.f32 %v5954_v37, %v967_v34  ;;  %v9790_v4 = vld [vmem:[#allocation5_spill] sm:$0xff] }
  0xea   : > { %675 = vst.msk [vmem:[#allocation2 + $0x160] sm:$0xff] %vm385_vm2, %v654_v45  ;;  %677 = vst.msk [vmem:[#allocation2 + $0x170] sm:$0xff] %vm385_vm2, %v656_v5  ;;  %v657_v28 = vsel %vm364_vm0, %v5496_v61, %v605_v18  ;;  %v6582_v45 = vmul.f32 %v5948_v33, %v6470_v23  ;;  %v844_v5 = vld [vmem:[#allocation2 + $0x30] sm:$0xff]  ;;  %v6598_v23 = vmul.f32 %v5930_v56, %v968_v0  ;;  %v851_v26 = vld [vmem:[#allocation2 + $0x68] sm:$0x1] }
  0xeb   : > { %682 = vst.msk [vmem:[#allocation2 + $0x198] sm:$0x3] %vm387_vm1, %v661_v52  ;;  %676 = vst.msk [vmem:[#allocation2 + $0x168] sm:$0x3] %vm387_vm1, %v655_v42  ;;  %v6590_v52 = vmul.f32 %v5959_v38, %v6487_v63  ;;  %v6601_v42 = vmul.f32 %v5992_v44, %v1215_v3  ;;  %v6607_v63 = vmul.f32 %v5916_v8, %v1623_v11  ;;  %v1221_v30 = vld [vmem:[#allocation2 + $0x68] sm:$0x1] }
  0xec   : > { %9761 = vst [vmem:[#allocation92_spill] sm:$0xff] %v6582_v45  ;;  %9762 = vst [vmem:[#allocation93_spill] sm:$0xff] %v6586_v50  ;;  %v6610_v18 = vmul.f32 %v6012_v51, %v1987_v53  ;;  %v6616_v0 = vmul.f32 %v5954_v37, %v2541_v16  ;;  %v6619_v3 = vmul.f32 %v5959_v38, %v3176_v22  ;;  %v1346_v61 = vld [vmem:[#allocation2 + $0x69] sm:$0x1]  ;;  %v850_v16 = vld [vmem:[#allocation2 + $0x60] sm:$0xff] }
  0xed   : > { %9763 = vst [vmem:[#allocation94_spill] sm:$0xff] %v6590_v52  ;;  %683 = vst.msk [vmem:[#allocation2 + $0x1a0] sm:$0xff] %vm385_vm2, %v662_v12  ;;  %v974_v12 = vld [vmem:[#allocation2 + $0x69] sm:$0x1]  ;;  %v6622_v11 = vmul.f32 %v5909_v48, %v844_v5  ;;  %v6628_v53 = vmul.f32 %v5992_v44, %v844_v5  ;;  %v6642_v54 = vmul.f32 %v5948_v33, %v844_v5  ;;  %v2425_v20 = vld [vmem:[#allocation2 + $0x68] sm:$0x1] }
  0xee   : > { %678 = vst.msk [vmem:[#allocation2 + $0x178] sm:$0x3] %vm387_vm1, %v657_v28  ;;  %9764 = vst [vmem:[#allocation95_spill] sm:$0xff] %v6601_v42  ;;  %v619_v28 = vpop.permute.xlu1 %618  ;;  %v1629_v19 = vld [vmem:[#allocation2 + $0x69] sm:$0x1]  ;;  %v6655_v39 = vmul.f32 %v5930_v56, %v974_v12  ;;  %v6658_v5 = vmul.f32 %v5992_v44, %v1221_v30  ;;  %v6661_v10 = vmul.f32 %v5997_v43, %v1346_v61  ;;  %v975_v50 = vld [vmem:[#allocation2 + $0x71] sm:$0xff] }
  0xef   : > { %9765 = vst [vmem:[#allocation96_spill] sm:$0xff] %v6604_v40  ;;  %9766 = vst [vmem:[#allocation97_spill] sm:$0xff] %v6610_v18  ;;  %v6625_v40 = vmul.f32 %v5930_v56, %v967_v34  ;;  %v1993_v42 = vld [vmem:[#allocation2 + $0x69] sm:$0x1]  ;;  %v6636_v18 = vmul.f32 %v5916_v8, %v967_v34  ;;  %v6675_v12 = vmul.f32 %v5954_v37, %v2547_v9  ;;  %v853_v9 = vld [vmem:[#allocation2 + $0x78] sm:$0x1] }
  0xf0   : > { %9767 = vst [vmem:[#allocation98_spill] sm:$0xff] %v6613_v1  ;;  %9768 = vst [vmem:[#allocation99_spill] sm:$0xff] %v6616_v0  ;;  %v5497_v0 = vld [vmem:[%s5646_s26 + $0x1b0] sm:$0xff]  ;;  %v6639_v1 = vmul.f32 %v6012_v51, %v967_v34  ;;  %v3182_v49 = vld [vmem:[#allocation2 + $0x69] sm:$0x1]  ;;  %v6681_v61 = vmul.f32 %v5909_v48, %v850_v16  ;;  %v6823_v45 = vmul.f32 %v6012_v51, %v975_v50 }
  0xf1   : > { %9769 = vst [vmem:[#allocation100_spill] sm:$0xff] %v6619_v3  ;;  %9770 = vst [vmem:[#allocation101_spill] sm:$0xff] %v6628_v53  ;;  %v664_v22 = vsel %vm364_vm0, %v5497_v0, %v619_v28  ;;  %v6633_v3 = vmul.f32 %v5997_v43, %v967_v34  ;;  %v6649_v0 = vmul.f32 %v5959_v38, %v967_v34  ;;  %v6669_v34 = vld [vmem:[#allocation2 + $0xc0] sm:$0xff]  ;;  %v2427_v53 = vld [vmem:[#allocation2 + $0x78] sm:$0x1] }
  0xf2   : > { %9772 = vst [vmem:[#allocation103_spill] sm:$0xff] %v6639_v1  ;;  %9773 = vst [vmem:[#allocation104_spill] sm:$0xff] %v6642_v54  ;;  %v6652_v28 = vmul.f32 %v5909_v48, %v851_v26  ;;  %v973_v1 = vld [vmem:[#allocation2 + $0x61] sm:$0xff]  ;;  %v6672_v26 = vmul.f32 %v5948_v33, %v2425_v20  ;;  %v6678_v30 = vmul.f32 %v5959_v38, %v3182_v49  ;;  %v2549_v6 = vld [vmem:[#allocation2 + $0x79] sm:$0x1] }
  0xf3   : > { %9771 = vst [vmem:[#allocation102_spill] sm:$0xff] %v6633_v3  ;;  %685 = vst.msk [vmem:[#allocation2 + $0x1b0] sm:$0xff] %vm385_vm2, %v664_v22  ;;  %v6664_v22 = vmul.f32 %v5916_v8, %v1629_v19  ;;  %v6684_v19 = vmul.f32 %v5930_v56, %v973_v1  ;;  %v6693_v20 = vmul.f32 %v5916_v8, %v973_v1  ;;  %v6709_v8 = vld [vmem:[%s9657_s1] ss:$0 sm:$0xff]  ;;  %v9789_v3 = vld [vmem:[#allocation45_spill] sm:$0xff] }
  0xf4   : > { %9774 = vst [vmem:[#allocation105_spill] sm:$0xff] %v6646_v46  ;;  %9775 = vst [vmem:[#allocation106_spill] sm:$0xff] %v6649_v0  ;;  %v6667_v46 = vmul.f32 %v6012_v51, %v1993_v42  ;;  %v6687_v42 = vmul.f32 %v5992_v44, %v850_v16  ;;  %v6690_v0 = vmul.f32 %v5997_v43, %v973_v1  ;;  %v3184_v2 = vld [vmem:[#allocation2 + $0x79] sm:$0x1]  ;;  %v6750_v52 = vld [vmem:[#allocation2 + $0xd0] sm:$0xff] }
  0xf5   : > { %9776 = vst [vmem:[#allocation107_spill] sm:$0xff] %v6658_v5  ;;  %9777 = vst [vmem:[#allocation108_spill] sm:$0xff] %v6661_v10  ;;  %v6698_v49 = vmul.f32 %v6012_v51, %v973_v1  ;;  %v6701_v48 = vmul.f32 %v5948_v33, %v850_v16  ;;  %v6704_v56 = vmul.f32 %v5954_v37, %v973_v1  ;;  %v1348_v10 = vld [vmem:[#allocation2 + $0x79] sm:$0x1]  ;;  %v1560_v16 = vld [vmem:[#allocation2 + $0xc8] sm:$0x1] }
  0xf6   : > { %9778 = vst [vmem:[#allocation109_spill] sm:$0xff] %v6667_v46  ;;  %9779 = vst [vmem:[#allocation110_spill] sm:$0xff] %v6672_v26  ;;  %v1223_v26 = vld [vmem:[#allocation2 + $0x78] sm:$0x1]  ;;  %v1584_v5 = vmul.f32 %v6709_v8, %v6669_v34  ;;  %v6714_v46 = vmul.f32 %v5959_v38, %v973_v1  ;;  %v1995_v33 = vld [vmem:[#allocation2 + $0x79] sm:$0x1]  ;;  %v6718_v37 = vadd.f32 %v6068_v47, %v6293_v32 }
  0xf7   : > { %9780 = vst [vmem:[#allocation111_spill] sm:$0xff] %v6675_v12  ;;  %9781 = vst [vmem:[#allocation112_spill] sm:$0xff] %v6678_v30  ;;  %v6695_v12 = vld [vmem:[#allocation2 + $0xc1] sm:$0xff]  ;;  %v976_v30 = vld [vmem:[#allocation2 + $0x79] sm:$0x1]  ;;  %v6726_v54 = vadd.f32 %v9790_v4, %v9789_v3 }
  0xf8   : > { %9782 = vst [vmem:[#allocation113_spill] sm:$0xff] %v6687_v42  ;;  %9783 = vst [vmem:[#allocation114_spill] sm:$0xff] %v6690_v0  ;;  %v1663_v38 = vadd.f32 %v6567_v62, %v1584_v5  ;;  %v6732_v1 = vld [vmem:[%s9657_s1 + $0x2] ss:$0 sm:$0xff]  ;;  %v9791_v32 = vld [vmem:[#allocation47_spill] sm:$0xff] }
  0xf9   : > { %9784 = vst [vmem:[#allocation115_spill] sm:$0xff] %v6698_v49  ;;  %9785 = vst [vmem:[#allocation116_spill] sm:$0xff] %v6701_v48  ;;  %v1631_v49 = vld [vmem:[#allocation2 + $0x79] sm:$0x1]  ;;  %v1706_v47 = vmul.f32 %v6732_v1, %v6695_v12  ;;  %v9793_v4 = vld [vmem:[#allocation36_spill] sm:$0xff]  ;;  %v6748_v62 = vmul.f32 %v6732_v1, %v976_v30 }
  0xfa   : > { %9786 = vst [vmem:[#allocation117_spill] sm:$0xff] %v6704_v56  ;;  %9787 = vst [vmem:[#allocation118_spill] sm:$0xff] %v6714_v46  ;;  %v9788_v56 = vld [vmem:[#allocation21_spill] sm:$0xff]  ;;  %v6742_v3 = vadd.f32 %v9793_v4, %v6417_v36  ;;  %v6745_v46 = vmul.f32 %v6709_v8, %v853_v9  ;;  %v852_v5 = vld [vmem:[#allocation2 + $0x70] sm:$0xff]  ;;  %v6761_v36 = vmul.f32 %v5992_v44, %v1223_v26 }
  0xfb   : > { %v6722_v48 = vadd.f32 %v9788_v56, %v6361_v41  ;;  %v9792_v41 = vld [vmem:[#allocation6_spill] sm:$0xff]  ;;  %9794 = vst [vmem:[#allocation21_spill] sm:$0xff] %v6748_v62  ;;  %v9795_v0 = vld [vmem:[#allocation13_spill] sm:$0xff]  ;;  %v6764_v9 = vmul.f32 %v5997_v43, %v1348_v10  ;;  %v1585_v4 = vmul.f32 %v6709_v8, %v1560_v16  ;;  %v6767_v60 = vadd.f32 %v1706_v47, %v1663_v38  ;;  %v6783_v10 = vld [vmem:[%s9657_s1 + $0x3] ss:$0 sm:$0xff] }
  0xfc   : > { %v6738_v56 = vadd.f32 %v9792_v41, %v9791_v32  ;;  %v6754_v42 = vadd.f32 %v9795_v0, %v6328_v58  ;;  %v9796_v32 = vld [vmem:[#allocation29_spill] sm:$0xff]  ;;  %9797 = vst [vmem:[#allocation45_spill] sm:$0xff] %v6761_v36  ;;  %v6772_v58 = vld [vmem:[%s9657_s1 + $0x1] ss:$0 sm:$0xff]  ;;  %v6786_v26 = vmul.f32 %v6783_v10, %v2427_v53  ;;  %v6791_v16 = vld [vmem:[%s9657_s1 + $0x5] ss:$0 sm:$0xff]  ;;  %v6805_v53 = vmul.f32 %v6709_v8, %v852_v5 }
  0xfd   : > { %v6758_v41 = vadd.f32 %v9796_v32, %v6402_v15  ;;  %9798 = vst [vmem:[#allocation5_spill] sm:$0xff] %v6764_v9  ;;  %v904_v30 = vld [vmem:[#allocation2 + $0xc8] sm:$0x1]  ;;  %9799 = vst [vmem:[#allocation47_spill] sm:$0xff] %v6767_v60  ;;  %v6775_v0 = vmul.f32 %v6772_v58, %v1631_v49  ;;  %v6778_v15 = vmul.f32 %v6012_v51, %v1995_v33  ;;  %v1682_v49 = vld [vmem:[#allocation2 + $0xc9] sm:$0x1] }
  0xfe   : > { %9801 = vst [vmem:[#allocation36_spill] sm:$0xff] %v6786_v26  ;;  %v6794_v38 = vmul.f32 %v6791_v16, %v2549_v6  ;;  %v6799_v33 = vld [vmem:[%s9657_s1 + $0x4] ss:$0 sm:$0xff]  ;;  %v6808_v32 = vmul.f32 %v6732_v1, %v975_v50  ;;  %v1276_v9 = vld [vmem:[#allocation2 + $0xc8] sm:$0x1]  ;;  %v1586_v6 = vmul.f32 %v6709_v8, %v6750_v52  ;;  %v6813_v36 = vmul.f32 %v5992_v44, %v852_v5 }
  0xff   : > { %9800 = vst [vmem:[#allocation6_spill] sm:$0xff] %v6778_v15  ;;  %v6802_v47 = vmul.f32 %v6799_v33, %v3184_v2  ;;  %v6819_v15 = vmul.f32 %v6772_v58, %v975_v50  ;;  %v930_v2 = vmul.f32 %v6772_v58, %v904_v30  ;;  %v2046_v26 = vld [vmem:[#allocation2 + $0xc9] sm:$0x1]  ;;  %v2478_v60 = vld [vmem:[#allocation2 + $0xc8] sm:$0x1]  ;;  %9806 = vst [vmem:[#allocation121_spill] sm:$0xff] %v6823_v45 }
 0x100   : > { %9802 = vst [vmem:[#allocation13_spill] sm:$0xff] %v6794_v38  ;;  %9804 = vst [vmem:[#allocation119_spill] sm:$0xff] %v6813_v36  ;;  %v6816_v38 = vmul.f32 %v5997_v43, %v975_v50  ;;  %v1664_v27 = vadd.f32 %v6456_v55, %v1585_v4  ;;  %v1707_v7 = vmul.f32 %v6732_v1, %v1682_v49  ;;  %v3113_v31 = vld [vmem:[#allocation2 + $0xc8] sm:$0x1]  ;;  %v3235_v36 = vld [vmem:[#allocation2 + $0xc9] sm:$0x1] }
 0x101   : > { %9803 = vst [vmem:[#allocation29_spill] sm:$0xff] %v6802_v47  ;;  %v1924_v47 = vld [vmem:[#allocation2 + $0xc8] sm:$0x1]  ;;  %v1562_v24 = vld [vmem:[#allocation2 + $0xd8] sm:$0x1]  ;;  %v6831_v29 = vmul.f32 %v6783_v10, %v852_v5  ;;  %v6834_v30 = vmul.f32 %v6791_v16, %v975_v50  ;;  %v6837_v17 = vmul.f32 %v6799_v33, %v975_v50  ;;  %v929_v55 = vmul.f32 %v6772_v58, %v6669_v34  ;;  %v6841_v4 = vld [vmem:[#allocation2 + $0x100] sm:$0xff]  ;;  %v6855_v50 = vpop.permute.xlu0 %616 }
 0x102   : > { %9805 = vst [vmem:[#allocation120_spill] sm:$0xff] %v6816_v38  ;;  %v6828_v38 = vadd.f32 %v6636_v18, %v1586_v6  ;;  %v6844_v49 = vmul.f32 %v6012_v51, %v1276_v9  ;;  %v6847_v18 = vmul.f32 %v5992_v44, %v1924_v47  ;;  %v6850_v5 = vmul.f32 %v5997_v43, %v2046_v26  ;;  %v906_v45 = vld [vmem:[#allocation2 + $0xd8] sm:$0x1]  ;;  %v3243_v25 = vld [vmem:[#allocation2 + $0x109] sm:$0x1] }
 0x103   : > { %9807 = vst [vmem:[#allocation122_spill] sm:$0xff] %v6831_v29  ;;  %9808 = vst [vmem:[#allocation123_spill] sm:$0xff] %v6834_v30  ;;  %v6853_v6 = vmul.f32 %v6799_v33, %v2478_v60  ;;  %v6861_v30 = vmul.f32 %v6783_v10, %v3113_v31  ;;  %v6864_v9 = vmul.f32 %v6791_v16, %v3235_v36  ;;  %v6867_v29 = vld [vmem:[#allocation2 + $0x101] sm:$0xff]  ;;  %v1684_v31 = vld [vmem:[#allocation2 + $0xd9] sm:$0x1] }
 0x104   : > { %9809 = vst [vmem:[#allocation124_spill] sm:$0xff] %v6837_v17  ;;  %9810 = vst [vmem:[#allocation125_spill] sm:$0xff] %v6844_v49  ;;  %v6858_v17 = vadd.f32 %v930_v2, %v6440_v13  ;;  %v1587_v47 = vmul.f32 %v6709_v8, %v1562_v24  ;;  %v6869_v26 = vadd.f32 %v1707_v7, %v1664_v27  ;;  %v1278_v2 = vld [vmem:[#allocation2 + $0xd8] sm:$0x1]  ;;  %v3237_v49 = vld [vmem:[#allocation2 + $0xd9] sm:$0x1] }
 0x105   : > { %9811 = vst [vmem:[#allocation126_spill] sm:$0xff] %v6847_v18  ;;  %9812 = vst [vmem:[#allocation127_spill] sm:$0xff] %v6850_v5  ;;  %v6873_v60 = vmul.f32 %v6012_v51, %v6669_v34  ;;  %v6877_v13 = vmul.f32 %v5992_v44, %v6669_v34  ;;  %v1592_v36 = vmul.f32 %v6709_v8, %v6841_v4  ;;  %v914_v35 = vld [vmem:[#allocation2 + $0x118] sm:$0x1] }
 0x106   : > { %9813 = vst [vmem:[#allocation128_spill] sm:$0xff] %v6853_v6  ;;  %9814 = vst [vmem:[#allocation129_spill] sm:$0xff] %v6861_v30  ;;  %v1926_v6 = vld [vmem:[#allocation2 + $0xd8] sm:$0x1]  ;;  %v6882_v24 = vadd.f32 %v929_v55, %v6526_v14  ;;  %v6886_v7 = vmul.f32 %v5997_v43, %v6695_v12  ;;  %v6890_v27 = vmul.f32 %v6799_v33, %v6669_v34  ;;  %v1568_v43 = vld [vmem:[#allocation2 + $0x108] sm:$0x1] }
 0x107   : > { %9815 = vst [vmem:[#allocation130_spill] sm:$0xff] %v6864_v9  ;;  %9816 = vst [vmem:[#allocation131_spill] sm:$0xff] %v6869_v26  ;;  %v932_v44 = vmul.f32 %v6772_v58, %v906_v45  ;;  %v2048_v9 = vld [vmem:[#allocation2 + $0xd9] sm:$0x1]  ;;  %v2480_v26 = vld [vmem:[#allocation2 + $0xd8] sm:$0x1]  ;;  %v6895_v30 = vmul.f32 %v6783_v10, %v6669_v34  ;;  %v6899_v14 = vmul.f32 %v6791_v16, %v6695_v12 }
 0x108   : > { %9817 = vst [vmem:[#allocation132_spill] sm:$0xff] %v6873_v60  ;;  %9818 = vst [vmem:[#allocation133_spill] sm:$0xff] %v6877_v13  ;;  %v3115_v55 = vld [vmem:[#allocation2 + $0xd8] sm:$0x1]  ;;  %v6905_v45 = vmul.f32 %v6012_v51, %v1278_v2  ;;  %v1666_v5 = vadd.f32 %v6607_v63, %v1587_v47  ;;  %v1709_v34 = vmul.f32 %v6732_v1, %v1684_v31  ;;  %v6912_v12 = vld [vmem:[%s9657_s1 + $0x6] ss:$0 sm:$0xff] }
 0x109   : > { %9819 = vst [vmem:[#allocation134_spill] sm:$0xff] %v6886_v7  ;;  %9820 = vst [vmem:[#allocation135_spill] sm:$0xff] %v6890_v27  ;;  %v1671_v7 = vadd.f32 %v6693_v20, %v1592_v36  ;;  %v1714_v27 = vmul.f32 %v6732_v1, %v6867_v29  ;;  %v6917_v20 = vld [vmem:[#allocation2 + $0x110] sm:$0xff]  ;;  %v6919_v36 = vpop.permute.xlu1 %732  ;;  %v6924_v51 = vld [vmem:[%s9657_s1 + $0x8] ss:$0 sm:$0xff]  ;;  %v6930_v47 = vmul.f32 %v6799_v33, %v2480_v26 }
 0x10a   : > { %9821 = vst [vmem:[#allocation136_spill] sm:$0xff] %v6895_v30  ;;  %9822 = vst [vmem:[#allocation137_spill] sm:$0xff] %v6899_v14  ;;  %v6915_v14 = vmul.f32 %v6912_v12, %v1926_v6  ;;  %v1683_v30 = vld [vmem:[#allocation2 + $0xd1] sm:$0xff]  ;;  %v6927_v63 = vmul.f32 %v6924_v51, %v2048_v9  ;;  %v931_v6 = vmul.f32 %v6772_v58, %v6750_v52  ;;  %v912_v2 = vld [vmem:[#allocation2 + $0x108] sm:$0x1] }
 0x10b   : > { %9823 = vst [vmem:[#allocation138_spill] sm:$0xff] %v6905_v45  ;;  %9826 = vst [vmem:[#allocation141_spill] sm:$0xff] %v6930_v47  ;;  %v6934_v31 = vadd.f32 %v1714_v27, %v1671_v7  ;;  %v6936_v45 = vpop.permute.xlu0 %620  ;;  %v6942_v18 = vmul.f32 %v6783_v10, %v3115_v55  ;;  %v6945_v9 = vmul.f32 %v6791_v16, %v3237_v49  ;;  %v6951_v47 = vld [vmem:[%s9657_s1 + $0x7] ss:$0 sm:$0xff]  ;;  %v1690_v27 = vld [vmem:[#allocation2 + $0x109] sm:$0x1] }
 0x10c   : > { %9824 = vst [vmem:[#allocation139_spill] sm:$0xff] %v6915_v14  ;;  %9825 = vst [vmem:[#allocation140_spill] sm:$0xff] %v6927_v63  ;;  %v6939_v14 = vadd.f32 %v932_v44, %v6593_v21  ;;  %v1593_v26 = vmul.f32 %v6709_v8, %v1568_v43  ;;  %v6955_v7 = vmul.f32 %v6951_v47, %v6750_v52  ;;  %v1284_v63 = vld [vmem:[#allocation2 + $0x108] sm:$0x1] }
 0x10d   : > { %9827 = vst [vmem:[#allocation142_spill] sm:$0xff] %v6934_v31  ;;  %9828 = vst [vmem:[#allocation143_spill] sm:$0xff] %v6942_v18  ;;  %v1708_v21 = vmul.f32 %v6732_v1, %v1683_v30  ;;  %v939_v44 = vmul.f32 %v6772_v58, %v6917_v20  ;;  %v1594_v49 = vmul.f32 %v6709_v8, %v6917_v20  ;;  %v1570_v31 = vld [vmem:[#allocation2 + $0x118] sm:$0x1]  ;;  %v6994_v62 = vpop.permute.xlu1 %748 }
 0x10e   : > { %9829 = vst [vmem:[#allocation144_spill] sm:$0xff] %v6945_v9  ;;  %9830 = vst [vmem:[#allocation145_spill] sm:$0xff] %v6955_v7  ;;  %v6962_v55 = vadd.f32 %v1709_v34, %v1666_v5  ;;  %v6966_v43 = vmul.f32 %v6912_v12, %v6750_v52  ;;  %v6969_v9 = vmul.f32 %v6924_v51, %v1683_v30  ;;  %v1932_v5 = vld [vmem:[#allocation2 + $0x108] sm:$0x1]  ;;  %v2054_v34 = vld [vmem:[#allocation2 + $0x109] sm:$0x1] }
 0x10f   : > { %v938_v18 = vmul.f32 %v6772_v58, %v912_v2  ;;  %v6973_v7 = vadd.f32 %v931_v6, %v6622_v11  ;;  %v6977_v13 = vmul.f32 %v6799_v33, %v6750_v52  ;;  %v6980_v60 = vadd.f32 %v939_v44, %v6805_v53  ;;  %v7005_v44 = vpop.permute.xlu0 %736 }
 0x110   : > { %9831 = vst [vmem:[#allocation146_spill] sm:$0xff] %v6962_v55  ;;  %9832 = vst [vmem:[#allocation147_spill] sm:$0xff] %v6966_v43  ;;  %v2486_v55 = vld [vmem:[#allocation2 + $0x108] sm:$0x1]  ;;  %v6983_v43 = vadd.f32 %v6819_v15, %v1594_v49  ;;  %v6987_v2 = vmul.f32 %v6783_v10, %v6750_v52  ;;  %v6990_v11 = vmul.f32 %v6791_v16, %v1683_v30  ;;  %v1286_v49 = vld [vmem:[#allocation2 + $0x118] sm:$0x1] }
 0x111   : > { %9833 = vst [vmem:[#allocation148_spill] sm:$0xff] %v6969_v9  ;;  %9834 = vst [vmem:[#allocation149_spill] sm:$0xff] %v6977_v13  ;;  %v1672_v6 = vadd.f32 %v6664_v22, %v1593_v26  ;;  %v1715_v9 = vmul.f32 %v6732_v1, %v1690_v27  ;;  %v3121_v13 = vld [vmem:[#allocation2 + $0x108] sm:$0x1]  ;;  %v6997_v53 = vadd.f32 %v1708_v21, %v6828_v38 }
 0x112   : > { %9835 = vst [vmem:[#allocation150_spill] sm:$0xff] %v6987_v2  ;;  %9836 = vst [vmem:[#allocation151_spill] sm:$0xff] %v6990_v11  ;;  %v7000_v15 = vmul.f32 %v6951_v47, %v1284_v63  ;;  %v937_v52 = vmul.f32 %v6772_v58, %v6841_v4  ;;  %v1595_v30 = vmul.f32 %v6709_v8, %v1570_v31  ;;  %v1692_v63 = vld [vmem:[#allocation2 + $0x119] sm:$0x1]  ;;  %v1691_v2 = vld [vmem:[#allocation2 + $0x111] sm:$0xff] }
 0x113   : > { %9837 = vst [vmem:[#allocation152_spill] sm:$0xff] %v6997_v53  ;;  %v7008_v22 = vadd.f32 %v938_v18, %v6652_v28  ;;  %v7011_v26 = vmul.f32 %v6912_v12, %v1932_v5  ;;  %v7014_v27 = vmul.f32 %v6924_v51, %v2054_v34  ;;  %v7017_v38 = vmul.f32 %v6799_v33, %v2486_v55  ;;  %v1934_v5 = vld [vmem:[#allocation2 + $0x118] sm:$0x1]  ;;  %v2056_v34 = vld [vmem:[#allocation2 + $0x119] sm:$0x1] }
 0x114   : > { %9838 = vst [vmem:[#allocation153_spill] sm:$0xff] %v7000_v15  ;;  %v7020_v21 = vmul.f32 %v6783_v10, %v3121_v13  ;;  %v7023_v31 = vmul.f32 %v6791_v16, %v3243_v25  ;;  %v7027_v28 = vmul.f32 %v6951_v47, %v6841_v4  ;;  %v940_v18 = vmul.f32 %v6772_v58, %v914_v35  ;;  %v3245_v35 = vld [vmem:[#allocation2 + $0x119] sm:$0x1]  ;;  %v1025_v15 = vld [vmem:[#allocation2 + $0x150] sm:$0xff] }
 0x115   : > { %9839 = vst [vmem:[#allocation154_spill] sm:$0xff] %v7011_v26  ;;  %9840 = vst [vmem:[#allocation155_spill] sm:$0xff] %v7014_v27  ;;  %v7030_v11 = vadd.f32 %v1715_v9, %v1672_v6  ;;  %v7034_v55 = vmul.f32 %v6912_v12, %v6841_v4  ;;  %v7038_v13 = vmul.f32 %v6924_v51, %v6867_v29  ;;  %v1023_v27 = vld [vmem:[#allocation2 + $0x140] sm:$0xff]  ;;  %v2991_v53 = vld [vmem:[#allocation2 + $0x159] sm:$0x1] }
 0x116   : > { %9841 = vst [vmem:[#allocation156_spill] sm:$0xff] %v7017_v38  ;;  %9842 = vst [vmem:[#allocation157_spill] sm:$0xff] %v7020_v21  ;;  %v7042_v25 = vmul.f32 %v6799_v33, %v6841_v4  ;;  %v3123_v38 = vld [vmem:[#allocation2 + $0x118] sm:$0x1]  ;;  %v7045_v21 = vadd.f32 %v937_v52, %v6681_v61  ;;  %v7049_v9 = vmul.f32 %v6783_v10, %v6841_v4  ;;  %v7066_v52 = vpop.permute.xlu1 %738 }
 0x117   : > { %9843 = vst [vmem:[#allocation158_spill] sm:$0xff] %v7023_v31  ;;  %9844 = vst [vmem:[#allocation159_spill] sm:$0xff] %v7027_v28  ;;  %v2488_v31 = vld [vmem:[#allocation2 + $0x118] sm:$0x1]  ;;  %v1674_v6 = vadd.f32 %v6775_v0, %v1595_v30  ;;  %v7061_v61 = vmul.f32 %v6912_v12, %v1934_v5  ;;  %v7064_v4 = vmul.f32 %v6924_v51, %v2056_v34  ;;  %v7085_v5 = vpop.permute.xlu0 %752  ;;  %v1147_v34 = vld [vmem:[#allocation2 + $0x141] sm:$0xff] }
 0x118   : > { %9845 = vst [vmem:[#allocation160_spill] sm:$0xff] %v7030_v11  ;;  %9846 = vst [vmem:[#allocation161_spill] sm:$0xff] %v7034_v55  ;;  %v1717_v11 = vmul.f32 %v6732_v1, %v1692_v63  ;;  %v7069_v0 = vadd.f32 %v940_v18, %v6745_v46  ;;  %v7072_v30 = vmul.f32 %v6799_v33, %v2488_v31  ;;  %v1032_v28 = vld [vmem:[#allocation2 + $0x188] sm:$0x1] }
 0x119   : > { %9847 = vst [vmem:[#allocation162_spill] sm:$0xff] %v7038_v13  ;;  %9848 = vst [vmem:[#allocation163_spill] sm:$0xff] %v7042_v25  ;;  %v7055_v25 = vmul.f32 %v6791_v16, %v6867_v29  ;;  %v7058_v13 = vmul.f32 %v6951_v47, %v1286_v49  ;;  %v7075_v29 = vmul.f32 %v6783_v10, %v3123_v38  ;;  %v7083_v49 = vld [vmem:[%s9657_s1 + $0x6] ss:$0 sm:$0xff] }
 0x11a   : > { %9849 = vst [vmem:[#allocation164_spill] sm:$0xff] %v7049_v9  ;;  %9852 = vst [vmem:[#allocation167_spill] sm:$0xff] %v7061_v61  ;;  %v7078_v63 = vmul.f32 %v6791_v16, %v3245_v35  ;;  %v7089_v46 = vmul.f32 %v6951_v47, %v6917_v20  ;;  %v1716_v31 = vmul.f32 %v6732_v1, %v1691_v2  ;;  %v1031_v35 = vld [vmem:[#allocation2 + $0x180] sm:$0xff] }
 0x11b   : > { %9850 = vst [vmem:[#allocation165_spill] sm:$0xff] %v7055_v25  ;;  %9851 = vst [vmem:[#allocation166_spill] sm:$0xff] %v7058_v13  ;;  %v1051_v18 = vmul.f32 %v6783_v10, %v1025_v15  ;;  %v1049_v38 = vmul.f32 %v6783_v10, %v1023_v27  ;;  %v1026_v13 = vld [vmem:[#allocation2 + $0x158] sm:$0x1]  ;;  %v7105_v47 = vmul.f32 %v6799_v33, %v6917_v20  ;;  %v7140_v25 = vpop.permute.xlu1 %744  ;;  %v7159_v9 = vpop.permute.xlu0 %740 }
 0x11c   : > { %9853 = vst [vmem:[#allocation168_spill] sm:$0xff] %v7064_v4  ;;  %9854 = vst [vmem:[#allocation169_spill] sm:$0xff] %v7072_v30  ;;  %v7098_v4 = vmul.f32 %v6912_v12, %v6917_v20  ;;  %v7101_v30 = vmul.f32 %v6924_v51, %v1691_v2  ;;  %v7112_v61 = vmul.f32 %v6791_v16, %v1691_v2  ;;  %v2599_v2 = vld [vmem:[#allocation2 + $0x158] sm:$0x1] }
 0x11d   : > { %9855 = vst [vmem:[#allocation170_spill] sm:$0xff] %v7075_v29  ;;  %9856 = vst [vmem:[#allocation171_spill] sm:$0xff] %v7078_v63  ;;  %v7094_v63 = vadd.f32 %v1717_v11, %v1674_v6  ;;  %v7109_v29 = vmul.f32 %v6783_v10, %v6917_v20  ;;  %v7115_v11 = vmul.f32 %v6709_v8, %v1025_v15 }
 0x11e   : > { %9857 = vst [vmem:[#allocation172_spill] sm:$0xff] %v7089_v46  ;;  %9859 = vst [vmem:[#allocation174_spill] sm:$0xff] %v7098_v4  ;;  %v7118_v12 = vmul.f32 %v7083_v49, %v1025_v15  ;;  %v7121_v51 = vadd.f32 %v1716_v31, %v6983_v43  ;;  %v7124_v6 = vmul.f32 %v6791_v16, %v1147_v34  ;;  %v1150_v4 = vld [vmem:[#allocation2 + $0x159] sm:$0x1]  ;;  %v2234_v46 = vld [vmem:[#allocation2 + $0x158] sm:$0x1] }
 0x11f   : > { %9858 = vst [vmem:[#allocation173_spill] sm:$0xff] %v7094_v63  ;;  %9860 = vst [vmem:[#allocation175_spill] sm:$0xff] %v7101_v30  ;;  %v1057_v30 = vmul.f32 %v6783_v10, %v1031_v35  ;;  %v1052_v20 = vmul.f32 %v6783_v10, %v1026_v13  ;;  %v9868_v63 = vld [vmem:[#allocation4_spill] sm:$0xff]  ;;  %v7135_v15 = vmul.f32 %v6799_v33, %v1147_v34  ;;  %v1802_v31 = vld [vmem:[#allocation2 + $0x159] sm:$0x1] }
 0x120   : > { %9861 = vst [vmem:[#allocation176_spill] sm:$0xff] %v7105_v47  ;;  %9862 = vst [vmem:[#allocation177_spill] sm:$0xff] %v7109_v29  ;;  %v1149_v29 = vld [vmem:[#allocation2 + $0x151] sm:$0xff]  ;;  %v7132_v47 = vadd.f32 %v1049_v38, %v9868_v63  ;;  %v7138_v43 = vmul.f32 %v6709_v8, %v1023_v27  ;;  %v7143_v13 = vmul.f32 %v6732_v1, %v1147_v34  ;;  %v7157_v27 = vld [vmem:[%s9657_s1 + $0x8] ss:$0 sm:$0xff] }
 0x121   : > { %9863 = vst [vmem:[#allocation178_spill] sm:$0xff] %v7112_v61  ;;  %9864 = vst [vmem:[#allocation179_spill] sm:$0xff] %v7115_v11  ;;  %v7129_v61 = vadd.f32 %v1051_v18, %v6718_v37  ;;  %v7149_v37 = vmul.f32 %v6709_v8, %v1031_v35  ;;  %v7152_v63 = vmul.f32 %v7083_v49, %v1031_v35  ;;  %v2356_v18 = vld [vmem:[#allocation2 + $0x159] sm:$0x1]  ;;  %v1033_v38 = vld [vmem:[#allocation2 + $0x190] sm:$0xff] }
 0x122   : > { %9865 = vst [vmem:[#allocation180_spill] sm:$0xff] %v7118_v12  ;;  %9866 = vst [vmem:[#allocation181_spill] sm:$0xff] %v7121_v51  ;;  %v7146_v51 = vmul.f32 %v6772_v58, %v1147_v34  ;;  %v7162_v26 = vmul.f32 %v6791_v16, %v1149_v29  ;;  %v7165_v34 = vmul.f32 %v6791_v16, %v1150_v4 }
 0x123   : > { %9867 = vst [vmem:[#allocation182_spill] sm:$0xff] %v7129_v61  ;;  %9869 = vst [vmem:[#allocation4_spill] sm:$0xff] %v7149_v37  ;;  %v7168_v55 = vmul.f32 %v6799_v33, %v1149_v29  ;;  %v2624_v35 = vmul.f32 %v7083_v49, %v2599_v2  ;;  %v7172_v11 = vadd.f32 %v1057_v30, %v6722_v48  ;;  %v7177_v37 = vld [vmem:[%s9657_s1 + $0x7] ss:$0 sm:$0xff]  ;;  %v3355_v2 = vld [vmem:[#allocation2 + $0x159] sm:$0x1] }
 0x124   : > { %9870 = vst [vmem:[#allocation183_spill] sm:$0xff] %v7152_v63  ;;  %9871 = vst [vmem:[#allocation184_spill] sm:$0xff] %v7162_v26  ;;  %v2722_v63 = vld [vmem:[#allocation2 + $0x159] sm:$0x1]  ;;  %v7180_v26 = vadd.f32 %v1052_v20, %v6726_v54  ;;  %v7183_v4 = vmul.f32 %v6799_v33, %v1802_v31  ;;  %v7192_v48 = vmul.f32 %v6732_v1, %v2356_v18  ;;  %v1155_v54 = vld [vmem:[#allocation2 + $0x181] sm:$0xff] }
 0x125   : > { %9872 = vst [vmem:[#allocation185_spill] sm:$0xff] %v7165_v34  ;;  %9873 = vst [vmem:[#allocation186_spill] sm:$0xff] %v7168_v55  ;;  %v7186_v34 = vmul.f32 %v6709_v8, %v2234_v46  ;;  %v7189_v55 = vmul.f32 %v6732_v1, %v1149_v29  ;;  %v7195_v30 = vmul.f32 %v7157_v27, %v1149_v29  ;;  %v1156_v20 = vld [vmem:[#allocation2 + $0x189] sm:$0x1] }
 0x126   : > { %9874 = vst [vmem:[#allocation187_spill] sm:$0xff] %v7180_v26  ;;  %9875 = vst [vmem:[#allocation188_spill] sm:$0xff] %v7183_v4  ;;  %v1059_v61 = vmul.f32 %v6783_v10, %v1033_v38  ;;  %v7199_v31 = vmul.f32 %v7157_v27, %v2722_v63  ;;  %v7202_v46 = vmul.f32 %v6772_v58, %v1149_v29  ;;  %v1808_v18 = vld [vmem:[#allocation2 + $0x189] sm:$0x1] }
 0x127   : > { %9876 = vst [vmem:[#allocation189_spill] sm:$0xff] %v7186_v34  ;;  %9877 = vst [vmem:[#allocation190_spill] sm:$0xff] %v7189_v55  ;;  %v7205_v34 = vmul.f32 %v6772_v58, %v2991_v53  ;;  %v1058_v55 = vmul.f32 %v6783_v10, %v1032_v28  ;;  %v7209_v26 = vadd.f32 %v2624_v35, %v6738_v56  ;;  %v1027_v53 = vld [vmem:[#allocation2 + $0x160] sm:$0xff] }
 0x128   : > { %9878 = vst [vmem:[#allocation191_spill] sm:$0xff] %v7192_v48  ;;  %9879 = vst [vmem:[#allocation192_spill] sm:$0xff] %v7195_v30  ;;  %v2240_v48 = vld [vmem:[#allocation2 + $0x188] sm:$0x1]  ;;  %v7212_v4 = vmul.f32 %v7177_v37, %v1149_v29  ;;  %v7215_v30 = vmul.f32 %v7177_v37, %v3355_v2  ;;  %v7218_v63 = vmul.f32 %v6709_v8, %v1033_v38  ;;  %v2728_v2 = vld [vmem:[#allocation2 + $0x189] sm:$0x1] }
 0x129   : > { %9880 = vst [vmem:[#allocation193_spill] sm:$0xff] %v7199_v31  ;;  %9881 = vst [vmem:[#allocation194_spill] sm:$0xff] %v7202_v46  ;;  %v2362_v31 = vld [vmem:[#allocation2 + $0x189] sm:$0x1]  ;;  %v2605_v46 = vld [vmem:[#allocation2 + $0x188] sm:$0x1]  ;;  %v7223_v28 = vmul.f32 %v7083_v49, %v1033_v38  ;;  %v7226_v56 = vmul.f32 %v6791_v16, %v1155_v54  ;;  %v7229_v29 = vmul.f32 %v6791_v16, %v1156_v20 }
 0x12a   : > { %9882 = vst [vmem:[#allocation195_spill] sm:$0xff] %v7205_v34  ;;  %9883 = vst [vmem:[#allocation196_spill] sm:$0xff] %v7209_v26  ;;  %v7220_v34 = vpop.permute.xlu1 %754  ;;  %v7232_v35 = vmul.f32 %v6799_v33, %v1155_v54  ;;  %v7240_v26 = vmul.f32 %v6799_v33, %v1808_v18  ;;  %v7243_v38 = vmul.f32 %v6709_v8, %v2240_v48  ;;  %v2997_v20 = vld [vmem:[#allocation2 + $0x189] sm:$0x1]  ;;  %v1157_v18 = vld [vmem:[#allocation2 + $0x191] sm:$0xff] }
 0x12b   : > { %9884 = vst [vmem:[#allocation197_spill] sm:$0xff] %v7212_v4  ;;  %9885 = vst [vmem:[#allocation198_spill] sm:$0xff] %v7215_v30  ;;  %v1034_v30 = vld [vmem:[#allocation2 + $0x198] sm:$0x1]  ;;  %v7237_v4 = vadd.f32 %v1059_v61, %v6742_v3  ;;  %v7252_v12 = vmul.f32 %v6732_v1, %v2362_v31  ;;  %v7255_v3 = vmul.f32 %v7083_v49, %v2605_v46 }
 0x12c   : > { %9886 = vst [vmem:[#allocation199_spill] sm:$0xff] %v7218_v63  ;;  %9887 = vst [vmem:[#allocation200_spill] sm:$0xff] %v7223_v28  ;;  %v7234_v63 = vpop.permute.xlu0 %750  ;;  %v7246_v28 = vmul.f32 %v6732_v1, %v1155_v54  ;;  %v1053_v61 = vmul.f32 %v6783_v10, %v1027_v53  ;;  %v7259_v48 = vmul.f32 %v7157_v27, %v1155_v54  ;;  %v2242_v31 = vld [vmem:[#allocation2 + $0x198] sm:$0x1] }
 0x12d   : > { %9888 = vst [vmem:[#allocation201_spill] sm:$0xff] %v7229_v29  ;;  %9889 = vst [vmem:[#allocation202_spill] sm:$0xff] %v7232_v35  ;;  %v3361_v29 = vld [vmem:[#allocation2 + $0x189] sm:$0x1]  ;;  %v7249_v35 = vadd.f32 %v1058_v55, %v6754_v42  ;;  %v1060_v42 = vmul.f32 %v6783_v10, %v1034_v30  ;;  %v1810_v55 = vld [vmem:[#allocation2 + $0x199] sm:$0x1]  ;;  %v7269_v46 = vmul.f32 %v6772_v58, %v2997_v20 }
 0x12e   : > { %9890 = vst [vmem:[#allocation203_spill] sm:$0xff] %v7237_v4  ;;  %9891 = vst [vmem:[#allocation204_spill] sm:$0xff] %v7240_v26  ;;  %v1158_v26 = vld [vmem:[#allocation2 + $0x199] sm:$0x1]  ;;  %v7265_v4 = vmul.f32 %v6772_v58, %v1155_v54  ;;  %v7283_v30 = vmul.f32 %v7083_v49, %v1027_v53  ;;  %v7286_v20 = vmul.f32 %v6791_v16, %v1157_v18 }
 0x12f   : > { %9892 = vst [vmem:[#allocation205_spill] sm:$0xff] %v7243_v38  ;;  %9893 = vst [vmem:[#allocation206_spill] sm:$0xff] %v7249_v35  ;;  %v7262_v38 = vmul.f32 %v7157_v27, %v2728_v2  ;;  %v1009_v2 = vadd.f32 %v6538_v57, %v6882_v24  ;;  %v1029_v35 = vld [vmem:[#allocation2 + $0x170] sm:$0xff]  ;;  %v7296_v57 = vmul.f32 %v6799_v33, %v1157_v18 }
 0x130   : > { %9894 = vst [vmem:[#allocation207_spill] sm:$0xff] %v7252_v12  ;;  %9895 = vst [vmem:[#allocation208_spill] sm:$0xff] %v7255_v3  ;;  %v7272_v3 = vmul.f32 %v7177_v37, %v1155_v54  ;;  %v7275_v12 = vmul.f32 %v7177_v37, %v3361_v29  ;;  %v7289_v54 = vmul.f32 %v6791_v16, %v1158_v26  ;;  %v2730_v29 = vld [vmem:[#allocation2 + $0x199] sm:$0x1] }
 0x131   : > { %9896 = vst [vmem:[#allocation209_spill] sm:$0xff] %v7259_v48  ;;  %9897 = vst [vmem:[#allocation210_spill] sm:$0xff] %v7262_v38  ;;  %v2364_v38 = vld [vmem:[#allocation2 + $0x199] sm:$0x1]  ;;  %v7280_v48 = vmul.f32 %v6709_v8, %v1027_v53  ;;  %v7299_v24 = vmul.f32 %v6799_v33, %v1810_v55  ;;  %v7302_v53 = vmul.f32 %v6709_v8, %v2242_v31  ;;  %v7316_v55 = vld [vmem:[#allocation2 + $0x1b0] sm:$0xff] }
 0x132   : > { %9898 = vst [vmem:[#allocation211_spill] sm:$0xff] %v7269_v46  ;;  %9899 = vst [vmem:[#allocation212_spill] sm:$0xff] %v7272_v3  ;;  %v2607_v3 = vld [vmem:[#allocation2 + $0x198] sm:$0x1]  ;;  %v7293_v46 = vadd.f32 %v1053_v61, %v1009_v2  ;;  %v7307_v26 = vadd.f32 %v1060_v42, %v6758_v41  ;;  %v7313_v61 = vmul.f32 %v6732_v1, %v2364_v38 }
 0x133   : > { %9900 = vst [vmem:[#allocation213_spill] sm:$0xff] %v7275_v12  ;;  %9901 = vst [vmem:[#allocation214_spill] sm:$0xff] %v7280_v48  ;;  %v7291_v12 = vpop.permute.xlu1 %760  ;;  %v2999_v48 = vld [vmem:[#allocation2 + $0x199] sm:$0x1]  ;;  %v1055_v2 = vmul.f32 %v6783_v10, %v1029_v35  ;;  %v7319_v31 = vmul.f32 %v7083_v49, %v2607_v3  ;;  %v7325_v41 = vmul.f32 %v7157_v27, %v2730_v29 }
 0x134   : > { %9902 = vst [vmem:[#allocation215_spill] sm:$0xff] %v7283_v30  ;;  %9903 = vst [vmem:[#allocation216_spill] sm:$0xff] %v7286_v20  ;;  %v3363_v30 = vld [vmem:[#allocation2 + $0x199] sm:$0x1]  ;;  %v7304_v20 = vpop.permute.xlu0 %756  ;;  %v7328_v42 = vmul.f32 %v6772_v58, %v1157_v18  ;;  %v7331_v38 = vmul.f32 %v6772_v58, %v2999_v48  ;;  %v7344_v29 = vmul.f32 %v6709_v8, %v1029_v35 }
 0x135   : > { %9904 = vst [vmem:[#allocation217_spill] sm:$0xff] %v7289_v54  ;;  %9905 = vst [vmem:[#allocation218_spill] sm:$0xff] %v7302_v53  ;;  %v7310_v54 = vmul.f32 %v6732_v1, %v1157_v18  ;;  %v7322_v53 = vmul.f32 %v7157_v27, %v1157_v18  ;;  %v7337_v3 = vmul.f32 %v7177_v37, %v3363_v30 }
 0x136   : > { %9906 = vst [vmem:[#allocation219_spill] sm:$0xff] %v7307_v26  ;;  %9908 = vst [vmem:[#allocation221_spill] sm:$0xff] %v7313_v61  ;;  %v7334_v61 = vmul.f32 %v7177_v37, %v1157_v18  ;;  %v7341_v26 = vld [vmem:[#allocation2 + $0x161] sm:$0xff]  ;;  %v1019_v18 = vadd.f32 %v6808_v32, %v6980_v60  ;;  %v1063_v48 = vmul.f32 %v6783_v10, %v7316_v55 }
 0x137   : > { %9907 = vst [vmem:[#allocation220_spill] sm:$0xff] %v7310_v54  ;;  %9909 = vst [vmem:[#allocation222_spill] sm:$0xff] %v7319_v31  ;;  %v1028_v54 = vld [vmem:[#allocation2 + $0x168] sm:$0x1]  ;;  %v1011_v31 = vadd.f32 %v6625_v40, %v6973_v7  ;;  %v1010_v40 = vadd.f32 %v6447_v59, %v6858_v17  ;;  %v7363_v32 = vmul.f32 %v6791_v16, %v7341_v26  ;;  %v5508_v17 = vld [vmem:[%s5646_s26 + $0x1e0] sm:$0xff] }
 0x138   : > { %9910 = vst [vmem:[#allocation223_spill] sm:$0xff] %v7325_v41  ;;  %9911 = vst [vmem:[#allocation224_spill] sm:$0xff] %v7331_v38  ;;  %v7347_v41 = vmul.f32 %v7083_v49, %v1029_v35  ;;  %v1054_v7 = vmul.f32 %v6783_v10, %v1028_v54  ;;  %v5507_v38 = vld [vmem:[%s5646_s26 + $0x1a8] sm:$0x3]  ;;  %v747_v35 = vpop.permute.xlu1 %746  ;;  %v7365_v60 = vadd.f32 %v1063_v48, %v1019_v18  ;;  %v5509_v54 = vld [vmem:[%s5646_s26 + $0x1b8] sm:$0x3] }
 0x139   : > { %9912 = vst [vmem:[#allocation225_spill] sm:$0xff] %v7334_v61  ;;  %9913 = vst [vmem:[#allocation226_spill] sm:$0xff] %v7337_v3  ;;  %v7353_v30 = vadd.f32 %v1055_v2, %v1011_v31  ;;  %v663_v3 = vsel %vm364_vm0, %v5507_v38, %v6855_v50  ;;  %v792_v59 = vsel %vm364_vm0, %v5508_v17, %v6919_v36  ;;  %v743_v2 = vpop.permute.xlu0 %742  ;;  %v1152_v31 = vld [vmem:[#allocation2 + $0x169] sm:$0x1]  ;;  %v5510_v18 = vld [vmem:[%s5646_s26 + $0x220] sm:$0xff] }
 0x13a   : > { %9914 = vst [vmem:[#allocation227_spill] sm:$0xff] %v7365_v60  ;;  %684 = vst.msk [vmem:[#allocation2 + $0x1a8] sm:$0x3] %vm387_vm1, %v663_v3  ;;  %v665_v50 = vsel %vm364_vm0, %v5509_v54, %v6936_v45  ;;  %v1804_v38 = vld [vmem:[#allocation2 + $0x169] sm:$0x1]  ;;  %v800_v3 = vsel %vm364_vm0, %v5510_v18, %v6994_v62  ;;  %v5511_v48 = vld [vmem:[%s5646_s26 + $0x1f0] sm:$0xff] }
 0x13b   : > { %813 = vst.msk [vmem:[#allocation2 + $0x1e0] sm:$0xff] %vm385_vm2, %v792_v59  ;;  %v794_v36 = vsel %vm364_vm0, %v5511_v48, %v7005_v44  ;;  %v5512_v17 = vld [vmem:[%s5646_s26 + $0x1f8] sm:$0x3]  ;;  %v5513_v54 = vld [vmem:[%s5646_s26 + $0x230] sm:$0xff]  ;;  %v2358_v61 = vld [vmem:[#allocation2 + $0x169] sm:$0x1] }
 0x13c   : > { %686 = vst.msk [vmem:[#allocation2 + $0x1b8] sm:$0x3] %vm387_vm1, %v665_v50  ;;  %v795_v45 = vsel %vm364_vm0, %v5512_v17, %v7066_v52  ;;  %v802_v59 = vsel %vm364_vm0, %v5513_v54, %v7085_v5  ;;  %v2236_v50 = vld [vmem:[#allocation2 + $0x168] sm:$0x1]  ;;  %v7388_v60 = vld [vmem:[#allocation2 + $0x1a0] sm:$0xff]  ;;  %v5514_v62 = vld [vmem:[%s5646_s26 + $0x210] sm:$0xff] }
 0x13d   : > { %821 = vst.msk [vmem:[#allocation2 + $0x220] sm:$0xff] %vm385_vm2, %v800_v3  ;;  %815 = vst.msk [vmem:[#allocation2 + $0x1f0] sm:$0xff] %vm385_vm2, %v794_v36  ;;  %v798_v44 = vsel %vm364_vm0, %v5514_v62, %v7140_v25  ;;  %v5515_v52 = vld [vmem:[%s5646_s26 + $0x200] sm:$0xff]  ;;  %v5516_v18 = vld [vmem:[%s5646_s26 + $0x238] sm:$0x3] }
 0x13e   : > { %816 = vst.msk [vmem:[#allocation2 + $0x1f8] sm:$0x3] %vm387_vm1, %v795_v45  ;;  %v796_v5 = vsel %vm364_vm0, %v5515_v52, %v7159_v9  ;;  %v803_v3 = vsel %vm364_vm0, %v5516_v18, %v7220_v34  ;;  %v5517_v48 = vld [vmem:[%s5646_s26 + $0x228] sm:$0x3]  ;;  %v1030_v45 = vld [vmem:[#allocation2 + $0x178] sm:$0x1]  ;;  %v7420_v52 = vadd.f32 %v1054_v7, %v1010_v40  ;;  %v7427_v18 = vmul.f32 %v6799_v33, %v7341_v26 }
 0x13f   : > { %823 = vst.msk [vmem:[#allocation2 + $0x230] sm:$0xff] %vm385_vm2, %v802_v59  ;;  %v801_v36 = vsel %vm364_vm0, %v5517_v48, %v7234_v63  ;;  %v2601_v17 = vld [vmem:[#allocation2 + $0x168] sm:$0x1]  ;;  %819 = vst.msk [vmem:[#allocation2 + $0x210] sm:$0xff] %vm385_vm2, %v798_v44  ;;  %v5518_v25 = vld [vmem:[%s5646_s26 + $0x250] sm:$0xff]  ;;  %v7437_v40 = vmul.f32 %v6709_v8, %v2236_v50  ;;  %v7441_v7 = vmul.f32 %v6732_v1, %v7341_v26 }
 0x140   : > { %817 = vst.msk [vmem:[#allocation2 + $0x200] sm:$0xff] %vm385_vm2, %v796_v5  ;;  %v806_v9 = vsel %vm364_vm0, %v5518_v25, %v7291_v12  ;;  %v5519_v54 = vld [vmem:[%s5646_s26 + $0x240] sm:$0xff]  ;;  %v5520_v59 = vld [vmem:[%s5646_s26 + $0x218] sm:$0x3]  ;;  %v5521_v62 = vld [vmem:[%s5646_s26 + $0x208] sm:$0x3]  ;;  %v7423_v5 = vmul.f32 %v6791_v16, %v1152_v31  ;;  %v7430_v12 = vmul.f32 %v6799_v33, %v1804_v38  ;;  %v1061_v31 = vmul.f32 %v6783_v10, %v7388_v60  ;;  %v763_v38 = vpop.permute.xlu1 %762 }
 0x141   : > { %824 = vst.msk [vmem:[#allocation2 + $0x238] sm:$0x3] %vm387_vm1, %v803_v3  ;;  %822 = vst.msk [vmem:[#allocation2 + $0x228] sm:$0x3] %vm387_vm1, %v801_v36  ;;  %v804_v34 = vsel %vm364_vm0, %v5519_v54, %v7304_v20  ;;  %v799_v63 = vsel %vm364_vm0, %v5520_v59, %v747_v35  ;;  %v797_v44 = vsel %vm364_vm0, %v5521_v62, %v743_v2  ;;  %v2724_v3 = vld [vmem:[#allocation2 + $0x169] sm:$0x1] }
 0x142   : > { %9915 = vst [vmem:[#allocation228_spill] sm:$0xff] %v7420_v52  ;;  %9916 = vst [vmem:[#allocation229_spill] sm:$0xff] %v7423_v5  ;;  %v2993_v20 = vld [vmem:[#allocation2 + $0x169] sm:$0x1]  ;;  %v7444_v35 = vmul.f32 %v6732_v1, %v2358_v61  ;;  %v7449_v48 = vmul.f32 %v7083_v49, %v2601_v17  ;;  %v7453_v36 = vmul.f32 %v7157_v27, %v7341_v26  ;;  %v1153_v25 = vld [vmem:[#allocation2 + $0x171] sm:$0xff] }
 0x143   : > { %9917 = vst [vmem:[#allocation230_spill] sm:$0xff] %v7427_v18  ;;  %9918 = vst [vmem:[#allocation231_spill] sm:$0xff] %v7430_v12  ;;  %v3357_v2 = vld [vmem:[#allocation2 + $0x169] sm:$0x1]  ;;  %v1056_v50 = vmul.f32 %v6783_v10, %v1030_v45  ;;  %v5522_v54 = vld [vmem:[%s5646_s26 + $0x258] sm:$0x3]  ;;  %v7463_v59 = vmul.f32 %v6772_v58, %v7341_v26  ;;  %v7466_v17 = vmul.f32 %v6772_v58, %v2993_v20 }
 0x144   : > { %827 = vst.msk [vmem:[#allocation2 + $0x250] sm:$0xff] %vm385_vm2, %v806_v9  ;;  %825 = vst.msk [vmem:[#allocation2 + $0x240] sm:$0xff] %vm385_vm2, %v804_v34  ;;  %v1154_v9 = vld [vmem:[#allocation2 + $0x179] sm:$0x1]  ;;  %v807_v61 = vsel %vm364_vm0, %v5522_v54, %v763_v38  ;;  %v7459_v34 = vmul.f32 %v7157_v27, %v2724_v3  ;;  %v2238_v45 = vld [vmem:[#allocation2 + $0x178] sm:$0x1]  ;;  %v7476_v3 = vmul.f32 %v7177_v37, %v3357_v2 }
 0x145   : > { %820 = vst.msk [vmem:[#allocation2 + $0x218] sm:$0x3] %vm387_vm1, %v799_v63  ;;  %818 = vst.msk [vmem:[#allocation2 + $0x208] sm:$0x3] %vm387_vm1, %v797_v44  ;;  %v1017_v63 = vadd.f32 %v6684_v19, %v7045_v21  ;;  %v1806_v62 = vld [vmem:[#allocation2 + $0x179] sm:$0x1]  ;;  %v7473_v44 = vmul.f32 %v7177_v37, %v7341_v26  ;;  %v7480_v38 = vmul.f32 %v6709_v8, %v7388_v60 }
 0x146   : > { %9919 = vst [vmem:[#allocation232_spill] sm:$0xff] %v7437_v40  ;;  %9920 = vst [vmem:[#allocation233_spill] sm:$0xff] %v7444_v35  ;;  %v1012_v20 = vadd.f32 %v6598_v23, %v6939_v14  ;;  %v2360_v54 = vld [vmem:[#allocation2 + $0x179] sm:$0x1]  ;;  %v2603_v19 = vld [vmem:[#allocation2 + $0x178] sm:$0x1]  ;;  %v7491_v26 = vmul.f32 %v6791_v16, %v1153_v25  ;;  %v7494_v2 = vmul.f32 %v6791_v16, %v1154_v9 }
 0x147   : > { %9921 = vst [vmem:[#allocation234_spill] sm:$0xff] %v7449_v48  ;;  %9922 = vst [vmem:[#allocation235_spill] sm:$0xff] %v7459_v34  ;;  %v7484_v21 = vadd.f32 %v1061_v31, %v1017_v63  ;;  %v7499_v35 = vmul.f32 %v6799_v33, %v1153_v25  ;;  %v7502_v23 = vmul.f32 %v6799_v33, %v1806_v62  ;;  %v3359_v31 = vld [vmem:[#allocation2 + $0x179] sm:$0x1]  ;;  %v1085_v63 = vld [vmem:[#allocation2 + $0x1e0] sm:$0xff] }
 0x148   : > { %9923 = vst [vmem:[#allocation236_spill] sm:$0xff] %v7466_v17  ;;  %828 = vst.msk [vmem:[#allocation2 + $0x258] sm:$0x3] %vm387_vm1, %v807_v61  ;;  %v7488_v61 = vmul.f32 %v7083_v49, %v7388_v60  ;;  %v7496_v34 = vadd.f32 %v1056_v50, %v1012_v20  ;;  %v7505_v14 = vmul.f32 %v6709_v8, %v2238_v45  ;;  %v2995_v60 = vld [vmem:[#allocation2 + $0x179] sm:$0x1]  ;;  %v1860_v12 = vld [vmem:[#allocation2 + $0x1e1] sm:$0xff] }
 0x149   : > { %9924 = vst [vmem:[#allocation237_spill] sm:$0xff] %v7473_v44  ;;  %9925 = vst [vmem:[#allocation238_spill] sm:$0xff] %v7476_v3  ;;  %v2726_v3 = vld [vmem:[#allocation2 + $0x179] sm:$0x1]  ;;  %v7508_v5 = vmul.f32 %v6732_v1, %v1153_v25  ;;  %v7511_v9 = vmul.f32 %v6732_v1, %v2360_v54  ;;  %v7514_v50 = vmul.f32 %v7083_v49, %v2603_v19  ;;  %v1036_v45 = vld [vmem:[#allocation2 + $0x1a8] sm:$0x1] }
 0x14a   : > { %9926 = vst [vmem:[#allocation239_spill] sm:$0xff] %v7494_v2  ;;  %9927 = vst [vmem:[#allocation240_spill] sm:$0xff] %v7496_v34  ;;  %v7517_v20 = vmul.f32 %v7157_v27, %v1153_v25  ;;  %v7520_v62 = vmul.f32 %v7157_v27, %v2726_v3  ;;  %v1111_v17 = vmul.f32 %v6799_v33, %v1085_v63  ;;  %v1159_v48 = vld [vmem:[#allocation2 + $0x1a1] sm:$0xff]  ;;  %v1160_v2 = vld [vmem:[#allocation2 + $0x1a9] sm:$0x1] }
 0x14b   : > { %9928 = vst [vmem:[#allocation241_spill] sm:$0xff] %v7499_v35  ;;  %9929 = vst [vmem:[#allocation242_spill] sm:$0xff] %v7502_v23  ;;  %v1763_v40 = vmul.f32 %v6783_v10, %v1085_v63  ;;  %v2317_v52 = vmul.f32 %v6772_v58, %v1085_v63  ;;  %v7526_v54 = vmul.f32 %v6772_v58, %v1153_v25  ;;  %v9937_v18 = vld [vmem:[#allocation44_spill] sm:$0xff] }
 0x14c   : > { %9930 = vst [vmem:[#allocation243_spill] sm:$0xff] %v7505_v14  ;;  %9931 = vst [vmem:[#allocation244_spill] sm:$0xff] %v7511_v9  ;;  %v7529_v19 = vmul.f32 %v6772_v58, %v2995_v60  ;;  %v7535_v3 = vmul.f32 %v7177_v37, %v3359_v31  ;;  %v1129_v44 = vadd.f32 %v1111_v17, %v7132_v47  ;;  %v2366_v47 = vld [vmem:[#allocation2 + $0x1a9] sm:$0x1]  ;;  %v2609_v17 = vld [vmem:[#allocation2 + $0x1a8] sm:$0x1] }
 0x14d   : > { %9932 = vst [vmem:[#allocation245_spill] sm:$0xff] %v7514_v50  ;;  %9933 = vst [vmem:[#allocation246_spill] sm:$0xff] %v7520_v62  ;;  %v7532_v50 = vmul.f32 %v7177_v37, %v1153_v25  ;;  %v7539_v62 = vmul.f32 %v6709_v8, %v7316_v55  ;;  %v1781_v34 = vadd.f32 %v1763_v40, %v9937_v18 }
 0x14e   : > { %9934 = vst [vmem:[#allocation247_spill] sm:$0xff] %v7529_v19  ;;  %9936 = vst [vmem:[#allocation249_spill] sm:$0xff] %v7535_v3  ;;  %v2335_v9 = vadd.f32 %v2317_v52, %v7138_v43  ;;  %v7546_v60 = vmul.f32 %v7083_v49, %v7316_v55  ;;  %v1018_v25 = vadd.f32 %v6655_v39, %v7008_v22  ;;  %v1812_v3 = vld [vmem:[#allocation2 + $0x1a9] sm:$0x1]  ;;  %v9939_v19 = vld [vmem:[#allocation43_spill] sm:$0xff] }
 0x14f   : > { %9935 = vst [vmem:[#allocation248_spill] sm:$0xff] %v7532_v50  ;;  %v1062_v31 = vmul.f32 %v6783_v10, %v1036_v45  ;;  %v2244_v50 = vld [vmem:[#allocation2 + $0x1a8] sm:$0x1]  ;;  %vm836_vm6 = vcmp.ne.s32.totalorder %v9939_v19, 0  ;;  %v1885_v14 = vmul.f32 %v6791_v16, %v1860_v12  ;;  %v1191_v18 = vadd.f32 %v7124_v6, %v1129_v44 }
 0x150   : > { %9938 = vst [vmem:[#allocation44_spill] sm:$0xff] %v7546_v60  ;;  %v1842_v43 = vadd.f32 %v7135_v15, %v1781_v34  ;;  %v2396_v52 = vadd.f32 %v7143_v13, %v2335_v9  ;;  %v2952_v55 = vmul.f32 %v6709_v8, %v1085_v63  ;;  %v7558_v40 = vmul.f32 %v6791_v16, %v1159_v48  ;;  %v9942_v45 = vld [vmem:[#allocation21_spill] sm:$0xff]  ;;  %v9945_v34 = vld [vmem:[#allocation7_spill] sm:$0xff]  ;;  %v7577_v63 = vld [vmem:[#allocation2 + $0x220] sm:$0xff] }
 0x151   : > { %v7561_v39 = vmul.f32 %v6791_v16, %v1160_v2  ;;  %v7564_v22 = vmul.f32 %v6799_v33, %v1159_v48  ;;  %v7568_v60 = vadd.f32 %v9942_v45, %v7069_v0  ;;  %v7571_v6 = vmul.f32 %v6799_v33, %v1812_v3  ;;  %v2732_v13 = vld [vmem:[#allocation2 + $0x1a9] sm:$0x1]  ;;  %v9948_v3 = vld [vmem:[#allocation10_spill] sm:$0xff] }
 0x152   : > { %v7574_v15 = vmul.f32 %v6709_v8, %v2244_v50  ;;  %v1254_v44 = vadd.f32 %v9945_v34, %v1191_v18  ;;  %v1903_v2 = vadd.f32 %v1885_v14, %v1842_v43  ;;  %v7579_v9 = vadd.f32 %v1062_v31, %v1018_v25  ;;  %v9951_v18 = vld [vmem:[#allocation49_spill] sm:$0xff]  ;;  %v9954_v34 = vld [vmem:[#allocation8_spill] sm:$0xff] }
 0x153   : > { %9940 = vst [vmem:[#allocation250_spill] sm:$0xff] %v7561_v39  ;;  %9941 = vst [vmem:[#allocation251_spill] sm:$0xff] %v7564_v22  ;;  %v7582_v39 = vmul.f32 %v6732_v1, %v1159_v48  ;;  %v7585_v0 = vmul.f32 %v6732_v1, %v2366_v47  ;;  %v2457_v45 = vadd.f32 %v9948_v3, %v2396_v52 }
 0x154   : > { %9943 = vst [vmem:[#allocation21_spill] sm:$0xff] %v7571_v6  ;;  %9944 = vst [vmem:[#allocation252_spill] sm:$0xff] %v7574_v15  ;;  %v7589_v50 = vmul.f32 %v7083_v49, %v2609_v17  ;;  %v3001_v6 = vld [vmem:[#allocation2 + $0x1a9] sm:$0x1]  ;;  %v9950_v15 = vld [vmem:[#allocation48_spill] sm:$0xff]  ;;  %v1964_v14 = vadd.f32 %v9951_v18, %v1903_v2  ;;  %v3031_v43 = vadd.f32 %v7146_v51, %v2952_v55 }
 0x155   : > { %9946 = vst [vmem:[#allocation7_spill] sm:$0xff] %v7579_v9  ;;  %9947 = vst [vmem:[#allocation253_spill] sm:$0xff] %v7585_v0  ;;  %v1317_v22 = vadd.f32 %v9950_v15, %v1254_v44  ;;  %v7595_v25 = vmul.f32 %v7157_v27, %v1159_v48  ;;  %v7598_v31 = vmul.f32 %v7157_v27, %v2732_v13  ;;  %v3365_v17 = vld [vmem:[#allocation2 + $0x1a9] sm:$0x1]  ;;  %v7610_v55 = vld [vmem:[#allocation2 + $0x1f0] sm:$0xff] }
 0x156   : > { %9949 = vst [vmem:[#allocation10_spill] sm:$0xff] %v7589_v50  ;;  %v7601_v47 = vmul.f32 %v6772_v58, %v1159_v48  ;;  %v1119_v52 = vmul.f32 %v6799_v33, %v7577_v63  ;;  %v9955_v15 = vld [vmem:[#allocation9_spill] sm:$0xff]  ;;  %v3074_v2 = vmul.f32 %v6732_v1, %v1860_v12  ;;  %v2960_v51 = vmul.f32 %v6709_v8, %v7577_v63  ;;  %v9959_v12 = vld [vmem:[#allocation50_spill] sm:$0xff] }
 0x157   : > { %9952 = vst [vmem:[#allocation48_spill] sm:$0xff] %v7598_v31  ;;  %v1379_v3 = vadd.f32 %v9954_v34, %v1317_v22  ;;  %v2025_v44 = vadd.f32 %v9955_v15, %v1964_v14  ;;  %v7613_v13 = vmul.f32 %v6772_v58, %v3001_v6  ;;  %v7616_v18 = vmul.f32 %v7177_v37, %v1159_v48  ;;  %v9958_v31 = vld [vmem:[#allocation51_spill] sm:$0xff]  ;;  %v7623_v22 = vld [vmem:[%s9659_s3] ss:$0 sm:$0xff]  ;;  %v9965_v50 = vld [vmem:[#allocation182_spill] sm:$0xff] }
 0x158   : > { %9953 = vst [vmem:[#allocation49_spill] sm:$0xff] %v7601_v47  ;;  %v1137_v9 = vadd.f32 %v1119_v52, %v7172_v11  ;;  %v2518_v0 = vadd.f32 %v9958_v31, %v2457_v45  ;;  %v3092_v34 = vadd.f32 %v3074_v2, %v3031_v43  ;;  %v1038_v15 = vld [vmem:[#allocation2 + $0x1b8] sm:$0x1]  ;;  %v7628_v6 = vadd.f32 %v7265_v4, %v2960_v51  ;;  %v9966_v47 = vld [vmem:[#allocation25_spill] sm:$0xff] }
 0x159   : > { %9956 = vst [vmem:[#allocation8_spill] sm:$0xff] %v7613_v13  ;;  %9957 = vst [vmem:[#allocation9_spill] sm:$0xff] %v7616_v18  ;;  %v1403_v1 = vadd.f32 %v7623_v22, %v1379_v3  ;;  %v2086_v14 = vadd.f32 %v9959_v12, %v2025_v44  ;;  %v7631_v48 = vmul.f32 %v7177_v37, %v3365_v17  ;;  %v9961_v45 = vld [vmem:[#allocation11_spill] sm:$0xff]  ;;  %v9963_v12 = vld [vmem:[#allocation180_spill] sm:$0xff] }
 0x15a   : > { %v1199_v11 = vadd.f32 %v7226_v56, %v1137_v9  ;;  %v2579_v31 = vadd.f32 %v9961_v45, %v2518_v0  ;;  %v1113_v52 = vmul.f32 %v6799_v33, %v7610_v55  ;;  %v7640_v43 = vld [vmem:[#allocation2 + $0x1b1] sm:$0xff]  ;;  %v2325_v4 = vmul.f32 %v6772_v58, %v7577_v63  ;;  %v1162_v9 = vld [vmem:[#allocation2 + $0x1b9] sm:$0x1]  ;;  %v9962_v0 = vld [vmem:[#allocation37_spill] sm:$0xff] }
 0x15b   : > { %9960 = vst [vmem:[#allocation51_spill] sm:$0xff] %v7631_v48  ;;  %v1425_v3 = vsel %vm836_vm6, %v1403_v1, 0.0  ;;  %v2104_v44 = vadd.f32 %v7623_v22, %v2086_v14  ;;  %v1765_v17 = vmul.f32 %v6783_v10, %v7610_v55  ;;  %v1064_v56 = vmul.f32 %v6783_v10, %v1038_v15  ;;  %v1741_v48 = vld [vmem:[#allocation2 + $0x1f8] sm:$0x1]  ;;  %v9964_v13 = vld [vmem:[#allocation52_spill] sm:$0xff] }
 0x15c   : > { %v5295_v2 = vpack.c.bf16 %v1425_v3, %v1425_v3  ;;  %v1262_v51 = vadd.f32 %v9962_v0, %v1199_v11  ;;  %v2641_v45 = vadd.f32 %v9963_v12, %v2579_v31  ;;  %v3153_v14 = vadd.f32 %v9964_v13, %v3092_v34  ;;  %v9968_v15 = vld [vmem:[#allocation76_spill] sm:$0xff]  ;;  %v1814_v0 = vld [vmem:[#allocation2 + $0x1b9] sm:$0x1] }
 0x15d   : > { %v5313_v1 = vpack.c.bf16 %v2104_v44, %v2104_v44  ;;  %v1131_v18 = vadd.f32 %v1113_v52, %v9965_v50  ;;  %v1783_v23 = vadd.f32 %v1765_v17, %v9966_v47  ;;  %v7655_v3 = vmul.f32 %v6791_v16, %v7640_v43  ;;  %v9970_v47 = vld [vmem:[#allocation4_spill] sm:$0xff] }
 0x15e   : > { %1516 = vst.msk [vmem:[#allocation3] sm:$0xf] %vm1515_vm7, %v5295_v2  ;;  %v1325_v35 = vadd.f32 %v9968_v15, %v1262_v51  ;;  %v2685_v11 = vmul.f32 %v7177_v37, %v7610_v55  ;;  %v2954_v31 = vmul.f32 %v6709_v8, %v7610_v55  ;;  %v5592_v13 = vmov 0   ;;  %v9971_v52 = vld [vmem:[#allocation184_spill] sm:$0xff]  ;;  %v7670_v2 = vld [vmem:[#allocation2 + $0x1f1] sm:$0xff] }
 0x15f   : > { %9967 = vst [vmem:[#allocation50_spill] sm:$0xff] %v7655_v3  ;;  %2195 = vst.msk [vmem:[#allocation3 + $0x48] sm:$0xf] %vm1515_vm7, %v5313_v1  ;;  %v7665_v50 = vmul.f32 %v6791_v16, %v1162_v9  ;;  %v2343_v34 = vadd.f32 %v2325_v4, %v9970_v47  ;;  %v1193_v44 = vadd.f32 %v9971_v52, %v1131_v18  ;;  %v9973_v51 = vld [vmem:[#allocation38_spill] sm:$0xff]  ;;  %v9976_v18 = vld [vmem:[#allocation12_spill] sm:$0xff] }
 0x160   : > { %3603 = vst.msk [vmem:[#allocation3] sm:$0xf] %vm1515_vm7, %v5592_v13  ;;  %v1766_v17 = vmul.f32 %v6783_v10, %v1741_v48  ;;  %3607 = vst.msk [vmem:[#allocation3 + $0x48] sm:$0xf] %vm1515_vm7, %v5592_v13  ;;  %v7674_v8 = vadd.f32 %v1064_v56, %v7568_v60  ;;  %v1387_v12 = vadd.f32 %v9973_v51, %v1325_v35  ;;  %v9974_v15 = vld [vmem:[#allocation194_spill] sm:$0xff]  ;;  %v9977_v10 = vld [vmem:[#allocation89_spill] sm:$0xff] }
 0x161   : > { %9969 = vst [vmem:[#allocation11_spill] sm:$0xff] %v7665_v50  ;;  %v2703_v1 = vadd.f32 %v2685_v11, %v2641_v45  ;;  %v3033_v9 = vadd.f32 %v9974_v15, %v2954_v31  ;;  %v7680_v4 = vmul.f32 %v6799_v33, %v7640_v43  ;;  %v3214_v47 = vadd.f32 %v9976_v18, %v3153_v14  ;;  %v9978_v52 = vld [vmem:[#allocation46_spill] sm:$0xff]  ;;  %v1863_v13 = vld [vmem:[#allocation2 + $0x1f9] sm:$0x1]  ;;  %v9979_v56 = vld [vmem:[#allocation192_spill] sm:$0xff] }
 0x162   : > { %9972 = vst [vmem:[#allocation37_spill] sm:$0xff] %v7674_v8  ;;  %v1256_v48 = vadd.f32 %v9977_v10, %v1193_v44  ;;  %v1784_v50 = vadd.f32 %v1766_v17, %v9978_v52  ;;  %v1411_v60 = vadd.f32 %v7623_v22, %v1387_v12  ;;  %v9980_v8 = vld [vmem:[#allocation186_spill] sm:$0xff]  ;;  %v1887_v45 = vmul.f32 %v6791_v16, %v7670_v2  ;;  %v9982_v14 = vld [vmem:[#allocation132_spill] sm:$0xff]  ;;  %v2661_v17 = vld [vmem:[#allocation2 + $0x1f8] sm:$0x1] }
 0x163   : > { %9975 = vst [vmem:[#allocation180_spill] sm:$0xff] %v7680_v4  ;;  %v2764_v3 = vadd.f32 %v9979_v56, %v2703_v1  ;;  %v1844_v35 = vadd.f32 %v9980_v8, %v1783_v23  ;;  %v7691_v11 = vmul.f32 %v6799_v33, %v1814_v0  ;;  %v2404_v31 = vadd.f32 %v7246_v28, %v2343_v34  ;;  %v9983_v44 = vld [vmem:[#allocation188_spill] sm:$0xff]  ;;  %v1088_v18 = vld [vmem:[#allocation2 + $0x1f8] sm:$0x1]  ;;  %v9984_v0 = vld [vmem:[#allocation54_spill] sm:$0xff] }
 0x164   : > { %v1319_v51 = vadd.f32 %v9982_v14, %v1256_v48  ;;  %v1845_v15 = vadd.f32 %v9983_v44, %v1784_v50  ;;  %v1433_v12 = vsel %vm836_vm6, %v1411_v60, 0.0  ;;  %v1888_v23 = vmul.f32 %v6791_v16, %v1863_v13  ;;  %v2246_v10 = vld [vmem:[#allocation2 + $0x1b8] sm:$0x1]  ;;  %v9986_v60 = vld [vmem:[#allocation133_spill] sm:$0xff]  ;;  %v2368_v44 = vld [vmem:[#allocation2 + $0x1b9] sm:$0x1] }
 0x165   : > { %9981 = vst [vmem:[#allocation52_spill] sm:$0xff] %v7691_v11  ;;  %v2782_v1 = vadd.f32 %v7623_v22, %v2764_v3  ;;  %v1905_v8 = vadd.f32 %v1887_v45, %v1844_v35  ;;  %v5303_v52 = vpack.c.bf16 %v1433_v12, %v1433_v12  ;;  %v3275_v56 = vadd.f32 %v9984_v0, %v3214_v47  ;;  %v9985_v11 = vld [vmem:[#allocation90_spill] sm:$0xff]  ;;  %v2734_v0 = vld [vmem:[#allocation2 + $0x1b9] sm:$0x1] }
 0x166   : > { %v1381_v28 = vadd.f32 %v9985_v11, %v1319_v51  ;;  %v2319_v34 = vmul.f32 %v6772_v58, %v7610_v55  ;;  %v1906_v48 = vadd.f32 %v1888_v23, %v1845_v15  ;;  %v2686_v3 = vmul.f32 %v7177_v37, %v2661_v17  ;;  %v7716_v58 = vld [vmem:[%s9657_s1] ss:$0 sm:$0xff]  ;;  %v2611_v11 = vld [vmem:[#allocation2 + $0x1b8] sm:$0x1]  ;;  %v9988_v51 = vld [vmem:[#allocation126_spill] sm:$0xff] }
 0x167   : > { %v2800_v50 = vsel %vm836_vm6, %v2782_v1, 0.0  ;;  %v1966_v14 = vadd.f32 %v9986_v60, %v1905_v8  ;;  %1535 = vst.msk [vmem:[#allocation3 + $0x20] sm:$0xf] %vm1515_vm7, %v5303_v52  ;;  %v3318_v47 = vmul.f32 %v7083_v49, %v7610_v55  ;;  %v1114_v35 = vmul.f32 %v6799_v33, %v1088_v18  ;;  %v9989_v17 = vld [vmem:[#allocation91_spill] sm:$0xff]  ;;  %v9990_v1 = vld [vmem:[#allocation196_spill] sm:$0xff]  ;;  %v9994_v60 = vld [vmem:[#allocation193_spill] sm:$0xff] }
 0x168   : > { %v1405_v16 = vadd.f32 %v7623_v22, %v1381_v28  ;;  %v5331_v13 = vpack.c.bf16 %v2800_v50, %v2800_v50  ;;  %v7719_v45 = vmul.f32 %v7716_v58, %v2246_v10  ;;  %v1967_v15 = vadd.f32 %v9988_v51, %v1906_v48  ;;  %v7729_v33 = vld [vmem:[%s9657_s1 + $0x2] ss:$0 sm:$0xff]  ;;  %v9993_v50 = vld [vmem:[#allocation85_spill] sm:$0xff] }
 0x169   : > { %v7723_v12 = vadd.f32 %v9989_v17, %v1966_v14  ;;  %v2704_v23 = vadd.f32 %v2686_v3, %v9990_v1  ;;  %v7733_v55 = vmul.f32 %v7729_v33, %v7640_v43  ;;  %v3336_v8 = vadd.f32 %v3318_v47, %v3275_v56  ;;  %v3294_v3 = vld [vmem:[#allocation2 + $0x1f8] sm:$0x1] }
 0x16a   : > { %9987 = vst [vmem:[#allocation182_spill] sm:$0xff] %v7719_v45  ;;  %v1427_v18 = vsel %vm836_vm6, %v1405_v16, 0.0  ;;  %2891 = vst.msk [vmem:[#allocation3 + $0x90] sm:$0xf] %vm1515_vm7, %v5331_v13  ;;  %v3076_v10 = vmul.f32 %v7729_v33, %v7670_v2  ;;  %v7741_v52 = vmul.f32 %v7729_v33, %v2368_v44  ;;  %v2028_v48 = vadd.f32 %v9993_v50, %v1967_v15  ;;  %v9996_v16 = vld [vmem:[#allocation40_spill] sm:$0xff]  ;;  %v9997_v13 = vld [vmem:[#allocation179_spill] sm:$0xff] }
 0x16b   : > { %9991 = vst [vmem:[#allocation25_spill] sm:$0xff] %v7733_v55  ;;  %v5297_v28 = vpack.c.bf16 %v1427_v18, %v1427_v18  ;;  %v2765_v14 = vadd.f32 %v9994_v60, %v2704_v23  ;;  %v7746_v51 = vmul.f32 %v7083_v49, %v2611_v11  ;;  %v2465_v17 = vadd.f32 %v9996_v16, %v2404_v31  ;;  %v9998_v47 = vld [vmem:[#allocation187_spill] sm:$0xff]  ;;  %v7764_v31 = vld [vmem:[%s9657_s1 + $0x1] ss:$0 sm:$0xff]  ;;  %v10002_v60 = vld [vmem:[#allocation197_spill] sm:$0xff] }
 0x16c   : > { %9992 = vst [vmem:[#allocation76_spill] sm:$0xff] %v7741_v52  ;;  %v2337_v56 = vadd.f32 %v2319_v34, %v9997_v13  ;;  %v1132_v1 = vadd.f32 %v1114_v35, %v9998_v47  ;;  %v7753_v44 = vmul.f32 %v7157_v27, %v7640_v43  ;;  %v10000_v18 = vld [vmem:[#allocation127_spill] sm:$0xff]  ;;  %v3094_v50 = vadd.f32 %v3076_v10, %v3033_v9  ;;  %v2892_v35 = vld [vmem:[#allocation3 + $0x94] sm:$0x1] }
 0x16d   : > { %9995 = vst [vmem:[#allocation4_spill] sm:$0xff] %v7746_v51  ;;  %1523 = vst.msk [vmem:[#allocation3 + $0x8] sm:$0xf] %vm1515_vm7, %v5297_v28  ;;  %v2089_v15 = vadd.f32 %v10000_v18, %v2028_v48  ;;  %v2783_v23 = vadd.f32 %v7623_v22, %v2765_v14  ;;  %v7759_v11 = vmul.f32 %v7157_v27, %v2734_v0  ;;  %v7772_v16 = vld [vmem:[#allocation2 + $0x230] sm:$0xff]  ;;  %v10003_v0 = vld [vmem:[#allocation136_spill] sm:$0xff] }
 0x16e   : > { %9999 = vst [vmem:[#allocation184_spill] sm:$0xff] %v7753_v44  ;;  %v7768_v34 = vmul.f32 %v7764_v31, %v7640_v43  ;;  %v3319_v28 = vmul.f32 %v7083_v49, %v3294_v3  ;;  %v3397_v48 = vadd.f32 %v10002_v60, %v3336_v8  ;;  %v7776_v14 = vadd.f32 %v10003_v0, %v3094_v50  ;;  %v3416_v13 = vld [vmem:[#allocation2 + $0x1f9] sm:$0x1]  ;;  %v10004_v52 = vld [vmem:[#allocation190_spill] sm:$0xff]  ;;  %v10005_v51 = vld [vmem:[#allocation185_spill] sm:$0xff] }
 0x16f   : > { %10001 = vst [vmem:[#allocation38_spill] sm:$0xff] %v7759_v11  ;;  %v2107_v9 = vadd.f32 %v7623_v22, %v2089_v15  ;;  %v5332_v10 = vpack.c.bf16 %v2783_v23, %v2783_v23  ;;  %v3440_v47 = vmul.f32 %v7157_v27, %v7670_v2  ;;  %v3003_v18 = vld [vmem:[#allocation2 + $0x1b9] sm:$0x1]  ;;  %v2398_v11 = vadd.f32 %v10004_v52, %v2337_v56  ;;  %v2200_v45 = vld [vmem:[#allocation3 + $0x54] sm:$0x1]  ;;  %v10007_v60 = vld [vmem:[#allocation80_spill] sm:$0xff] }
 0x170   : > { %v1194_v3 = vadd.f32 %v10005_v51, %v1132_v1  ;;  %v10006_v55 = vld [vmem:[#allocation55_spill] sm:$0xff]  ;;  %v2526_v4 = vadd.f32 %v10007_v60, %v2465_v17  ;;  %v7789_v0 = vld [vmem:[%s9657_s1 + $0x4] ss:$0 sm:$0xff]  ;;  %v10009_v52 = vld [vmem:[#allocation198_spill] sm:$0xff] }
 0x171   : > { %v3337_v8 = vadd.f32 %v3319_v28, %v10006_v55  ;;  %v5316_v44 = vpack.c.bf16 %v2107_v9, %v2107_v9  ;;  %v2893_v23 = vsel %vm6149_vm5, %v5332_v10, %v2892_v35  ;;  %v3458_v50 = vadd.f32 %v3440_v47, %v3397_v48  ;;  %v10010_v56 = vld [vmem:[#allocation41_spill] sm:$0xff]  ;;  %v7799_v1 = vld [vmem:[%s9657_s1 + $0x3] ss:$0 sm:$0xff]  ;;  %v10012_v10 = vld [vmem:[#allocation203_spill] sm:$0xff] }
 0x172   : > { %v1121_v2 = vmul.f32 %v7789_v0, %v7772_v16  ;;  %2894 = vst [vmem:[#allocation3 + $0x94] sm:$0x1] %v2893_v23  ;;  %v3441_v55 = vmul.f32 %v7157_v27, %v3416_v13  ;;  %v2587_v17 = vadd.f32 %v10010_v56, %v2526_v4  ;;  %v1773_v35 = vmul.f32 %v7799_v1, %v7772_v16  ;;  %v7810_v13 = vld [vmem:[#allocation2 + $0x210] sm:$0xff]  ;;  %v10013_v47 = vld [vmem:[#allocation200_spill] sm:$0xff]  ;;  %v10014_v60 = vld [vmem:[#allocation53_spill] sm:$0xff] }
 0x173   : > { %v3398_v51 = vadd.f32 %v10009_v52, %v3337_v8  ;;  %v7804_v28 = vmul.f32 %v7764_v31, %v3003_v18  ;;  %v2201_v48 = vsel %vm6149_vm5, %v5316_v44, %v2200_v45  ;;  %v3476_v9 = vadd.f32 %v7623_v22, %v3458_v50  ;;  %v10015_v52 = vld [vmem:[#allocation92_spill] sm:$0xff] }
 0x174   : > { %v1139_v27 = vadd.f32 %v1121_v2, %v10012_v10  ;;  %2202 = vst [vmem:[#allocation3 + $0x54] sm:$0x1] %v2201_v48  ;;  %v2649_v8 = vadd.f32 %v10013_v47, %v2587_v17  ;;  %v7814_v23 = vadd.f32 %v1773_v35, %v10014_v60  ;;  %v2693_v18 = vmul.f32 %v7177_v37, %v7772_v16  ;;  %v10016_v45 = vld [vmem:[#allocation216_spill] sm:$0xff]  ;;  %v10017_v2 = vld [vmem:[#allocation83_spill] sm:$0xff]  ;;  %v10018_v47 = vld [vmem:[#allocation113_spill] sm:$0xff] }
 0x175   : > { %10011 = vst [vmem:[#allocation194_spill] sm:$0xff] %v7804_v28  ;;  %v3459_v4 = vadd.f32 %v3441_v55, %v3398_v51  ;;  %v2459_v56 = vadd.f32 %v10015_v52, %v2398_v11  ;;  %v5349_v28 = vpack.c.bf16 %v3476_v9, %v3476_v9  ;;  %v2962_v50 = vmul.f32 %v7716_v58, %v7772_v16  ;;  %v2295_v48 = vld [vmem:[#allocation2 + $0x1f8] sm:$0x1]  ;;  %v3568_v35 = vld [vmem:[#allocation3 + $0xdc] sm:$0x1] }
 0x176   : > { %v1201_v44 = vadd.f32 %v10016_v45, %v1139_v27  ;;  %v1257_v10 = vadd.f32 %v10017_v2, %v1194_v3  ;;  %v2711_v55 = vadd.f32 %v2693_v18, %v2649_v8  ;;  %v1117_v17 = vmul.f32 %v7789_v0, %v7810_v13  ;;  %v10019_v52 = vld [vmem:[#allocation159_spill] sm:$0xff] }
 0x177   : > { %v3477_v51 = vadd.f32 %v7623_v22, %v3459_v4  ;;  %3567 = vst.msk [vmem:[#allocation3 + $0xd8] sm:$0xf] %vm1515_vm7, %v5349_v28  ;;  %v7829_v9 = vadd.f32 %v7328_v42, %v2962_v50  ;;  %v1769_v27 = vmul.f32 %v7799_v1, %v7810_v13  ;;  %v2323_v3 = vmul.f32 %v7764_v31, %v7810_v13  ;;  %v10020_v42 = vld [vmem:[#allocation152_spill] sm:$0xff] }
 0x178   : > { %v1264_v11 = vadd.f32 %v10018_v47, %v1201_v44  ;;  %v2691_v4 = vmul.f32 %v7177_v37, %v7577_v63  ;;  %v2772_v60 = vadd.f32 %v7322_v53, %v2711_v55  ;;  %v1135_v18 = vadd.f32 %v1117_v17, %v7353_v30  ;;  %v10021_v30 = vld [vmem:[#allocation125_spill] sm:$0xff] }
 0x179   : > { %v5350_v8 = vpack.c.bf16 %v3477_v51, %v3477_v51  ;;  %v2320_v28 = vmul.f32 %v7764_v31, %v2295_v48  ;;  %v7842_v44 = vadd.f32 %v1769_v27, %v10020_v42  ;;  %v2341_v50 = vadd.f32 %v2323_v3, %v7344_v29  ;;  %v10022_v48 = vld [vmem:[#allocation114_spill] sm:$0xff]  ;;  %v10023_v27 = vld [vmem:[#allocation135_spill] sm:$0xff]  ;;  %v1089_v29 = vld [vmem:[#allocation2 + $0x200] sm:$0xff] }
 0x17a   : > { %v1327_v45 = vadd.f32 %v10019_v52, %v1264_v11  ;;  %v2790_v47 = vadd.f32 %v7623_v22, %v2772_v60  ;;  %v1197_v51 = vadd.f32 %v7491_v26, %v1135_v18  ;;  %v2958_v53 = vmul.f32 %v7716_v58, %v7810_v13  ;;  %v10024_v3 = vld [vmem:[#allocation22_spill] sm:$0xff] }
 0x17b   : > { %v3569_v2 = vsel %vm6149_vm5, %v5350_v8, %v3568_v35  ;;  %v1320_v55 = vadd.f32 %v10021_v30, %v1257_v10  ;;  %v2402_v11 = vadd.f32 %v7508_v5, %v2341_v50  ;;  %v2520_v52 = vadd.f32 %v10023_v27, %v2459_v56  ;;  %v10026_v60 = vld [vmem:[#allocation94_spill] sm:$0xff]  ;;  %v10028_v5 = vld [vmem:[#allocation93_spill] sm:$0xff] }
 0x17c   : > { %3570 = vst [vmem:[#allocation3 + $0xdc] sm:$0x1] %v3569_v2  ;;  %v1389_v17 = vadd.f32 %v10022_v48, %v1327_v45  ;;  %v2808_v35 = vsel %vm836_vm6, %v2790_v47, 0.0  ;;  %v1260_v8 = vadd.f32 %v10024_v3, %v1197_v51  ;;  %v7859_v26 = vadd.f32 %v7526_v54, %v2958_v53  ;;  %v10027_v45 = vld [vmem:[#allocation26_spill] sm:$0xff]  ;;  %v10030_v48 = vld [vmem:[#allocation137_spill] sm:$0xff]  ;;  %v10033_v3 = vld [vmem:[#allocation23_spill] sm:$0xff] }
 0x17d   : > { %v3216_v18 = vadd.f32 %v10026_v60, %v7776_v14  ;;  %v5339_v42 = vpack.c.bf16 %v2808_v35, %v2808_v35  ;;  %v2463_v2 = vadd.f32 %v10027_v45, %v2402_v11  ;;  %v2581_v50 = vadd.f32 %v10028_v5, %v2520_v52  ;;  %v10029_v56 = vld [vmem:[#allocation62_spill] sm:$0xff]  ;;  %v2930_v5 = vld [vmem:[#allocation2 + $0x1f8] sm:$0x1] }
 0x17e   : > { %10025 = vst [vmem:[#allocation12_spill] sm:$0xff] %v7859_v26  ;;  %v1413_v10 = vadd.f32 %v7623_v22, %v1389_v17  ;;  %v1323_v30 = vadd.f32 %v10029_v56, %v1260_v8  ;;  %v1115_v47 = vmul.f32 %v7789_v0, %v1089_v29  ;;  %v1767_v51 = vmul.f32 %v7799_v1, %v1089_v29  ;;  %v10031_v14 = vld [vmem:[#allocation66_spill] sm:$0xff]  ;;  %v10032_v17 = vld [vmem:[#allocation215_spill] sm:$0xff] }
 0x17f   : > { %v3277_v27 = vadd.f32 %v10030_v48, %v3216_v18  ;;  %2907 = vst.msk [vmem:[#allocation3 + $0xb0] sm:$0xf] %vm1515_vm7, %v5339_v42  ;;  %v2524_v53 = vadd.f32 %v10031_v14, %v2463_v2  ;;  %v2643_v35 = vadd.f32 %v10032_v17, %v2581_v50  ;;  %v2321_v11 = vmul.f32 %v7764_v31, %v1089_v29  ;;  %v10034_v18 = vld [vmem:[#allocation47_spill] sm:$0xff]  ;;  %v10037_v50 = vld [vmem:[#allocation189_spill] sm:$0xff] }
 0x180   : > { %v1435_v54 = vsel %vm836_vm6, %v1413_v10, 0.0  ;;  %v1385_v8 = vadd.f32 %v10033_v3, %v1323_v30  ;;  %v1133_v60 = vadd.f32 %v1115_v47, %v7293_v46  ;;  %v7879_v45 = vadd.f32 %v1767_v51, %v10034_v18  ;;  %v10035_v56 = vld [vmem:[#allocation27_spill] sm:$0xff]  ;;  %v10036_v10 = vld [vmem:[#allocation214_spill] sm:$0xff] }
 0x181   : > { %v5305_v52 = vpack.c.bf16 %v1435_v54, %v1435_v54  ;;  %v2585_v48 = vadd.f32 %v10035_v56, %v2524_v53  ;;  %v2339_v26 = vadd.f32 %v2321_v11, %v10036_v10  ;;  %v2687_v42 = vmul.f32 %v7177_v37, %v1089_v29  ;;  %v10038_v51 = vld [vmem:[#allocation183_spill] sm:$0xff] }
 0x182   : > { %v2956_v2 = vmul.f32 %v7716_v58, %v1089_v29  ;;  %v2338_v14 = vadd.f32 %v2320_v28, %v10037_v50  ;;  %v1409_v30 = vadd.f32 %v7623_v22, %v1385_v8  ;;  %v1195_v46 = vadd.f32 %v7363_v32, %v1133_v60  ;;  %v1749_v3 = vld [vmem:[#allocation2 + $0x238] sm:$0x1]  ;;  %v10040_v60 = vld [vmem:[#allocation104_spill] sm:$0xff] }
 0x183   : > { %1539 = vst.msk [vmem:[#allocation3 + $0x28] sm:$0xf] %vm1515_vm7, %v5305_v52  ;;  %v3320_v47 = vmul.f32 %v7083_v49, %v1089_v29  ;;  %v2647_v54 = vadd.f32 %v10038_v51, %v2585_v48  ;;  %v2400_v53 = vadd.f32 %v7441_v7, %v2339_v26  ;;  %v2705_v17 = vadd.f32 %v2687_v42, %v2643_v35  ;;  %v10039_v52 = vld [vmem:[#allocation101_spill] sm:$0xff]  ;;  %v7901_v32 = vld [vmem:[#allocation2 + $0x231] sm:$0xff] }
 0x184   : > { %v7893_v11 = vadd.f32 %v7463_v59, %v2956_v2  ;;  %v2955_v18 = vmul.f32 %v7716_v58, %v2930_v5  ;;  %v1431_v28 = vsel %vm836_vm6, %v1409_v30, 0.0  ;;  %v1258_v8 = vadd.f32 %v10039_v52, %v1195_v46  ;;  %v10041_v59 = vld [vmem:[#allocation84_spill] sm:$0xff]  ;;  %v10042_v48 = vld [vmem:[#allocation145_spill] sm:$0xff]  ;;  %v1096_v5 = vld [vmem:[#allocation2 + $0x238] sm:$0x1] }
 0x185   : > { %v7899_v56 = vadd.f32 %v3320_v47, %v3277_v27  ;;  %v5301_v49 = vpack.c.bf16 %v1431_v28, %v1431_v28  ;;  %v2709_v29 = vadd.f32 %v2691_v4, %v2647_v54  ;;  %v2461_v7 = vadd.f32 %v10040_v60, %v2400_v53  ;;  %v10043_v27 = vld [vmem:[#allocation209_spill] sm:$0xff]  ;;  %v10045_v51 = vld [vmem:[#allocation195_spill] sm:$0xff]  ;;  %v10046_v53 = vld [vmem:[#allocation102_spill] sm:$0xff] }
 0x186   : > { %v2766_v26 = vadd.f32 %v7453_v36, %v2705_v17  ;;  %v1382_v35 = vadd.f32 %v10041_v59, %v1320_v55  ;;  %v1321_v10 = vadd.f32 %v10042_v48, %v1258_v8  ;;  %v1774_v42 = vmul.f32 %v7799_v1, %v1749_v3  ;;  %v10044_v4 = vld [vmem:[#allocation149_spill] sm:$0xff]  ;;  %v1871_v36 = vld [vmem:[#allocation2 + $0x239] sm:$0x1]  ;;  %v7919_v55 = vld [vmem:[%s9657_s1 + $0x5] ss:$0 sm:$0xff] }
 0x187   : > { %v1852_v2 = vadd.f32 %v7296_v57, %v7814_v23  ;;  %1531 = vst.msk [vmem:[#allocation3 + $0x18] sm:$0xf] %vm1515_vm7, %v5301_v49  ;;  %v7912_v50 = vadd.f32 %v10043_v27, %v2709_v29  ;;  %v2522_v30 = vadd.f32 %v10044_v4, %v2461_v7  ;;  %v1895_v47 = vmul.f32 %v7919_v55, %v7901_v32  ;;  %v3052_v23 = vld [vmem:[#allocation2 + $0x1f9] sm:$0x1]  ;;  %v10047_v3 = vld [vmem:[#allocation77_spill] sm:$0xff] }
 0x188   : > { %v2784_v46 = vadd.f32 %v7623_v22, %v2766_v26  ;;  %v3034_v57 = vadd.f32 %v10045_v51, %v2955_v18  ;;  %v2327_v54 = vmul.f32 %v7764_v31, %v7772_v16  ;;  %v1383_v17 = vadd.f32 %v10046_v53, %v1321_v10  ;;  %v10048_v52 = vld [vmem:[#allocation105_spill] sm:$0xff]  ;;  %v10051_v51 = vld [vmem:[#allocation219_spill] sm:$0xff] }
 0x189   : > { %v1792_v28 = vadd.f32 %v1774_v42, %v10047_v3  ;;  %v2583_v8 = vadd.f32 %v10048_v52, %v2522_v30  ;;  %v1122_v29 = vmul.f32 %v7789_v0, %v1096_v5  ;;  %v1913_v60 = vadd.f32 %v1895_v47, %v1852_v2  ;;  %v10049_v27 = vld [vmem:[#allocation161_spill] sm:$0xff]  ;;  %v10050_v2 = vld [vmem:[#allocation199_spill] sm:$0xff]  ;;  %v10053_v3 = vld [vmem:[#allocation134_spill] sm:$0xff] }
 0x18a   : > { %v2802_v49 = vsel %vm836_vm6, %v2784_v46, 0.0  ;;  %v1407_v7 = vadd.f32 %v7623_v22, %v1383_v17  ;;  %v1896_v59 = vmul.f32 %v7919_v55, %v1871_v36  ;;  %v3077_v48 = vmul.f32 %v7729_v33, %v3052_v23  ;;  %v10052_v53 = vld [vmem:[#allocation115_spill] sm:$0xff] }
 0x18b   : > { %v5333_v26 = vpack.c.bf16 %v2802_v49, %v2802_v49  ;;  %v1853_v18 = vadd.f32 %v7299_v24, %v1792_v28  ;;  %v2689_v10 = vmul.f32 %v7177_v37, %v7810_v13  ;;  %v2645_v42 = vadd.f32 %v7347_v41, %v2583_v8  ;;  %v3367_v41 = vld [vmem:[#allocation2 + $0x1b9] sm:$0x1]  ;;  %v10055_v49 = vld [vmem:[#allocation154_spill] sm:$0xff] }
 0x18c   : > { %v1974_v4 = vadd.f32 %v10049_v27, %v1913_v60  ;;  %v1771_v5 = vmul.f32 %v7799_v1, %v7577_v63  ;;  %v2345_v30 = vadd.f32 %v2327_v54, %v10050_v2  ;;  %v1429_v46 = vsel %vm836_vm6, %v1407_v7, 0.0  ;;  %v10054_v52 = vld [vmem:[#allocation191_spill] sm:$0xff] }
 0x18d   : > { %2895 = vst.msk [vmem:[#allocation3 + $0x98] sm:$0xf] %vm1515_vm7, %v5333_v26  ;;  %v1914_v24 = vadd.f32 %v1896_v59, %v1853_v18  ;;  %v5299_v36 = vpack.c.bf16 %v1429_v46, %v1429_v46  ;;  %v2707_v47 = vadd.f32 %v2689_v10, %v2645_v42  ;;  %v1140_v23 = vadd.f32 %v1122_v29, %v10051_v51  ;;  %v10057_v18 = vld [vmem:[#allocation162_spill] sm:$0xff]  ;;  %v10060_v42 = vld [vmem:[#allocation109_spill] sm:$0xff]  ;;  %v10066_v51 = vld [vmem:[#allocation155_spill] sm:$0xff] }
 0x18e   : > { %v2035_v17 = vadd.f32 %v10052_v53, %v1974_v4  ;;  %v2088_v28 = vadd.f32 %v10053_v3, %v7723_v12  ;;  %v2399_v8 = vadd.f32 %v10054_v52, %v2338_v14  ;;  %v3084_v60 = vmul.f32 %v7729_v33, %v7901_v32  ;;  %v10059_v14 = vld [vmem:[#allocation70_spill] sm:$0xff]  ;;  %v1094_v4 = vld [vmem:[#allocation2 + $0x228] sm:$0x1] }
 0x18f   : > { %v1975_v54 = vadd.f32 %v10055_v49, %v1914_v24  ;;  %v7955_v7 = vadd.f32 %v7623_v22, %v1382_v35  ;;  %v3095_v26 = vadd.f32 %v3077_v48, %v3034_v57  ;;  %1527 = vst.msk [vmem:[#allocation3 + $0x10] sm:$0xf] %vm1515_vm7, %v5299_v36  ;;  %v7959_v29 = vadd.f32 %v7517_v20, %v2707_v47  ;;  %v7977_v20 = vld [vmem:[%s9657_s1 + $0x6] ss:$0 sm:$0xff]  ;;  %v1747_v24 = vld [vmem:[#allocation2 + $0x228] sm:$0x1] }
 0x190   : > { %v7962_v59 = vadd.f32 %v10057_v18, %v2035_v17  ;;  %v7966_v12 = vmul.f32 %v7177_v37, %v7640_v43  ;;  %v1789_v10 = vadd.f32 %v1771_v5, %v10059_v14  ;;  %v3102_v35 = vadd.f32 %v3084_v60, %v7829_v9  ;;  %v10062_v43 = vld [vmem:[#allocation220_spill] sm:$0xff]  ;;  %v10063_v5 = vld [vmem:[#allocation217_spill] sm:$0xff]  ;;  %v10069_v49 = vld [vmem:[#allocation202_spill] sm:$0xff] }
 0x191   : > { %10056 = vst [vmem:[#allocation89_spill] sm:$0xff] %v7955_v7  ;;  %v2036_v27 = vadd.f32 %v10060_v42, %v1975_v54  ;;  %v7972_v57 = vmul.f32 %v7177_v37, %v3367_v41  ;;  %v7981_v48 = vmul.f32 %v7977_v20, %v7577_v63  ;;  %v2406_v2 = vadd.f32 %v10062_v43, %v2345_v30  ;;  %v7985_v36 = vld [vmem:[#allocation2 + $0x221] sm:$0xff]  ;;  %v10065_v37 = vld [vmem:[#allocation86_spill] sm:$0xff]  ;;  %v1869_v18 = vld [vmem:[#allocation2 + $0x229] sm:$0x1] }
 0x192   : > { %10058 = vst [vmem:[#allocation46_spill] sm:$0xff] %v7966_v12  ;;  %v1202_v46 = vadd.f32 %v10063_v5, %v1140_v23  ;;  %v7988_v9 = vadd.f32 %v7623_v22, %v2088_v28  ;;  %v7991_v47 = vadd.f32 %v10065_v37, %v2399_v8  ;;  %v10067_v17 = vld [vmem:[#allocation164_spill] sm:$0xff]  ;;  %v10068_v30 = vld [vmem:[#allocation129_spill] sm:$0xff]  ;;  %v8004_v23 = vmul.f32 %v7977_v20, %v7772_v16  ;;  %v10072_v5 = vld [vmem:[#allocation206_spill] sm:$0xff] }
 0x193   : > { %10061 = vst [vmem:[#allocation192_spill] sm:$0xff] %v7972_v57  ;;  %v2097_v53 = vadd.f32 %v10066_v51, %v2036_v27  ;;  %v7995_v41 = vadd.f32 %v10067_v17, %v3102_v35  ;;  %v8000_v3 = vadd.f32 %v10068_v30, %v3095_v26  ;;  %v1120_v28 = vmul.f32 %v7789_v0, %v1094_v4  ;;  %v2936_v52 = vld [vmem:[#allocation2 + $0x228] sm:$0x1]  ;;  %v3058_v42 = vld [vmem:[#allocation2 + $0x229] sm:$0x1]  ;;  %v10070_v26 = vld [vmem:[#allocation116_spill] sm:$0xff] }
 0x194   : > { %10064 = vst [vmem:[#allocation186_spill] sm:$0xff] %v7988_v9  ;;  %v1850_v54 = vadd.f32 %v10069_v49, %v1789_v10  ;;  %v1772_v60 = vmul.f32 %v7799_v1, %v1747_v24  ;;  %v1893_v14 = vmul.f32 %v7919_v55, %v7985_v36  ;;  %v8013_v27 = vadd.f32 %v10070_v26, %v2406_v2  ;;  %v2216_v35 = vld [vmem:[#allocation3 + $0x74] sm:$0x1]  ;;  %v10071_v4 = vld [vmem:[#allocation107_spill] sm:$0xff]  ;;  %v10074_v30 = vld [vmem:[#allocation201_spill] sm:$0xff] }
 0x195   : > { %v2115_v8 = vadd.f32 %v7623_v22, %v2097_v53  ;;  %v2788_v16 = vadd.f32 %v7623_v22, %v7912_v50  ;;  %v1265_v43 = vadd.f32 %v10071_v4, %v1202_v46  ;;  %v1138_v37 = vadd.f32 %v1120_v28, %v10072_v5  ;;  %v10073_v10 = vld [vmem:[#allocation63_spill] sm:$0xff]  ;;  %v10075_v28 = vld [vmem:[#allocation204_spill] sm:$0xff]  ;;  %v10076_v4 = vld [vmem:[#allocation78_spill] sm:$0xff] }
 0x196   : > { %v1790_v53 = vadd.f32 %v1772_v60, %v10073_v10  ;;  %v1911_v24 = vadd.f32 %v1893_v14, %v1850_v54  ;;  %v2961_v17 = vmul.f32 %v7716_v58, %v2936_v52  ;;  %v1894_v63 = vmul.f32 %v7919_v55, %v1869_v18  ;;  %v2303_v26 = vld [vmem:[#allocation2 + $0x238] sm:$0x1]  ;;  %v2301_v54 = vld [vmem:[#allocation2 + $0x228] sm:$0x1]  ;;  %v10079_v10 = vld [vmem:[#allocation30_spill] sm:$0xff] }
 0x197   : > { %v5324_v51 = vpack.c.bf16 %v2115_v8, %v2115_v8  ;;  %v1200_v49 = vadd.f32 %v10074_v30, %v1138_v37  ;;  %v3082_v2 = vmul.f32 %v7729_v33, %v7985_v36  ;;  %v3083_v50 = vmul.f32 %v7729_v33, %v3058_v42  ;;  %v10077_v14 = vld [vmem:[#allocation211_spill] sm:$0xff]  ;;  %v10078_v18 = vld [vmem:[#allocation153_spill] sm:$0xff]  ;;  %v10086_v12 = vld [vmem:[#allocation74_spill] sm:$0xff] }
 0x198   : > { %v1851_v8 = vadd.f32 %v10075_v28, %v1790_v53  ;;  %v1972_v60 = vadd.f32 %v10076_v4, %v1911_v24  ;;  %v3040_v52 = vadd.f32 %v10077_v14, %v2961_v17  ;;  %v8033_v5 = vmul.f32 %v7977_v20, %v7810_v13  ;;  %v3302_v53 = vld [vmem:[#allocation2 + $0x238] sm:$0x1]  ;;  %v10082_v14 = vld [vmem:[#allocation69_spill] sm:$0xff]  ;;  %v10095_v9 = vld [vmem:[#allocation72_spill] sm:$0xff] }
 0x199   : > { %v2217_v46 = vsel %vm6149_vm5, %v5324_v51, %v2216_v35  ;;  %v1328_v37 = vadd.f32 %v10078_v18, %v1265_v43  ;;  %v1263_v42 = vadd.f32 %v10079_v10, %v1200_v49  ;;  %v3100_v30 = vadd.f32 %v3082_v2, %v7628_v6  ;;  %v8038_v35 = vld [vmem:[#allocation2 + $0x250] sm:$0xff]  ;;  %v10081_v17 = vld [vmem:[#allocation39_spill] sm:$0xff]  ;;  %v10083_v49 = vld [vmem:[#allocation81_spill] sm:$0xff] }
 0x19a   : > { %2218 = vst [vmem:[#allocation3 + $0x74] sm:$0x1] %v2217_v46  ;;  %v8042_v51 = vsel %vm836_vm6, %v2788_v16, 0.0  ;;  %v1912_v24 = vadd.f32 %v1894_v63, %v1851_v8  ;;  %v2033_v28 = vadd.f32 %v10081_v17, %v1972_v60  ;;  %v3101_v4 = vadd.f32 %v3083_v50, %v3040_v52  ;;  %v10084_v6 = vld [vmem:[#allocation71_spill] sm:$0xff] }
 0x19b   : > { %10080 = vst [vmem:[#allocation132_spill] sm:$0xff] %v8042_v51  ;;  %v2328_v13 = vmul.f32 %v7764_v31, %v2303_v26  ;;  %v1326_v43 = vadd.f32 %v10082_v14, %v1263_v42  ;;  %v2326_v46 = vmul.f32 %v7764_v31, %v2301_v54  ;;  %v3161_v18 = vadd.f32 %v10083_v49, %v3100_v30  ;;  %v10085_v10 = vld [vmem:[#allocation79_spill] sm:$0xff]  ;;  %v10088_v26 = vld [vmem:[#allocation42_spill] sm:$0xff]  ;;  %v10089_v30 = vld [vmem:[#allocation32_spill] sm:$0xff] }
 0x19c   : > { %v1973_v2 = vadd.f32 %v10084_v6, %v1912_v24  ;;  %v2094_v57 = vadd.f32 %v10085_v10, %v2033_v28  ;;  %v3162_v16 = vadd.f32 %v10086_v12, %v3101_v4  ;;  %v1125_v63 = vmul.f32 %v7789_v0, %v8038_v35  ;;  %v10087_v50 = vld [vmem:[#allocation31_spill] sm:$0xff]  ;;  %v1536_v51 = vld [vmem:[#allocation3 + $0x24] sm:$0x1] }
 0x19d   : > { %v3327_v8 = vmul.f32 %v7977_v20, %v3302_v53  ;;  %v1388_v60 = vadd.f32 %v10087_v50, %v1326_v43  ;;  %v3222_v52 = vadd.f32 %v10088_v26, %v3161_v18  ;;  %v1777_v54 = vmul.f32 %v7799_v1, %v8038_v35  ;;  %v2669_v42 = vld [vmem:[#allocation2 + $0x238] sm:$0x1]  ;;  %v10092_v53 = vld [vmem:[#allocation205_spill] sm:$0xff]  ;;  %v10093_v43 = vld [vmem:[#allocation82_spill] sm:$0xff] }
 0x19e   : > { %v2034_v17 = vadd.f32 %v10089_v30, %v1973_v2  ;;  %v2112_v24 = vadd.f32 %v7623_v22, %v2094_v57  ;;  %v10090_v28 = vld [vmem:[#allocation35_spill] sm:$0xff]  ;;  %v2344_v6 = vadd.f32 %v2326_v46, %v10092_v53  ;;  %v10094_v18 = vld [vmem:[#allocation181_spill] sm:$0xff]  ;;  %v8079_v46 = vld [vmem:[%s9657_s1 + $0x7] ss:$0 sm:$0xff] }
 0x19f   : > { %v3223_v14 = vadd.f32 %v10090_v28, %v3162_v16  ;;  %v10091_v12 = vld [vmem:[#allocation227_spill] sm:$0xff]  ;;  %v1412_v49 = vadd.f32 %v7623_v22, %v1388_v60  ;;  %v3283_v10 = vadd.f32 %v10093_v43, %v3222_v52  ;;  %v8069_v50 = vadd.f32 %v1777_v54, %v10094_v18 }
 0x1a0   : > { %v8063_v4 = vadd.f32 %v1125_v63, %v10091_v12  ;;  %v3424_v26 = vld [vmem:[#allocation2 + $0x239] sm:$0x1]  ;;  %v2095_v2 = vadd.f32 %v10095_v9, %v2034_v17  ;;  %v5321_v30 = vpack.c.bf16 %v2112_v24, %v2112_v24  ;;  %v2331_v16 = vmul.f32 %v7764_v31, %v8038_v35  ;;  %v10097_v63 = vld [vmem:[#allocation108_spill] sm:$0xff]  ;;  %v2212_v12 = vld [vmem:[#allocation3 + $0x6c] sm:$0x1] }
 0x1a1   : > { %v10096_v57 = vld [vmem:[#allocation75_spill] sm:$0xff]  ;;  %v1390_v28 = vadd.f32 %v10097_v63, %v1328_v37  ;;  %v8082_v60 = vmul.f32 %v8079_v46, %v2669_v42  ;;  %v5304_v52 = vpack.c.bf16 %v1412_v49, %v1412_v49  ;;  %v3344_v54 = vadd.f32 %v8004_v23, %v3283_v10  ;;  %v8097_v42 = vld [vmem:[%s9657_s1 + $0x8] ss:$0 sm:$0xff]  ;;  %v10101_v10 = vld [vmem:[#allocation226_spill] sm:$0xff] }
 0x1a2   : > { %v3284_v7 = vadd.f32 %v10096_v57, %v3223_v14  ;;  %v2113_v9 = vadd.f32 %v7623_v22, %v2095_v2  ;;  %2211 = vst.msk [vmem:[#allocation3 + $0x68] sm:$0xf] %vm1515_vm7, %v5321_v30  ;;  %v8088_v24 = vadd.f32 %v2331_v16, %v7539_v62  ;;  %v2966_v37 = vmul.f32 %v7716_v58, %v8038_v35  ;;  %v8092_v14 = vld [vmem:[#allocation2 + $0x240] sm:$0xff]  ;;  %v10099_v62 = vld [vmem:[#allocation225_spill] sm:$0xff]  ;;  %v10102_v30 = vld [vmem:[#allocation163_spill] sm:$0xff] }
 0x1a3   : > { %v3449_v23 = vmul.f32 %v8097_v42, %v3424_v26  ;;  %v1537_v49 = vsel %vm6149_vm5, %v5304_v52, %v1536_v51  ;;  %v8104_v53 = vadd.f32 %v10099_v62, %v3344_v54  ;;  %v2528_v57 = vadd.f32 %v10102_v30, %v8013_v27  ;;  %v10103_v26 = vld [vmem:[#allocation218_spill] sm:$0xff]  ;;  %v2938_v54 = vld [vmem:[#allocation2 + $0x238] sm:$0x1] }
 0x1a4   : > { %v3345_v17 = vadd.f32 %v3327_v8, %v3284_v7  ;;  %v10098_v7 = vld [vmem:[#allocation207_spill] sm:$0xff]  ;;  %1538 = vst [vmem:[#allocation3 + $0x24] sm:$0x1] %v1537_v49  ;;  %v5322_v43 = vpack.c.bf16 %v2113_v9, %v2113_v9  ;;  %v8108_v2 = vadd.f32 %v7768_v34, %v2966_v37  ;;  %v2346_v16 = vadd.f32 %v2328_v13, %v10103_v26  ;;  %v10104_v63 = vld [vmem:[#allocation118_spill] sm:$0xff]  ;;  %v10106_v13 = vld [vmem:[#allocation33_spill] sm:$0xff] }
 0x1a5   : > { %v2405_v8 = vadd.f32 %v10098_v7, %v2344_v6  ;;  %10100 = vst [vmem:[#allocation188_spill] sm:$0xff] %v8104_v53  ;;  %v3224_v51 = vadd.f32 %v10104_v63, %v7995_v41  ;;  %v1123_v6 = vmul.f32 %v7789_v0, %v8092_v14  ;;  %v1775_v52 = vmul.f32 %v7799_v1, %v8092_v14  ;;  %v10107_v41 = vld [vmem:[#allocation165_spill] sm:$0xff]  ;;  %v3060_v26 = vld [vmem:[#allocation2 + $0x239] sm:$0x1] }
 0x1a6   : > { %v3406_v18 = vadd.f32 %v10101_v10, %v3345_v17  ;;  %v2213_v9 = vsel %vm6149_vm5, %v5322_v43, %v2212_v12  ;;  %v10105_v17 = vld [vmem:[#allocation117_spill] sm:$0xff]  ;;  %v2329_v27 = vmul.f32 %v7764_v31, %v8092_v14  ;;  %v10108_v10 = vld [vmem:[#allocation142_spill] sm:$0xff]  ;;  %v2695_v43 = vmul.f32 %v8079_v46, %v8092_v14 }
 0x1a7   : > { %v2589_v37 = vadd.f32 %v10105_v17, %v2528_v57  ;;  %2214 = vst [vmem:[#allocation3 + $0x6c] sm:$0x1] %v2213_v9  ;;  %v2466_v49 = vadd.f32 %v10106_v13, %v2405_v8  ;;  %v3285_v7 = vadd.f32 %v10107_v41, %v3224_v51  ;;  %v1141_v62 = vadd.f32 %v1123_v6, %v7484_v21  ;;  %v3584_v21 = vld [vmem:[#allocation3 + $0xfc] sm:$0x1]  ;;  %v8144_v17 = vld [vmem:[#allocation2 + $0x211] sm:$0xff] }
 0x1a8   : > { %v3467_v34 = vadd.f32 %v3449_v23, %v3406_v18  ;;  %v8128_v30 = vadd.f32 %v1775_v52, %v10108_v10  ;;  %v2347_v12 = vadd.f32 %v2329_v27, %v7480_v38  ;;  %v1745_v18 = vld [vmem:[#allocation2 + $0x218] sm:$0x1]  ;;  %v8136_v8 = vadd.f32 %v7623_v22, %v1390_v28  ;;  %v10110_v52 = vld [vmem:[#allocation221_spill] sm:$0xff] }
 0x1a9   : > { %v2651_v23 = vadd.f32 %v7488_v61, %v2589_v37  ;;  %v2963_v57 = vmul.f32 %v7716_v58, %v2938_v54  ;;  %v1203_v51 = vadd.f32 %v7558_v40, %v1141_v62  ;;  %v3328_v6 = vmul.f32 %v7977_v20, %v8092_v14  ;;  %v10111_v28 = vld [vmem:[#allocation119_spill] sm:$0xff]  ;;  %v10112_v40 = vld [vmem:[#allocation73_spill] sm:$0xff] }
 0x1aa   : > { %v3485_v63 = vadd.f32 %v7623_v22, %v3467_v34  ;;  %10109 = vst [vmem:[#allocation54_spill] sm:$0xff] %v8136_v8  ;;  %v2407_v9 = vadd.f32 %v10110_v52, %v2346_v16  ;;  %v2408_v38 = vadd.f32 %v7582_v39, %v2347_v12  ;;  %v3085_v37 = vmul.f32 %v7729_v33, %v3060_v26  ;;  %v10113_v16 = vld [vmem:[#allocation122_spill] sm:$0xff] }
 0x1ab   : > { %v2713_v34 = vadd.f32 %v2695_v43, %v2651_v23  ;;  %v1266_v27 = vadd.f32 %v10111_v28, %v1203_v51  ;;  %v8148_v13 = vadd.f32 %v3328_v6, %v3285_v7  ;;  %v1770_v54 = vmul.f32 %v7799_v1, %v1745_v18  ;;  %v10114_v23 = vld [vmem:[#allocation172_spill] sm:$0xff]  ;;  %v10115_v26 = vld [vmem:[#allocation146_spill] sm:$0xff]  ;;  %v10116_v7 = vld [vmem:[#allocation241_spill] sm:$0xff] }
 0x1ac   : > { %v5358_v61 = vpack.c.bf16 %v3485_v63, %v3485_v63  ;;  %v2527_v41 = vadd.f32 %v10112_v40, %v2466_v49  ;;  %v2469_v10 = vadd.f32 %v10113_v16, %v2408_v38  ;;  %v1867_v63 = vld [vmem:[#allocation2 + $0x219] sm:$0x1]  ;;  %v1848_v51 = vadd.f32 %v10116_v7, %v7842_v44  ;;  %v2299_v49 = vld [vmem:[#allocation2 + $0x218] sm:$0x1]  ;;  %v10117_v6 = vld [vmem:[#allocation224_spill] sm:$0xff] }
 0x1ad   : > { %v2774_v39 = vadd.f32 %v7595_v25, %v2713_v34  ;;  %v1329_v12 = vadd.f32 %v10114_v23, %v1266_v27  ;;  %v1788_v43 = vadd.f32 %v1770_v54, %v10115_v26  ;;  %v1891_v18 = vmul.f32 %v7919_v55, %v8144_v17  ;;  %v10119_v34 = vld [vmem:[#allocation120_spill] sm:$0xff]  ;;  %v10120_v27 = vld [vmem:[#allocation242_spill] sm:$0xff]  ;;  %v10122_v26 = vld [vmem:[#allocation123_spill] sm:$0xff] }
 0x1ae   : > { %v3585_v62 = vsel %vm6149_vm5, %v5358_v61, %v3584_v21  ;;  %v3042_v52 = vadd.f32 %v10117_v6, %v2963_v57  ;;  %v10118_v61 = vld [vmem:[#allocation176_spill] sm:$0xff]  ;;  %v1892_v40 = vmul.f32 %v7919_v55, %v1867_v63  ;;  %v10121_v16 = vld [vmem:[#allocation34_spill] sm:$0xff]  ;;  %v2324_v57 = vmul.f32 %v7764_v31, %v2299_v49 }
 0x1af   : > { %3586 = vst [vmem:[#allocation3 + $0xfc] sm:$0x1] %v3585_v62  ;;  %v2530_v25 = vadd.f32 %v10118_v61, %v2469_v10  ;;  %v2792_v38 = vadd.f32 %v7623_v22, %v2774_v39  ;;  %v1391_v28 = vadd.f32 %v10119_v34, %v1329_v12  ;;  %v1849_v54 = vadd.f32 %v10120_v27, %v1788_v43  ;;  %v2934_v62 = vld [vmem:[#allocation2 + $0x218] sm:$0x1]  ;;  %v10123_v12 = vld [vmem:[#allocation64_spill] sm:$0xff] }
 0x1b0   : > { %v1909_v44 = vadd.f32 %v1891_v18, %v1848_v51  ;;  %v2588_v23 = vadd.f32 %v10121_v16, %v2527_v41  ;;  %v2786_v63 = vadd.f32 %v7623_v22, %v7959_v29  ;;  %v2697_v43 = vmul.f32 %v8079_v46, %v8038_v35  ;;  %v10124_v41 = vld [vmem:[#allocation44_spill] sm:$0xff] }
 0x1b1   : > { %v2591_v7 = vadd.f32 %v10122_v26, %v2530_v25  ;;  %v2810_v21 = vsel %vm836_vm6, %v2792_v38, 0.0  ;;  %v1415_v10 = vadd.f32 %v7623_v22, %v1391_v28  ;;  %v1910_v6 = vadd.f32 %v1892_v40, %v1849_v54  ;;  %v3056_v25 = vld [vmem:[#allocation2 + $0x219] sm:$0x1]  ;;  %v10125_v38 = vld [vmem:[#allocation57_spill] sm:$0xff]  ;;  %v10126_v28 = vld [vmem:[#allocation24_spill] sm:$0xff] }
 0x1b2   : > { %v5341_v39 = vpack.c.bf16 %v2810_v21, %v2810_v21  ;;  %v1970_v61 = vadd.f32 %v10123_v12, %v1909_v44  ;;  %v2959_v18 = vmul.f32 %v7716_v58, %v2934_v62  ;;  %v1092_v21 = vld [vmem:[#allocation2 + $0x218] sm:$0x1]  ;;  %v3080_v29 = vmul.f32 %v7729_v33, %v8144_v17  ;;  %v10127_v54 = vld [vmem:[#allocation222_spill] sm:$0xff] }
 0x1b3   : > { %v2653_v51 = vadd.f32 %v10124_v41, %v2591_v7  ;;  %v1437_v49 = vsel %vm836_vm6, %v1415_v10, 0.0  ;;  %v1971_v34 = vadd.f32 %v10125_v38, %v1910_v6  ;;  %v2650_v40 = vadd.f32 %v10127_v54, %v2588_v23  ;;  %v10128_v26 = vld [vmem:[#allocation243_spill] sm:$0xff]  ;;  %v10129_v7 = vld [vmem:[#allocation16_spill] sm:$0xff]  ;;  %v10130_v41 = vld [vmem:[#allocation65_spill] sm:$0xff] }
 0x1b4   : > { %2911 = vst.msk [vmem:[#allocation3 + $0xb8] sm:$0xf] %vm1515_vm7, %v5341_v39  ;;  %v2031_v27 = vadd.f32 %v10126_v28, %v1970_v61  ;;  %v5307_v44 = vpack.c.bf16 %v1437_v49, %v1437_v49  ;;  %v2342_v62 = vadd.f32 %v2324_v57, %v10128_v26  ;;  %v10131_v39 = vld [vmem:[#allocation247_spill] sm:$0xff]  ;;  %v3081_v6 = vmul.f32 %v7729_v33, %v3056_v25  ;;  %v10133_v23 = vld [vmem:[#allocation184_spill] sm:$0xff]  ;;  %v10135_v38 = vld [vmem:[#allocation110_spill] sm:$0xff] }
 0x1b5   : > { %v2715_v16 = vadd.f32 %v2697_v43, %v2653_v51  ;;  %v2032_v12 = vadd.f32 %v10129_v7, %v1971_v34  ;;  %v3038_v53 = vadd.f32 %v10131_v39, %v2959_v18  ;;  %v8200_v61 = vadd.f32 %v7623_v22, %v7962_v59  ;;  %v10134_v57 = vld [vmem:[#allocation12_spill] sm:$0xff]  ;;  %v10136_v18 = vld [vmem:[#allocation58_spill] sm:$0xff]  ;;  %v10139_v26 = vld [vmem:[#allocation67_spill] sm:$0xff] }
 0x1b6   : > { %v8194_v10 = vadd.f32 %v10130_v41, %v2031_v27  ;;  %1543 = vst.msk [vmem:[#allocation3 + $0x30] sm:$0xf] %vm1515_vm7, %v5307_v44  ;;  %v1118_v43 = vmul.f32 %v7789_v0, %v1092_v21  ;;  %v3098_v51 = vadd.f32 %v3080_v29, %v10134_v57  ;;  %v8207_v34 = vadd.f32 %v10135_v38, %v2407_v9  ;;  %v10138_v44 = vld [vmem:[#allocation244_spill] sm:$0xff]  ;;  %v1090_v57 = vld [vmem:[#allocation2 + $0x208] sm:$0x1]  ;;  %v10145_v38 = vld [vmem:[#allocation19_spill] sm:$0xff] }
 0x1b7   : > { %10132 = vst [vmem:[#allocation90_spill] sm:$0xff] %v8200_v61  ;;  %v2776_v49 = vadd.f32 %v10133_v23, %v2715_v16  ;;  %v8209_v28 = vadd.f32 %v3085_v37, %v3042_v52  ;;  %v2093_v27 = vadd.f32 %v10136_v18, %v2032_v12  ;;  %v3099_v25 = vadd.f32 %v3081_v6, %v3038_v53  ;;  %v3300_v37 = vld [vmem:[#allocation2 + $0x228] sm:$0x1]  ;;  %v10141_v53 = vld [vmem:[#allocation60_spill] sm:$0xff]  ;;  %v8226_v12 = vpop.permute.xlu0 %758  ;;  %v10161_v61 = vld [vmem:[#allocation231_spill] sm:$0xff] }
 0x1b8   : > { %v8214_v59 = vmul.f32 %v8097_v42, %v7901_v32  ;;  %v2403_v16 = vadd.f32 %v10138_v44, %v2342_v62  ;;  %v3159_v21 = vadd.f32 %v10139_v26, %v3098_v51  ;;  %v8221_v29 = vsel %vm836_vm6, %v2786_v63, 0.0  ;;  %v2208_v41 = vld [vmem:[#allocation3 + $0x64] sm:$0x1]  ;;  %v10144_v63 = vld [vmem:[#allocation230_spill] sm:$0xff]  ;;  %v1743_v44 = vld [vmem:[#allocation2 + $0x208] sm:$0x1] }
 0x1b9   : > { %v2794_v54 = vadd.f32 %v7623_v22, %v2776_v49  ;;  %10140 = vst [vmem:[#allocation126_spill] sm:$0xff] %v8221_v29  ;;  %v2712_v9 = vadd.f32 %v8082_v60, %v2650_v40  ;;  %v2111_v52 = vadd.f32 %v7623_v22, %v2093_v27  ;;  %v3160_v7 = vadd.f32 %v10141_v53, %v3099_v25  ;;  %v10142_v62 = vld [vmem:[#allocation240_spill] sm:$0xff]  ;;  %v2667_v60 = vld [vmem:[#allocation2 + $0x228] sm:$0x1]  ;;  %v3422_v40 = vld [vmem:[#allocation2 + $0x229] sm:$0x1] }
 0x1ba   : > { %10137 = vst [vmem:[#allocation133_spill] sm:$0xff] %v8214_v59  ;;  %v1136_v39 = vadd.f32 %v1118_v43, %v10142_v62  ;;  %v10143_v6 = vld [vmem:[#allocation28_spill] sm:$0xff]  ;;  %v1846_v49 = vadd.f32 %v10144_v63, %v7879_v45  ;;  %v10147_v26 = vld [vmem:[#allocation17_spill] sm:$0xff] }
 0x1bb   : > { %v2812_v32 = vsel %vm836_vm6, %v2794_v54, 0.0  ;;  %v3220_v23 = vadd.f32 %v10143_v6, %v3159_v21  ;;  %v5320_v22 = vpack.c.bf16 %v2111_v52, %v2111_v52  ;;  %v3221_v18 = vadd.f32 %v10145_v38, %v3160_v7  ;;  %v10146_v27 = vld [vmem:[#allocation128_spill] sm:$0xff]  ;;  %v10149_v62 = vld [vmem:[#allocation237_spill] sm:$0xff] }
 0x1bc   : > { %v5343_v51 = vpack.c.bf16 %v2812_v32, %v2812_v32  ;;  %v2521_v25 = vadd.f32 %v10146_v27, %v7991_v47  ;;  %v3325_v54 = vmul.f32 %v7977_v20, %v3300_v37  ;;  %v2464_v43 = vadd.f32 %v10147_v26, %v2403_v16  ;;  %v10148_v53 = vld [vmem:[#allocation68_spill] sm:$0xff]  ;;  %v10150_v7 = vld [vmem:[#allocation61_spill] sm:$0xff]  ;;  %v10151_v32 = vld [vmem:[#allocation87_spill] sm:$0xff] }
 0x1bd   : > { %v3281_v21 = vadd.f32 %v10148_v53, %v3220_v23  ;;  %v8242_v45 = vadd.f32 %v10149_v62, %v7899_v56  ;;  %v8244_v6 = vld [vmem:[#allocation2 + $0x201] sm:$0xff]  ;;  %v2209_v52 = vsel %vm6149_vm5, %v5320_v22, %v2208_v41  ;;  %v3282_v47 = vadd.f32 %v10150_v7, %v3221_v18  ;;  %v10152_v27 = vld [vmem:[#allocation223_spill] sm:$0xff]  ;;  %v1865_v53 = vld [vmem:[#allocation2 + $0x209] sm:$0x1]  ;;  %v8262_v62 = vpop.permute.xlu1 %338 }
 0x1be   : > { %2915 = vst.msk [vmem:[#allocation3 + $0xc0] sm:$0xf] %vm1515_vm7, %v5343_v51  ;;  %v2582_v63 = vadd.f32 %v10151_v32, %v2521_v25  ;;  %v1116_v37 = vmul.f32 %v7789_v0, %v1090_v57  ;;  %v8253_v16 = vmul.f32 %v8079_v46, %v2667_v60  ;;  %v3447_v23 = vmul.f32 %v8097_v42, %v3422_v40  ;;  %v2297_v51 = vld [vmem:[#allocation2 + $0x208] sm:$0x1]  ;;  %v10153_v41 = vld [vmem:[#allocation239_spill] sm:$0xff]  ;;  %v8264_v40 = vpop.permute.xlu0 %336  ;;  %v10157_v7 = vld [vmem:[#allocation234_spill] sm:$0xff] }
 0x1bf   : > { %2210 = vst [vmem:[#allocation3 + $0x64] sm:$0x1] %v2209_v52  ;;  %v3342_v56 = vadd.f32 %v7981_v48, %v3281_v21  ;;  %v1768_v38 = vmul.f32 %v7799_v1, %v1743_v44  ;;  %v2773_v26 = vadd.f32 %v10152_v27, %v2712_v9  ;;  %v1198_v22 = vadd.f32 %v10153_v41, %v1136_v39  ;;  %v2663_v25 = vld [vmem:[#allocation2 + $0x208] sm:$0x1]  ;;  %v10154_v52 = vld [vmem:[#allocation59_spill] sm:$0xff]  ;;  %v10155_v21 = vld [vmem:[#allocation212_spill] sm:$0xff] }
 0x1c0   : > { %v3343_v18 = vadd.f32 %v3325_v54, %v3282_v47  ;;  %v1889_v57 = vmul.f32 %v7919_v55, %v8244_v6  ;;  %v2932_v60 = vld [vmem:[#allocation2 + $0x208] sm:$0x1]  ;;  %v2525_v48 = vadd.f32 %v10154_v52, %v2464_v43  ;;  %v2644_v9 = vadd.f32 %v10157_v7, %v2582_v63  ;;  %v10158_v32 = vld [vmem:[#allocation131_spill] sm:$0xff]  ;;  %v10160_v27 = vld [vmem:[#allocation228_spill] sm:$0xff] }
 0x1c1   : > { %v8268_v44 = vadd.f32 %v10155_v21, %v3342_v56  ;;  %v1786_v39 = vadd.f32 %v1768_v38, %v10158_v32  ;;  %v10159_v54 = vld [vmem:[#allocation213_spill] sm:$0xff]  ;;  %v1134_v41 = vadd.f32 %v1116_v37, %v10160_v27  ;;  %v2322_v59 = vmul.f32 %v7764_v31, %v2297_v51  ;;  %v10162_v52 = vld [vmem:[#allocation14_spill] sm:$0xff]  ;;  %v10163_v7 = vld [vmem:[#allocation147_spill] sm:$0xff] }
 0x1c2   : > { %v3404_v47 = vadd.f32 %v10159_v54, %v3343_v18  ;;  %v1907_v29 = vadd.f32 %v1889_v57, %v1846_v49  ;;  %v1890_v19 = vmul.f32 %v7919_v55, %v1865_v53  ;;  %v2688_v43 = vmul.f32 %v8079_v46, %v2663_v25  ;;  %v10164_v32 = vld [vmem:[#allocation232_spill] sm:$0xff]  ;;  %v3054_v54 = vld [vmem:[#allocation2 + $0x209] sm:$0x1]  ;;  %v10165_v37 = vld [vmem:[#allocation18_spill] sm:$0xff] }
 0x1c3   : > { %10156 = vst [vmem:[#allocation91_spill] sm:$0xff] %v8268_v44  ;;  %v1847_v8 = vadd.f32 %v10161_v61, %v1786_v39  ;;  %v2957_v56 = vmul.f32 %v7716_v58, %v2932_v60  ;;  %v1261_v21 = vadd.f32 %v10162_v52, %v1198_v22  ;;  %v2340_v18 = vadd.f32 %v2322_v59, %v10164_v32  ;;  %v10166_v51 = vld [vmem:[#allocation236_spill] sm:$0xff]  ;;  %v10167_v22 = vld [vmem:[#allocation229_spill] sm:$0xff]  ;;  %v10168_v60 = vld [vmem:[#allocation103_spill] sm:$0xff] }
 0x1c4   : > { %v3465_v63 = vadd.f32 %v3447_v23, %v3404_v47  ;;  %v1968_v38 = vadd.f32 %v10163_v7, %v1907_v29  ;;  %v2586_v49 = vadd.f32 %v10165_v37, %v2525_v48  ;;  %v2706_v31 = vadd.f32 %v2688_v43, %v2644_v9  ;;  %v8287_v53 = vld [vmem:[%s9659_s3] ss:$0 sm:$0xff]  ;;  %v10169_v59 = vld [vmem:[#allocation233_spill] sm:$0xff]  ;;  %v8295_v47 = vpop.permute.xlu1 %482  ;;  %v10170_v48 = vld [vmem:[#allocation139_spill] sm:$0xff] }
 0x1c5   : > { %v1908_v57 = vadd.f32 %v1890_v19, %v1847_v8  ;;  %v3036_v61 = vadd.f32 %v10166_v51, %v2957_v56  ;;  %v1196_v23 = vadd.f32 %v10167_v22, %v1134_v41  ;;  %v2401_v39 = vadd.f32 %v10169_v59, %v2340_v18  ;;  %v8297_v19 = vpop.permute.xlu0 %480  ;;  %v3580_v8 = vld [vmem:[#allocation3 + $0xf4] sm:$0x1]  ;;  %v10171_v27 = vld [vmem:[#allocation235_spill] sm:$0xff]  ;;  %v10172_v7 = vld [vmem:[#allocation88_spill] sm:$0xff] }
 0x1c6   : > { %v3483_v25 = vadd.f32 %v8287_v53, %v3465_v63  ;;  %v8292_v29 = vadd.f32 %v10168_v60, %v1968_v38  ;;  %v2767_v43 = vadd.f32 %v10171_v27, %v2706_v31  ;;  %v3078_v56 = vmul.f32 %v7729_v33, %v8244_v6  ;;  %v10173_v32 = vld [vmem:[#allocation98_spill] sm:$0xff]  ;;  %v10174_v37 = vld [vmem:[#allocation97_spill] sm:$0xff]  ;;  %v10175_v59 = vld [vmem:[#allocation56_spill] sm:$0xff] }
 0x1c7   : > { %v1969_v9 = vadd.f32 %v10170_v48, %v1908_v57  ;;  %v3079_v52 = vmul.f32 %v7729_v33, %v3054_v54  ;;  %v8305_v41 = vadd.f32 %v8287_v53, %v2773_v26  ;;  %v3217_v38 = vadd.f32 %v10172_v7, %v8000_v3  ;;  %v3296_v60 = vld [vmem:[#allocation2 + $0x208] sm:$0x1]  ;;  %v10176_v33 = vld [vmem:[#allocation208_spill] sm:$0xff]  ;;  %v10177_v27 = vld [vmem:[#allocation95_spill] sm:$0xff] }
 0x1c8   : > { %v5356_v63 = vpack.c.bf16 %v3483_v25, %v3483_v25  ;;  %v2462_v18 = vadd.f32 %v10173_v32, %v2401_v39  ;;  %v2785_v57 = vadd.f32 %v8287_v53, %v2767_v43  ;;  %v3096_v31 = vadd.f32 %v3078_v56, %v7893_v11  ;;  %v2896_v25 = vld [vmem:[#allocation3 + $0x9c] sm:$0x1]  ;;  %v3298_v7 = vld [vmem:[#allocation2 + $0x218] sm:$0x1]  ;;  %v10178_v39 = vld [vmem:[#allocation140_spill] sm:$0xff] }
 0x1c9   : > { %v2030_v51 = vadd.f32 %v10174_v37, %v1969_v9  ;;  %v3097_v22 = vadd.f32 %v3079_v52, %v3036_v61  ;;  %v1324_v48 = vadd.f32 %v10175_v59, %v1261_v21  ;;  %v2648_v54 = vadd.f32 %v10176_v33, %v2586_v49  ;;  %v10179_v43 = vld [vmem:[#allocation150_spill] sm:$0xff]  ;;  %v10180_v11 = vld [vmem:[#allocation143_spill] sm:$0xff]  ;;  %v10182_v21 = vld [vmem:[#allocation141_spill] sm:$0xff] }
 0x1ca   : > { %v3581_v26 = vsel %vm6149_vm5, %v5356_v63, %v3580_v8  ;;  %v1259_v3 = vadd.f32 %v10177_v27, %v1196_v23  ;;  %v5334_v32 = vpack.c.bf16 %v2785_v57, %v2785_v57  ;;  %v3157_v37 = vadd.f32 %v10179_v43, %v3096_v31  ;;  %v10181_v56 = vld [vmem:[#allocation130_spill] sm:$0xff]  ;;  %v8326_v63 = vpop.permute.xlu1 %624  ;;  %v8328_v23 = vpop.permute.xlu0 %622  ;;  %v10184_v33 = vld [vmem:[#allocation100_spill] sm:$0xff]  ;;  %v2204_v27 = vld [vmem:[#allocation3 + $0x5c] sm:$0x1] }
 0x1cb   : > { %3582 = vst [vmem:[#allocation3 + $0xf4] sm:$0x1] %v3581_v26  ;;  %v2091_v9 = vadd.f32 %v10178_v39, %v2030_v51  ;;  %v3158_v61 = vadd.f32 %v10180_v11, %v3097_v22  ;;  %v3278_v52 = vadd.f32 %v10181_v56, %v3217_v38  ;;  %v2523_v59 = vadd.f32 %v10182_v21, %v2462_v18  ;;  %v10183_v31 = vld [vmem:[#allocation106_spill] sm:$0xff]  ;;  %v3418_v26 = vld [vmem:[#allocation2 + $0x209] sm:$0x1]  ;;  %v10186_v56 = vld [vmem:[#allocation151_spill] sm:$0xff] }
 0x1cc   : > { %v3321_v49 = vmul.f32 %v7977_v20, %v3296_v60  ;;  %v3442_v8 = vmul.f32 %v8097_v42, %v8244_v6  ;;  %v2897_v57 = vsel %vm6149_vm5, %v5334_v32, %v2896_v25  ;;  %v3218_v22 = vadd.f32 %v10183_v31, %v3157_v37  ;;  %v10185_v43 = vld [vmem:[#allocation138_spill] sm:$0xff]  ;;  %v10187_v25 = vld [vmem:[#allocation144_spill] sm:$0xff]  ;;  %v3420_v37 = vld [vmem:[#allocation2 + $0x219] sm:$0x1] }
 0x1cd   : > { %v2109_v51 = vadd.f32 %v8287_v53, %v2091_v9  ;;  %v3219_v38 = vadd.f32 %v10184_v33, %v3158_v61  ;;  %v2710_v18 = vadd.f32 %v8253_v16, %v2648_v54  ;;  %v3323_v60 = vmul.f32 %v7977_v20, %v3298_v7  ;;  %2898 = vst [vmem:[#allocation3 + $0x9c] sm:$0x1] %v2897_v57  ;;  %v10188_v31 = vld [vmem:[#allocation99_spill] sm:$0xff]  ;;  %v10189_v33 = vld [vmem:[#allocation238_spill] sm:$0xff] }
 0x1ce   : > { %v3339_v6 = vadd.f32 %v3321_v49, %v3278_v52  ;;  %v3460_v39 = vadd.f32 %v3442_v8, %v8242_v45  ;;  %v1322_v11 = vadd.f32 %v10185_v43, %v1259_v3  ;;  %v3279_v21 = vadd.f32 %v10186_v56, %v3218_v22  ;;  %v10190_v7 = vld [vmem:[#allocation15_spill] sm:$0xff]  ;;  %v10194_v43 = vld [vmem:[#allocation180_spill] sm:$0xff]  ;;  %v10197_v56 = vld [vmem:[#allocation245_spill] sm:$0xff] }
 0x1cf   : > { %v5318_v9 = vpack.c.bf16 %v2109_v51, %v2109_v51  ;;  %v3280_v32 = vadd.f32 %v10187_v25, %v3219_v38  ;;  %v2584_v61 = vadd.f32 %v10188_v31, %v2523_v59  ;;  %v3443_v16 = vmul.f32 %v8097_v42, %v3418_v26  ;;  %v10191_v51 = vld [vmem:[#allocation210_spill] sm:$0xff]  ;;  %v8352_v38 = vpop.permute.xlu1 %766  ;;  %v8354_v26 = vpop.permute.xlu0 %764 }
 0x1d0   : > { %v3400_v44 = vadd.f32 %v10189_v33, %v3339_v6  ;;  %v3478_v54 = vadd.f32 %v8287_v53, %v3460_v39  ;;  %v1386_v52 = vadd.f32 %v10190_v7, %v1324_v48  ;;  %v3340_v3 = vadd.f32 %v8033_v5, %v3279_v21  ;;  %v2665_v6 = vld [vmem:[#allocation2 + $0x218] sm:$0x1]  ;;  %v10192_v39 = vld [vmem:[#allocation248_spill] sm:$0xff]  ;;  %v10193_v5 = vld [vmem:[#allocation249_spill] sm:$0xff] }
 0x1d1   : > { %v2205_v45 = vsel %vm6149_vm5, %v5318_v9, %v2204_v27  ;;  %v3341_v49 = vadd.f32 %v3323_v60, %v3280_v32  ;;  %v2964_v8 = vmul.f32 %v7716_v58, %v8092_v14  ;;  %v2771_v57 = vadd.f32 %v10191_v51, %v2710_v18  ;;  %v10195_v14 = vld [vmem:[#allocation157_spill] sm:$0xff]  ;;  %v10196_v18 = vld [vmem:[#allocation96_spill] sm:$0xff]  ;;  %v5273_v7 = vld [vmem:[%s5646_s26 + $0x1f1] sm:$0xff] }
 0x1d2   : > { %2206 = vst [vmem:[#allocation3 + $0x5c] sm:$0x1] %v2205_v45  ;;  %v3461_v59 = vadd.f32 %v3443_v16, %v3400_v44  ;;  %v5351_v22 = vpack.c.bf16 %v3478_v54, %v3478_v54  ;;  %v3445_v48 = vmul.f32 %v8097_v42, %v3420_v37  ;;  %v8358_v27 = vadd.f32 %v10192_v39, %v3340_v3  ;;  %v10199_v16 = vld [vmem:[#allocation148_spill] sm:$0xff]  ;;  %v3576_v51 = vld [vmem:[#allocation3 + $0xec] sm:$0x1] }
 0x1d3   : > { %v3402_v60 = vadd.f32 %v10193_v5, %v3341_v49  ;;  %v8363_v58 = vadd.f32 %v10194_v43, %v8069_v50  ;;  %v8367_v44 = vadd.f32 %v10195_v14, %v8209_v28  ;;  %v1384_v9 = vadd.f32 %v10196_v18, %v1322_v11  ;;  %v3572_v28 = vld [vmem:[#allocation3 + $0xe4] sm:$0x1]  ;;  %v1100_v11 = vld [vmem:[#allocation2 + $0x258] sm:$0x1]  ;;  %v10202_v18 = vld [vmem:[#allocation9_spill] sm:$0xff] }
 0x1d4   : > { %v2646_v21 = vadd.f32 %v10197_v56, %v2584_v61  ;;  %v3479_v25 = vadd.f32 %v8287_v53, %v3461_v59  ;;  %3571 = vst.msk [vmem:[#allocation3 + $0xe0] sm:$0xf] %vm1515_vm7, %v5351_v22  ;;  %v8375_v32 = vmul.f32 %v8097_v42, %v7985_v36  ;;  %v8379_v50 = vmul.f32 %v7977_v20, %v8038_v35  ;;  %v10200_v35 = vld [vmem:[#allocation49_spill] sm:$0xff]  ;;  %v1753_v49 = vld [vmem:[#allocation2 + $0x258] sm:$0x1]  ;;  %v10203_v56 = vld [vmem:[#allocation156_spill] sm:$0xff] }
 0x1d5   : > { %v8382_v37 = vadd.f32 %v8287_v53, %v1386_v52  ;;  %v3463_v31 = vadd.f32 %v3445_v48, %v3402_v60  ;;  %v2690_v61 = vmul.f32 %v8079_v46, %v2665_v6  ;;  %v8386_v33 = vadd.f32 %v8287_v53, %v2771_v57  ;;  %v8408_v6 = vpop.permute.xlu0 %340  ;;  %v10201_v5 = vld [vmem:[#allocation251_spill] sm:$0xff] }
 0x1d6   : > { %10198 = vst [vmem:[#allocation196_spill] sm:$0xff] %v8375_v32  ;;  %v2090_v54 = vadd.f32 %v10199_v16, %v8292_v29  ;;  %v5352_v36 = vpack.c.bf16 %v3479_v25, %v3479_v25  ;;  %v8393_v45 = vadd.f32 %v10200_v35, %v2964_v8  ;;  %v8397_v52 = vadd.f32 %v8287_v53, %v8194_v10  ;;  %v8406_v8 = vpop.permute.xlu1 %342  ;;  %v8457_v35 = vld [vmem:[%s5646_s26 + $0x171] sm:$0xff]  ;;  %v10217_v10 = vld [vmem:[#allocation160_spill] sm:$0xff] }
 0x1d7   : > { %v3481_v3 = vadd.f32 %v8287_v53, %v3463_v31  ;;  %v8401_v57 = vadd.f32 %v8287_v53, %v1384_v9  ;;  %v2708_v59 = vadd.f32 %v2690_v61, %v2646_v21  ;;  %v1126_v22 = vmul.f32 %v7789_v0, %v1100_v11  ;;  %v5534_v21 = vld [vmem:[%s5646_s26 + $0x248] sm:$0x3]  ;;  %v5257_v31 = vld [vmem:[%s5646_s26 + $0x151] sm:$0xff] }
 0x1d8   : > { %v3573_v29 = vsel %vm6149_vm5, %v5352_v36, %v3572_v28  ;;  %v8414_v48 = vmul.f32 %v8097_v42, %v8144_v17  ;;  %v8418_v60 = vadd.f32 %v10201_v5, %v8128_v30  ;;  %v8423_v43 = vadd.f32 %v8287_v53, %v2090_v54  ;;  %v5535_v28 = vld [vmem:[%s5646_s26 + $0x88] sm:$0x3]  ;;  %v10204_v61 = vld [vmem:[#allocation246_spill] sm:$0xff] }
 0x1d9   : > { %v5354_v39 = vpack.c.bf16 %v3481_v3, %v3481_v3  ;;  %3574 = vst [vmem:[#allocation3 + $0xe4] sm:$0x1] %v3573_v29  ;;  %v1778_v14 = vmul.f32 %v7799_v1, %v1753_v49  ;;  %v8428_v9 = vadd.f32 %v10202_v18, %v8148_v13  ;;  %v2529_v30 = vadd.f32 %v10203_v56, %v8207_v34  ;;  %v5258_v13 = vld [vmem:[%s5646_s26 + $0x161] sm:$0xff]  ;;  %v5261_v18 = vld [vmem:[%s5646_s26 + $0x191] sm:$0xff] }
 0x1da   : > { %v805_v25 = vsel %vm364_vm0, %v5534_v21, %v8226_v12  ;;  %v382_v1 = vsel %vm364_vm0, %v5535_v28, %v8262_v62  ;;  %v2769_v16 = vadd.f32 %v10204_v61, %v2708_v59  ;;  %v10205_v34 = vld [vmem:[#allocation37_spill] sm:$0xff]  ;;  %v8448_v12 = vld [vmem:[#allocation2 + $0x251] sm:$0xff]  ;;  %v5540_v21 = vld [vmem:[%s5646_s26 + $0x1c0] sm:$0xff]  ;;  %v487_v28 = vpop.permute.xlu1 %486 }
 0x1db   : > { %v3577_v17 = vsel %vm6149_vm5, %v5354_v39, %v3576_v51  ;;  %v8446_v54 = vadd.f32 %v1126_v22, %v10205_v34  ;;  %826 = vst.msk [vmem:[#allocation2 + $0x248] sm:$0x3] %vm387_vm1, %v805_v25  ;;  %404 = vst.msk [vmem:[#allocation2 + $0x88] sm:$0x3] %vm387_vm1, %v382_v1  ;;  %v10206_v62 = vld [vmem:[#allocation50_spill] sm:$0xff]  ;;  %v10207_v3 = vld [vmem:[#allocation25_spill] sm:$0xff]  ;;  %v666_v25 = vsel %vm364_vm0, %v5540_v21, %v8328_v23 }
 0x1dc   : > { %3578 = vst [vmem:[#allocation3 + $0xec] sm:$0x1] %v3577_v17  ;;  %v8454_v36 = vadd.f32 %v10206_v62, %v8063_v4  ;;  %v8461_v49 = vadd.f32 %v10207_v3, %v8088_v24  ;;  %v5536_v51 = vld [vmem:[%s5646_s26 + $0x80] sm:$0xff]  ;;  %v5537_v29 = vld [vmem:[%s5646_s26 + $0x128] sm:$0x3]  ;;  %v8489_v1 = vmul.f32 %v7919_v55, %v8448_v12  ;;  %v10209_v61 = vld [vmem:[#allocation111_spill] sm:$0xff] }
 0x1dd   : > { %v381_v59 = vsel %vm364_vm0, %v5536_v51, %v8264_v40  ;;  %v525_v22 = vsel %vm364_vm0, %v5537_v29, %v8295_v47  ;;  %v5538_v39 = vld [vmem:[%s5646_s26 + $0x120] sm:$0xff]  ;;  %v10208_v56 = vld [vmem:[#allocation173_spill] sm:$0xff]  ;;  %v5404_v40 = vpack.i.bf16 %v5258_v13, %v5257_v31  ;;  %v2590_v34 = vadd.f32 %v10209_v61, %v2529_v30  ;;  %687 = vst.msk [vmem:[#allocation2 + $0x1c0] sm:$0xff] %vm385_vm2, %v666_v25  ;;  %v8501_v62 = vld [vmem:[%s5646_s26 + $0x1b1] sm:$0xff] }
 0x1de   : > { %v524_v4 = vsel %vm364_vm0, %v5538_v39, %v8297_v19  ;;  %v8473_v5 = vld [vmem:[%s5646_s26 + $0x181] sm:$0xff]  ;;  %v1796_v24 = vadd.f32 %v1778_v14, %v10208_v56  ;;  %403 = vst.msk [vmem:[#allocation2 + $0x80] sm:$0xff] %vm385_vm2, %v381_v59  ;;  %v485_v14 = vpop.permute.xlu0 %484  ;;  %v1524_v30 = vld [vmem:[#allocation3 + $0xc] sm:$0x1]  ;;  %v2307_v51 = vld [vmem:[#allocation2 + $0x258] sm:$0x1] }
 0x1df   : > { %v5262_v17 = vld [vmem:[%s5646_s26 + $0x1a1] sm:$0xff]  ;;  %546 = vst.msk [vmem:[#allocation2 + $0x128] sm:$0x3] %vm387_vm1, %v525_v22  ;;  %v2673_v59 = vld [vmem:[#allocation2 + $0x258] sm:$0x1]  ;;  %5405 = vrot.lane.b32.xlu0 %v5404_v40, %s5591_s27  ;;  %v5544_v39 = vld [vmem:[%s5646_s26 + $0x90] sm:$0xff]  ;;  %v8518_v40 = vadd.f32 %v8287_v53, %v2769_v16 }
 0x1e0   : > { %545 = vst.msk [vmem:[#allocation2 + $0x120] sm:$0xff] %vm385_vm2, %v524_v4  ;;  %v5539_v47 = vld [vmem:[%s5646_s26 + $0x1c8] sm:$0x3]  ;;  %v5542_v13 = vld [vmem:[%s5646_s26 + $0x260] sm:$0xff]  ;;  %v2942_v29 = vld [vmem:[#allocation2 + $0x258] sm:$0x1]  ;;  %v383_v4 = vsel %vm364_vm0, %v5544_v39, %v8408_v6  ;;  %v5409_v56 = vpack.i.bf16 %v5262_v17, %v5261_v18 }
 0x1e1   : > { %v667_v19 = vsel %vm364_vm0, %v5539_v47, %v8326_v63  ;;  %v5541_v31 = vld [vmem:[%s5646_s26 + $0x268] sm:$0x3]  ;;  %v808_v23 = vsel %vm364_vm0, %v5542_v13, %v8354_v26  ;;  %v5543_v26 = vld [vmem:[%s5646_s26 + $0x98] sm:$0x3]  ;;  %405 = vst.msk [vmem:[#allocation2 + $0x90] sm:$0xff] %vm385_vm2, %v383_v4  ;;  %v5546_v25 = vld [vmem:[%s5646_s26 + $0x130] sm:$0xff] }
 0x1e2   : > { %688 = vst.msk [vmem:[#allocation2 + $0x1c8] sm:$0x3] %vm387_vm1, %v667_v19  ;;  %v809_v63 = vsel %vm364_vm0, %v5541_v31, %v8352_v38  ;;  %v8504_v3 = vld [vmem:[%s5646_s26 + $0x1c1] sm:$0xff]  ;;  %v5414_v38 = vpack.i.bf16 %v8473_v5, %v8457_v35  ;;  %v384_v22 = vsel %vm364_vm0, %v5543_v26, %v8406_v8  ;;  %v5265_v47 = vld [vmem:[%s5646_s26 + $0xb1] sm:$0xff]  ;;  %v526_v6 = vsel %vm364_vm0, %v5546_v25, %v485_v14 }
 0x1e3   : > { %830 = vst.msk [vmem:[#allocation2 + $0x268] sm:$0x3] %vm387_vm1, %v809_v63  ;;  %v10210_v35 = vld [vmem:[#allocation112_spill] sm:$0xff]  ;;  %406 = vst.msk [vmem:[#allocation2 + $0x98] sm:$0x3] %vm387_vm1, %v384_v22  ;;  %v8534_v16 = vld [vmem:[%s5646_s26 + $0xd1] sm:$0xff]  ;;  %5410 = vrot.lane.b32.xlu1 %v5409_v56, %s5591_s27 }
 0x1e4   : > { %829 = vst.msk [vmem:[#allocation2 + $0x260] sm:$0xff] %vm385_vm2, %v808_v23  ;;  %v3225_v5 = vadd.f32 %v10210_v35, %v8367_v44  ;;  %v5266_v19 = vld [vmem:[%s5646_s26 + $0xc1] sm:$0xff]  ;;  %v5545_v8 = vld [vmem:[%s5646_s26 + $0x138] sm:$0x3]  ;;  %547 = vst.msk [vmem:[#allocation2 + $0x130] sm:$0xff] %vm385_vm2, %v526_v6  ;;  %v5419_v44 = vpack.i.bf16 %v8504_v3, %v8501_v62  ;;  %v8561_v62 = vmul.f32 %v8079_v46, %v2673_v59  ;;  %5415 = vrot.lane.b32.xlu0 %v5414_v38, %s5591_s27 }
 0x1e5   : > { %v527_v21 = vsel %vm364_vm0, %v5545_v8, %v487_v28  ;;  %v10211_v18 = vld [vmem:[#allocation52_spill] sm:$0xff]  ;;  %v5269_v28 = vld [vmem:[%s5646_s26 + $0xf1] sm:$0xff]  ;;  %v10212_v31 = vld [vmem:[#allocation89_spill] sm:$0xff] }
 0x1e6   : > { %v8531_v17 = vadd.f32 %v10211_v18, %v1796_v24  ;;  %v8537_v61 = vld [vmem:[%s5646_s26 + $0xe1] sm:$0xff]  ;;  %548 = vst.msk [vmem:[#allocation2 + $0x138] sm:$0x3] %vm387_vm1, %v527_v21  ;;  %v10213_v14 = vpack.c.bf16 %v10212_v31, %v10212_v31  ;;  %v10214_v63 = vld [vmem:[#allocation186_spill] sm:$0xff]  ;;  %v8566_v3 = vld [vmem:[%s9657_s1] ss:$0 sm:$0xff]  ;;  %v5424_v18 = vpack.i.bf16 %v5266_v19, %v5265_v47 }
 0x1e7   : > { %v5315_v13 = vpack.c.bf16 %v10214_v63, %v10214_v63  ;;  %v8555_v23 = vld [vmem:[%s9657_s1 + $0x1] ss:$0 sm:$0xff]  ;;  %v10215_v22 = vld [vmem:[#allocation10_spill] sm:$0xff]  ;;  %v1751_v4 = vld [vmem:[#allocation2 + $0x248] sm:$0x1]  ;;  %v5434_v0 = vpack.i.bf16 %v8537_v61, %v8534_v16  ;;  %5420 = vrot.lane.b32.xlu1 %v5419_v44, %s5591_s27 }
 0x1e8   : > { %v1525_v24 = vsel %vm6149_vm5, %v10213_v14, %v1524_v30  ;;  %v8558_v26 = vmul.f32 %v8555_v23, %v2307_v51  ;;  %v8569_v30 = vmul.f32 %v8566_v3, %v2942_v29  ;;  %v2652_v39 = vadd.f32 %v10215_v22, %v2590_v34  ;;  %v1872_v56 = vld [vmem:[#allocation2 + $0x241] sm:$0xff]  ;;  %v1873_v8 = vld [vmem:[#allocation2 + $0x249] sm:$0x1]  ;;  %v10216_v31 = vld [vmem:[#allocation158_spill] sm:$0xff]  ;;  %5425 = vrot.lane.b32.xlu0 %v5424_v18, %s5593_s18 }
 0x1e9   : > { %v5270_v35 = vld [vmem:[%s5646_s26 + $0x101] sm:$0xff]  ;;  %1526 = vst [vmem:[#allocation3 + $0xc] sm:$0x1] %v1525_v24  ;;  %v1897_v21 = vmul.f32 %v7919_v55, %v1872_v56  ;;  %2199 = vst.msk [vmem:[#allocation3 + $0x50] sm:$0xf] %vm1515_vm7, %v5315_v13  ;;  %v3286_v14 = vadd.f32 %v10216_v31, %v3225_v5  ;;  %v1898_v13 = vmul.f32 %v7919_v55, %v1873_v8 }
 0x1ea   : > { %v8576_v51 = vld [vmem:[%s9657_s1 + $0x3] ss:$0 sm:$0xff]  ;;  %v2305_v25 = vld [vmem:[#allocation2 + $0x248] sm:$0x1]  ;;  %v8583_v34 = vld [vmem:[%s9657_s1 + $0x2] ss:$0 sm:$0xff]  ;;  %v5429_v5 = vpack.i.bf16 %v5270_v35, %v5269_v28 }
 0x1eb   : > { %v1776_v59 = vmul.f32 %v8576_v51, %v1751_v4  ;;  %v2671_v6 = vld [vmem:[#allocation2 + $0x248] sm:$0x1]  ;;  %v3086_v29 = vmul.f32 %v8583_v34, %v1872_v56  ;;  %v2330_v24 = vmul.f32 %v8555_v23, %v2305_v25  ;;  %v3062_v4 = vld [vmem:[#allocation2 + $0x249] sm:$0x1]  ;;  %v1915_v38 = vadd.f32 %v1897_v21, %v8418_v60  ;;  %v10218_v25 = vld [vmem:[#allocation252_spill] sm:$0xff] }
 0x1ec   : > { %v2696_v63 = vmul.f32 %v8079_v46, %v2671_v6  ;;  %v2940_v22 = vld [vmem:[#allocation2 + $0x248] sm:$0x1]  ;;  %v10221_v60 = vld [vmem:[#allocation8_spill] sm:$0xff]  ;;  %5430 = vrot.lane.b32.xlu1 %v5429_v5, %s5593_s18  ;;  %v3450_v5 = vmul.f32 %v8097_v42, %v1872_v56  ;;  %5435 = vrot.lane.b32.xlu0 %v5434_v0, %s5593_s18 }
 0x1ed   : > { %v1794_v11 = vadd.f32 %v1776_v59, %v10217_v10  ;;  %v2965_v47 = vmul.f32 %v8566_v3, %v2940_v22  ;;  %v3304_v19 = vld [vmem:[#allocation2 + $0x248] sm:$0x1]  ;;  %v2348_v31 = vadd.f32 %v2330_v24, %v10218_v25  ;;  %v3104_v6 = vadd.f32 %v3086_v29, %v8393_v45  ;;  %v10220_v10 = vld [vmem:[#allocation174_spill] sm:$0xff]  ;;  %v10223_v28 = vld [vmem:[#allocation48_spill] sm:$0xff] }
 0x1ee   : > { %v2714_v46 = vadd.f32 %v2696_v63, %v2652_v39  ;;  %v5274_v32 = vld [vmem:[%s5646_s26 + $0x201] sm:$0xff]  ;;  %v1976_v59 = vadd.f32 %v10220_v10, %v1915_v38  ;;  %v3087_v22 = vmul.f32 %v8583_v34, %v3062_v4  ;;  %v3329_v8 = vmul.f32 %v7977_v20, %v3304_v19  ;;  %v3306_v4 = vld [vmem:[#allocation2 + $0x258] sm:$0x1] }
 0x1ef   : > { %v10219_v16 = vld [vmem:[#allocation21_spill] sm:$0xff]  ;;  %v3044_v21 = vadd.f32 %v10221_v60, %v2965_v47  ;;  %v5444_v38 = vpack.i.bf16 %v5274_v32, %v5273_v7  ;;  %v10226_v47 = vld [vmem:[#allocation36_spill] sm:$0xff] }
 0x1f0   : > { %v1855_v61 = vadd.f32 %v10219_v16, %v1794_v11  ;;  %v10222_v55 = vld [vmem:[#allocation253_spill] sm:$0xff]  ;;  %v2775_v39 = vadd.f32 %v10223_v28, %v2714_v46  ;;  %v10227_v16 = vld [vmem:[#allocation124_spill] sm:$0xff]  ;;  %v3347_v10 = vadd.f32 %v3329_v8, %v3286_v14  ;;  %v5275_v46 = vld [vmem:[%s5646_s26 + $0x211] sm:$0xff]  ;;  %v3331_v8 = vmul.f32 %v7977_v20, %v3306_v4 }
 0x1f1   : > { %v2409_v44 = vadd.f32 %v10222_v55, %v2348_v31  ;;  %v10224_v45 = vld [vmem:[#allocation177_spill] sm:$0xff]  ;;  %v3105_v63 = vadd.f32 %v3087_v22, %v3044_v21  ;;  %v10228_v55 = vld [vmem:[#allocation167_spill] sm:$0xff]  ;;  %v10232_v14 = vld [vmem:[#allocation178_spill] sm:$0xff]  ;;  %5445 = vrot.lane.b32.xlu0 %v5444_v38, %s5594_s23 }
 0x1f2   : > { %v3165_v35 = vadd.f32 %v10224_v45, %v3104_v6  ;;  %v1916_v11 = vadd.f32 %v1898_v13, %v1855_v61  ;;  %v10225_v29 = vld [vmem:[#allocation121_spill] sm:$0xff]  ;;  %v2793_v18 = vadd.f32 %v8287_v53, %v2775_v39  ;;  %v2912_v6 = vld [vmem:[#allocation3 + $0xbc] sm:$0x1]  ;;  %v10237_v4 = vld [vmem:[#allocation168_spill] sm:$0xff] }
 0x1f3   : > { %v2037_v24 = vadd.f32 %v10225_v29, %v1976_v59  ;;  %v2470_v25 = vadd.f32 %v10226_v47, %v2409_v44  ;;  %v5276_v60 = vld [vmem:[%s5646_s26 + $0x221] sm:$0xff]  ;;  %v10229_v13 = vld [vmem:[#allocation175_spill] sm:$0xff]  ;;  %v10230_v59 = vld [vmem:[#allocation170_spill] sm:$0xff] }
 0x1f4   : > { %v3226_v31 = vadd.f32 %v10227_v16, %v3165_v35  ;;  %v1977_v19 = vadd.f32 %v10228_v55, %v1916_v11  ;;  %v3166_v32 = vadd.f32 %v10230_v59, %v3105_v63  ;;  %v3426_v7 = vld [vmem:[#allocation2 + $0x249] sm:$0x1]  ;;  %v1098_v21 = vld [vmem:[#allocation2 + $0x248] sm:$0x1]  ;;  %v5342_v28 = vpack.c.bf16 %v2793_v18, %v2793_v18  ;;  %v10233_v45 = vld [vmem:[#allocation51_spill] sm:$0xff] }
 0x1f5   : > { %v8620_v61 = vadd.f32 %v10229_v13, %v2037_v24  ;;  %v10231_v22 = vld [vmem:[#allocation169_spill] sm:$0xff]  ;;  %v3408_v35 = vadd.f32 %v10233_v45, %v3347_v10  ;;  %v10234_v11 = vld [vmem:[#allocation6_spill] sm:$0xff]  ;;  %v5454_v63 = vpack.i.bf16 %v5276_v60, %v5275_v46  ;;  %v3428_v18 = vld [vmem:[#allocation2 + $0x259] sm:$0x1] }
 0x1f6   : > { %v2531_v44 = vadd.f32 %v10231_v22, %v2470_v25  ;;  %v3287_v39 = vadd.f32 %v10232_v14, %v3226_v31  ;;  %v2038_v29 = vadd.f32 %v10234_v11, %v1977_v19  ;;  %v10235_v24 = vld [vmem:[#allocation29_spill] sm:$0xff]  ;;  %v2913_v0 = vsel %vm6149_vm5, %v5342_v28, %v2912_v6  ;;  %v8639_v31 = vld [vmem:[%s9657_s1 + $0x4] ss:$0 sm:$0xff]  ;;  %v10238_v46 = vld [vmem:[#allocation171_spill] sm:$0xff] }
 0x1f7   : > { %v3227_v47 = vadd.f32 %v10235_v24, %v3166_v32  ;;  %v10236_v16 = vld [vmem:[#allocation13_spill] sm:$0xff]  ;;  %v3451_v25 = vmul.f32 %v8097_v42, %v3426_v7  ;;  %v1124_v20 = vmul.f32 %v8639_v31, %v1098_v21  ;;  %2914 = vst [vmem:[#allocation3 + $0xbc] sm:$0x1] %v2913_v0  ;;  %v3468_v19 = vadd.f32 %v3450_v5, %v8428_v9  ;;  %v10239_v6 = vld [vmem:[#allocation4_spill] sm:$0xff]  ;;  %v10240_v59 = vld [vmem:[#allocation46_spill] sm:$0xff] }
 0x1f8   : > { %v2592_v55 = vadd.f32 %v10236_v16, %v2531_v44  ;;  %v3348_v56 = vadd.f32 %v8379_v50, %v3287_v39  ;;  %v2099_v10 = vadd.f32 %v10237_v4, %v2038_v29  ;;  %v3452_v50 = vmul.f32 %v8097_v42, %v8448_v12  ;;  %v10241_v22 = vld [vmem:[#allocation182_spill] sm:$0xff]  ;;  %v3064_v9 = vld [vmem:[#allocation2 + $0x259] sm:$0x1]  ;;  %v2220_v38 = vld [vmem:[#allocation3 + $0x7c] sm:$0x1]  ;;  %5455 = vrot.lane.b32.xlu0 %v5454_v63, %s5594_s23 }
 0x1f9   : > { %v3288_v60 = vadd.f32 %v10238_v46, %v3227_v47  ;;  %v3469_v7 = vadd.f32 %v3451_v25, %v3408_v35  ;;  %v2350_v21 = vadd.f32 %v8558_v26, %v10241_v22  ;;  %v3486_v14 = vadd.f32 %v8287_v53, %v3468_v19  ;;  %v1875_v29 = vld [vmem:[#allocation2 + $0x259] sm:$0x1]  ;;  %v3588_v24 = vld [vmem:[#allocation3 + $0x104] sm:$0x1]  ;;  %v1225_v63 = vld [vmem:[#allocation2 + $0x88] sm:$0x1] }
 0x1fa   : > { %v2654_v13 = vadd.f32 %v10239_v6, %v2592_v55  ;;  %v3409_v32 = vadd.f32 %v10240_v59, %v3348_v56  ;;  %v2117_v44 = vadd.f32 %v8287_v53, %v2099_v10  ;;  %v3453_v5 = vmul.f32 %v8097_v42, %v3428_v18  ;;  %v10242_v35 = vld [vmem:[#allocation7_spill] sm:$0xff]  ;;  %v10243_v26 = vld [vmem:[#allocation192_spill] sm:$0xff]  ;;  %v10244_v42 = vld [vmem:[#allocation38_spill] sm:$0xff] }
 0x1fb   : > { %v3349_v28 = vadd.f32 %v3331_v8, %v3288_v60  ;;  %v3487_v11 = vadd.f32 %v8287_v53, %v3469_v7  ;;  %v1142_v47 = vadd.f32 %v1124_v20, %v10242_v35  ;;  %v5359_v0 = vpack.c.bf16 %v3486_v14, %v3486_v14  ;;  %v10245_v18 = vld [vmem:[#allocation194_spill] sm:$0xff]  ;;  %v2916_v19 = vld [vmem:[#allocation3 + $0xc4] sm:$0x1] }
 0x1fc   : > { %v2716_v39 = vadd.f32 %v8561_v62, %v2654_v13  ;;  %v3470_v45 = vadd.f32 %v3452_v50, %v3409_v32  ;;  %v5326_v16 = vpack.c.bf16 %v2117_v44, %v2117_v44  ;;  %v3088_v8 = vmul.f32 %v8583_v34, %v8448_v12  ;;  %v8673_v12 = vld [vmem:[%s9657_s1 + $0x5] ss:$0 sm:$0xff]  ;;  %v3592_v32 = vld [vmem:[#allocation3 + $0x10c] sm:$0x1]  ;;  %v10246_v7 = vld [vmem:[#allocation250_spill] sm:$0xff] }
 0x1fd   : > { %v3410_v55 = vadd.f32 %v10243_v26, %v3349_v28  ;;  %v5360_v25 = vpack.c.bf16 %v3487_v11, %v3487_v11  ;;  %v3046_v4 = vadd.f32 %v10245_v18, %v8569_v30  ;;  %v3089_v10 = vmul.f32 %v8583_v34, %v3064_v9  ;;  %3587 = vst.msk [vmem:[#allocation3 + $0x100] sm:$0xf] %vm1515_vm7, %v5359_v0  ;;  %v8687_v28 = vld [vmem:[#allocation3] ss:$72 sps:$4 sm:$0xff]   ;;  %v8689_v14 = vld [vmem:[#allocation3 + $0x4] sm:$0x1] }
 0x1fe   : > { %v2777_v56 = vadd.f32 %v10244_v42, %v2716_v39  ;;  %v3488_v62 = vadd.f32 %v8287_v53, %v3470_v45  ;;  %v2221_v20 = vsel %vm6149_vm5, %v5326_v16, %v2220_v38  ;;  %v1900_v60 = vmul.f32 %v8673_v12, %v1875_v29  ;;  %v855_v38 = vld [vmem:[#allocation2 + $0x88] sm:$0x1]  ;;  %v978_v39 = vld [vmem:[#allocation2 + $0x89] sm:$0x1]  ;;  %v8698_v45 = vld [vmem:[%s9657_s1 + $0x6] ss:$0 sm:$0xff] }
 0x1ff   : > { %v3471_v46 = vadd.f32 %v3453_v5, %v3410_v55  ;;  %2222 = vst [vmem:[#allocation3 + $0x7c] sm:$0x1] %v2221_v20  ;;  %v3589_v6 = vsel %vm6149_vm5, %v5360_v25, %v3588_v24  ;;  %v8683_v59 = vadd.f32 %v8489_v1, %v8363_v58  ;;  %v1204_v22 = vadd.f32 %v10246_v7, %v1142_v47  ;;  %v10247_v58 = vld [vmem:[#allocation11_spill] sm:$0xff]  ;;  %v854_v29 = vld [vmem:[#allocation2 + $0x80] sm:$0xff]  ;;  %v1350_v47 = vld [vmem:[#allocation2 + $0x89] sm:$0x1] }
 0x200   : > { %v2795_v30 = vadd.f32 %v8287_v53, %v2777_v56  ;;  %v5361_v50 = vpack.c.bf16 %v3488_v62, %v3488_v62  ;;  %3590 = vst [vmem:[#allocation3 + $0x104] sm:$0x1] %v3589_v6  ;;  %v1918_v9 = vadd.f32 %v1900_v60, %v8531_v17  ;;  %v1206_v1 = vadd.f32 %v10247_v58, %v8446_v54  ;;  %v10248_v16 = vld [vmem:[#allocation76_spill] sm:$0xff]  ;;  %v2429_v55 = vld [vmem:[#allocation2 + $0x88] sm:$0x1] }
 0x201   : > { %v3489_v44 = vadd.f32 %v8287_v53, %v3471_v46  ;;  %v1251_v11 = vmul.f32 %v8698_v45, %v1225_v63  ;;  %v8702_v24 = vadd.f32 %v3088_v8, %v8108_v2  ;;  %v8704_v17 = vadd.f32 %v3089_v10, %v3046_v4  ;;  %v1288_v0 = vld [vmem:[#allocation2 + $0x128] sm:$0x1]  ;;  %v1633_v42 = vld [vmem:[#allocation2 + $0x89] sm:$0x1] }
 0x202   : > { %v5344_v5 = vpack.c.bf16 %v2795_v30, %v2795_v30  ;;  %3591 = vst.msk [vmem:[#allocation3 + $0x108] sm:$0xf] %vm1515_vm7, %v5361_v50  ;;  %v2411_v26 = vadd.f32 %v10248_v16, %v2350_v21  ;;  %v1997_v56 = vld [vmem:[#allocation2 + $0x89] sm:$0x1]  ;;  %v1936_v62 = vld [vmem:[#allocation2 + $0x128] sm:$0x1]  ;;  %v880_v10 = vmul.f32 %v8566_v3, %v855_v38  ;;  %v1250_v63 = vmul.f32 %v8698_v45, %v854_v29 }
 0x203   : > { %v5362_v35 = vpack.c.bf16 %v3489_v44, %v3489_v44  ;;  %v10249_v8 = vld [vmem:[#allocation45_spill] sm:$0xff]  ;;  %v8720_v60 = vmul.f32 %v8583_v34, %v978_v39  ;;  %v2454_v30 = vmul.f32 %v8576_v51, %v2429_v55  ;;  %v8726_v50 = vld [vmem:[%s9657_s1 + $0x7] ss:$0 sm:$0xff]  ;;  %v1658_v44 = vmul.f32 %v8555_v23, %v1633_v42 }
 0x204   : > { %v2917_v54 = vsel %vm6149_vm5, %v5344_v5, %v2916_v19  ;;  %v8713_v4 = vadd.f32 %v10249_v8, %v1204_v22  ;;  %v2551_v20 = vld [vmem:[#allocation2 + $0x89] sm:$0x1]  ;;  %v1269_v19 = vadd.f32 %v1251_v11, %v1206_v1  ;;  %v1314_v6 = vmul.f32 %v8726_v50, %v1288_v0  ;;  %v8734_v7 = vld [vmem:[%s9657_s1 + $0x8] ss:$0 sm:$0xff] }
 0x205   : > { %2918 = vst [vmem:[#allocation3 + $0xc4] sm:$0x1] %v2917_v54  ;;  %v3593_v21 = vsel %vm6149_vm5, %v5362_v35, %v3592_v32  ;;  %v3186_v46 = vld [vmem:[#allocation2 + $0x89] sm:$0x1]  ;;  %v8729_v32 = vld [vmem:[#allocation2 + $0x120] sm:$0xff]  ;;  %v1376_v22 = vmul.f32 %v8734_v7, %v1350_v47  ;;  %v2022_v5 = vmul.f32 %v8726_v50, %v1997_v56  ;;  %v1961_v39 = vmul.f32 %v8698_v45, %v1936_v62 }
 0x206   : > { %3594 = vst [vmem:[#allocation3 + $0x10c] sm:$0x1] %v3593_v21  ;;  %v8739_v38 = vld [vmem:[#allocation2 + $0x81] sm:$0xff]  ;;  %v8743_v58 = vmul.f32 %v8673_v12, %v2551_v20  ;;  %v3211_v1 = vmul.f32 %v8639_v31, %v3186_v46  ;;  %v8747_v11 = vmul.f32 %v8566_v3, %v854_v29  ;;  %v1332_v35 = vadd.f32 %v1314_v6, %v1269_v19  ;;  %v2058_v16 = vld [vmem:[#allocation2 + $0x129] sm:$0x1] }
 0x207   : > { %v3125_v55 = vld [vmem:[#allocation2 + $0x128] sm:$0x1]  ;;  %v1268_v47 = vadd.f32 %v1250_v63, %v8454_v36  ;;  %v2453_v0 = vmul.f32 %v8576_v51, %v854_v29  ;;  %v1979_v54 = vadd.f32 %v1961_v39, %v1918_v9  ;;  %v1313_v42 = vmul.f32 %v8726_v50, %v8729_v32 }
 0x208   : > { %v2472_v56 = vadd.f32 %v2454_v30, %v2411_v26  ;;  %v1375_v62 = vmul.f32 %v8734_v7, %v8739_v38  ;;  %v1657_v8 = vmul.f32 %v8555_v23, %v8739_v38  ;;  %v916_v21 = vld [vmem:[#allocation2 + $0x128] sm:$0x1]  ;;  %v1394_v20 = vadd.f32 %v1376_v22, %v1332_v35 }
 0x209   : > { %v1572_v46 = vld [vmem:[#allocation2 + $0x128] sm:$0x1]  ;;  %v2040_v19 = vadd.f32 %v2022_v5, %v1979_v54  ;;  %v2083_v6 = vmul.f32 %v8734_v7, %v2058_v16  ;;  %v3150_v29 = vmul.f32 %v8576_v51, %v3125_v55  ;;  %v1331_v9 = vadd.f32 %v1313_v42, %v1268_v47  ;;  %v1548_v5 = vld [vmem:[#allocation3 + $0x3c] sm:$0x1] }
 0x20a   : > { %v2490_v36 = vld [vmem:[#allocation2 + $0x128] sm:$0x1]  ;;  %v2021_v63 = vmul.f32 %v8726_v50, %v8739_v38  ;;  %v3210_v26 = vmul.f32 %v8639_v31, %v8739_v38  ;;  %v1418_v30 = vadd.f32 %v8287_v53, %v1394_v20  ;;  %v1960_v39 = vmul.f32 %v8698_v45, %v8729_v32 }
 0x20b   : > { %v2471_v22 = vadd.f32 %v2453_v0, %v8461_v49  ;;  %v942_v35 = vmul.f32 %v8555_v23, %v916_v21  ;;  %v2101_v16 = vadd.f32 %v2083_v6, %v2040_v19  ;;  %v1393_v54 = vadd.f32 %v1375_v62, %v1331_v9  ;;  %v1693_v55 = vld [vmem:[#allocation2 + $0x121] sm:$0xff]  ;;  %v1694_v21 = vld [vmem:[#allocation2 + $0x129] sm:$0x1] }
 0x20c   : > { %v5310_v47 = vpack.c.bf16 %v1418_v30, %v1418_v30  ;;  %v1597_v42 = vmul.f32 %v8566_v3, %v1572_v46  ;;  %v2515_v13 = vmul.f32 %v8639_v31, %v2490_v36  ;;  %v1978_v2 = vadd.f32 %v1960_v39, %v8683_v59  ;;  %v2224_v0 = vld [vmem:[#allocation3 + $0x84] sm:$0x1] }
 0x20d   : > { %v2119_v20 = vadd.f32 %v8287_v53, %v2101_v16  ;;  %v3168_v18 = vadd.f32 %v3150_v29, %v8704_v17  ;;  %v1417_v25 = vadd.f32 %v8287_v53, %v1393_v54  ;;  %v3149_v49 = vmul.f32 %v8576_v51, %v8729_v32  ;;  %v3247_v17 = vld [vmem:[#allocation2 + $0x129] sm:$0x1] }
 0x20e   : > { %v1549_v62 = vsel %vm6149_vm5, %v5310_v47, %v1548_v5  ;;  %v1596_v46 = vmul.f32 %v8566_v3, %v8729_v32  ;;  %v2039_v19 = vadd.f32 %v2021_v63, %v1978_v2  ;;  %v2082_v59 = vmul.f32 %v8734_v7, %v1693_v55  ;;  %v1040_v47 = vld [vmem:[#allocation2 + $0x1c8] sm:$0x1] }
 0x20f   : > { %v960_v6 = vadd.f32 %v942_v35, %v880_v10  ;;  %1550 = vst [vmem:[#allocation3 + $0x3c] sm:$0x1] %v1549_v62  ;;  %v5328_v36 = vpack.c.bf16 %v2119_v20, %v2119_v20  ;;  %v941_v29 = vmul.f32 %v8555_v23, %v8729_v32  ;;  %v1439_v30 = vsel %vm836_vm6, %v1417_v25, 0.0  ;;  %v2613_v35 = vld [vmem:[#allocation2 + $0x1c8] sm:$0x1] }
 0x210   : > { %v2533_v39 = vadd.f32 %v2515_v13, %v2472_v56  ;;  %v5309_v16 = vpack.c.bf16 %v1439_v30, %v1439_v30  ;;  %v2100_v5 = vadd.f32 %v2082_v59, %v2039_v19  ;;  %v3167_v54 = vadd.f32 %v3149_v49, %v8702_v24  ;;  %v1816_v62 = vld [vmem:[#allocation2 + $0x1c9] sm:$0x1]  ;;  %v2675_v59 = vld [vmem:[#allocation2 + $0x268] sm:$0x1] }
 0x211   : > { %v1676_v3 = vadd.f32 %v1658_v44, %v1597_v42  ;;  %v1719_v2 = vmul.f32 %v8583_v34, %v1694_v21  ;;  %v2225_v10 = vsel %vm6149_vm5, %v5328_v36, %v2224_v0  ;;  %v2514_v63 = vmul.f32 %v8639_v31, %v8729_v32  ;;  %v1164_v0 = vld [vmem:[#allocation2 + $0x1c9] sm:$0x1]  ;;  %v1039_v21 = vld [vmem:[#allocation2 + $0x1c0] sm:$0xff] }
 0x212   : > { %2226 = vst [vmem:[#allocation3 + $0x84] sm:$0x1] %v2225_v10  ;;  %v3229_v23 = vadd.f32 %v3211_v1, %v3168_v18  ;;  %v3272_v25 = vmul.f32 %v8673_v12, %v3247_v17  ;;  %1547 = vst.msk [vmem:[#allocation3 + $0x38] sm:$0xf] %vm1515_vm7, %v5309_v16  ;;  %v1675_v13 = vadd.f32 %v1657_v8, %v1596_v46  ;;  %v5556_v1 = vld [vmem:[%s9657_s1 + $0x6] ss:$0 sm:$0xff] }
 0x213   : > { %v2118_v24 = vadd.f32 %v8287_v53, %v2100_v5  ;;  %v959_v44 = vadd.f32 %v941_v29, %v8747_v11  ;;  %v1718_v56 = vmul.f32 %v8583_v34, %v1693_v55  ;;  %v1022_v42 = vadd.f32 %v8720_v60, %v960_v6  ;;  %v10251_v11 = vld [vmem:[#allocation166_spill] sm:$0xff]  ;;  %v2736_v29 = vld [vmem:[#allocation2 + $0x1c9] sm:$0x1]  ;;  %v5558_v10 = vld [vmem:[%s9657_s1 + $0x8] ss:$0 sm:$0xff] }
 0x214   : > { %v1066_v20 = vmul.f32 %v8576_v51, %v1040_v47  ;;  %v3228_v32 = vadd.f32 %v3210_v26, %v3167_v54  ;;  %v2594_v18 = vadd.f32 %v8743_v58, %v2533_v39  ;;  %v2638_v8 = vmul.f32 %v5556_v1, %v2613_v35  ;;  %v3369_v30 = vld [vmem:[#allocation2 + $0x1c9] sm:$0x1] }
 0x215   : > { %v5327_v49 = vpack.c.bf16 %v2118_v24, %v2118_v24  ;;  %v8804_v46 = vadd.f32 %v10251_v11, %v8713_v4  ;;  %v1003_v60 = vmul.f32 %v8583_v34, %v8739_v38  ;;  %v2575_v26 = vmul.f32 %v8673_v12, %v8739_v38  ;;  %v1163_v38 = vld [vmem:[#allocation2 + $0x1c1] sm:$0xff] }
 0x216   : > { %v2532_v19 = vadd.f32 %v2514_v63, %v2471_v22  ;;  %v1737_v6 = vadd.f32 %v1719_v2, %v1676_v3  ;;  %v3290_v58 = vadd.f32 %v3272_v25, %v3229_v23  ;;  %v1736_v36 = vadd.f32 %v1718_v56, %v1675_v13  ;;  %v3308_v22 = vld [vmem:[#allocation2 + $0x268] sm:$0x1]  ;;  %v1101_v24 = vld [vmem:[#allocation2 + $0x260] sm:$0xff] }
 0x217   : > { %2223 = vst.msk [vmem:[#allocation3 + $0x80] sm:$0xf] %vm1515_vm7, %v5327_v49  ;;  %v3271_v17 = vmul.f32 %v8673_v12, %v1693_v55  ;;  %v8813_v4 = vmul.f32 %v8673_v12, %v1164_v0  ;;  %v1841_v39 = vmul.f32 %v8639_v31, %v1816_v62  ;;  %v1021_v34 = vadd.f32 %v1003_v60, %v959_v44  ;;  %v1102_v3 = vld [vmem:[#allocation2 + $0x268] sm:$0x1]  ;;  %v5557_v55 = vld [vmem:[%s9657_s1 + $0x7] ss:$0 sm:$0xff] }
 0x218   : > { %v1065_v16 = vmul.f32 %v8576_v51, %v1039_v21  ;;  %v1084_v54 = vadd.f32 %v1066_v20, %v1022_v42  ;;  %v2656_v47 = vadd.f32 %v2638_v8, %v2594_v18  ;;  %v2700_v2 = vmul.f32 %v5557_v55, %v2675_v59  ;;  %v1755_v13 = vld [vmem:[#allocation2 + $0x268] sm:$0x1]  ;;  %v3430_v20 = vld [vmem:[#allocation2 + $0x269] sm:$0x1] }
 0x219   : > { %v3289_v5 = vadd.f32 %v3271_v17, %v3228_v32  ;;  %v2761_v63 = vmul.f32 %v5558_v10, %v2736_v29  ;;  %v3394_v35 = vmul.f32 %v5557_v55, %v3369_v30  ;;  %v2593_v23 = vadd.f32 %v2575_v26, %v2532_v19  ;;  %v1876_v17 = vld [vmem:[#allocation2 + $0x261] sm:$0xff] }
 0x21a   : > { %v2637_v25 = vmul.f32 %v5556_v1, %v1039_v21  ;;  %v1189_v44 = vmul.f32 %v8673_v12, %v1163_v38  ;;  %v2718_v56 = vadd.f32 %v2700_v2, %v2656_v47  ;;  %v3333_v42 = vmul.f32 %v5556_v1, %v3308_v22 }
 0x21b   : > { %v1083_v49 = vadd.f32 %v1065_v16, %v1021_v34  ;;  %v2760_v32 = vmul.f32 %v5558_v10, %v1163_v38  ;;  %v1128_v0 = vmul.f32 %v8639_v31, %v1102_v3  ;;  %v1780_v62 = vmul.f32 %v8576_v51, %v1755_v13  ;;  %v2920_v34 = vld [vmem:[#allocation3 + $0xcc] sm:$0x1] }
 0x21c   : > { %v2779_v18 = vadd.f32 %v2761_v63, %v2718_v56  ;;  %v3351_v8 = vadd.f32 %v3333_v42, %v3290_v58  ;;  %v2655_v11 = vadd.f32 %v2637_v25, %v2593_v23  ;;  %v3455_v60 = vmul.f32 %v5558_v10, %v3430_v20  ;;  %v1877_v58 = vld [vmem:[#allocation2 + $0x269] sm:$0x1]  ;;  %v1227_v42 = vld [vmem:[#allocation2 + $0x98] sm:$0x1]  ;;  %v3596_v20 = vld [vmem:[#allocation3 + $0x114] sm:$0x1] }
 0x21d   : > { %v1127_v26 = vmul.f32 %v8639_v31, %v1101_v24  ;;  %v1779_v21 = vmul.f32 %v8576_v51, %v1101_v24  ;;  %v2699_v29 = vmul.f32 %v5557_v55, %v1101_v24  ;;  %v3393_v30 = vmul.f32 %v5557_v55, %v1163_v38 }
 0x21e   : > { %v2797_v19 = vadd.f32 %v8287_v53, %v2779_v18  ;;  %v3412_v59 = vadd.f32 %v3394_v35, %v3351_v8  ;;  %v1146_v16 = vadd.f32 %v1128_v0, %v1084_v54  ;;  %v3332_v22 = vmul.f32 %v5556_v1, %v1101_v24  ;;  %v1290_v8 = vld [vmem:[#allocation2 + $0x138] sm:$0x1] }
 0x21f   : > { %v1798_v47 = vadd.f32 %v1780_v62, %v1737_v6  ;;  %v2717_v63 = vadd.f32 %v2699_v29, %v2655_v11  ;;  %v1145_v23 = vadd.f32 %v1127_v26, %v1083_v49  ;;  %v1797_v56 = vadd.f32 %v1779_v21, %v1736_v36  ;;  %v1938_v26 = vld [vmem:[#allocation2 + $0x138] sm:$0x1]  ;;  %v10252_v21 = vld [vmem:[#allocation5_spill] sm:$0xff]  ;;  %v1999_v29 = vld [vmem:[#allocation2 + $0x99] sm:$0x1] }
 0x220   : > { %v5346_v3 = vpack.c.bf16 %v2797_v19, %v2797_v19  ;;  %v3473_v2 = vadd.f32 %v3455_v60, %v3412_v59  ;;  %v3350_v25 = vadd.f32 %v3332_v22, %v3289_v5  ;;  %v1840_v55 = vmul.f32 %v8639_v31, %v1163_v38  ;;  %v1226_v5 = vld [vmem:[#allocation2 + $0x90] sm:$0xff] }
 0x221   : > { %v2778_v35 = vadd.f32 %v2760_v32, %v2717_v63  ;;  %v3454_v6 = vmul.f32 %v5558_v10, %v1876_v17  ;;  %v1902_v54 = vmul.f32 %v8673_v12, %v1877_v58  ;;  %v1859_v0 = vadd.f32 %v1841_v39, %v1798_v47  ;;  %v1352_v39 = vld [vmem:[#allocation2 + $0x99] sm:$0x1]  ;;  %v1351_v47 = vld [vmem:[#allocation2 + $0x91] sm:$0xff] }
 0x222   : > { %v2921_v13 = vsel %vm6149_vm5, %v5346_v3, %v2920_v34  ;;  %v3491_v51 = vadd.f32 %v8287_v53, %v3473_v2  ;;  %v3411_v1 = vadd.f32 %v3393_v30, %v3350_v25  ;;  %v1208_v18 = vadd.f32 %v8813_v4, %v1146_v16  ;;  %v1289_v30 = vld [vmem:[#allocation2 + $0x130] sm:$0xff]  ;;  %v2060_v58 = vld [vmem:[#allocation2 + $0x139] sm:$0x1] }
 0x223   : > { %2922 = vst [vmem:[#allocation3 + $0xcc] sm:$0x1] %v2921_v13  ;;  %v2796_v49 = vadd.f32 %v8287_v53, %v2778_v35  ;;  %v1253_v36 = vmul.f32 %v8698_v45, %v1227_v42  ;;  %v1858_v31 = vadd.f32 %v1840_v55, %v1797_v56  ;;  %v1207_v10 = vadd.f32 %v1189_v44, %v1145_v23  ;;  %v8844_v53 = vld [vmem:[%s9659_s3] ss:$0 sm:$0xff]  ;;  %v2059_v35 = vld [vmem:[#allocation2 + $0x131] sm:$0xff] }
 0x224   : > { %v5364_v24 = vpack.c.bf16 %v3491_v51, %v3491_v51  ;;  %v3472_v62 = vadd.f32 %v3454_v6, %v3411_v1  ;;  %v1252_v60 = vmul.f32 %v8698_v45, %v1226_v5  ;;  %v8850_v19 = vadd.f32 %v10252_v21, %v8804_v46  ;;  %v1552_v5 = vld [vmem:[#allocation3 + $0x44] sm:$0x1]  ;;  %v8896_v21 = vld [vmem:[#allocation3 + $0xd8] sm:$0xf] }
 0x225   : > { %v2814_v38 = vsel %vm836_vm6, %v2796_v49, 0.0  ;;  %v8854_v44 = vadd.f32 %v8844_v53, %v8620_v61  ;;  %v1901_v59 = vmul.f32 %v8673_v12, %v1876_v17  ;;  %v1920_v34 = vadd.f32 %v1902_v54, %v1859_v0 }
 0x226   : > { %v3597_v32 = vsel %vm6149_vm5, %v5364_v24, %v3596_v20  ;;  %v5345_v11 = vpack.c.bf16 %v2814_v38, %v2814_v38  ;;  %v3490_v4 = vadd.f32 %v8844_v53, %v3472_v62  ;;  %v1271_v22 = vadd.f32 %v1253_v36, %v1208_v18  ;;  %v8870_v20 = vld [vmem:[%s9658_s2] ss:$0 sm:$0xff] }
 0x227   : > { %3598 = vst [vmem:[#allocation3 + $0x114] sm:$0x1] %v3597_v32  ;;  %v1316_v3 = vmul.f32 %v8726_v50, %v1290_v8  ;;  %v1919_v2 = vadd.f32 %v1901_v59, %v1858_v31  ;;  %v1378_v46 = vmul.f32 %v8734_v7, %v1352_v39  ;;  %v1963_v63 = vmul.f32 %v8698_v45, %v1938_v26  ;;  %v8886_v32 = vld [vmem:[%s9658_s2 + $0x2] ss:$0 sm:$0xff]  ;;  %v3787_v26 = vld [vmem:[#allocation3 + $0x90] sm:$0xf] }
 0x228   : > { %2919 = vst.msk [vmem:[#allocation3 + $0xc8] sm:$0xf] %vm1515_vm7, %v5345_v11  ;;  %v5363_v16 = vpack.c.bf16 %v3490_v4, %v3490_v4  ;;  %v2024_v61 = vmul.f32 %v8726_v50, %v1999_v29  ;;  %v1270_v12 = vadd.f32 %v1252_v60, %v1207_v10  ;;  %v1315_v23 = vmul.f32 %v8726_v50, %v1289_v30 }
 0x229   : > { %v1334_v17 = vadd.f32 %v1316_v3, %v1271_v22  ;;  %v1377_v25 = vmul.f32 %v8734_v7, %v1351_v47  ;;  %v2023_v13 = vmul.f32 %v8726_v50, %v1351_v47  ;;  %v1981_v51 = vadd.f32 %v1963_v63, %v1920_v34  ;;  %v8876_v50 = vld [vmem:[%s9658_s2 + $0x1] ss:$0 sm:$0xff]  ;;  %v8905_v22 = vld [vmem:[#allocation3 + $0x94] sm:$0x1]  ;;  %v8907_v47 = vld [vmem:[#allocation3 + $0x50] sm:$0xf] }
 0x22a   : > { %3595 = vst.msk [vmem:[#allocation3 + $0x110] sm:$0xf] %vm1515_vm7, %v5363_v16  ;;  %v1962_v56 = vmul.f32 %v8698_v45, %v1289_v30  ;;  %v1333_v55 = vadd.f32 %v1315_v23, %v1270_v12  ;;  %v2085_v6 = vmul.f32 %v8734_v7, %v2060_v58  ;;  %v2084_v49 = vmul.f32 %v8734_v7, %v2059_v35  ;;  %v2228_v7 = vld [vmem:[#allocation3 + $0x8c] sm:$0x1] }
 0x22b   : > { %v1396_v42 = vadd.f32 %v1378_v46, %v1334_v17  ;;  %v2042_v1 = vadd.f32 %v2024_v61, %v1981_v51  ;;  %v10253_v18 = vunpack.c.l.bf16 %v8687_v28  ;;  %v10254_v10 = vunpack.c.h.bf16 %v8687_v28  ;;  %v8913_v46 = vld [vmem:[%s9658_s2 + $0x3] ss:$0 sm:$0xff]  ;;  %v8924_v17 = vld [vmem:[%s9658_s2 + $0x5] ss:$0 sm:$0xff]  ;;  %v4045_v58 = vld [vmem:[#allocation3 + $0xc] sm:$0x1] }
 0x22c   : > { %v1980_v54 = vadd.f32 %v1962_v56, %v1919_v2  ;;  %v1395_v24 = vadd.f32 %v1377_v25, %v1333_v55  ;;  %v10256_v34 = vunpack.c.l.bf16 %v8689_v14  ;;  %v8918_v14 = vld [vmem:[%s9658_s2 + $0x4] ss:$0 sm:$0xff]  ;;  %v3795_v61 = vunpack.c.l.bf16 %v3787_v26  ;;  %v8934_v56 = vld [vmem:[%s9658_s2 + $0x7] ss:$0 sm:$0xff] }
 0x22d   : > { %v1420_v45 = vadd.f32 %v8844_v53, %v1396_v42  ;;  %v2103_v0 = vadd.f32 %v2085_v6, %v2042_v1  ;;  %v3634_v36 = vmul.f32 %v8870_v20, %v10253_v18  ;;  %v3674_v8 = vmul.f32 %v8876_v50, %v10254_v10  ;;  %v8956_v10 = vld [vmem:[%s9658_s2 + $0x6] ss:$0 sm:$0xff] }
 0x22e   : > { %v2041_v62 = vadd.f32 %v2023_v13, %v1980_v54  ;;  %v1419_v38 = vadd.f32 %v8844_v53, %v1395_v24  ;;  %v10255_v39 = vmov %v10253_v18  ;;  %v3715_v16 = vmul.f32 %v8886_v32, %v10256_v34  ;;  %v3964_v24 = vld [vmem:[#allocation3 + $0x8] sm:$0xf]  ;;  %v5277_v34 = vld [vmem:[%s5646_s26 + $0x231] sm:$0xff] }
 0x22f   : > { %v5312_v31 = vpack.c.bf16 %v1420_v45, %v1420_v45  ;;  %v2121_v11 = vadd.f32 %v8844_v53, %v2103_v0  ;;  %v3714_v60 = vmul.f32 %v8886_v32, %v10255_v39  ;;  %v3682_v30 = vadd.f32 %v3674_v8, %v3634_v36  ;;  %v8950_v0 = vld [vmem:[%s9658_s2 + $0x8] ss:$0 sm:$0xff]  ;;  %v5271_v39 = vld [vmem:[%s5646_s26 + $0x111] sm:$0xff] }
 0x230   : > { %v2102_v4 = vadd.f32 %v2084_v49, %v2041_v62  ;;  %v1441_v29 = vsel %vm836_vm6, %v1419_v38, 0.0  ;;  %v3748_v63 = vrot.slane %v3715_v16, 1  ;;  %v3835_v12 = vunpack.c.l.bf16 %v8896_v21  ;;  %v5278_v16 = vld [vmem:[%s5646_s26 + $0x241] sm:$0xff] }
 0x231   : > { %v1553_v59 = vsel %vm6149_vm5, %v5312_v31, %v1552_v5  ;;  %v5330_v28 = vpack.c.bf16 %v2121_v11, %v2121_v11  ;;  %v5311_v3 = vpack.c.bf16 %v1441_v29, %v1441_v29  ;;  %v3747_v9 = vrot.slane %v3714_v60, 1  ;;  %v5272_v60 = vld [vmem:[%s5646_s26 + $0x121] sm:$0xff] }
 0x232   : > { %1554 = vst [vmem:[#allocation3 + $0x44] sm:$0x1] %v1553_v59  ;;  %v2120_v2 = vadd.f32 %v8844_v53, %v2102_v4  ;;  %v3875_v13 = vunpack.c.l.bf16 %v8905_v22  ;;  %v4013_v51 = vunpack.c.l.bf16 %v8907_v47  ;;  %v8938_v35 = vadd.f32 %v8844_v53, %v8850_v19 }
 0x233   : > { %v2229_v23 = vsel %vm6149_vm5, %v5330_v28, %v2228_v7  ;;  %1551 = vst.msk [vmem:[#allocation3 + $0x40] sm:$0xf] %vm1515_vm7, %v5311_v3  ;;  %v3749_v42 = vsel %vm3746_vm8, %v3747_v9, %v3748_v63  ;;  %v3811_v55 = vmul.f32 %v8913_v46, %v3795_v61  ;;  %v3891_v1 = vmul.f32 %v8924_v17, %v3795_v61  ;;  %v1540_v9 = vld [vmem:[#allocation3 + $0x2c] sm:$0x1] }
 0x234   : > { %v5329_v25 = vpack.c.bf16 %v2120_v2, %v2120_v2  ;;  %2230 = vst [vmem:[#allocation3 + $0x8c] sm:$0x1] %v2229_v23  ;;  %v3779_v6 = vadd.f32 %v3749_v42, %v3682_v30  ;;  %v3851_v54 = vmul.f32 %v8918_v14, %v3835_v12  ;;  %v3892_v45 = vmul.f32 %v8924_v17, %v3875_v13  ;;  %v2908_v23 = vld [vmem:[#allocation3 + $0xb4] sm:$0x1] }
 0x235   : > { %v4053_v49 = vunpack.c.l.bf16 %v4045_v58  ;;  %v3923_v19 = vrot.slane %v3891_v1, 1  ;;  %v4029_v5 = vmul.f32 %v8934_v56, %v4013_v51  ;;  %v4259_v62 = vshrl.u32 %v3787_v26, 16  ;;  %v5571_v1 = vld [vmem:[%s9659_s3 + $0x5] ss:$0 sm:$0xff] }
 0x236   : > { %2227 = vst.msk [vmem:[#allocation3 + $0x88] sm:$0xf] %vm1515_vm7, %v5329_v25  ;;  %v3819_v18 = vadd.f32 %v3811_v55, %v3779_v6  ;;  %v3924_v36 = vrot.slane %v3892_v45, 1  ;;  %v4262_v38 = vshll.u32 %v3787_v26, 16  ;;  %v4268_v7 = vshll.u32 %v8905_v22, 16  ;;  %v10259_v45 = vld [vmem:[#allocation54_spill] sm:$0xff] }
 0x237   : > { %v4070_v31 = vmul.f32 %v8950_v0, %v4053_v49  ;;  %v4261_v8 = vrot.slane %v4259_v62, 4  ;;  %v4387_v11 = vshrl.u32 %v3964_v24, 16  ;;  %v4390_v4 = vshll.u32 %v3964_v24, 16  ;;  %v8964_v55 = vld [vmem:[#allocation3 + $0x20] ss:$72 sps:$4 sm:$0xff]  }
 0x238   : > { %v3859_v59 = vadd.f32 %v3851_v54, %v3819_v18  ;;  %v3925_v29 = vsel %vm3746_vm8, %v3923_v19, %v3924_v36  ;;  %v4264_v30 = vrot.slane %v4262_v38, 5  ;;  %v4396_v2 = vshll.u32 %v4045_v58, 16  ;;  %v3791_v19 = vld [vmem:[#allocation3 + $0xb0] sm:$0xf]  ;;  %v5280_v36 = vld [vmem:[%s5646_s26 + $0x261] sm:$0xff] }
 0x239   : > { %v4102_v26 = vrot.slane %v4070_v31, 1  ;;  %v4389_v28 = vrot.slane %v4387_v11, 4  ;;  %v4392_v3 = vrot.slane %v4390_v4, 5  ;;  %v3972_v12 = vunpack.c.l.bf16 %v3964_v24  ;;  %v5279_v18 = vld [vmem:[%s5646_s26 + $0x251] sm:$0xff]  ;;  %v10263_v11 = vld [vmem:[#allocation188_spill] sm:$0xff]  ;;  %v10264_v4 = vld [vmem:[#allocation133_spill] sm:$0xff] }
 0x23a   : > { %v3955_v63 = vadd.f32 %v3925_v29, %v3859_v59  ;;  %v4265_v61 = vor.u32 %v4264_v30, %v4261_v8  ;;  %v5439_v22 = vpack.i.bf16 %v5272_v60, %v5271_v39  ;;  %v4270_v25 = vrot.slane %v4268_v7, 5  ;;  %v10261_v31 = vld [vmem:[#allocation90_spill] sm:$0xff] }
 0x23b   : > { %v4393_v13 = vor.u32 %v4392_v3, %v4389_v28  ;;  %v4398_v51 = vrot.slane %v4396_v2, 5  ;;  %v5449_v42 = vpack.i.bf16 %v5278_v16, %v5277_v34  ;;  %v3988_v6 = vmul.f32 %v8956_v10, %v3972_v12  ;;  %v3968_v3 = vld [vmem:[#allocation3 + $0x28] sm:$0xf] }
 0x23c   : > { %v4266_v58 = vrot.slane %v4265_v61, 4  ;;  %v4069_v54 = vmul.f32 %v8950_v0, %v3972_v12  ;;  %5440 = vrot.lane.b32.xlu1 %v5439_v22, %s5593_s18  ;;  %v10260_v24 = vpack.c.bf16 %v10259_v45, %v10259_v45  ;;  %v5323_v38 = vpack.c.bf16 %v10261_v31, %v10261_v31  ;;  %v9007_v12 = vld [vmem:[%s9659_s3 + $0x1] ss:$0 sm:$0xff] }
 0x23d   : > { %v4394_v62 = vrot.slane %v4393_v13, 4  ;;  %v10262_v8 = vpack.c.bf16 %v8305_v41, %v8305_v41  ;;  %v3466_v39 = vadd.f32 %v10264_v4, %v10263_v11  ;;  %v3996_v59 = vadd.f32 %v3988_v6, %v3955_v63 }
 0x23e   : > { %v1541_v49 = vsel %vm6149_vm5, %v10260_v24, %v1540_v9  ;;  %v4271_v60 = vsel %vm8968_vm11, %v4266_v58, %v4270_v25  ;;  %v4101_v29 = vrot.slane %v4069_v54, 1  ;;  %v3623_v30 = vunpack.c.l.bf16 %v8964_v55  ;;  %2215 = vst.msk [vmem:[#allocation3 + $0x70] sm:$0xf] %vm1515_vm7, %v5323_v38 }
 0x23f   : > { %1542 = vst [vmem:[#allocation3 + $0x2c] sm:$0x1] %v1541_v49  ;;  %v2909_v7 = vsel %vm6149_vm5, %v10262_v8, %v2908_v23  ;;  %v4378_v34 = vmax.bf16 %v4271_v60, %v8896_v21  ;;  %v4399_v16 = vsel %vm8968_vm11, %v4394_v62, %v4398_v51  ;;  %v3484_v41 = vadd.f32 %v8844_v53, %v3466_v39  ;;  %v9018_v51 = vld [vmem:[%s9659_s3 + $0x4] ss:$0 sm:$0xff] }
 0x240   : > { %2910 = vst [vmem:[#allocation3 + $0xb4] sm:$0x1] %v2909_v7  ;;  %v3799_v28 = vunpack.c.l.bf16 %v3791_v19  ;;  %v4506_v2 = vmax.bf16 %v4399_v16, %v8907_v47  ;;  %v4037_v9 = vadd.f32 %v4029_v5, %v3996_v59  ;;  %v4103_v63 = vsel %vm3746_vm8, %v4101_v29, %v4102_v26  ;;  %5450 = vrot.lane.b32.xlu1 %v5449_v42, %s5594_s23 }
 0x241   : > { %v5459_v61 = vpack.i.bf16 %v5280_v36, %v5279_v18  ;;  %v5308_v21 = vpack.c.bf16 %v8938_v35, %v8938_v35  ;;  %v5357_v22 = vpack.c.bf16 %v3484_v41, %v3484_v41  ;;  %v9010_v23 = vmul.f32 %v8886_v32, %v3623_v30  ;;  %v9034_v36 = vld [vmem:[%s9659_s3 + $0x5] ss:$0 sm:$0xff]  ;;  %v3694_v41 = vld [vmem:[#allocation3 + $0x24] sm:$0x1]  ;;  %v9107_v35 = vld [vmem:[#allocation3 + $0x100] sm:$0xf] }
 0x242   : > { %v9013_v47 = vmul.f32 %v8924_v17, %v3799_v28  ;;  %v4514_v5 = vmax.bf16 %v4506_v2, %v4378_v34  ;;  %v4133_v26 = vadd.f32 %v4103_v63, %v4037_v9  ;;  %v3976_v25 = vunpack.c.l.bf16 %v3968_v3 }
 0x243   : > { %v4315_v13 = vshrl.u32 %v3791_v19, 16  ;;  %3583 = vst.msk [vmem:[#allocation3 + $0xf8] sm:$0xf] %vm1515_vm7, %v5357_v22  ;;  %v3638_v42 = vmul.f32 %v8870_v20, %v3623_v30  ;;  %v9023_v58 = vmul.f32 %v8913_v46, %v3799_v28  ;;  %v4318_v6 = vshll.u32 %v3791_v19, 16 }
 0x244   : > { %v4443_v54 = vshrl.u32 %v3968_v3, 16  ;;  %v4522_v45 = vunpack.c.l.bf16 %v4514_v5  ;;  %v9026_v24 = vadd.f32 %v9007_v12, %v4133_v26  ;;  %5460 = vrot.lane.b32.xlu1 %v5459_v61, %s5594_s23  ;;  %v3759_v49 = vrot.slane %v9010_v23, 1  ;;  %s5595_s23 = smov 24  }
 0x245   : > { %v3935_v62 = vrot.slane %v9013_v47, 1  ;;  %v4077_v19 = vmul.f32 %v8950_v0, %v3976_v25  ;;  %v4317_v8 = vrot.slane %v4315_v13, 4  ;;  %v4320_v7 = vrot.slane %v4318_v6, 5  ;;  %v4009_v4 = vld [vmem:[#allocation3 + $0x70] sm:$0xf] }
 0x246   : > { %v4049_v18 = vld [vmem:[#allocation3 + $0x2c] sm:$0x1]  ;;  %v4536_v11 = vmul.f32 %v9018_v51, %v4522_v45  ;;  %v4445_v60 = vrot.slane %v4443_v54, 4  ;;  %v4446_v59 = vshll.u32 %v3968_v3, 16  ;;  %v4017_v29 = vunpack.c.l.bf16 %v4009_v4  ;;  %v1528_v45 = vld [vmem:[#allocation3 + $0x14] sm:$0x1] }
 0x247   : > { %v3871_v31 = vld [vmem:[#allocation3 + $0xb4] sm:$0x1]  ;;  %v4057_v38 = vunpack.c.l.bf16 %v4049_v18  ;;  %v4321_v34 = vor.u32 %v4320_v7, %v4317_v8  ;;  %v4452_v16 = vshll.u32 %v4049_v18, 16  ;;  %v3662_v63 = vunpack.c.h.bf16 %v8964_v55 }
 0x248   : > { %v4324_v39 = vshll.u32 %v3871_v31, 16  ;;  %v4550_v28 = vadd.f32 %v9034_v36, %v4536_v11  ;;  %v4448_v9 = vrot.slane %v4446_v59, 5  ;;  %v9042_v61 = vmul.f32 %v8956_v10, %v3976_v25  ;;  %v3612_v25 = vld [vmem:[#allocation3 + $0x8] ss:$72 sps:$4 sm:$0xff]   ;;  %v3788_v59 = vld [vmem:[#allocation3 + $0x98] sm:$0xf] }
 0x249   : > { %v4078_v30 = vmul.f32 %v8950_v0, %v4057_v38  ;;  %v4113_v22 = vrot.slane %v4077_v19, 1  ;;  %v4322_v23 = vrot.slane %v4321_v34, 4  ;;  %v4454_v5 = vrot.slane %v4452_v16, 5 }
 0x24a   : > { %v4326_v2 = vrot.slane %v4324_v39, 5  ;;  %v4731_v26 = vpack.c.bf16 %v4550_v28, %v4550_v28  ;;  %v3831_v3 = vld [vmem:[#allocation3 + $0xf8] sm:$0xf]  ;;  %v4449_v13 = vor.u32 %v4448_v9, %v4445_v60  ;;  %v3678_v6 = vmul.f32 %v8876_v50, %v3662_v63  ;;  %v3691_v60 = vld [vmem:[#allocation3 + $0xc] sm:$0x1] }
 0x24b   : > { %v3702_v54 = vunpack.c.l.bf16 %v3694_v41  ;;  %v9046_v18 = vmul.f32 %v8934_v56, %v4017_v29  ;;  %v4114_v38 = vrot.slane %v4078_v30, 1  ;;  %v3879_v8 = vunpack.c.l.bf16 %v3871_v31 }
 0x24c   : > { %v4327_v55 = vsel %vm8968_vm11, %v4322_v23, %v4326_v2  ;;  %4771 = vrot.lane.b32.xlu0 %v4731_v26, %s5595_s23  ;;  %v3839_v19 = vunpack.c.l.bf16 %v3831_v3  ;;  %v4450_v11 = vrot.slane %v4449_v13, 4  ;;  %v3686_v34 = vadd.f32 %v3678_v6, %v3638_v42  ;;  %v3868_v6 = vld [vmem:[#allocation3 + $0x9c] sm:$0x1] }
 0x24d   : > { %v4382_v7 = vmax.bf16 %v4327_v55, %v3831_v3  ;;  %v3723_v39 = vmul.f32 %v8886_v32, %v3702_v54  ;;  %v3900_v29 = vmul.f32 %v8924_v17, %v3879_v8  ;;  %v10265_v30 = vpack.c.bf16 %v8401_v57, %v8401_v57  ;;  %v9063_v57 = vld [vmem:[#allocation3 + $0xe0] sm:$0xf]  ;;  %v3965_v8 = vld [vmem:[#allocation3 + $0x10] sm:$0xf] }
 0x24e   : > { %v5317_v16 = vpack.c.bf16 %v8423_v43, %v8423_v43  ;;  %v4455_v41 = vsel %vm8968_vm11, %v4450_v11, %v4454_v5  ;;  %v3620_v2 = vunpack.c.l.bf16 %v3612_v25  ;;  %v3659_v9 = vunpack.c.h.bf16 %v3612_v25 }
 0x24f   : > { %v1529_v31 = vsel %vm6149_vm5, %v10265_v30, %v1528_v45  ;;  %v3760_v28 = vrot.slane %v3723_v39, 1  ;;  %v4510_v63 = vmax.bf16 %v4455_v41, %v4009_v4  ;;  %v3936_v42 = vrot.slane %v3900_v29, 1 }
 0x250   : > { %1530 = vst [vmem:[#allocation3 + $0x14] sm:$0x1] %v1529_v31  ;;  %2203 = vst.msk [vmem:[#allocation3 + $0x58] sm:$0xf] %vm1515_vm7, %v5317_v16  ;;  %v3699_v23 = vunpack.c.l.bf16 %v3691_v60  ;;  %v3796_v26 = vunpack.c.l.bf16 %v3788_v59  ;;  %v3635_v13 = vmul.f32 %v8870_v20, %v3620_v2  ;;  %v3675_v43 = vmul.f32 %v8876_v50, %v3659_v9 }
 0x251   : > { %v3761_v3 = vsel %vm3746_vm8, %v3759_v49, %v3760_v28  ;;  %v3716_v5 = vmul.f32 %v8886_v32, %v3620_v2  ;;  %v9070_v54 = vsel %vm3746_vm8, %v4113_v22, %v4114_v38  ;;  %v4518_v4 = vmax.bf16 %v4510_v63, %v4382_v7 }
 0x252   : > { %v3783_v45 = vadd.f32 %v3761_v3, %v3686_v34  ;;  %v3717_v55 = vmul.f32 %v8886_v32, %v3699_v23  ;;  %v3855_v25 = vmul.f32 %v8918_v14, %v3839_v19  ;;  %v3937_v49 = vsel %vm3746_vm8, %v3935_v62, %v3936_v42 }
 0x253   : > { %v3750_v11 = vrot.slane %v3716_v5, 1  ;;  %v3836_v39 = vunpack.c.l.bf16 %v9063_v57  ;;  %v4526_v60 = vunpack.c.l.bf16 %v4518_v4  ;;  %v3876_v22 = vunpack.c.l.bf16 %v3868_v6 }
 0x254   : > { %v3823_v29 = vadd.f32 %v9023_v58, %v3783_v45  ;;  %v3751_v30 = vrot.slane %v3717_v55, 1  ;;  %v3683_v38 = vadd.f32 %v3675_v43, %v3635_v13  ;;  %v3893_v7 = vmul.f32 %v8924_v17, %v3796_v26 }
 0x255   : > { %v3973_v34 = vunpack.c.l.bf16 %v3965_v8  ;;  %v4273_v31 = vshrl.u32 %v3788_v59, 16  ;;  %v4540_v16 = vmul.f32 %v9018_v51, %v4526_v60  ;;  %v3894_v62 = vmul.f32 %v8924_v17, %v3876_v22 }
 0x256   : > { %v3863_v19 = vadd.f32 %v3855_v25, %v3823_v29  ;;  %v3752_v47 = vsel %vm3746_vm8, %v3750_v11, %v3751_v30  ;;  %v3812_v28 = vmul.f32 %v8913_v46, %v3796_v26  ;;  %v3852_v2 = vmul.f32 %v8918_v14, %v3836_v39 }
 0x257   : > { %v3780_v41 = vadd.f32 %v3752_v47, %v3683_v38  ;;  %v3926_v58 = vrot.slane %v3893_v7, 1  ;;  %v9085_v9 = vld [vmem:[#allocation3 + $0x58] sm:$0xf]  ;;  %v4554_v63 = vadd.f32 %v9034_v36, %v4540_v16  ;;  %v3927_v23 = vrot.slane %v3894_v62, 1  ;;  %v4046_v5 = vld [vmem:[#allocation3 + $0x14] sm:$0x1] }
 0x258   : > { %v3959_v42 = vadd.f32 %v3937_v49, %v3863_v19  ;;  %v4014_v3 = vunpack.c.l.bf16 %v9085_v9  ;;  %v3989_v43 = vmul.f32 %v8956_v10, %v3973_v34  ;;  %v4275_v4 = vrot.slane %v4273_v31, 4  ;;  %v1544_v31 = vld [vmem:[#allocation3 + $0x34] sm:$0x1]  ;;  %v3616_v47 = vld [vmem:[#allocation3 + $0x28] ss:$72 sps:$4 sm:$0xff]  }
 0x259   : > { %v3820_v13 = vadd.f32 %v3812_v28, %v3780_v41  ;;  %v4276_v45 = vshll.u32 %v3788_v59, 16  ;;  %v4735_v55 = vpack.c.bf16 %v4554_v63, %v4554_v63  ;;  %v3928_v25 = vsel %vm3746_vm8, %v3926_v58, %v3927_v23  ;;  %v3695_v28 = vld [vmem:[#allocation3 + $0x2c] sm:$0x1] }
 0x25a   : > { %v4000_v26 = vadd.f32 %v9042_v61, %v3959_v42  ;;  %v4071_v11 = vmul.f32 %v8950_v0, %v3973_v34  ;;  %v4282_v29 = vshll.u32 %v3868_v6, 16  ;;  %v4401_v49 = vshrl.u32 %v3965_v8, 16 }
 0x25b   : > { %v3860_v39 = vadd.f32 %v3852_v2, %v3820_v13  ;;  %v4278_v60 = vrot.slane %v4276_v45, 5  ;;  %4779 = vrot.lane.b32.xlu0 %v4735_v55, %s5595_s23  ;;  %v4030_v30 = vmul.f32 %v8934_v56, %v4014_v3  ;;  %v4404_v22 = vshll.u32 %v3965_v8, 16  ;;  %v3792_v2 = vld [vmem:[#allocation3 + $0xb8] sm:$0xf]  ;;  %v3872_v55 = vld [vmem:[#allocation3 + $0xbc] sm:$0x1] }
 0x25c   : > { %v4410_v38 = vshll.u32 %v4046_v5, 16  ;;  %v4054_v7 = vunpack.c.l.bf16 %v4046_v5  ;;  %v4284_v19 = vrot.slane %v4282_v29, 5  ;;  %v4403_v61 = vrot.slane %v4401_v49, 4  ;;  %v3969_v49 = vld [vmem:[#allocation3 + $0x30] sm:$0xf] }
 0x25d   : > { %v3956_v59 = vadd.f32 %v3928_v25, %v3860_v39  ;;  %v4279_v16 = vor.u32 %v4278_v60, %v4275_v4  ;;  %v4041_v62 = vadd.f32 %v9046_v18, %v4000_v26  ;;  %v4406_v34 = vrot.slane %v4404_v22, 5 }
 0x25e   : > { %v4412_v41 = vrot.slane %v4410_v38, 5  ;;  %v4072_v6 = vmul.f32 %v8950_v0, %v4054_v7  ;;  %v1545_v8 = vsel %vm6149_vm5, %v5308_v21, %v1544_v31  ;;  %v5325_v42 = vpack.c.bf16 %v8854_v44, %v8854_v44 }
 0x25f   : > { %v3997_v58 = vadd.f32 %v3989_v43, %v3956_v59  ;;  %v4280_v63 = vrot.slane %v4279_v16, 4  ;;  %v4407_v23 = vor.u32 %v4406_v34, %v4403_v61  ;;  %1546 = vst [vmem:[#allocation3 + $0x34] sm:$0x1] %v1545_v8  ;;  %v3624_v18 = vunpack.c.l.bf16 %v3616_v47 }
 0x260   : > { %v4105_v3 = vrot.slane %v4072_v6, 1  ;;  %v3663_v13 = vunpack.c.h.bf16 %v3616_v47  ;;  %v4104_v5 = vrot.slane %v4071_v11, 1  ;;  %2219 = vst.msk [vmem:[#allocation3 + $0x78] sm:$0xf] %vm1515_vm7, %v5325_v42  ;;  %v3703_v43 = vunpack.c.l.bf16 %v3695_v28 }
 0x261   : > { %v4285_v4 = vsel %vm8968_vm11, %v4280_v63, %v4284_v19  ;;  %v3800_v45 = vunpack.c.l.bf16 %v3792_v2  ;;  %v9110_v21 = vadd.f32 %v9070_v54, %v4041_v62  ;;  %v9112_v44 = vadd.f32 %v4030_v30, %v3997_v58 }
 0x262   : > { %v4408_v26 = vrot.slane %v4407_v23, 4  ;;  %v3639_v25 = vmul.f32 %v8870_v20, %v3624_v18  ;;  %v4379_v11 = vmax.bf16 %v4285_v4, %v9063_v57  ;;  %v3679_v39 = vmul.f32 %v8876_v50, %v3663_v13 }
 0x263   : > { %v3724_v60 = vmul.f32 %v8886_v32, %v3624_v18  ;;  %v3725_v29 = vmul.f32 %v8886_v32, %v3703_v43  ;;  %v9122_v54 = vsel %vm3746_vm8, %v4104_v5, %v4105_v3  ;;  %v3840_v30 = vunpack.c.l.bf16 %v9107_v35 }
 0x264   : > { %v4413_v22 = vsel %vm8968_vm11, %v4408_v26, %v4412_v41  ;;  %v3880_v38 = vunpack.c.l.bf16 %v3872_v55  ;;  %v3816_v59 = vmul.f32 %v8913_v46, %v3800_v45  ;;  %v3687_v16 = vadd.f32 %v3679_v39, %v3639_v25  ;;  %v1532_v39 = vld [vmem:[#allocation3 + $0x1c] sm:$0x1] }
 0x265   : > { %v4507_v7 = vmax.bf16 %v4413_v22, %v9085_v9  ;;  %v3762_v31 = vrot.slane %v3724_v60, 1  ;;  %v3763_v57 = vrot.slane %v3725_v29, 1  ;;  %v3901_v19 = vmul.f32 %v8924_v17, %v3800_v45 }
 0x266   : > { %v3902_v61 = vmul.f32 %v8924_v17, %v3880_v38  ;;  %v3977_v47 = vunpack.c.l.bf16 %v3969_v49  ;;  %v4329_v41 = vshrl.u32 %v3792_v2, 16  ;;  %v4332_v6 = vshll.u32 %v3792_v2, 16  ;;  %v4050_v5 = vld [vmem:[#allocation3 + $0x34] sm:$0x1] }
 0x267   : > { %v4515_v62 = vmax.bf16 %v4507_v7, %v4379_v11  ;;  %v3764_v34 = vsel %vm3746_vm8, %v3762_v31, %v3763_v57  ;;  %v3856_v58 = vmul.f32 %v8918_v14, %v3840_v30  ;;  %v3938_v63 = vrot.slane %v3901_v19, 1  ;;  %v4010_v8 = vld [vmem:[#allocation3 + $0x78] sm:$0xf] }
 0x268   : > { %v3784_v28 = vadd.f32 %v3764_v34, %v3687_v16  ;;  %v3939_v9 = vrot.slane %v3902_v61, 1  ;;  %v3993_v23 = vmul.f32 %v8956_v10, %v3977_v47  ;;  %v4018_v3 = vunpack.c.l.bf16 %v4010_v8 }
 0x269   : > { %v4523_v42 = vunpack.c.l.bf16 %v4515_v62  ;;  %v4331_v18 = vrot.slane %v4329_v41, 4  ;;  %v4079_v4 = vmul.f32 %v8950_v0, %v3977_v47  ;;  %v4334_v43 = vrot.slane %v4332_v6, 5  ;;  %v2900_v47 = vld [vmem:[#allocation3 + $0xa4] sm:$0x1]  ;;  %v3613_v6 = vld [vmem:[#allocation3 + $0x10] ss:$72 sps:$4 sm:$0xff]  }
 0x26a   : > { %v3824_v13 = vadd.f32 %v3816_v59, %v3784_v28  ;;  %v4338_v45 = vshll.u32 %v3872_v55, 16  ;;  %v3940_v2 = vsel %vm3746_vm8, %v3938_v63, %v3939_v9  ;;  %v4034_v25 = vmul.f32 %v8934_v56, %v4018_v3  ;;  %v3966_v28 = vld [vmem:[#allocation3 + $0x18] sm:$0xf] }
 0x26b   : > { %v4537_v26 = vmul.f32 %v9018_v51, %v4523_v42  ;;  %v4457_v11 = vshrl.u32 %v3969_v49, 16  ;;  %v4335_v29 = vor.u32 %v4334_v43, %v4331_v18  ;;  %v4460_v30 = vshll.u32 %v3969_v49, 16  ;;  %v10267_v42 = vld [vmem:[#allocation126_spill] sm:$0xff] }
 0x26c   : > { %v3864_v60 = vadd.f32 %v3856_v58, %v3824_v13  ;;  %v4340_v22 = vrot.slane %v4338_v45, 5  ;;  %v4466_v31 = vshll.u32 %v4050_v5, 16  ;;  %v4058_v57 = vunpack.c.l.bf16 %v4050_v5 }
 0x26d   : > { %v4551_v38 = vadd.f32 %v9034_v36, %v4537_v26  ;;  %v4459_v7 = vrot.slane %v4457_v11, 4  ;;  %v4116_v16 = vrot.slane %v4079_v4, 1  ;;  %v4462_v55 = vrot.slane %v4460_v30, 5 }
 0x26e   : > { %v3960_v59 = vadd.f32 %v3940_v2, %v3864_v60  ;;  %v10266_v19 = vpack.c.bf16 %v8382_v37, %v8382_v37  ;;  %v4336_v34 = vrot.slane %v4335_v29, 4  ;;  %v4080_v41 = vmul.f32 %v8950_v0, %v4058_v57 }
 0x26f   : > { %v4732_v62 = vpack.c.bf16 %v4551_v38, %v4551_v38  ;;  %v5319_v49 = vpack.c.bf16 %v8397_v52, %v8397_v52  ;;  %v4463_v63 = vor.u32 %v4462_v55, %v4459_v7  ;;  %v4468_v9 = vrot.slane %v4466_v31, 5 }
 0x270   : > { %v1533_v61 = vsel %vm6149_vm5, %v10266_v19, %v1532_v39  ;;  %v4001_v58 = vadd.f32 %v3993_v23, %v3960_v59  ;;  %v5335_v37 = vpack.c.bf16 %v10267_v42, %v10267_v42  ;;  %v4341_v3 = vsel %vm8968_vm11, %v4336_v34, %v4340_v22 }
 0x271   : > { %1534 = vst [vmem:[#allocation3 + $0x1c] sm:$0x1] %v1533_v61  ;;  %4773 = vrot.lane.b32.xlu1 %v4732_v62, %s5595_s23  ;;  %v4117_v18 = vrot.slane %v4080_v41, 1  ;;  %2207 = vst.msk [vmem:[#allocation3 + $0x60] sm:$0xf] %vm1515_vm7, %v5319_v49  ;;  %v10268_v13 = vpack.c.bf16 %v8518_v40, %v8518_v40  ;;  %v3462_v23 = vadd.f32 %v8414_v48, %v8358_v27  ;;  %v4464_v4 = vrot.slane %v4463_v63, 4 }
 0x272   : > { %v4042_v5 = vadd.f32 %v4034_v25, %v4001_v58  ;;  %2899 = vst.msk [vmem:[#allocation3 + $0xa0] sm:$0xf] %vm1515_vm7, %v5335_v37  ;;  %v3621_v43 = vunpack.c.l.bf16 %v3613_v6  ;;  %v3974_v45 = vunpack.c.l.bf16 %v3966_v28  ;;  %v4415_v11 = vshrl.u32 %v3966_v28, 16  ;;  %v10269_v62 = vld [vmem:[#allocation132_spill] sm:$0xff] }
 0x273   : > { %v2901_v52 = vsel %vm6149_vm5, %v10268_v13, %v2900_v47  ;;  %v4118_v26 = vsel %vm3746_vm8, %v4116_v16, %v4117_v18  ;;  %v3480_v2 = vadd.f32 %v8844_v53, %v3462_v23  ;;  %v4418_v39 = vshll.u32 %v3966_v28, 16  ;;  %v3692_v47 = vld [vmem:[#allocation3 + $0x14] sm:$0x1] }
 0x274   : > { %2902 = vst [vmem:[#allocation3 + $0xa4] sm:$0x1] %v2901_v52  ;;  %v9163_v40 = vadd.f32 %v9122_v54, %v9112_v44  ;;  %v4383_v60 = vmax.bf16 %v4341_v3, %v9107_v35  ;;  %v4469_v27 = vsel %vm8968_vm11, %v4464_v4, %v4468_v9  ;;  %v9169_v48 = vmul.f32 %v8886_v32, %v3621_v43 }
 0x275   : > { %v4511_v25 = vmax.bf16 %v4469_v27, %v4010_v8  ;;  %v9171_v29 = vadd.f32 %v4118_v26, %v4042_v5  ;;  %v5353_v22 = vpack.c.bf16 %v3480_v2, %v3480_v2  ;;  %v3636_v30 = vmul.f32 %v8870_v20, %v3621_v43 }
 0x276   : > { %v9175_v38 = vmul.f32 %v8956_v10, %v3974_v45  ;;  %v4417_v44 = vrot.slane %v4415_v11, 4  ;;  %v4420_v54 = vrot.slane %v4418_v39, 5  ;;  %v3660_v31 = vunpack.c.h.bf16 %v3613_v6 }
 0x277   : > { %v4519_v35 = vmax.bf16 %v4511_v25, %v4383_v60  ;;  %3575 = vst.msk [vmem:[#allocation3 + $0xe8] sm:$0xf] %vm1515_vm7, %v5353_v22  ;;  %v4073_v59 = vmul.f32 %v8950_v0, %v3974_v45  ;;  %v3753_v8 = vrot.slane %v9169_v48, 1  ;;  %v5337_v34 = vpack.c.bf16 %v10269_v62, %v10269_v62  ;;  %v2904_v60 = vld [vmem:[#allocation3 + $0xac] sm:$0x1]  ;;  %v10271_v62 = vld [vmem:[#allocation91_spill] sm:$0xff] }
 0x278   : > { %v4047_v7 = vld [vmem:[#allocation3 + $0x1c] sm:$0x1]  ;;  %v4007_v55 = vld [vmem:[#allocation3 + $0x60] sm:$0xf]  ;;  %v4421_v19 = vor.u32 %v4420_v54, %v4417_v44  ;;  %v3676_v61 = vmul.f32 %v8876_v50, %v3660_v31  ;;  %v3700_v23 = vunpack.c.l.bf16 %v3692_v47 }
 0x279   : > { %v4055_v57 = vunpack.c.l.bf16 %v4047_v7  ;;  %v4424_v16 = vshll.u32 %v4047_v7, 16  ;;  %v4527_v41 = vunpack.c.l.bf16 %v4519_v35  ;;  %v3789_v49 = vld [vmem:[#allocation3 + $0xa0] sm:$0xf]  ;;  %v4015_v28 = vunpack.c.l.bf16 %v4007_v55  ;;  %2903 = vst.msk [vmem:[#allocation3 + $0xa8] sm:$0xf] %vm1515_vm7, %v5337_v34 }
 0x27a   : > { %v3797_v9 = vunpack.c.l.bf16 %v3789_v49  ;;  %v4287_v42 = vshrl.u32 %v3789_v49, 16  ;;  %v4290_v37 = vshll.u32 %v3789_v49, 16  ;;  %v4422_v52 = vrot.slane %v4421_v19, 4  ;;  %v3614_v27 = vld [vmem:[#allocation3 + $0x18] ss:$72 sps:$4 sm:$0xff]  }
 0x27b   : > { %v3869_v6 = vld [vmem:[#allocation3 + $0xa4] sm:$0x1]  ;;  %v4074_v58 = vmul.f32 %v8950_v0, %v4055_v57  ;;  %v4426_v63 = vrot.slane %v4424_v16, 5  ;;  %v4541_v18 = vmul.f32 %v9018_v51, %v4527_v41  ;;  %v9187_v5 = vmul.f32 %v8934_v56, %v4015_v28 }
 0x27c   : > { %v4296_v3 = vshll.u32 %v3869_v6, 16  ;;  %v4107_v4 = vrot.slane %v4073_v59, 1  ;;  %v4289_v43 = vrot.slane %v4287_v42, 4  ;;  %v4292_v45 = vrot.slane %v4290_v37, 5  ;;  %v3693_v59 = vld [vmem:[#allocation3 + $0x1c] sm:$0x1] }
 0x27d   : > { %v4108_v13 = vrot.slane %v4074_v58, 1  ;;  %v4555_v26 = vadd.f32 %v9034_v36, %v4541_v18  ;;  %v3813_v2 = vmul.f32 %v8913_v46, %v3797_v9  ;;  %v3895_v11 = vmul.f32 %v8924_v17, %v3797_v9  ;;  %v10272_v34 = vld [vmem:[#allocation196_spill] sm:$0xff] }
 0x27e   : > { %v4427_v39 = vsel %vm8968_vm11, %v4422_v52, %v4426_v63  ;;  %v3829_v48 = vld [vmem:[#allocation3 + $0xe8] sm:$0xf]  ;;  %v4293_v22 = vor.u32 %v4292_v45, %v4289_v43  ;;  %v4298_v7 = vrot.slane %v4296_v3, 5  ;;  %v3684_v31 = vadd.f32 %v3676_v61, %v3636_v30 }
 0x27f   : > { %v9195_v25 = vsel %vm3746_vm8, %v4107_v4, %v4108_v13  ;;  %v4508_v44 = vmax.bf16 %v4427_v39, %v4007_v55  ;;  %v4736_v54 = vpack.c.bf16 %v4555_v26, %v4555_v26  ;;  %v3719_v35 = vmul.f32 %v8886_v32, %v3700_v23  ;;  %v3967_v13 = vld [vmem:[#allocation3 + $0x20] sm:$0xf]  ;;  %v9216_v39 = vld [vmem:[#allocation3 + $0x68] sm:$0xf] }
 0x280   : > { %v3877_v57 = vunpack.c.l.bf16 %v3869_v6  ;;  %v4294_v16 = vrot.slane %v4293_v22, 4  ;;  %v10270_v19 = vpack.c.bf16 %v8386_v33, %v8386_v33  ;;  %v3464_v41 = vadd.f32 %v10272_v34, %v10271_v62  ;;  %v3790_v9 = vld [vmem:[#allocation3 + $0xa8] sm:$0xf] }
 0x281   : > { %v3622_v49 = vunpack.c.l.bf16 %v3614_v27  ;;  %4781 = vrot.lane.b32.xlu1 %v4736_v54, %s5595_s23  ;;  %v3837_v55 = vunpack.c.l.bf16 %v3829_v48  ;;  %v3754_v28 = vrot.slane %v3719_v35, 1  ;;  %v3661_v61 = vunpack.c.h.bf16 %v3614_v27 }
 0x282   : > { %v2905_v47 = vsel %vm6149_vm5, %v10270_v19, %v2904_v60  ;;  %v3896_v30 = vmul.f32 %v8924_v17, %v3877_v57  ;;  %v4299_v6 = vsel %vm8968_vm11, %v4294_v16, %v4298_v7  ;;  %v3482_v33 = vadd.f32 %v8844_v53, %v3464_v41  ;;  %v4048_v60 = vld [vmem:[#allocation3 + $0x24] sm:$0x1] }
 0x283   : > { %2906 = vst [vmem:[#allocation3 + $0xac] sm:$0x1] %v2905_v47  ;;  %v3637_v58 = vmul.f32 %v8870_v20, %v3622_v49  ;;  %v3701_v63 = vunpack.c.l.bf16 %v3693_v59  ;;  %v4380_v42 = vmax.bf16 %v4299_v6, %v3829_v48  ;;  %v3755_v37 = vsel %vm3746_vm8, %v3753_v8, %v3754_v28 }
 0x284   : > { %v3930_v3 = vrot.slane %v3896_v30, 1  ;;  %v3677_v18 = vmul.f32 %v8876_v50, %v3661_v61  ;;  %v3781_v52 = vadd.f32 %v3755_v37, %v3684_v31  ;;  %v5355_v23 = vpack.c.bf16 %v3482_v33, %v3482_v33 }
 0x285   : > { %v3720_v4 = vmul.f32 %v8886_v32, %v3622_v49  ;;  %v3721_v43 = vmul.f32 %v8886_v32, %v3701_v63  ;;  %v3853_v45 = vmul.f32 %v8918_v14, %v3837_v55  ;;  %v3929_v53 = vrot.slane %v3895_v11, 1 }
 0x286   : > { %v4516_v26 = vmax.bf16 %v4508_v44, %v4380_v42  ;;  %v3798_v20 = vunpack.c.l.bf16 %v3790_v9  ;;  %v3821_v27 = vadd.f32 %v3813_v2, %v3781_v52  ;;  %3579 = vst.msk [vmem:[#allocation3 + $0xf0] sm:$0xf] %vm1515_vm7, %v5355_v23  ;;  %v3975_v48 = vunpack.c.l.bf16 %v3967_v13 }
 0x287   : > { %v3756_v8 = vrot.slane %v3720_v4, 1  ;;  %v3757_v50 = vrot.slane %v3721_v43, 1  ;;  %v3931_v7 = vsel %vm3746_vm8, %v3929_v53, %v3930_v3  ;;  %v3685_v54 = vadd.f32 %v3677_v18, %v3637_v58 }
 0x288   : > { %v4524_v22 = vunpack.c.l.bf16 %v4516_v26  ;;  %v3897_v32 = vmul.f32 %v8924_v17, %v3798_v20  ;;  %v3861_v31 = vadd.f32 %v3853_v45, %v3821_v27  ;;  %v4016_v35 = vunpack.c.l.bf16 %v9216_v39 }
 0x289   : > { %v3758_v11 = vsel %vm3746_vm8, %v3756_v8, %v3757_v50  ;;  %v4056_v57 = vunpack.c.l.bf16 %v4048_v60  ;;  %v3814_v16 = vmul.f32 %v8913_v46, %v3798_v20  ;;  %v3991_v34 = vmul.f32 %v8956_v10, %v3975_v48 }
 0x28a   : > { %v3870_v44 = vld [vmem:[#allocation3 + $0xac] sm:$0x1]  ;;  %v4538_v2 = vmul.f32 %v9018_v51, %v4524_v22  ;;  %v3782_v59 = vadd.f32 %v3758_v11, %v3685_v54  ;;  %v3957_v47 = vadd.f32 %v3931_v7, %v3861_v31  ;;  %v3932_v62 = vrot.slane %v3897_v32, 1 }
 0x28b   : > { %v3878_v19 = vunpack.c.l.bf16 %v3870_v44  ;;  %v4075_v41 = vmul.f32 %v8950_v0, %v3975_v48  ;;  %v4076_v28 = vmul.f32 %v8950_v0, %v4056_v57  ;;  %v4301_v30 = vshrl.u32 %v3790_v9, 16 }
 0x28c   : > { %v4552_v49 = vadd.f32 %v9034_v36, %v4538_v2  ;;  %v3998_v61 = vadd.f32 %v9175_v38, %v3957_v47  ;;  %v3822_v6 = vadd.f32 %v3814_v16, %v3782_v59  ;;  %v4032_v33 = vmul.f32 %v8934_v56, %v4016_v35 }
 0x28d   : > { %v3898_v55 = vmul.f32 %v8924_v17, %v3878_v19  ;;  %v4304_v46 = vshll.u32 %v3790_v9, 16  ;;  %v3830_v63 = vld [vmem:[#allocation3 + $0xf0] sm:$0xf]  ;;  %v4303_v37 = vrot.slane %v4301_v30, 4  ;;  %v4310_v10 = vshll.u32 %v3870_v44, 16 }
 0x28e   : > { %v4733_v58 = vpack.c.bf16 %v4552_v49, %v4552_v49  ;;  %v4039_v3 = vadd.f32 %v9187_v5, %v3998_v61  ;;  %v3838_v18 = vunpack.c.l.bf16 %v3830_v63  ;;  %v4110_v52 = vrot.slane %v4075_v41, 1  ;;  %v3617_v44 = vld [vmem:[#allocation3 + $0x30] ss:$72 sps:$4 sm:$0xff]  }
 0x28f   : > { %v3933_v42 = vrot.slane %v3898_v55, 1  ;;  %v4306_v23 = vrot.slane %v4304_v46, 5  ;;  %v4111_v0 = vrot.slane %v4076_v28, 1  ;;  %v4429_v38 = vshrl.u32 %v3967_v13, 16  ;;  %v3696_v28 = vld [vmem:[#allocation3 + $0x34] sm:$0x1] }
 0x290   : > { %4775 = vrot.lane.b32.xlu0 %v4733_v58, %s5595_s23  ;;  %v4432_v4 = vshll.u32 %v3967_v13, 16  ;;  %v3854_v56 = vmul.f32 %v8918_v14, %v3838_v18  ;;  %v4312_v43 = vrot.slane %v4310_v10, 5  ;;  %v4438_v45 = vshll.u32 %v4048_v60, 16 }
 0x291   : > { %v3934_v17 = vsel %vm3746_vm8, %v3932_v62, %v3933_v42  ;;  %v4307_v9 = vor.u32 %v4306_v23, %v4303_v37  ;;  %v4431_v53 = vrot.slane %v4429_v38, 4  ;;  %v4148_v5 = vadd.f32 %v9007_v12, %v9163_v40  ;;  %v9264_v23 = vld [vmem:[%s9658_s2] ss:$0 sm:$0xff] }
 0x292   : > { %v4434_v26 = vrot.slane %v4432_v4, 5  ;;  %v4151_v20 = vadd.f32 %v9007_v12, %v9110_v21  ;;  %v4135_v27 = vadd.f32 %v9195_v25, %v4039_v3  ;;  %v3862_v8 = vadd.f32 %v3854_v56, %v3822_v6  ;;  %v9272_v56 = vld [vmem:[%s9658_s2 + $0x2] ss:$0 sm:$0xff] }
 0x293   : > { %v4308_v50 = vrot.slane %v4307_v9, 4  ;;  %v4152_v13 = vadd.f32 %v9007_v12, %v9171_v29  ;;  %v4112_v14 = vsel %vm3746_vm8, %v4110_v52, %v4111_v0  ;;  %v4440_v22 = vrot.slane %v4438_v45, 5  ;;  %v9267_v0 = vld [vmem:[#allocation3 + $0xc0] sm:$0xf]  ;;  %v9275_v9 = vld [vmem:[#allocation3 + $0x108] sm:$0xf] }
 0x294   : > { %v4435_v48 = vor.u32 %v4434_v26, %v4431_v53  ;;  %v4164_v60 = vmul.f32 %v4148_v5, %v4148_v5  ;;  %v3958_v7 = vadd.f32 %v3934_v17, %v3862_v8  ;;  %v9246_v40 = vmul.f32 0.5, %v4148_v5  ;;  %v9283_v53 = vld [vmem:[%s9658_s2 + $0x1] ss:$0 sm:$0xff] }
 0x295   : > { %v4313_v54 = vsel %vm8968_vm11, %v4308_v50, %v4312_v43  ;;  %v4167_v32 = vmul.f32 %v4151_v20, %v4151_v20  ;;  %v9248_v25 = vmul.f32 0.5, %v4151_v20  ;;  %v4168_v11 = vmul.f32 %v4152_v13, %v4152_v13 }
 0x296   : > { %v4436_v21 = vrot.slane %v4435_v48, 4  ;;  %v4172_v31 = vmul.f32 %v4164_v60, %v4148_v5  ;;  %v3999_v35 = vadd.f32 %v3991_v34, %v3958_v7  ;;  %v4381_v29 = vmax.bf16 %v4313_v54, %v3830_v63 }
 0x297   : > { %v4175_v57 = vmul.f32 %v4167_v32, %v4151_v20  ;;  %v4149_v2 = vadd.f32 %v9007_v12, %v4135_v27  ;;  %v9253_v19 = vmul.f32 0.5, %v4152_v13  ;;  %v4176_v47 = vmul.f32 %v4168_v11, %v4152_v13  ;;  %v9297_v32 = vld [vmem:[#allocation3 + $0x80] sm:$0xf] }
 0x298   : > { %v4441_v59 = vsel %vm8968_vm11, %v4436_v21, %v4440_v22  ;;  %v4180_v16 = vmul.f32 0.044715, %v4172_v31  ;;  %v4040_v62 = vadd.f32 %v4032_v33, %v3999_v35  ;;  %v3625_v55 = vunpack.c.l.bf16 %v3617_v44  ;;  %v9305_v35 = vld [vmem:[#allocation3 + $0x3c] sm:$0x1] }
 0x299   : > { %v4509_v41 = vmax.bf16 %v4441_v59, %v9216_v39  ;;  %v4183_v49 = vmul.f32 0.044715, %v4175_v57  ;;  %v4184_v61 = vmul.f32 0.044715, %v4176_v47  ;;  %v4165_v34 = vmul.f32 %v4149_v2, %v4149_v2  ;;  %v9311_v57 = vld [vmem:[%s9658_s2 + $0x5] ss:$0 sm:$0xff] }
 0x29a   : > { %v4188_v30 = vadd.f32 %v4180_v16, %v4148_v5  ;;  %v3664_v6 = vunpack.c.h.bf16 %v3617_v44  ;;  %v4136_v46 = vadd.f32 %v4112_v14, %v4040_v62  ;;  %v9256_v42 = vmul.f32 0.5, %v4149_v2  ;;  %v9286_v5 = vld [vmem:[#allocation3 + $0xc4] sm:$0x1] }
 0x29b   : > { %v4517_v58 = vmax.bf16 %v4509_v41, %v4381_v29  ;;  %v4191_v63 = vadd.f32 %v4183_v49, %v4151_v20  ;;  %v4192_v10 = vadd.f32 %v4184_v61, %v4152_v13  ;;  %v4173_v3 = vmul.f32 %v4165_v34, %v4149_v2  ;;  %v9288_v20 = vld [vmem:[#allocation3 + $0x38] sm:$0xf]  ;;  %v9320_v62 = vld [vmem:[%s9658_s2 + $0x4] ss:$0 sm:$0xff]  ;;  %v9328_v61 = vld [vmem:[%s9658_s2 + $0x8] ss:$0 sm:$0xff] }
 0x29c   : > { %v4196_v37 = vmul.f32 0.7978846, %v4188_v30  ;;  %v3704_v18 = vunpack.c.l.bf16 %v3696_v28  ;;  %v9259_v33 = vadd.f32 %v9007_v12, %v4136_v46  ;;  %v3640_v17 = vmul.f32 %v9264_v23, %v3625_v55 }
 0x29d   : > { %v4525_v39 = vunpack.c.l.bf16 %v4517_v58  ;;  %v4199_v52 = vmul.f32 0.7978846, %v4191_v63  ;;  %v4200_v38 = vmul.f32 0.7978846, %v4192_v10  ;;  %v4181_v4 = vmul.f32 0.044715, %v4173_v3 }
 0x29e   : > { %5466 = vtanh.f32 %v4196_v37  ;;  %v3726_v12 = vmul.f32 %v9272_v56, %v3625_v55  ;;  %v4166_v45 = vmul.f32 %v9259_v33, %v9259_v33  ;;  %v3680_v26 = vmul.f32 %v9283_v53, %v3664_v6  ;;  %v3618_v6 = vld [vmem:[#allocation3 + $0x38] ss:$72 sps:$4 sm:$0xff]   ;;  %v9334_v63 = vld [vmem:[%s9658_s2 + $0x6] ss:$0 sm:$0xff]  ;;  %v9340_v10 = vld [vmem:[%s9658_s2 + $0x7] ss:$0 sm:$0xff] }
 0x29f   : > { %v4539_v43 = vmul.f32 %v9018_v51, %v4525_v39  ;;  %5468 = vtanh.f32 %v4199_v52  ;;  %v4189_v27 = vadd.f32 %v4181_v4, %v4149_v2  ;;  %v3727_v8 = vmul.f32 %v9272_v56, %v3704_v18 }
 0x2a0   : > { %5470 = vtanh.f32 %v4200_v38  ;;  %v3765_v51 = vrot.slane %v3726_v12, 1  ;;  %v4174_v13 = vmul.f32 %v4166_v45, %v9259_v33  ;;  %v3801_v14 = vunpack.c.l.bf16 %v9267_v0 }
 0x2a1   : > { %v4553_v50 = vadd.f32 %v9034_v36, %v4539_v43  ;;  %v3841_v48 = vunpack.c.l.bf16 %v9275_v9  ;;  %v4197_v22 = vmul.f32 0.7978846, %v4189_v27  ;;  %v3766_v60 = vrot.slane %v3727_v8, 1  ;;  %v9302_v36 = vld [vmem:[%s9658_s2 + $0x3] ss:$0 sm:$0xff] }
 0x2a2   : > { %v3881_v7 = vunpack.c.l.bf16 %v9286_v5  ;;  %v3978_v54 = vunpack.c.l.bf16 %v9288_v20  ;;  %v4182_v31 = vmul.f32 0.044715, %v4174_v13  ;;  %v3688_v11 = vadd.f32 %v3680_v26, %v3640_v17  ;;  %v3697_v13 = vld [vmem:[#allocation3 + $0x3c] sm:$0x1] }
 0x2a3   : > { %v4734_v21 = vpack.c.bf16 %v4553_v50, %v4553_v50  ;;  %v3817_v44 = vmul.f32 %v9302_v36, %v3801_v14  ;;  %5472 = vtanh.f32 %v4197_v22  ;;  %v3767_v29 = vsel %vm3746_vm8, %v3765_v51, %v3766_v60 }
 0x2a4   : > { %v3903_v2 = vmul.f32 %v9311_v57, %v3801_v14  ;;  %v3904_v59 = vmul.f32 %v9311_v57, %v3881_v7  ;;  %v4190_v16 = vadd.f32 %v4182_v31, %v9259_v33  ;;  %v3785_v47 = vadd.f32 %v3767_v29, %v3688_v11  ;;  %v9353_v7 = vld [vmem:[%s9659_s3 + $0x2] ss:$0 sm:$0xff] }
 0x2a5   : > { %4777 = vrot.lane.b32.xlu1 %v4734_v21, %s5595_s23  ;;  %v3857_v41 = vmul.f32 %v9320_v62, %v3841_v48  ;;  %v4019_v49 = vunpack.c.l.bf16 %v9297_v32  ;;  %v4059_v30 = vunpack.c.l.bf16 %v9305_v35  ;;  %v4081_v34 = vmul.f32 %v9328_v61, %v3978_v54 }
 0x2a6   : > { %v3941_v55 = vrot.slane %v3903_v2, 1  ;;  %v3942_v28 = vrot.slane %v3904_v59, 1  ;;  %v4198_v46 = vmul.f32 0.7978846, %v4190_v16  ;;  %v3825_v58 = vadd.f32 %v3817_v44, %v3785_v47 }
 0x2a7   : > { %v3994_v37 = vmul.f32 %v9334_v63, %v3978_v54  ;;  %v4035_v3 = vmul.f32 %v9340_v10, %v4019_v49  ;;  %v4082_v52 = vmul.f32 %v9328_v61, %v4059_v30  ;;  %v4119_v17 = vrot.slane %v4081_v34, 1 }
 0x2a8   : > { %v5467_v18 = vpop.eup %5466  ;;  %v3943_v39 = vsel %vm3746_vm8, %v3941_v55, %v3942_v28  ;;  %v4163_v38 = vmul.f32 %v9026_v24, %v9026_v24  ;;  %5474 = vtanh.f32 %v4198_v46  ;;  %v3865_v43 = vadd.f32 %v3857_v41, %v3825_v58  ;;  %v9370_v28 = vld [vmem:[#allocation3 + $0xc8] sm:$0xf]  ;;  %v9374_v58 = vld [vmem:[#allocation3 + $0x110] sm:$0xf] }
 0x2a9   : > { %v5469_v4 = vpop.eup %5468  ;;  %v4212_v12 = vadd.f32 1.0, %v5467_v18  ;;  %v3626_v45 = vunpack.c.l.bf16 %v3618_v6  ;;  %v4120_v8 = vrot.slane %v4082_v52, 1  ;;  %v3665_v50 = vunpack.c.h.bf16 %v3618_v6 }
 0x2aa   : > { %v5471_v26 = vpop.eup %5470  ;;  %v4215_v27 = vadd.f32 1.0, %v5469_v4  ;;  %v4171_v51 = vmul.f32 %v4163_v38, %v9026_v24  ;;  %v3961_v22 = vadd.f32 %v3943_v39, %v3865_v43  ;;  %v3705_v2 = vunpack.c.l.bf16 %v3697_v13  ;;  %v9397_v13 = vld [vmem:[#allocation3 + $0x40] sm:$0xf] }
 0x2ab   : > { %v4220_v14 = vmul.f32 %v4212_v12, %v9246_v40  ;;  %v4216_v48 = vadd.f32 1.0, %v5471_v26  ;;  %v3641_v60 = vmul.f32 %v9264_v23, %v3626_v45  ;;  %v4121_v21 = vsel %vm3746_vm8, %v4119_v17, %v4120_v8  ;;  %v9363_v23 = vld [vmem:[%s9659_s3 + $0x3] ss:$0 sm:$0xff]  ;;  %v9378_v17 = vld [vmem:[#allocation3 + $0xcc] sm:$0x1] }
 0x2ac   : > { %v4223_v54 = vmul.f32 %v4215_v27, %v9248_v25  ;;  %v4179_v31 = vmul.f32 0.044715, %v4171_v51  ;;  %v3681_v11 = vmul.f32 %v9283_v53, %v3665_v50  ;;  %v4002_v29 = vadd.f32 %v3994_v37, %v3961_v22 }
 0x2ad   : > { %v4234_v44 = vmul.f32 %v9353_v7, %v4220_v14  ;;  %v4224_v40 = vmul.f32 %v4216_v48, %v9253_v19  ;;  %v5473_v59 = vpop.eup %5472  ;;  %v3728_v41 = vmul.f32 %v9272_v56, %v3626_v45  ;;  %v3729_v6 = vmul.f32 %v9272_v56, %v3705_v2 }
 0x2ae   : > { %v4237_v16 = vmul.f32 %v9353_v7, %v4223_v54  ;;  %v4187_v25 = vadd.f32 %v4179_v31, %v9026_v24  ;;  %v3689_v47 = vadd.f32 %v3681_v11, %v3641_v60  ;;  %v4213_v19 = vadd.f32 1.0, %v5473_v59  ;;  %v9402_v60 = vld [vmem:[#allocation3 + $0x88] sm:$0xf]  ;;  %v9407_v11 = vld [vmem:[#allocation3 + $0x44] sm:$0x1] }
 0x2af   : > { %v4248_v53 = vadd.f32 %v9363_v23, %v4234_v44  ;;  %v4238_v49 = vmul.f32 %v9353_v7, %v4224_v40  ;;  %v4043_v55 = vadd.f32 %v4035_v3, %v4002_v29  ;;  %v3768_v46 = vrot.slane %v3728_v41, 1 }
 0x2b0   : > { %v4251_v30 = vadd.f32 %v9363_v23, %v4237_v16  ;;  %v4195_v34 = vmul.f32 0.7978846, %v4187_v25  ;;  %v4221_v39 = vmul.f32 %v4213_v19, %v9256_v42  ;;  %v4158_v3 = vmul.f32 0.5, %v9259_v33  ;;  %v9387_v42 = vld [vmem:[%s9659_s3 + $0x1] ss:$0 sm:$0xff] }
 0x2b1   : > { %v4724_v37 = vpack.c.bf16 %v4248_v53, %v4248_v53  ;;  %v4252_v18 = vadd.f32 %v9363_v23, %v4238_v49  ;;  %v4139_v52 = vadd.f32 %v4121_v21, %v4043_v55  ;;  %v3769_v4 = vrot.slane %v3729_v6, 1 }
 0x2b2   : > { %v4727_v38 = vpack.c.bf16 %v4251_v30, %v4251_v30  ;;  %v3802_v12 = vunpack.c.l.bf16 %v9370_v28  ;;  %v5475_v43 = vpop.eup %5474  ;;  %v4235_v45 = vmul.f32 %v9353_v7, %v4221_v39  ;;  %v3842_v33 = vunpack.c.l.bf16 %v9374_v58 }
 0x2b3   : > { %4749 = vrot.lane.b32.xlu1 %v4724_v37, %s5596_s8  ;;  %v4728_v56 = vpack.c.bf16 %v4252_v18, %v4252_v18  ;;  %v9390_v26 = vadd.f32 %v9387_v42, %v4139_v52  ;;  %v4214_v27 = vadd.f32 1.0, %v5475_v43  ;;  %v3770_v8 = vsel %vm3746_vm8, %v3768_v46, %v3769_v4 }
 0x2b4   : > { %4755 = vrot.lane.b32.xlu0 %v4727_v38, %s5596_s8  ;;  %v3818_v51 = vmul.f32 %v9302_v36, %v3802_v12  ;;  %v3882_v50 = vunpack.c.l.bf16 %v9378_v17  ;;  %v4249_v14 = vadd.f32 %v9363_v23, %v4235_v45  ;;  %5476 = vtanh.f32 %v4195_v34 }
 0x2b5   : > { %v4169_v48 = vmul.f32 %v9390_v26, %v9390_v26  ;;  %v3786_v22 = vadd.f32 %v3770_v8, %v3689_v47  ;;  %v4222_v54 = vmul.f32 %v4214_v27, %v4158_v3  ;;  %v3858_v21 = vmul.f32 %v9320_v62, %v3842_v33 }
 0x2b6   : > { %v3905_v31 = vmul.f32 %v9311_v57, %v3802_v12  ;;  %v3906_v36 = vmul.f32 %v9311_v57, %v3882_v50  ;;  %v4725_v44 = vpack.c.bf16 %v4249_v14, %v4249_v14  ;;  %v3979_v2 = vunpack.c.l.bf16 %v9397_v13 }
 0x2b7   : > { %4757 = vrot.lane.b32.xlu1 %v4728_v56, %s5596_s8  ;;  %v4177_v40 = vmul.f32 %v4169_v48, %v9390_v26  ;;  %v3826_v29 = vadd.f32 %v3818_v51, %v3786_v22  ;;  %v4236_v59 = vmul.f32 %v9353_v7, %v4222_v54  ;;  %v4020_v62 = vunpack.c.l.bf16 %v9402_v60 }
 0x2b8   : > { %v3944_v16 = vrot.slane %v3905_v31, 1  ;;  %v3945_v25 = vrot.slane %v3906_v36, 1  ;;  %4751 = vrot.lane.b32.xlu0 %v4725_v44, %s5596_s8  ;;  %v3995_v41 = vmul.f32 %v9334_v63, %v3979_v2  ;;  %v4060_v53 = vunpack.c.l.bf16 %v9407_v11 }
 0x2b9   : > { %v4185_v47 = vmul.f32 0.044715, %v4177_v40  ;;  %v3866_v57 = vadd.f32 %v3858_v21, %v3826_v29  ;;  %v4250_v49 = vadd.f32 %v9363_v23, %v4236_v59  ;;  %v4036_v55 = vmul.f32 %v9340_v10, %v4020_v62 }
 0x2ba   : > { %v3946_v19 = vsel %vm3746_vm8, %v3944_v16, %v3945_v25  ;;  %v4083_v30 = vmul.f32 %v9328_v61, %v3979_v2  ;;  %v4084_v46 = vmul.f32 %v9328_v61, %v4060_v53  ;;  %v4343_v37 = vshrl.u32 %v9267_v0, 16  ;;  %v5464_v25 = vld [vmem:[%s9660_s4] sm:$0xff]  }
 0x2bb   : > { %v4193_v34 = vadd.f32 %v4185_v47, %v9390_v26  ;;  %v3962_v6 = vadd.f32 %v3946_v19, %v3866_v57  ;;  %v4726_v18 = vpack.c.bf16 %v4250_v49, %v4250_v49  ;;  %v4346_v63 = vshll.u32 %v9267_v0, 16  ;;  %5373 = vmatprep.subr.bf16.mxu0 %v5464_v25  ;;  %5385 = vmatprep.subr.bf16.mxu1 %v5464_v25 }
 0x2bc   : > { %v4122_v39 = vrot.slane %v4083_v30, 1  ;;  %v4352_v52 = vshll.u32 %v9286_v5, 16  ;;  %v4123_v4 = vrot.slane %v4084_v46, 1  ;;  %v4345_v10 = vrot.slane %v4343_v37, 4  ;;  %5374 = vmatpush3.bf16.msra.mxu0 %v5464_v25  ;;  %5387 = vmatpush3.bf16.msra.mxu1 %v5464_v25 }
 0x2bd   : > { %v4201_v38 = vmul.f32 0.7978846, %v4193_v34  ;;  %v4003_v3 = vadd.f32 %v3995_v41, %v3962_v6  ;;  %4753 = vrot.lane.b32.xlu1 %v4726_v18, %s5596_s8  ;;  %v4348_v12 = vrot.slane %v4346_v63, 5  ;;  %v4471_v43 = vshrl.u32 %v9288_v20, 16 }
 0x2be   : > { %v5477_v56 = vpop.eup %5476  ;;  %v4124_v45 = vsel %vm3746_vm8, %v4122_v39, %v4123_v4  ;;  %v4354_v27 = vrot.slane %v4352_v52, 5  ;;  %v4474_v0 = vshll.u32 %v9288_v20, 16  ;;  %v4357_v51 = vshrl.u32 %v9370_v28, 16 }
 0x2bf   : > { %5478 = vtanh.f32 %v4201_v38  ;;  %v4044_v61 = vadd.f32 %v4036_v55, %v4003_v3  ;;  %v4349_v33 = vor.u32 %v4348_v12, %v4345_v10  ;;  %v4473_v8 = vrot.slane %v4471_v43, 4 }
 0x2c0   : > { %v4360_v50 = vshll.u32 %v9370_v28, 16  ;;  %v4476_v48 = vrot.slane %v4474_v0, 5  ;;  %v4480_v22 = vshll.u32 %v9305_v35, 16  ;;  %v4485_v36 = vshrl.u32 %v9397_v13, 16 }
 0x2c1   : > { %v4140_v5 = vadd.f32 %v4124_v45, %v4044_v61  ;;  %v4350_v14 = vrot.slane %v4349_v33, 4  ;;  %v4211_v44 = vadd.f32 1.0, %v5477_v56  ;;  %v4359_v40 = vrot.slane %v4357_v51, 4  ;;  %v5570_v56 = vld [vmem:[%s9659_s3 + $0x4] ss:$0 sm:$0xff] }
 0x2c2   : > { %v4477_v31 = vor.u32 %v4476_v48, %v4473_v8  ;;  %v4362_v29 = vrot.slane %v4360_v50, 5  ;;  %v4482_v2 = vrot.slane %v4480_v22, 5  ;;  %v4487_v59 = vrot.slane %v4485_v36, 4  ;;  %v9484_v22 = vld [vmem:[%s5646_s26 + $0x1d0] sm:$0xff]  ;;  %v9491_v36 = vld [vmem:[%s5646_s26 + $0x278] sm:$0x3] }
 0x2c3   : > { %v9434_v54 = vadd.f32 %v9387_v42, %v4140_v5  ;;  %v4355_v21 = vsel %vm8968_vm11, %v4350_v14, %v4354_v27  ;;  %v4488_v35 = vshll.u32 %v9397_v13, 16  ;;  %v4155_v62 = vmul.f32 0.5, %v9026_v24 }
 0x2c4   : > { %v4478_v28 = vrot.slane %v4477_v31, 4  ;;  %v4384_v16 = vmax.bf16 %v4355_v21, %v9275_v9  ;;  %v4363_v19 = vor.u32 %v4362_v29, %v4359_v40  ;;  %v4494_v13 = vshll.u32 %v9407_v11, 16  ;;  %v9498_v29 = vld [vmem:[%s5646_s26 + $0x1d8] sm:$0x3] }
 0x2c5   : > { %v4170_v20 = vmul.f32 %v9434_v54, %v9434_v54  ;;  %v4490_v57 = vrot.slane %v4488_v35, 5  ;;  %v4161_v9 = vmul.f32 0.5, %v9390_v26  ;;  %v4219_v30 = vmul.f32 %v4211_v44, %v4155_v62 }
 0x2c6   : > { %v4483_v47 = vsel %vm8968_vm11, %v4478_v28, %v4482_v2  ;;  %v4366_v46 = vshll.u32 %v9378_v17, 16  ;;  %v4364_v39 = vrot.slane %v4363_v19, 4  ;;  %v4496_v63 = vrot.slane %v4494_v13, 5  ;;  %v9507_v28 = vpop.permute.xlu0 %5405  ;;  %v5253_v19 = vld [vmem:[%s5646_s26 + $0x51] sm:$0xff] }
 0x2c7   : > { %v4178_v42 = vmul.f32 %v4170_v20, %v9434_v54  ;;  %v4512_v49 = vmax.bf16 %v4483_v47, %v9297_v32  ;;  %v4491_v34 = vor.u32 %v4490_v57, %v4487_v59  ;;  %v5465_v32 = vld [vmem:[%s9660_s4 + $0x8] sm:$0xff]   ;;  %v4233_v52 = vmul.f32 %v9353_v7, %v4219_v30 }
 0x2c8   : > { %5375 = vmatprep.subr.bf16.mxu0 %v5465_v32  ;;  %5386 = vmatprep.subr.bf16.mxu1 %v5465_v32  ;;  %v4368_v3 = vrot.slane %v4366_v46, 5  ;;  %v4162_v51 = vmul.f32 0.5, %v9434_v54 }
 0x2c9   : > { %v5479_v41 = vpop.eup %5478  ;;  %v4186_v53 = vmul.f32 0.044715, %v4178_v42  ;;  %v4520_v6 = vmax.bf16 %v4512_v49, %v4384_v16  ;;  %v4492_v11 = vrot.slane %v4491_v34, 4  ;;  %5376 = vmatpush3.bf16.msra.mxu0 %v5465_v32  ;;  %5388 = vmatpush3.bf16.msra.mxu1 %v5465_v32  ;;  %v4247_v43 = vadd.f32 %v9363_v23, %v4233_v52  ;;  %v5254_v34 = vld [vmem:[%s5646_s26 + $0x61] sm:$0xff] }
 0x2ca   : > { %v4217_v55 = vadd.f32 1.0, %v5479_v41  ;;  %v4369_v10 = vsel %vm8968_vm11, %v4364_v39, %v4368_v3  ;;  %v5416_v59 = vpop.permute.xlu0 %5415 }
 0x2cb   : > { %v4194_v24 = vadd.f32 %v4186_v53, %v9434_v54  ;;  %v4528_v38 = vunpack.c.l.bf16 %v4520_v6  ;;  %v4497_v17 = vsel %vm8968_vm11, %v4492_v11, %v4496_v63  ;;  %v4385_v33 = vmax.bf16 %v4369_v10, %v9374_v58  ;;  %v9480_v58 = vld [vmem:[%s9657_s1 + $0x5] ss:$0 sm:$0xff] }
 0x2cc   : > { %v4225_v37 = vmul.f32 %v4217_v55, %v4161_v9  ;;  %v4513_v45 = vmax.bf16 %v4497_v17, %v9402_v60  ;;  %v4723_v27 = vpack.c.bf16 %v4247_v43, %v4247_v43 }
 0x2cd   : > { %v4202_v18 = vmul.f32 0.7978846, %v4194_v24  ;;  %v4542_v61 = vmul.f32 %v5570_v56, %v4528_v38 }
 0x2ce   : > { %v4239_v26 = vmul.f32 %v9353_v7, %v4225_v37  ;;  %v4521_v0 = vmax.bf16 %v4513_v45, %v4385_v33  ;;  %v9511_v42 = vpop.permute.xlu0 %5425 }
 0x2cf   : > { %5480 = vtanh.f32 %v4202_v18  ;;  %v4556_v8 = vadd.f32 %v5571_v1, %v4542_v61 }
 0x2d0   : > { %v4253_v4 = vadd.f32 %v9363_v23, %v4239_v26  ;;  %v4529_v14 = vunpack.c.l.bf16 %v4521_v0  ;;  %v5251_v0 = vld [vmem:[%s5646_s26 + $0x31] sm:$0xff] }
 0x2d1   : > { %v4737_v60 = vpack.c.bf16 %v4556_v8, %v4556_v8  ;;  %v5408_v8 = vunpack.i.h.bf16 %v9507_v28 }
 0x2d2   : > { %v4729_v12 = vpack.c.bf16 %v4253_v4, %v4253_v4  ;;  %v4543_v31 = vmul.f32 %v5570_v56, %v4529_v14  ;;  %v5436_v25 = vpop.permute.xlu0 %5435 }
 0x2d3   : > { %v5437_v14 = vunpack.i.l.bf16 %v5436_v25 }
 0x2d4   : > { %4759 = vrot.lane.b32.xlu0 %v4729_v12, %s5596_s8  ;;  %v4557_v20 = vadd.f32 %v5571_v1, %v4543_v31  ;;  %v5417_v1 = vunpack.i.l.bf16 %v5416_v59 }
 0x2d6   : > { %v4738_v40 = vpack.c.bf16 %v4557_v20, %v4557_v20  ;;  %v9515_v47 = vpop.permute.xlu0 %5445  ;;  %v4692_v31 = vsel %vm364_vm0, %v5251_v0, %v5417_v1  ;;  %v5427_v20 = vunpack.i.l.bf16 %v9511_v42  ;;  %v2944_v1 = vld [vmem:[#allocation2 + $0x268] sm:$0x1] }
 0x2d8   : > { %4747 = vrot.lane.b32.xlu0 %v4723_v27, %s5596_s8  ;;  %v5418_v27 = vunpack.i.h.bf16 %v5416_v59 }
 0x2d9   : > { %v5481_v5 = vpop.eup %5480 }
 0x2da   : > { %v4218_v50 = vadd.f32 1.0, %v5481_v5  ;;  %v9519_v41 = vpop.permute.xlu0 %5455  ;;  %v5252_v5 = vld [vmem:[%s5646_s26 + $0x41] sm:$0xff] }
 0x2dc   : > { %v4226_v48 = vmul.f32 %v4218_v50, %v4162_v51  ;;  %4783 = vrot.lane.b32.xlu0 %v4737_v60, %s5595_s23  ;;  %v5250_v51 = vld [vmem:[%s5646_s26 + $0x21] sm:$0xff]  ;;  %v5407_v50 = vunpack.i.l.bf16 %v9507_v28  ;;  %v5438_v60 = vunpack.i.h.bf16 %v5436_v25  ;;  %v4700_v28 = vsel %vm385_vm2, %v4692_v31, %v5437_v14 }
 0x2dd   : > { %v5448_v25 = vunpack.i.h.bf16 %v9515_v47 }
 0x2de   : > { %v4240_v21 = vmul.f32 %v9353_v7, %v4226_v48  ;;  %v9503_v7 = vld [vmem:[%s5646_s26 + $0x270] sm:$0xff]  ;;  %v9524_v13 = vpop.permute.xlu0 %4771 }
 0x2df   : > { %v5249_v48 = vld [vmem:[%s5646_s26 + $0x11] sm:$0xff] }
 0x2e0   : > { %v4254_v54 = vadd.f32 %v9363_v23, %v4240_v21  ;;  %626 = vrot.lane.b32.xlu0 %v9484_v22, %s5591_s27  ;;  %v5411_v23 = vpop.permute.xlu1 %5410  ;;  %v4693_v21 = vsel %vm364_vm0, %v5252_v5, %v5418_v27  ;;  %v4690_v59 = vsel %vm364_vm0, %v5249_v48, %v5407_v50  ;;  %v5574_v50 = vld [vmem:[%s9657_s1] ss:$0 sm:$0xff]  ;;  %v3066_v48 = vld [vmem:[#allocation2 + $0x269] sm:$0x1] }
 0x2e1   : > { %v5412_v49 = vunpack.i.l.bf16 %v5411_v23  ;;  %v5413_v9 = vunpack.i.h.bf16 %v5411_v23  ;;  %v5457_v23 = vunpack.i.l.bf16 %v9519_v41 }
 0x2e2   : > { %v4730_v44 = vpack.c.bf16 %v4254_v54, %v4254_v54  ;;  %v4780_v32 = vpop.permute.xlu0 %4779  ;;  %v5428_v54 = vunpack.i.h.bf16 %v9511_v42 }
 0x2e3   : > { %v4694_v24 = vsel %vm364_vm0, %v5253_v19, %v5412_v49  ;;  %v4695_v37 = vsel %vm364_vm0, %v5254_v34, %v5413_v9  ;;  %v5447_v19 = vunpack.i.l.bf16 %v9515_v47  ;;  %v4698_v9 = vsel %vm385_vm2, %v4690_v59, %v5427_v20 }
 0x2e4   : > { %4761 = vrot.lane.b32.xlu1 %v4730_v44, %s5596_s8  ;;  %770 = vrot.lane.b32.xlu0 %v9491_v36, %s5591_s27  ;;  %v9509_v2 = vpop.permute.xlu1 %5420  ;;  %v4691_v44 = vsel %vm364_vm0, %v5250_v51, %v5408_v8  ;;  %v4709_v42 = vsel %vm4706_vm12, %v4700_v28, %v5457_v23  ;;  %v3005_v8 = vld [vmem:[#allocation2 + $0x1c9] sm:$0x1]  ;;  %v2309_v51 = vld [vmem:[#allocation2 + $0x268] sm:$0x1] }
 0x2e5   : > { %v4699_v49 = vsel %vm385_vm2, %v4691_v44, %v5428_v54  ;;  %v4707_v34 = vsel %vm4706_vm12, %v4698_v9, %v5447_v19  ;;  %v2370_v9 = vld [vmem:[#allocation2 + $0x1c9] sm:$0x1] }
 0x2e8   : > { %4785 = vrot.lane.b32.xlu1 %v4738_v40, %s5595_s23  ;;  %v5431_v35 = vpop.permute.xlu1 %5430  ;;  %v5458_v40 = vunpack.i.h.bf16 %v9519_v41  ;;  %v4708_v41 = vsel %vm4706_vm12, %v4699_v49, %v5448_v25 }
 0x2e9   : > { %v5432_v55 = vunpack.i.l.bf16 %v5431_v35  ;;  %v5433_v6 = vunpack.i.h.bf16 %v5431_v35  ;;  %v4701_v35 = vsel %vm385_vm2, %v4693_v21, %v5438_v60  ;;  %v2969_v60 = vmul.f32 %v5574_v50, %v2944_v1  ;;  %v2248_v21 = vld [vmem:[#allocation2 + $0x1c8] sm:$0x1] }
 0x2eb   : > { %v4702_v11 = vsel %vm385_vm2, %v4694_v24, %v5432_v55  ;;  %v4703_v63 = vsel %vm385_vm2, %v4695_v37, %v5433_v6  ;;  %v4710_v55 = vsel %vm4706_vm12, %v4701_v35, %v5458_v40  ;;  %v4717_v6 = vpack.c.bf16 %v4709_v42, %v4709_v42  ;;  %v3127_v40 = vld [vmem:[#allocation2 + $0x138] sm:$0x1]  ;;  %v5577_v42 = vld [vmem:[%s9657_s1 + $0x3] ss:$0 sm:$0xff] }
 0x2ec   : > { %628 = vrot.lane.b32.xlu1 %v9498_v29, %s5591_s27  ;;  %v9513_v16 = vpop.permute.xlu1 %5440  ;;  %v4718_v24 = vpack.c.bf16 %v4710_v55, %v4710_v55  ;;  %v3152_v55 = vmul.f32 %v5577_v42, %v3127_v40 }
 0x2f0   : > { %768 = vrot.lane.b32.xlu1 %v9503_v7, %s5591_s27  ;;  %v5451_v62 = vpop.permute.xlu1 %5450  ;;  %s251_s27 = scalar_lea.vmem %s9662_s6, %s5294_s17 }
 0x2f1   : > { %v5452_v46 = vunpack.i.l.bf16 %v5451_v62  ;;  %v5453_v18 = vunpack.i.h.bf16 %v5451_v62 }
 0x2f3   : > { %v4711_v26 = vsel %vm4706_vm12, %v4702_v11, %v5452_v46  ;;  %v4712_v38 = vsel %vm4706_vm12, %v4703_v63, %v5453_v18  ;;  %v4715_v18 = vpack.c.bf16 %v4707_v34, %v4707_v34  ;;  %v5423_v63 = vunpack.i.h.bf16 %v9509_v2 }
 0x2f4   : > { %v9517_v57 = vpop.permute.xlu1 %5460  ;;  %v4719_v17 = vpack.c.bf16 %v4711_v26, %v4711_v26  ;;  %v4720_v12 = vpack.c.bf16 %v4712_v38, %v4712_v38  ;;  %v5422_v38 = vunpack.i.l.bf16 %v9509_v2 }
 0x2f8   : > { %v9521_v53 = vpop.permute.xlu1 %4773 }
 0x2fc   : > { %v4782_v30 = vpop.permute.xlu1 %4781 }
 0x302   : > { %v4776_v52 = vpop.permute.xlu0 %4775 }
 0x317   : > { %v4778_v39 = vpop.permute.xlu1 %4777 }
 0x325   : > { %v4750_v3 = vpop.permute.xlu1 %4749 }
 0x326   : > { %v4756_v4 = vpop.permute.xlu0 %4755 }
 0x327   : > { %v4802_v10 = vsel %vm4787_vm13, %v4719_v17, %v4756_v4 }
 0x328   : > { %v4822_v56 = vsel %vm4812_vm14, %v4802_v10, %v4780_v32  ;;  %v4716_v32 = vpack.c.bf16 %v4708_v41, %v4708_v41 }
 0x329   : > { %v4758_v43 = vpop.permute.xlu1 %4757 }
 0x32a   : > { %v4805_v61 = vsel %vm4787_vm13, %v4720_v12, %v4758_v43  ;;  %v4752_v62 = vpop.permute.xlu0 %4751  ;;  %v4793_v11 = vsel %vm4787_vm13, %v4716_v32, %v4750_v3  ;;  %v5255_v12 = vld [vmem:[%s5646_s26 + $0x71] sm:$0xff]  ;;  %v5256_v43 = vld [vmem:[%s5646_s26 + $0x81] sm:$0xff] }
 0x32b   : > { %v4824_v45 = vsel %vm4812_vm14, %v4805_v61, %v4782_v30  ;;  %v4796_v47 = vsel %vm4787_vm13, %v4717_v6, %v4752_v62  ;;  %v4816_v3 = vsel %vm4812_vm14, %v4793_v11, %v9521_v53  ;;  %v5462_v53 = vunpack.i.l.bf16 %v9517_v57  ;;  %v2431_v32 = vld [vmem:[#allocation2 + $0x98] sm:$0x1]  ;;  %v3188_v11 = vld [vmem:[#allocation2 + $0x99] sm:$0x1] }
 0x32c   : > { %v5284_v33 = vcombine.low %v4822_v56, %v4824_v45  ;;  %v4818_v4 = vsel %vm4812_vm14, %v4796_v47, %v4776_v52  ;;  %v5443_v45 = vunpack.i.h.bf16 %v9513_v16  ;;  %v4696_v52 = vsel %vm364_vm0, %v5255_v12, %v5422_v38 }
 0x32d   : > { %v2273_v62 = vmul.f32 %v5574_v50, %v2248_v21 }
 0x32e   : > { %5381 = vmatprep.mubr.msk.bf16.mxu1 %vm4872_vm15, %v5284_v33  ;;  %v5442_v33 = vunpack.i.l.bf16 %v9513_v16 }
 0x32f   : > { %v4754_v30 = vpop.permute.xlu1 %4753 }
 0x330   : > { %v4799_v37 = vsel %vm4787_vm13, %v4718_v24, %v4754_v30  ;;  %v4704_v0 = vsel %vm385_vm2, %v4696_v52, %v5442_v33 }
 0x331   : > { %v4820_v17 = vsel %vm4812_vm14, %v4799_v37, %v4778_v39  ;;  %v4697_v39 = vsel %vm364_vm0, %v5256_v43, %v5423_v63  ;;  %v4713_v54 = vsel %vm4706_vm12, %v4704_v0, %v5462_v53  ;;  %v2492_v63 = vld [vmem:[#allocation2 + $0x138] sm:$0x1] }
 0x332   : > { %v5283_v2 = vcombine.low %v4818_v4, %v4820_v17  ;;  %v4705_v16 = vsel %vm385_vm2, %v4697_v39, %v5443_v45  ;;  %v4721_v49 = vpack.c.bf16 %v4713_v54, %v4713_v54  ;;  %v2456_v17 = vmul.f32 %v5577_v42, %v2431_v32  ;;  %v5579_v39 = vld [vmem:[%s9657_s1 + $0x6] ss:$0 sm:$0xff]  ;;  %v5281_v42 = vld [vmem:[%s9661_s5] ss:$0 sm:$0xff] }
 0x346   : > { %v4760_v46 = vpop.permute.xlu0 %4759 }
 0x347   : > { %v4808_v30 = vsel %vm4787_vm13, %v4721_v49, %v4760_v46  ;;  %v5578_v46 = vld [vmem:[%s9657_s1 + $0x4] ss:$0 sm:$0xff] }
 0x348   : > { %v2517_v43 = vmul.f32 %v5578_v46, %v2492_v63 }
 0x34a   : > { %v4748_v26 = vpop.permute.xlu0 %4747 }
 0x34b   : > { %v4790_v10 = vsel %vm4787_vm13, %v4715_v18, %v4748_v26 }
 0x34c   : > { %v4814_v56 = vsel %vm4812_vm14, %v4790_v10, %v9524_v13  ;;  %v5463_v13 = vunpack.i.h.bf16 %v9517_v57  ;;  %v5575_v57 = vld [vmem:[%s9657_s1 + $0x1] ss:$0 sm:$0xff]  ;;  %v3213_v10 = vmul.f32 %v5578_v46, %v3188_v11 }
 0x34d   : > { %v5282_v61 = vcombine.low %v4814_v56, %v4816_v3  ;;  %v3030_v31 = vmul.f32 %v5575_v57, %v3005_v8  ;;  %v2334_v20 = vmul.f32 %v5575_v57, %v2309_v51  ;;  %v3249_v56 = vld [vmem:[#allocation2 + $0x139] sm:$0x1]  ;;  %v5581_v57 = vld [vmem:[%s9657_s1 + $0x8] ss:$0 sm:$0xff] }
 0x34e   : > { %v4784_v27 = vpop.permute.xlu0 %4783  ;;  %v4714_v44 = vsel %vm4706_vm12, %v4705_v16, %v5463_v13 }
 0x34f   : > { %5377 = vmatprep.mubr.msk.bf16.mxu0 %vm4872_vm15, %v5282_v61  ;;  %v3048_v28 = vadd.f32 %v3030_v31, %v2969_v60  ;;  %v4722_v19 = vpack.c.bf16 %v4714_v44, %v4714_v44  ;;  %v2352_v41 = vadd.f32 %v2334_v20, %v2273_v62 }
 0x350   : > { %5378 = vmatmul.mubr.msk.bf16.vlgmr.msra.gmra.mrb[0].mxu0 %vm4872_vm15, %v5283_v2  ;;  %v2553_v2 = vld [vmem:[#allocation2 + $0x99] sm:$0x1] }
 0x351   : > { %v2578_v8 = vmul.f32 %v9480_v58, %v2553_v2 }
 0x352   : > { %v627_v5 = vpop.permute.xlu0 %626 }
 0x353   : > { %v668_v14 = vsel %vm364_vm0, %v9484_v22, %v627_v5  ;;  %v5576_v22 = vld [vmem:[%s9657_s1 + $0x2] ss:$0 sm:$0xff] }
 0x354   : > { %689 = vst.msk [vmem:[#allocation2 + $0x1d0] sm:$0xff] %vm385_vm2, %v668_v14  ;;  %v3091_v35 = vmul.f32 %v5576_v22, %v3066_v48  ;;  %v2395_v47 = vmul.f32 %v5576_v22, %v2370_v9  ;;  %v5580_v48 = vld [vmem:[%s9657_s1 + $0x7] ss:$0 sm:$0xff]  ;;  %v3600_v22 = vld [vmem:[#allocation3 + $0x11c] sm:$0x1] }
 0x356   : > { %v4762_v23 = vpop.permute.xlu1 %4761  ;;  %v771_v59 = vpop.permute.xlu0 %770  ;;  %v3109_v6 = vadd.f32 %v3091_v35, %v3048_v28  ;;  %v2413_v38 = vadd.f32 %v2395_v47, %v2352_v41 }
 0x357   : > { %v811_v25 = vsel %vm364_vm0, %v9491_v36, %v771_v59  ;;  %v4811_v34 = vsel %vm4787_vm13, %v4722_v19, %v4762_v23  ;;  %v4826_v36 = vsel %vm4812_vm14, %v4808_v30, %v4784_v27  ;;  %v3274_v27 = vmul.f32 %v9480_v58, %v3249_v56  ;;  %v5582_v59 = vld [vmem:[%s9659_s3] ss:$0 sm:$0xff] }
 0x358   : > { %832 = vst.msk [vmem:[#allocation2 + $0x278] sm:$0x3] %vm387_vm1, %v811_v25  ;;  %v3170_v26 = vadd.f32 %v3152_v55, %v3109_v6  ;;  %v2474_v45 = vadd.f32 %v2456_v17, %v2413_v38  ;;  %v2924_v25 = vld [vmem:[#allocation3 + $0xd4] sm:$0x1] }
 0x35a   : > { %v4786_v24 = vpop.permute.xlu1 %4785  ;;  %v3231_v61 = vadd.f32 %v3213_v10, %v3170_v26 }
 0x35b   : > { %v4828_v37 = vsel %vm4812_vm14, %v4811_v34, %v4786_v24 }
 0x35c   : > { %v5285_v18 = vcombine.low %v4826_v36, %v4828_v37  ;;  %v3292_v13 = vadd.f32 %v3274_v27, %v3231_v61 }
 0x35e   : > { %v629_v4 = vpop.permute.xlu1 %628  ;;  %5382 = vmatmul.mubr.msk.bf16.vlgmr.msra.gmra.mrb[0].mxu1 %vm4872_vm15, %v5285_v18 }
 0x35f   : > { %v669_v12 = vsel %vm364_vm0, %v9498_v29, %v629_v4  ;;  %v3310_v3 = vld [vmem:[#allocation2 + $0x278] sm:$0x1]  ;;  %v2535_v29 = vadd.f32 %v2517_v43, %v2474_v45  ;;  %v3432_v0 = vld [vmem:[#allocation2 + $0x279] sm:$0x1] }
 0x360   : > { %690 = vst.msk [vmem:[#allocation2 + $0x1d8] sm:$0x3] %vm387_vm1, %v669_v12  ;;  %v3335_v52 = vmul.f32 %v5579_v39, %v3310_v3  ;;  %v2677_v53 = vld [vmem:[#allocation2 + $0x278] sm:$0x1]  ;;  %v3457_v31 = vmul.f32 %v5581_v57, %v3432_v0 }
 0x361   : > { %v2596_v50 = vadd.f32 %v2578_v8, %v2535_v29  ;;  %v2702_v21 = vmul.f32 %v5580_v48, %v2677_v53 }
 0x362   : > { %v769_v33 = vpop.permute.xlu1 %768  ;;  %v3353_v51 = vadd.f32 %v3335_v52, %v3292_v13 }
 0x363   : > { %v810_v1 = vsel %vm364_vm0, %v9503_v7, %v769_v33 }
 0x364   : > { %831 = vst.msk [vmem:[#allocation2 + $0x270] sm:$0xff] %vm385_vm2, %v810_v1 }
 0x367   : > { %v2615_v16 = vld [vmem:[#allocation2 + $0x1d8] sm:$0x1]  ;;  %v2738_v5 = vld [vmem:[#allocation2 + $0x1d9] sm:$0x1] }
 0x368   : > { %v2640_v60 = vmul.f32 %v5579_v39, %v2615_v16  ;;  %v3371_v14 = vld [vmem:[#allocation2 + $0x1d9] sm:$0x1]  ;;  %v2763_v58 = vmul.f32 %v5581_v57, %v2738_v5 }
 0x369   : > { %v3396_v7 = vmul.f32 %v5580_v48, %v3371_v14 }
 0x36a   : > { %v2658_v54 = vadd.f32 %v2640_v60, %v2596_v50 }
 0x36b   : > { %v3414_v44 = vadd.f32 %v3396_v7, %v3353_v51 }
 0x36c   : > { %v2720_v20 = vadd.f32 %v2702_v21, %v2658_v54 }
 0x36d   : > { %v3475_v40 = vadd.f32 %v3457_v31, %v3414_v44 }
 0x36e   : > { %v2781_v23 = vadd.f32 %v2763_v58, %v2720_v20 }
 0x36f   : > { %v3493_v28 = vadd.f32 %v5582_v59, %v3475_v40 }
 0x370   : > { %v2799_v35 = vadd.f32 %v5582_v59, %v2781_v23 }
 0x371   : > { %v5366_v62 = vpack.c.bf16 %v3493_v28, %v3493_v28 }
 0x372   : > { %v5348_v49 = vpack.c.bf16 %v2799_v35, %v2799_v35 }
 0x373   : > { %v3601_v19 = vsel %vm6149_vm5, %v5366_v62, %v3600_v22 }
 0x374   : > { %v2925_v9 = vsel %vm6149_vm5, %v5348_v49, %v2924_v25  ;;  %3602 = vst [vmem:[#allocation3 + $0x11c] sm:$0x1] %v3601_v19 }
 0x375   : > { %2926 = vst [vmem:[#allocation3 + $0xd4] sm:$0x1] %v2925_v9 }
 0x423   : > { %v5379_v55 = vpop.f32.mrb[0].mxu0 }
 0x424   : > { %v4928_v41 = vadd.f32 %v5379_v55, %v5281_v42  ;;  %v4919_v30 = vpop.f32.mrb[1].mxu0 }
 0x425   : > { %v4920_v34 = vadd.f32 %v5281_v42, %v4919_v30  ;;  %v5380_v24 = vpop.f32.mrb[2].mxu0 }
 0x426   : > { %4952 = vst.msk [vmem:[%s251_s27 + $0x10] sm:$0xff] %vm385_vm2, %v4928_v41  ;;  %v4931_v15 = vadd.f32 %v5380_v24, %v5281_v42  ;;  %v4922_v6 = vpop.f32.mrb[3].mxu0 }
 0x427   : > { %4950 = vst.msk [vmem:[%s251_s27] sm:$0xff] %vm385_vm2, %v4920_v34  ;;  %v4923_v32 = vadd.f32 %v5281_v42, %v4922_v6 }
 0x428   : > { %4953 = vst.msk [vmem:[%s251_s27 + $0x18] sm:$0xff] %vm385_vm2, %v4931_v15 }
 0x429   : > { %4951 = vst.msk [vmem:[%s251_s27 + $0x8] sm:$0xff] %vm385_vm2, %v4923_v32 }
 0x431   : > { %v5383_v36 = vpop.f32.mrb[0].mxu1 }
 0x432   : > { %v4944_v37 = vadd.f32 %v5383_v36, %v5281_v42  ;;  %v4935_v47 = vpop.f32.mrb[1].mxu1 }
 0x433   : > { %v4936_v11 = vadd.f32 %v5281_v42, %v4935_v47  ;;  %v5384_v18 = vpop.f32.mrb[2].mxu1 }
 0x434   : > { %4956 = vst.msk [vmem:[%s251_s27 + $0x30] sm:$0xff] %vm385_vm2, %v4944_v37  ;;  %v4947_v63 = vadd.f32 %v5384_v18, %v5281_v42  ;;  %v4938_v26 = vpop.f32.mrb[3].mxu1 }
 0x435   : > { %4954 = vst.msk [vmem:[%s251_s27 + $0x20] sm:$0xff] %vm385_vm2, %v4936_v11  ;;  %v4939_v38 = vadd.f32 %v5281_v42, %v4938_v26 }
 0x436   : > { %4957 = vst.msk [vmem:[%s251_s27 + $0x38] sm:$0xff] %vm385_vm2, %v4947_v63 }
 0x437   : > { %4955 = vst.msk [vmem:[%s251_s27 + $0x28] sm:$0xff] %vm385_vm2, %v4939_v38 }
 0x438 PF: > { %s16_s21 = sadd.s32 1, %s5589_s21  }
 0x439   : > { %p13_p4 = scmp.ge.s32.totalorder %s16_s21, 4  }
 0x43b   :  { %15 = sbr.rel (!%p13_p4) target bundleno = 1 (0x1), region = 114 }

</bundles_post_ra>
